<compile_context>
chip_gen: v5e
topology: v5e:2x2
jax: 0.10.0
libtpu: 0.0.40
codegen_flags: <defaults>
</compile_context>

<pallas_src>
import functools
import math

import jax
import jax.numpy as jnp
from jax import lax
from jax.experimental import pallas as pl
from jax.experimental.pallas import tpu as pltpu


# ---------------------------------------------------------------------------
# In-kernel helpers (traced inside the Pallas kernel)
# ---------------------------------------------------------------------------
def _gn_silu(x, group_avg, gamma, beta, eps):
    """GroupNorm (affine) + SiLU on a [rows, W*C] fp32 value.

    group_avg : [W*C, W*C] fp32, precomputed host-side; row j / col k are
                connected (value 1/(D*H*W*cg)) iff their channels share a
                GroupNorm group.  Group stats then come from two tiny
                [1,K]@[K,K] matmuls -- no minor-dim reshapes in the kernel.
    gamma/beta: [1, W*C] fp32 (channel params tiled across W host-side).
    """
    s1 = jnp.sum(x, axis=0, keepdims=True)                                # [1, K]
    mean = jnp.dot(s1, group_avg, preferred_element_type=jnp.float32)     # [1, K]
    d = x - mean
    # two-pass variance (review correctness concern: avoid E[x^2]-E[x]^2)
    var = jnp.dot(jnp.sum(d * d, axis=0, keepdims=True), group_avg,
                  preferred_element_type=jnp.float32)                     # [1, K]
    y = d * (lax.rsqrt(var + eps) * gamma) + beta
    return y * jax.nn.sigmoid(y)                                          # SiLU


def _conv_banded(pad_ref, w_ref, D, H):
    """3x3x3 'same' conv as 9 banded matmuls, value-carried fp32 accumulator.

    pad_ref: [D+2, H+2, W*Cin] bf16 VMEM scratch (zero border along D/H; the
             W boundary is handled inside the banded weights).
    w_ref  : [9, W*Cin, W*Cout] bf16 banded weight matrices (one per (dz,dy)).
    Returns [D*H, W*Cout] fp32 (caller stores it exactly once).
    """
    K = pad_ref.shape[-1]
    acc = None
    t = 0
    for dz in range(3):
        for dy in range(3):
            op = pad_ref[dz:dz + D, dy:dy + H, :].reshape(D * H, K)   # bf16
            p = jnp.dot(op, w_ref[t], preferred_element_type=jnp.float32)
            acc = p if acc is None else acc + p
            t += 1
    return acc


def _res_block_kernel(x_ref,
                      ga1_ref, g1_ref, be1_ref,
                      wr_ref, br_ref,
                      w1_ref, b1_ref,
                      ga2_ref, g2_ref, be2_ref,
                      w2_ref, b2_ref,
                      o_ref,
                      pad1_ref, pad2_ref,
                      *, D, H, W, eps):
    cin_w = x_ref.shape[-1]      # W*Cin
    cout_w = o_ref.shape[-1]     # W*Cout

    x = x_ref[0].astype(jnp.float32)                              # [D*H, W*Cin]

    # residual = resConv(x): block-diagonal 1x1x1 conv, fp32, computed in-kernel
    # (never round-tripped through HBM).
    residual = jnp.dot(x, wr_ref[...],
                       preferred_element_type=jnp.float32) + br_ref[...]

    # h = silu(norm1(x))
    h = _gn_silu(x, ga1_ref[...], g1_ref[...], be1_ref[...], eps)

    # zero-pad along D/H into bf16 VMEM scratch (single interior store)
    pad1_ref[...] = jnp.zeros_like(pad1_ref)
    pad1_ref[1:D + 1, 1:H + 1, :] = h.astype(jnp.bfloat16).reshape(D, H, cin_w)

    # h = conv1(h) + bias
    h = _conv_banded(pad1_ref, w1_ref, D, H) + b1_ref[...]

    # h = silu(norm2(h))
    # TODO(synk): nn.Dropout(p=0.0) is the identity in inference; omitted.
    h = _gn_silu(h, ga2_ref[...], g2_ref[...], be2_ref[...], eps)

    pad2_ref[...] = jnp.zeros_like(pad2_ref)
    pad2_ref[1:D + 1, 1:H + 1, :] = h.astype(jnp.bfloat16).reshape(D, H, cout_w)

    # out = conv2(h) + bias + residual   (single lane-dense store)
    o_ref[0] = _conv_banded(pad2_ref, w2_ref, D, H) + b2_ref[...] + residual


# ---------------------------------------------------------------------------
# Host-side parameter packing
# ---------------------------------------------------------------------------
def _banded_conv_weights(w, W):
    """PyTorch Conv3d weight [O, I, 3, 3, 3] -> [9, W*I, W*O] banded matrices.

    Banded[t][wi*I+ci, wo*O+co] = w[co, ci, dz, dy, wi-wo+1] when the W offset
    is in {0,1,2}, else 0 (this bakes the zero padding along W into the
    weights, so the VMEM scratch only needs padding along D and H).
    """
    O, I = w.shape[0], w.shape[1]
    wt = jnp.transpose(w, (2, 3, 4, 1, 0))                # [dz, dy, dx, I, O]
    wi = jnp.arange(W)[:, None]
    wo = jnp.arange(W)[None, :]
    dx = wi - wo + 1                                       # [W, W]
    valid = (dx >= 0) & (dx <= 2)
    taps = wt[:, :, jnp.clip(dx, 0, 2)]                    # [3, 3, W, W, I, O]
    taps = jnp.where(valid[None, None, :, :, None, None], taps, 0.0)
    taps = jnp.transpose(taps, (0, 1, 2, 4, 3, 5))         # [dz, dy, wi, I, wo, O]
    return taps.reshape(9, W * I, W * O)


def _group_avg_matrix(C, W, num_groups, rows):
    """[W*C, W*C] matrix s.t. (per-minor-pos sums) @ M -> per-group means."""
    cg = C // num_groups
    gid = (jnp.arange(W * C) % C) // cg
    eq = (gid[:, None] == gid[None, :]).astype(jnp.float32)
    return eq / float(rows * W * cg)


# ---------------------------------------------------------------------------
# ResBlockXY forward
# ---------------------------------------------------------------------------
def res_block_xy_forward(x, params, num_groups, eps=1e-6):
    """x: [B, Cin, D, H, W] (NCDHW) -> [B, Cout, D, H, W]."""
    B, Cin, D, H, W = x.shape
    Cout = params['conv1_w'].shape[0]
    DH = D * H
    assert Cin % num_groups == 0 and Cout % num_groups == 0, \
        "GroupNorm requires channels divisible by num_groups"

    # lane-dense layout [B, D*H, W*C]; single relayout at entry / exit
    x_cl = jnp.transpose(x, (0, 2, 3, 4, 1)).reshape(B, DH, W * Cin)

    ga1 = _group_avg_matrix(Cin, W, num_groups, DH)
    ga2 = _group_avg_matrix(Cout, W, num_groups, DH)
    g1 = jnp.tile(params['norm1_g'].astype(jnp.float32), W).reshape(1, W * Cin)
    be1 = jnp.tile(params['norm1_b'].astype(jnp.float32), W).reshape(1, W * Cin)
    g2 = jnp.tile(params['norm2_g'].astype(jnp.float32), W).reshape(1, W * Cout)
    be2 = jnp.tile(params['norm2_b'].astype(jnp.float32), W).reshape(1, W * Cout)

    w_res = jnp.transpose(params['resConv_w'].reshape(Cout, Cin))      # [Cin, Cout]
    w_res = jnp.kron(jnp.eye(W, dtype=jnp.float32), w_res.astype(jnp.float32))
    b_res = jnp.tile(params['resConv_b'].astype(jnp.float32), W).reshape(1, W * Cout)

    w1b = _banded_conv_weights(params['conv1_w'], W).astype(jnp.bfloat16)
    b1c = jnp.tile(params['conv1_b'].astype(jnp.float32), W).reshape(1, W * Cout)
    w2b = _banded_conv_weights(params['conv2_w'], W).astype(jnp.bfloat16)
    b2c = jnp.tile(params['conv2_b'].astype(jnp.float32), W).reshape(1, W * Cout)

    kernel = functools.partial(_res_block_kernel, D=D, H=H, W=W, eps=eps)
    const2 = lambda b: (0, 0)
    const3 = lambda b: (0, 0, 0)

    out = pl.pallas_call(
        kernel,
        out_shape=jax.ShapeDtypeStruct((B, DH, W * Cout), jnp.float32),
        grid=(B,),
        in_specs=[
            pl.BlockSpec((1, DH, W * Cin), lambda b: (b, 0, 0)),      # x
            pl.BlockSpec((W * Cin, W * Cin), const2),                 # group_avg 1
            pl.BlockSpec((1, W * Cin), const2),                       # gamma1
            pl.BlockSpec((1, W * Cin), const2),                       # beta1
            pl.BlockSpec((W * Cin, W * Cout), const2),                # resConv W
            pl.BlockSpec((1, W * Cout), const2),                      # resConv b
            pl.BlockSpec((9, W * Cin, W * Cout), const3),             # conv1 banded
            pl.BlockSpec((1, W * Cout), const2),                      # conv1 b
            pl.BlockSpec((W * Cout, W * Cout), const2),               # group_avg 2
            pl.BlockSpec((1, W * Cout), const2),                      # gamma2
            pl.BlockSpec((1, W * Cout), const2),                      # beta2
            pl.BlockSpec((9, W * Cout, W * Cout), const3),            # conv2 banded
            pl.BlockSpec((1, W * Cout), const2),                      # conv2 b
        ],
        out_specs=pl.BlockSpec((1, DH, W * Cout), lambda b: (b, 0, 0)),
        scratch_shapes=[
            pltpu.VMEM((D + 2, H + 2, W * Cin), jnp.bfloat16),
            pltpu.VMEM((D + 2, H + 2, W * Cout), jnp.bfloat16),
        ],
        compiler_params=pltpu.CompilerParams(
            dimension_semantics=("parallel",),
            vmem_limit_bytes=32 * 1024 * 1024,   # whole-sample blocks; << limit here
        ),
    )(x_cl, ga1, g1, be1, w_res, b_res, w1b, b1c, ga2, g2, be2, w2b, b2c)

    return jnp.transpose(out.reshape(B, D, H, W, Cout), (0, 4, 1, 2, 3))


# ---------------------------------------------------------------------------
# Pure-JAX reference (mirrors the PyTorch module) for validation
# ---------------------------------------------------------------------------
def _reference_forward(x, p, num_groups, eps=1e-6):
    def gn(v, gamma, beta):
        B, C = v.shape[0], v.shape[1]
        vg = v.reshape(B, num_groups, -1)
        mean = jnp.mean(vg, axis=2, keepdims=True)
        var = jnp.mean((vg - mean) ** 2, axis=2, keepdims=True)
        vn = ((vg - mean) / jnp.sqrt(var + eps)).reshape(v.shape)
        return vn * gamma.reshape(1, C, 1, 1, 1) + beta.reshape(1, C, 1, 1, 1)

    def conv(v, w, b, pad):
        out = lax.conv_general_dilated(
            v, w, window_strides=(1, 1, 1), padding=[(pad, pad)] * 3,
            dimension_numbers=('NCDHW', 'OIDHW', 'NCDHW'))
        return out + b.reshape(1, -1, 1, 1, 1)

    residual = conv(x, p['resConv_w'], p['resConv_b'], 0)
    h = gn(x, p['norm1_g'], p['norm1_b'])
    h = h * jax.nn.sigmoid(h)
    h = conv(h, p['conv1_w'], p['conv1_b'], 1)
    h = gn(h, p['norm2_g'], p['norm2_b'])
    h = h * jax.nn.sigmoid(h)
    h = conv(h, p['conv2_w'], p['conv2_b'], 1)
    return h + residual


# ---------------------------------------------------------------------------
if __name__ == "__main__":
    key = jax.random.PRNGKey(0)
    B, Cin, Cout = 2, 16, 32
    D = H = W = 8
    num_groups = 4

    ks = jax.random.split(key, 12)
    params = {
        'resConv_w': jax.random.normal(ks[0], (Cout, Cin, 1, 1, 1), jnp.float32)
                     / math.sqrt(Cin),
        'resConv_b': 0.05 * jax.random.normal(ks[1], (Cout,), jnp.float32),
        'conv1_w': jax.random.normal(ks[2], (Cout, Cin, 3, 3, 3), jnp.float32)
                   / math.sqrt(Cin * 27),
        'conv1_b': 0.05 * jax.random.normal(ks[3], (Cout,), jnp.float32),
        'conv2_w': jax.random.normal(ks[4], (Cout, Cout, 3, 3, 3), jnp.float32)
                   / math.sqrt(Cout * 27),
        'conv2_b': 0.05 * jax.random.normal(ks[5], (Cout,), jnp.float32),
        'norm1_g': 1.0 + 0.1 * jax.random.normal(ks[6], (Cin,), jnp.float32),
        'norm1_b': 0.1 * jax.random.normal(ks[7], (Cin,), jnp.float32),
        'norm2_g': 1.0 + 0.1 * jax.random.normal(ks[8], (Cout,), jnp.float32),
        'norm2_b': 0.1 * jax.random.normal(ks[9], (Cout,), jnp.float32),
    }
    x = jax.random.normal(ks[10], (B, Cin, D, H, W), jnp.float32)

    fwd = jax.jit(functools.partial(res_block_xy_forward, params=params,
                                    num_groups=num_groups))
    out = jax.block_until_ready(fwd(x))
    assert out.shape == (B, Cout, D, H, W), out.shape
    assert bool(jnp.all(jnp.isfinite(out)))

    # validate against a pure-JAX reference (tolerance covers bf16 MXU operands)
    ref = _reference_forward(x, params, num_groups)
    max_err = float(jnp.max(jnp.abs(out - ref)))
    assert max_err < 1e-1, f"max abs err vs reference = {max_err}"
    print("KERNEL_OK")
</pallas_src>

<mosaic_0001>
module attributes {stable_mosaic.version = 11 : i64} {
  func.func @_res_block_kernel(%arg0: i32, %arg1: memref<1x64x128xf32, #tpu.memory_space<vmem>>, %arg2: memref<128x128xf32, #tpu.memory_space<vmem>>, %arg3: memref<1x128xf32, #tpu.memory_space<vmem>>, %arg4: memref<1x128xf32, #tpu.memory_space<vmem>>, %arg5: memref<128x256xf32, #tpu.memory_space<vmem>>, %arg6: memref<1x256xf32, #tpu.memory_space<vmem>>, %arg7: memref<9x128x256xbf16, #tpu.memory_space<vmem>>, %arg8: memref<1x256xf32, #tpu.memory_space<vmem>>, %arg9: memref<256x256xf32, #tpu.memory_space<vmem>>, %arg10: memref<1x256xf32, #tpu.memory_space<vmem>>, %arg11: memref<1x256xf32, #tpu.memory_space<vmem>>, %arg12: memref<9x256x256xbf16, #tpu.memory_space<vmem>>, %arg13: memref<1x256xf32, #tpu.memory_space<vmem>>, %arg14: memref<1x64x256xf32, #tpu.memory_space<vmem>>, %arg15: memref<10x10x128xbf16, #tpu.memory_space<vmem>>, %arg16: memref<10x10x256xbf16, #tpu.memory_space<vmem>>) attributes {dimension_semantics = [#tpu.dimension_semantics<parallel>], iteration_bounds = array<i64: 2>, scalar_prefetch = 0 : i64, scratch_operands = 2 : i64, tpu.core_type = #tpu.core_type<tc>, window_params = [{transform_indices = @transform_0, window_bounds = array<i64: 1, 64, 128>}, {pipeline_mode = #tpu.pipeline_mode<synchronous>, transform_indices = @transform_1, window_bounds = array<i64: 128, 128>}, {pipeline_mode = #tpu.pipeline_mode<synchronous>, transform_indices = @transform_2, window_bounds = array<i64: 1, 128>}, {pipeline_mode = #tpu.pipeline_mode<synchronous>, transform_indices = @transform_3, window_bounds = array<i64: 1, 128>}, {pipeline_mode = #tpu.pipeline_mode<synchronous>, transform_indices = @transform_4, window_bounds = array<i64: 128, 256>}, {pipeline_mode = #tpu.pipeline_mode<synchronous>, transform_indices = @transform_5, window_bounds = array<i64: 1, 256>}, {pipeline_mode = #tpu.pipeline_mode<synchronous>, transform_indices = @transform_6, window_bounds = array<i64: 9, 128, 256>}, {pipeline_mode = #tpu.pipeline_mode<synchronous>, transform_indices = @transform_7, window_bounds = array<i64: 1, 256>}, {pipeline_mode = #tpu.pipeline_mode<synchronous>, transform_indices = @transform_8, window_bounds = array<i64: 256, 256>}, {pipeline_mode = #tpu.pipeline_mode<synchronous>, transform_indices = @transform_9, window_bounds = array<i64: 1, 256>}, {pipeline_mode = #tpu.pipeline_mode<synchronous>, transform_indices = @transform_10, window_bounds = array<i64: 1, 256>}, {pipeline_mode = #tpu.pipeline_mode<synchronous>, transform_indices = @transform_11, window_bounds = array<i64: 9, 256, 256>}, {pipeline_mode = #tpu.pipeline_mode<synchronous>, transform_indices = @transform_12, window_bounds = array<i64: 1, 256>}, {transform_indices = @transform_13, window_bounds = array<i64: 1, 64, 256>}]} {
    %c0 = arith.constant 0 : index
    %c0_0 = arith.constant 0 : index
    %c0_1 = arith.constant 0 : index
    %0 = vector.load %arg1[%c0, %c0_0, %c0_1] : memref<1x64x128xf32, #tpu.memory_space<vmem>>, vector<1x64x128xf32>
    %1 = vector.shape_cast %0 : vector<1x64x128xf32> to vector<64x128xf32>
    %c0_2 = arith.constant 0 : index
    %c0_3 = arith.constant 0 : index
    %2 = vector.load %arg5[%c0_2, %c0_3] : memref<128x256xf32, #tpu.memory_space<vmem>>, vector<128x256xf32>
    %cst = arith.constant dense<0.000000e+00> : vector<64x256xf32>
    %3 = tpu.matmul %1, %2, %cst {dimension_numbers = #tpu.dot_dimension_numbers<[1], [0], [0], [1], [0, 0, 1, 1], [], []>} : vector<64x128xf32>, vector<128x256xf32>, vector<64x256xf32> -> vector<64x256xf32>
    %c0_4 = arith.constant 0 : index
    %c0_5 = arith.constant 0 : index
    %4 = vector.load %arg6[%c0_4, %c0_5] : memref<1x256xf32, #tpu.memory_space<vmem>>, vector<1x256xf32>
    %5 = vector.broadcast %4 : vector<1x256xf32> to vector<64x256xf32>
    %6 = arith.addf %3, %5 : vector<64x256xf32>
    %c0_6 = arith.constant 0 : index
    %c0_7 = arith.constant 0 : index
    %7 = vector.load %arg2[%c0_6, %c0_7] : memref<128x128xf32, #tpu.memory_space<vmem>>, vector<128x128xf32>
    %c0_8 = arith.constant 0 : index
    %c0_9 = arith.constant 0 : index
    %8 = vector.load %arg3[%c0_8, %c0_9] : memref<1x128xf32, #tpu.memory_space<vmem>>, vector<1x128xf32>
    %c0_10 = arith.constant 0 : index
    %c0_11 = arith.constant 0 : index
    %9 = vector.load %arg4[%c0_10, %c0_11] : memref<1x128xf32, #tpu.memory_space<vmem>>, vector<1x128xf32>
    %cst_12 = arith.constant dense<0.000000e+00> : vector<128xf32>
    %10 = vector.multi_reduction <add>, %1, %cst_12 [0] : vector<64x128xf32> to vector<128xf32>
    %11 = vector.shape_cast %10 : vector<128xf32> to vector<1x128xf32>
    %cst_13 = arith.constant dense<0.000000e+00> : vector<1x128xf32>
    %12 = tpu.matmul %11, %7, %cst_13 {dimension_numbers = #tpu.dot_dimension_numbers<[1], [0], [0], [1], [0, 0, 1, 1], [], []>} : vector<1x128xf32>, vector<128x128xf32>, vector<1x128xf32> -> vector<1x128xf32>
    %13 = vector.broadcast %12 : vector<1x128xf32> to vector<64x128xf32>
    %14 = arith.subf %1, %13 : vector<64x128xf32>
    %15 = arith.mulf %14, %14 : vector<64x128xf32>
    %cst_14 = arith.constant dense<0.000000e+00> : vector<128xf32>
    %16 = vector.multi_reduction <add>, %15, %cst_14 [0] : vector<64x128xf32> to vector<128xf32>
    %17 = vector.shape_cast %16 : vector<128xf32> to vector<1x128xf32>
    %cst_15 = arith.constant dense<0.000000e+00> : vector<1x128xf32>
    %18 = tpu.matmul %17, %7, %cst_15 {dimension_numbers = #tpu.dot_dimension_numbers<[1], [0], [0], [1], [0, 0, 1, 1], [], []>} : vector<1x128xf32>, vector<128x128xf32>, vector<1x128xf32> -> vector<1x128xf32>
    %cst_16 = arith.constant 9.99999997E-7 : f32
    %19 = vector.broadcast %cst_16 : f32 to vector<1x128xf32>
    %20 = arith.addf %18, %19 : vector<1x128xf32>
    %21 = math.rsqrt %20 : vector<1x128xf32>
    %22 = arith.mulf %21, %8 : vector<1x128xf32>
    %23 = vector.broadcast %22 : vector<1x128xf32> to vector<64x128xf32>
    %24 = arith.mulf %14, %23 : vector<64x128xf32>
    %25 = vector.broadcast %9 : vector<1x128xf32> to vector<64x128xf32>
    %26 = arith.addf %24, %25 : vector<64x128xf32>
    %27 = arith.negf %26 : vector<64x128xf32>
    %28 = math.exp %27 : vector<64x128xf32>
    %cst_17 = arith.constant 1.000000e+00 : f32
    %29 = vector.broadcast %cst_17 : f32 to vector<64x128xf32>
    %30 = arith.addf %29, %28 : vector<64x128xf32>
    %31 = arith.divf %29, %30 : vector<64x128xf32>
    %32 = arith.mulf %26, %31 : vector<64x128xf32>
    %cst_18 = arith.constant 0.000000e+00 : bf16
    %33 = vector.broadcast %cst_18 : bf16 to vector<10x10x128xbf16>
    %c0_19 = arith.constant 0 : index
    %c0_20 = arith.constant 0 : index
    %c0_21 = arith.constant 0 : index
    %34 = vector.load %arg15[%c0_19, %c0_20, %c0_21] : memref<10x10x128xbf16, #tpu.memory_space<vmem>>, vector<10x10x128xbf16>
    tpu.vector_store %arg15[%c0_19, %c0_20, %c0_21], %33 {strides = array<i32>} : memref<10x10x128xbf16, #tpu.memory_space<vmem>>, vector<10x10x128xbf16>,
    %35 = arith.truncf %32 : vector<64x128xf32> to vector<64x128xbf16>
    %36 = vector.shape_cast %35 : vector<64x128xbf16> to vector<8x8x128xbf16>
    %c1 = arith.constant 1 : index
    %c1_22 = arith.constant 1 : index
    %c0_23 = arith.constant 0 : index
    %37 = vector.load %arg15[%c1, %c1_22, %c0_23] : memref<10x10x128xbf16, #tpu.memory_space<vmem>>, vector<8x8x128xbf16>
    tpu.vector_store %arg15[%c1, %c1_22, %c0_23], %36 {strides = array<i32>} : memref<10x10x128xbf16, #tpu.memory_space<vmem>>, vector<8x8x128xbf16>,
    %c0_24 = arith.constant 0 : index
    %c0_25 = arith.constant 0 : index
    %c0_26 = arith.constant 0 : index
    %38 = vector.load %arg15[%c0_24, %c0_25, %c0_26] : memref<10x10x128xbf16, #tpu.memory_space<vmem>>, vector<8x8x128xbf16>
    %39 = vector.shape_cast %38 : vector<8x8x128xbf16> to vector<64x128xbf16>
    %c0_27 = arith.constant 0 : index
    %c0_28 = arith.constant 0 : index
    %c0_29 = arith.constant 0 : index
    %40 = vector.load %arg7[%c0_27, %c0_28, %c0_29] : memref<9x128x256xbf16, #tpu.memory_space<vmem>>, vector<1x128x256xbf16>
    %41 = vector.shape_cast %40 : vector<1x128x256xbf16> to vector<128x256xbf16>
    %cst_30 = arith.constant dense<0.000000e+00> : vector<64x256xf32>
    %42 = tpu.matmul %39, %41, %cst_30 {dimension_numbers = #tpu.dot_dimension_numbers<[1], [0], [0], [1], [0, 0, 1, 1], [], []>} : vector<64x128xbf16>, vector<128x256xbf16>, vector<64x256xf32> -> vector<64x256xf32>
    %c0_31 = arith.constant 0 : index
    %c1_32 = arith.constant 1 : index
    %c0_33 = arith.constant 0 : index
    %43 = vector.load %arg15[%c0_31, %c1_32, %c0_33] : memref<10x10x128xbf16, #tpu.memory_space<vmem>>, vector<8x8x128xbf16>
    %44 = vector.shape_cast %43 : vector<8x8x128xbf16> to vector<64x128xbf16>
    %c1_34 = arith.constant 1 : index
    %c0_35 = arith.constant 0 : index
    %c0_36 = arith.constant 0 : index
    %45 = vector.load %arg7[%c1_34, %c0_35, %c0_36] : memref<9x128x256xbf16, #tpu.memory_space<vmem>>, vector<1x128x256xbf16>
    %46 = vector.shape_cast %45 : vector<1x128x256xbf16> to vector<128x256xbf16>
    %cst_37 = arith.constant dense<0.000000e+00> : vector<64x256xf32>
    %47 = tpu.matmul %44, %46, %cst_37 {dimension_numbers = #tpu.dot_dimension_numbers<[1], [0], [0], [1], [0, 0, 1, 1], [], []>} : vector<64x128xbf16>, vector<128x256xbf16>, vector<64x256xf32> -> vector<64x256xf32>
    %48 = arith.addf %42, %47 : vector<64x256xf32>
    %c0_38 = arith.constant 0 : index
    %c2 = arith.constant 2 : index
    %c0_39 = arith.constant 0 : index
    %49 = vector.load %arg15[%c0_38, %c2, %c0_39] : memref<10x10x128xbf16, #tpu.memory_space<vmem>>, vector<8x8x128xbf16>
    %50 = vector.shape_cast %49 : vector<8x8x128xbf16> to vector<64x128xbf16>
    %c2_40 = arith.constant 2 : index
    %c0_41 = arith.constant 0 : index
    %c0_42 = arith.constant 0 : index
    %51 = vector.load %arg7[%c2_40, %c0_41, %c0_42] : memref<9x128x256xbf16, #tpu.memory_space<vmem>>, vector<1x128x256xbf16>
    %52 = vector.shape_cast %51 : vector<1x128x256xbf16> to vector<128x256xbf16>
    %cst_43 = arith.constant dense<0.000000e+00> : vector<64x256xf32>
    %53 = tpu.matmul %50, %52, %cst_43 {dimension_numbers = #tpu.dot_dimension_numbers<[1], [0], [0], [1], [0, 0, 1, 1], [], []>} : vector<64x128xbf16>, vector<128x256xbf16>, vector<64x256xf32> -> vector<64x256xf32>
    %54 = arith.addf %48, %53 : vector<64x256xf32>
    %c1_44 = arith.constant 1 : index
    %c0_45 = arith.constant 0 : index
    %c0_46 = arith.constant 0 : index
    %55 = vector.load %arg15[%c1_44, %c0_45, %c0_46] : memref<10x10x128xbf16, #tpu.memory_space<vmem>>, vector<8x8x128xbf16>
    %56 = vector.shape_cast %55 : vector<8x8x128xbf16> to vector<64x128xbf16>
    %c3 = arith.constant 3 : index
    %c0_47 = arith.constant 0 : index
    %c0_48 = arith.constant 0 : index
    %57 = vector.load %arg7[%c3, %c0_47, %c0_48] : memref<9x128x256xbf16, #tpu.memory_space<vmem>>, vector<1x128x256xbf16>
    %58 = vector.shape_cast %57 : vector<1x128x256xbf16> to vector<128x256xbf16>
    %cst_49 = arith.constant dense<0.000000e+00> : vector<64x256xf32>
    %59 = tpu.matmul %56, %58, %cst_49 {dimension_numbers = #tpu.dot_dimension_numbers<[1], [0], [0], [1], [0, 0, 1, 1], [], []>} : vector<64x128xbf16>, vector<128x256xbf16>, vector<64x256xf32> -> vector<64x256xf32>
    %60 = arith.addf %54, %59 : vector<64x256xf32>
    %c1_50 = arith.constant 1 : index
    %c1_51 = arith.constant 1 : index
    %c0_52 = arith.constant 0 : index
    %61 = vector.load %arg15[%c1_50, %c1_51, %c0_52] : memref<10x10x128xbf16, #tpu.memory_space<vmem>>, vector<8x8x128xbf16>
    %62 = vector.shape_cast %61 : vector<8x8x128xbf16> to vector<64x128xbf16>
    %c4 = arith.constant 4 : index
    %c0_53 = arith.constant 0 : index
    %c0_54 = arith.constant 0 : index
    %63 = vector.load %arg7[%c4, %c0_53, %c0_54] : memref<9x128x256xbf16, #tpu.memory_space<vmem>>, vector<1x128x256xbf16>
    %64 = vector.shape_cast %63 : vector<1x128x256xbf16> to vector<128x256xbf16>
    %cst_55 = arith.constant dense<0.000000e+00> : vector<64x256xf32>
    %65 = tpu.matmul %62, %64, %cst_55 {dimension_numbers = #tpu.dot_dimension_numbers<[1], [0], [0], [1], [0, 0, 1, 1], [], []>} : vector<64x128xbf16>, vector<128x256xbf16>, vector<64x256xf32> -> vector<64x256xf32>
    %66 = arith.addf %60, %65 : vector<64x256xf32>
    %c1_56 = arith.constant 1 : index
    %c2_57 = arith.constant 2 : index
    %c0_58 = arith.constant 0 : index
    %67 = vector.load %arg15[%c1_56, %c2_57, %c0_58] : memref<10x10x128xbf16, #tpu.memory_space<vmem>>, vector<8x8x128xbf16>
    %68 = vector.shape_cast %67 : vector<8x8x128xbf16> to vector<64x128xbf16>
    %c5 = arith.constant 5 : index
    %c0_59 = arith.constant 0 : index
    %c0_60 = arith.constant 0 : index
    %69 = vector.load %arg7[%c5, %c0_59, %c0_60] : memref<9x128x256xbf16, #tpu.memory_space<vmem>>, vector<1x128x256xbf16>
    %70 = vector.shape_cast %69 : vector<1x128x256xbf16> to vector<128x256xbf16>
    %cst_61 = arith.constant dense<0.000000e+00> : vector<64x256xf32>
    %71 = tpu.matmul %68, %70, %cst_61 {dimension_numbers = #tpu.dot_dimension_numbers<[1], [0], [0], [1], [0, 0, 1, 1], [], []>} : vector<64x128xbf16>, vector<128x256xbf16>, vector<64x256xf32> -> vector<64x256xf32>
    %72 = arith.addf %66, %71 : vector<64x256xf32>
    %c2_62 = arith.constant 2 : index
    %c0_63 = arith.constant 0 : index
    %c0_64 = arith.constant 0 : index
    %73 = vector.load %arg15[%c2_62, %c0_63, %c0_64] : memref<10x10x128xbf16, #tpu.memory_space<vmem>>, vector<8x8x128xbf16>
    %74 = vector.shape_cast %73 : vector<8x8x128xbf16> to vector<64x128xbf16>
    %c6 = arith.constant 6 : index
    %c0_65 = arith.constant 0 : index
    %c0_66 = arith.constant 0 : index
    %75 = vector.load %arg7[%c6, %c0_65, %c0_66] : memref<9x128x256xbf16, #tpu.memory_space<vmem>>, vector<1x128x256xbf16>
    %76 = vector.shape_cast %75 : vector<1x128x256xbf16> to vector<128x256xbf16>
    %cst_67 = arith.constant dense<0.000000e+00> : vector<64x256xf32>
    %77 = tpu.matmul %74, %76, %cst_67 {dimension_numbers = #tpu.dot_dimension_numbers<[1], [0], [0], [1], [0, 0, 1, 1], [], []>} : vector<64x128xbf16>, vector<128x256xbf16>, vector<64x256xf32> -> vector<64x256xf32>
    %78 = arith.addf %72, %77 : vector<64x256xf32>
    %c2_68 = arith.constant 2 : index
    %c1_69 = arith.constant 1 : index
    %c0_70 = arith.constant 0 : index
    %79 = vector.load %arg15[%c2_68, %c1_69, %c0_70] : memref<10x10x128xbf16, #tpu.memory_space<vmem>>, vector<8x8x128xbf16>
    %80 = vector.shape_cast %79 : vector<8x8x128xbf16> to vector<64x128xbf16>
    %c7 = arith.constant 7 : index
    %c0_71 = arith.constant 0 : index
    %c0_72 = arith.constant 0 : index
    %81 = vector.load %arg7[%c7, %c0_71, %c0_72] : memref<9x128x256xbf16, #tpu.memory_space<vmem>>, vector<1x128x256xbf16>
    %82 = vector.shape_cast %81 : vector<1x128x256xbf16> to vector<128x256xbf16>
    %cst_73 = arith.constant dense<0.000000e+00> : vector<64x256xf32>
    %83 = tpu.matmul %80, %82, %cst_73 {dimension_numbers = #tpu.dot_dimension_numbers<[1], [0], [0], [1], [0, 0, 1, 1], [], []>} : vector<64x128xbf16>, vector<128x256xbf16>, vector<64x256xf32> -> vector<64x256xf32>
    %84 = arith.addf %78, %83 : vector<64x256xf32>
    %c2_74 = arith.constant 2 : index
    %c2_75 = arith.constant 2 : index
    %c0_76 = arith.constant 0 : index
    %85 = vector.load %arg15[%c2_74, %c2_75, %c0_76] : memref<10x10x128xbf16, #tpu.memory_space<vmem>>, vector<8x8x128xbf16>
    %86 = vector.shape_cast %85 : vector<8x8x128xbf16> to vector<64x128xbf16>
    %c8 = arith.constant 8 : index
    %c0_77 = arith.constant 0 : index
    %c0_78 = arith.constant 0 : index
    %87 = vector.load %arg7[%c8, %c0_77, %c0_78] : memref<9x128x256xbf16, #tpu.memory_space<vmem>>, vector<1x128x256xbf16>
    %88 = vector.shape_cast %87 : vector<1x128x256xbf16> to vector<128x256xbf16>
    %cst_79 = arith.constant dense<0.000000e+00> : vector<64x256xf32>
    %89 = tpu.matmul %86, %88, %cst_79 {dimension_numbers = #tpu.dot_dimension_numbers<[1], [0], [0], [1], [0, 0, 1, 1], [], []>} : vector<64x128xbf16>, vector<128x256xbf16>, vector<64x256xf32> -> vector<64x256xf32>
    %90 = arith.addf %84, %89 : vector<64x256xf32>
    %c0_80 = arith.constant 0 : index
    %c0_81 = arith.constant 0 : index
    %91 = vector.load %arg8[%c0_80, %c0_81] : memref<1x256xf32, #tpu.memory_space<vmem>>, vector<1x256xf32>
    %92 = vector.broadcast %91 : vector<1x256xf32> to vector<64x256xf32>
    %93 = arith.addf %90, %92 : vector<64x256xf32>
    %c0_82 = arith.constant 0 : index
    %c0_83 = arith.constant 0 : index
    %94 = vector.load %arg9[%c0_82, %c0_83] : memref<256x256xf32, #tpu.memory_space<vmem>>, vector<256x256xf32>
    %c0_84 = arith.constant 0 : index
    %c0_85 = arith.constant 0 : index
    %95 = vector.load %arg10[%c0_84, %c0_85] : memref<1x256xf32, #tpu.memory_space<vmem>>, vector<1x256xf32>
    %c0_86 = arith.constant 0 : index
    %c0_87 = arith.constant 0 : index
    %96 = vector.load %arg11[%c0_86, %c0_87] : memref<1x256xf32, #tpu.memory_space<vmem>>, vector<1x256xf32>
    %cst_88 = arith.constant dense<0.000000e+00> : vector<256xf32>
    %97 = vector.multi_reduction <add>, %93, %cst_88 [0] : vector<64x256xf32> to vector<256xf32>
    %98 = vector.shape_cast %97 : vector<256xf32> to vector<1x256xf32>
    %cst_89 = arith.constant dense<0.000000e+00> : vector<1x256xf32>
    %99 = tpu.matmul %98, %94, %cst_89 {dimension_numbers = #tpu.dot_dimension_numbers<[1], [0], [0], [1], [0, 0, 1, 1], [], []>} : vector<1x256xf32>, vector<256x256xf32>, vector<1x256xf32> -> vector<1x256xf32>
    %100 = vector.broadcast %99 : vector<1x256xf32> to vector<64x256xf32>
    %101 = arith.subf %93, %100 : vector<64x256xf32>
    %102 = arith.mulf %101, %101 : vector<64x256xf32>
    %cst_90 = arith.constant dense<0.000000e+00> : vector<256xf32>
    %103 = vector.multi_reduction <add>, %102, %cst_90 [0] : vector<64x256xf32> to vector<256xf32>
    %104 = vector.shape_cast %103 : vector<256xf32> to vector<1x256xf32>
    %cst_91 = arith.constant dense<0.000000e+00> : vector<1x256xf32>
    %105 = tpu.matmul %104, %94, %cst_91 {dimension_numbers = #tpu.dot_dimension_numbers<[1], [0], [0], [1], [0, 0, 1, 1], [], []>} : vector<1x256xf32>, vector<256x256xf32>, vector<1x256xf32> -> vector<1x256xf32>
    %cst_92 = arith.constant 9.99999997E-7 : f32
    %106 = vector.broadcast %cst_92 : f32 to vector<1x256xf32>
    %107 = arith.addf %105, %106 : vector<1x256xf32>
    %108 = math.rsqrt %107 : vector<1x256xf32>
    %109 = arith.mulf %108, %95 : vector<1x256xf32>
    %110 = vector.broadcast %109 : vector<1x256xf32> to vector<64x256xf32>
    %111 = arith.mulf %101, %110 : vector<64x256xf32>
    %112 = vector.broadcast %96 : vector<1x256xf32> to vector<64x256xf32>
    %113 = arith.addf %111, %112 : vector<64x256xf32>
    %114 = arith.negf %113 : vector<64x256xf32>
    %115 = math.exp %114 : vector<64x256xf32>
    %cst_93 = arith.constant 1.000000e+00 : f32
    %116 = vector.broadcast %cst_93 : f32 to vector<64x256xf32>
    %117 = arith.addf %116, %115 : vector<64x256xf32>
    %118 = arith.divf %116, %117 : vector<64x256xf32>
    %119 = arith.mulf %113, %118 : vector<64x256xf32>
    %cst_94 = arith.constant 0.000000e+00 : bf16
    %120 = vector.broadcast %cst_94 : bf16 to vector<10x10x256xbf16>
    %c0_95 = arith.constant 0 : index
    %c0_96 = arith.constant 0 : index
    %c0_97 = arith.constant 0 : index
    %121 = vector.load %arg16[%c0_95, %c0_96, %c0_97] : memref<10x10x256xbf16, #tpu.memory_space<vmem>>, vector<10x10x256xbf16>
    tpu.vector_store %arg16[%c0_95, %c0_96, %c0_97], %120 {strides = array<i32>} : memref<10x10x256xbf16, #tpu.memory_space<vmem>>, vector<10x10x256xbf16>,
    %122 = arith.truncf %119 : vector<64x256xf32> to vector<64x256xbf16>
    %123 = vector.shape_cast %122 : vector<64x256xbf16> to vector<8x8x256xbf16>
    %c1_98 = arith.constant 1 : index
    %c1_99 = arith.constant 1 : index
    %c0_100 = arith.constant 0 : index
    %124 = vector.load %arg16[%c1_98, %c1_99, %c0_100] : memref<10x10x256xbf16, #tpu.memory_space<vmem>>, vector<8x8x256xbf16>
    tpu.vector_store %arg16[%c1_98, %c1_99, %c0_100], %123 {strides = array<i32>} : memref<10x10x256xbf16, #tpu.memory_space<vmem>>, vector<8x8x256xbf16>,
    %c0_101 = arith.constant 0 : index
    %c0_102 = arith.constant 0 : index
    %c0_103 = arith.constant 0 : index
    %125 = vector.load %arg16[%c0_101, %c0_102, %c0_103] : memref<10x10x256xbf16, #tpu.memory_space<vmem>>, vector<8x8x256xbf16>
    %126 = vector.shape_cast %125 : vector<8x8x256xbf16> to vector<64x256xbf16>
    %c0_104 = arith.constant 0 : index
    %c0_105 = arith.constant 0 : index
    %c0_106 = arith.constant 0 : index
    %127 = vector.load %arg12[%c0_104, %c0_105, %c0_106] : memref<9x256x256xbf16, #tpu.memory_space<vmem>>, vector<1x256x256xbf16>
    %128 = vector.shape_cast %127 : vector<1x256x256xbf16> to vector<256x256xbf16>
    %cst_107 = arith.constant dense<0.000000e+00> : vector<64x256xf32>
    %129 = tpu.matmul %126, %128, %cst_107 {dimension_numbers = #tpu.dot_dimension_numbers<[1], [0], [0], [1], [0, 0, 1, 1], [], []>} : vector<64x256xbf16>, vector<256x256xbf16>, vector<64x256xf32> -> vector<64x256xf32>
    %c0_108 = arith.constant 0 : index
    %c1_109 = arith.constant 1 : index
    %c0_110 = arith.constant 0 : index
    %130 = vector.load %arg16[%c0_108, %c1_109, %c0_110] : memref<10x10x256xbf16, #tpu.memory_space<vmem>>, vector<8x8x256xbf16>
    %131 = vector.shape_cast %130 : vector<8x8x256xbf16> to vector<64x256xbf16>
    %c1_111 = arith.constant 1 : index
    %c0_112 = arith.constant 0 : index
    %c0_113 = arith.constant 0 : index
    %132 = vector.load %arg12[%c1_111, %c0_112, %c0_113] : memref<9x256x256xbf16, #tpu.memory_space<vmem>>, vector<1x256x256xbf16>
    %133 = vector.shape_cast %132 : vector<1x256x256xbf16> to vector<256x256xbf16>
    %cst_114 = arith.constant dense<0.000000e+00> : vector<64x256xf32>
    %134 = tpu.matmul %131, %133, %cst_114 {dimension_numbers = #tpu.dot_dimension_numbers<[1], [0], [0], [1], [0, 0, 1, 1], [], []>} : vector<64x256xbf16>, vector<256x256xbf16>, vector<64x256xf32> -> vector<64x256xf32>
    %135 = arith.addf %129, %134 : vector<64x256xf32>
    %c0_115 = arith.constant 0 : index
    %c2_116 = arith.constant 2 : index
    %c0_117 = arith.constant 0 : index
    %136 = vector.load %arg16[%c0_115, %c2_116, %c0_117] : memref<10x10x256xbf16, #tpu.memory_space<vmem>>, vector<8x8x256xbf16>
    %137 = vector.shape_cast %136 : vector<8x8x256xbf16> to vector<64x256xbf16>
    %c2_118 = arith.constant 2 : index
    %c0_119 = arith.constant 0 : index
    %c0_120 = arith.constant 0 : index
    %138 = vector.load %arg12[%c2_118, %c0_119, %c0_120] : memref<9x256x256xbf16, #tpu.memory_space<vmem>>, vector<1x256x256xbf16>
    %139 = vector.shape_cast %138 : vector<1x256x256xbf16> to vector<256x256xbf16>
    %cst_121 = arith.constant dense<0.000000e+00> : vector<64x256xf32>
    %140 = tpu.matmul %137, %139, %cst_121 {dimension_numbers = #tpu.dot_dimension_numbers<[1], [0], [0], [1], [0, 0, 1, 1], [], []>} : vector<64x256xbf16>, vector<256x256xbf16>, vector<64x256xf32> -> vector<64x256xf32>
    %141 = arith.addf %135, %140 : vector<64x256xf32>
    %c1_122 = arith.constant 1 : index
    %c0_123 = arith.constant 0 : index
    %c0_124 = arith.constant 0 : index
    %142 = vector.load %arg16[%c1_122, %c0_123, %c0_124] : memref<10x10x256xbf16, #tpu.memory_space<vmem>>, vector<8x8x256xbf16>
    %143 = vector.shape_cast %142 : vector<8x8x256xbf16> to vector<64x256xbf16>
    %c3_125 = arith.constant 3 : index
    %c0_126 = arith.constant 0 : index
    %c0_127 = arith.constant 0 : index
    %144 = vector.load %arg12[%c3_125, %c0_126, %c0_127] : memref<9x256x256xbf16, #tpu.memory_space<vmem>>, vector<1x256x256xbf16>
    %145 = vector.shape_cast %144 : vector<1x256x256xbf16> to vector<256x256xbf16>
    %cst_128 = arith.constant dense<0.000000e+00> : vector<64x256xf32>
    %146 = tpu.matmul %143, %145, %cst_128 {dimension_numbers = #tpu.dot_dimension_numbers<[1], [0], [0], [1], [0, 0, 1, 1], [], []>} : vector<64x256xbf16>, vector<256x256xbf16>, vector<64x256xf32> -> vector<64x256xf32>
    %147 = arith.addf %141, %146 : vector<64x256xf32>
    %c1_129 = arith.constant 1 : index
    %c1_130 = arith.constant 1 : index
    %c0_131 = arith.constant 0 : index
    %148 = vector.load %arg16[%c1_129, %c1_130, %c0_131] : memref<10x10x256xbf16, #tpu.memory_space<vmem>>, vector<8x8x256xbf16>
    %149 = vector.shape_cast %148 : vector<8x8x256xbf16> to vector<64x256xbf16>
    %c4_132 = arith.constant 4 : index
    %c0_133 = arith.constant 0 : index
    %c0_134 = arith.constant 0 : index
    %150 = vector.load %arg12[%c4_132, %c0_133, %c0_134] : memref<9x256x256xbf16, #tpu.memory_space<vmem>>, vector<1x256x256xbf16>
    %151 = vector.shape_cast %150 : vector<1x256x256xbf16> to vector<256x256xbf16>
    %cst_135 = arith.constant dense<0.000000e+00> : vector<64x256xf32>
    %152 = tpu.matmul %149, %151, %cst_135 {dimension_numbers = #tpu.dot_dimension_numbers<[1], [0], [0], [1], [0, 0, 1, 1], [], []>} : vector<64x256xbf16>, vector<256x256xbf16>, vector<64x256xf32> -> vector<64x256xf32>
    %153 = arith.addf %147, %152 : vector<64x256xf32>
    %c1_136 = arith.constant 1 : index
    %c2_137 = arith.constant 2 : index
    %c0_138 = arith.constant 0 : index
    %154 = vector.load %arg16[%c1_136, %c2_137, %c0_138] : memref<10x10x256xbf16, #tpu.memory_space<vmem>>, vector<8x8x256xbf16>
    %155 = vector.shape_cast %154 : vector<8x8x256xbf16> to vector<64x256xbf16>
    %c5_139 = arith.constant 5 : index
    %c0_140 = arith.constant 0 : index
    %c0_141 = arith.constant 0 : index
    %156 = vector.load %arg12[%c5_139, %c0_140, %c0_141] : memref<9x256x256xbf16, #tpu.memory_space<vmem>>, vector<1x256x256xbf16>
    %157 = vector.shape_cast %156 : vector<1x256x256xbf16> to vector<256x256xbf16>
    %cst_142 = arith.constant dense<0.000000e+00> : vector<64x256xf32>
    %158 = tpu.matmul %155, %157, %cst_142 {dimension_numbers = #tpu.dot_dimension_numbers<[1], [0], [0], [1], [0, 0, 1, 1], [], []>} : vector<64x256xbf16>, vector<256x256xbf16>, vector<64x256xf32> -> vector<64x256xf32>
    %159 = arith.addf %153, %158 : vector<64x256xf32>
    %c2_143 = arith.constant 2 : index
    %c0_144 = arith.constant 0 : index
    %c0_145 = arith.constant 0 : index
    %160 = vector.load %arg16[%c2_143, %c0_144, %c0_145] : memref<10x10x256xbf16, #tpu.memory_space<vmem>>, vector<8x8x256xbf16>
    %161 = vector.shape_cast %160 : vector<8x8x256xbf16> to vector<64x256xbf16>
    %c6_146 = arith.constant 6 : index
    %c0_147 = arith.constant 0 : index
    %c0_148 = arith.constant 0 : index
    %162 = vector.load %arg12[%c6_146, %c0_147, %c0_148] : memref<9x256x256xbf16, #tpu.memory_space<vmem>>, vector<1x256x256xbf16>
    %163 = vector.shape_cast %162 : vector<1x256x256xbf16> to vector<256x256xbf16>
    %cst_149 = arith.constant dense<0.000000e+00> : vector<64x256xf32>
    %164 = tpu.matmul %161, %163, %cst_149 {dimension_numbers = #tpu.dot_dimension_numbers<[1], [0], [0], [1], [0, 0, 1, 1], [], []>} : vector<64x256xbf16>, vector<256x256xbf16>, vector<64x256xf32> -> vector<64x256xf32>
    %165 = arith.addf %159, %164 : vector<64x256xf32>
    %c2_150 = arith.constant 2 : index
    %c1_151 = arith.constant 1 : index
    %c0_152 = arith.constant 0 : index
    %166 = vector.load %arg16[%c2_150, %c1_151, %c0_152] : memref<10x10x256xbf16, #tpu.memory_space<vmem>>, vector<8x8x256xbf16>
    %167 = vector.shape_cast %166 : vector<8x8x256xbf16> to vector<64x256xbf16>
    %c7_153 = arith.constant 7 : index
    %c0_154 = arith.constant 0 : index
    %c0_155 = arith.constant 0 : index
    %168 = vector.load %arg12[%c7_153, %c0_154, %c0_155] : memref<9x256x256xbf16, #tpu.memory_space<vmem>>, vector<1x256x256xbf16>
    %169 = vector.shape_cast %168 : vector<1x256x256xbf16> to vector<256x256xbf16>
    %cst_156 = arith.constant dense<0.000000e+00> : vector<64x256xf32>
    %170 = tpu.matmul %167, %169, %cst_156 {dimension_numbers = #tpu.dot_dimension_numbers<[1], [0], [0], [1], [0, 0, 1, 1], [], []>} : vector<64x256xbf16>, vector<256x256xbf16>, vector<64x256xf32> -> vector<64x256xf32>
    %171 = arith.addf %165, %170 : vector<64x256xf32>
    %c2_157 = arith.constant 2 : index
    %c2_158 = arith.constant 2 : index
    %c0_159 = arith.constant 0 : index
    %172 = vector.load %arg16[%c2_157, %c2_158, %c0_159] : memref<10x10x256xbf16, #tpu.memory_space<vmem>>, vector<8x8x256xbf16>
    %173 = vector.shape_cast %172 : vector<8x8x256xbf16> to vector<64x256xbf16>
    %c8_160 = arith.constant 8 : index
    %c0_161 = arith.constant 0 : index
    %c0_162 = arith.constant 0 : index
    %174 = vector.load %arg12[%c8_160, %c0_161, %c0_162] : memref<9x256x256xbf16, #tpu.memory_space<vmem>>, vector<1x256x256xbf16>
    %175 = vector.shape_cast %174 : vector<1x256x256xbf16> to vector<256x256xbf16>
    %cst_163 = arith.constant dense<0.000000e+00> : vector<64x256xf32>
    %176 = tpu.matmul %173, %175, %cst_163 {dimension_numbers = #tpu.dot_dimension_numbers<[1], [0], [0], [1], [0, 0, 1, 1], [], []>} : vector<64x256xbf16>, vector<256x256xbf16>, vector<64x256xf32> -> vector<64x256xf32>
    %177 = arith.addf %171, %176 : vector<64x256xf32>
    %c0_164 = arith.constant 0 : index
    %c0_165 = arith.constant 0 : index
    %178 = vector.load %arg13[%c0_164, %c0_165] : memref<1x256xf32, #tpu.memory_space<vmem>>, vector<1x256xf32>
    %179 = vector.broadcast %178 : vector<1x256xf32> to vector<64x256xf32>
    %180 = arith.addf %177, %179 : vector<64x256xf32>
    %181 = arith.addf %180, %6 : vector<64x256xf32>
    %c0_166 = arith.constant 0 : index
    %c0_167 = arith.constant 0 : index
    %c0_168 = arith.constant 0 : index
    %182 = vector.load %arg14[%c0_166, %c0_167, %c0_168] : memref<1x64x256xf32, #tpu.memory_space<vmem>>, vector<1x64x256xf32>
    %183 = vector.shape_cast %182 : vector<1x64x256xf32> to vector<64x256xf32>
    %184 = vector.shape_cast %181 : vector<64x256xf32> to vector<1x64x256xf32>
    tpu.vector_store %arg14[%c0_166, %c0_167, %c0_168], %184 {strides = array<i32>} : memref<1x64x256xf32, #tpu.memory_space<vmem>>, vector<1x64x256xf32>,
    return
  }
  func.func @transform_0(%arg0: i32) -> (i32, i32, i32) {
    %c0_i32 = arith.constant 0 : i32
    %c0_i32_0 = arith.constant 0 : i32
    %c0_i32_1 = arith.constant 0 : i32
    return %arg0, %c0_i32, %c0_i32_0 : i32, i32, i32
  }
  func.func @transform_1(%arg0: i32) -> (i32, i32) {
    %c0_i32 = arith.constant 0 : i32
    %c0_i32_0 = arith.constant 0 : i32
    %c0_i32_1 = arith.constant 0 : i32
    return %c0_i32, %c0_i32_0 : i32, i32
  }
  func.func @transform_2(%arg0: i32) -> (i32, i32) {
    %c0_i32 = arith.constant 0 : i32
    %c0_i32_0 = arith.constant 0 : i32
    %c0_i32_1 = arith.constant 0 : i32
    return %c0_i32, %c0_i32_0 : i32, i32
  }
  func.func @transform_3(%arg0: i32) -> (i32, i32) {
    %c0_i32 = arith.constant 0 : i32
    %c0_i32_0 = arith.constant 0 : i32
    %c0_i32_1 = arith.constant 0 : i32
    return %c0_i32, %c0_i32_0 : i32, i32
  }
  func.func @transform_4(%arg0: i32) -> (i32, i32) {
    %c0_i32 = arith.constant 0 : i32
    %c0_i32_0 = arith.constant 0 : i32
    %c0_i32_1 = arith.constant 0 : i32
    return %c0_i32, %c0_i32_0 : i32, i32
  }
  func.func @transform_5(%arg0: i32) -> (i32, i32) {
    %c0_i32 = arith.constant 0 : i32
    %c0_i32_0 = arith.constant 0 : i32
    %c0_i32_1 = arith.constant 0 : i32
    return %c0_i32, %c0_i32_0 : i32, i32
  }
  func.func @transform_6(%arg0: i32) -> (i32, i32, i32) {
    %c0_i32 = arith.constant 0 : i32
    %c0_i32_0 = arith.constant 0 : i32
    %c0_i32_1 = arith.constant 0 : i32
    %c0_i32_2 = arith.constant 0 : i32
    return %c0_i32, %c0_i32_0, %c0_i32_1 : i32, i32, i32
  }
  func.func @transform_7(%arg0: i32) -> (i32, i32) {
    %c0_i32 = arith.constant 0 : i32
    %c0_i32_0 = arith.constant 0 : i32
    %c0_i32_1 = arith.constant 0 : i32
    return %c0_i32, %c0_i32_0 : i32, i32
  }
  func.func @transform_8(%arg0: i32) -> (i32, i32) {
    %c0_i32 = arith.constant 0 : i32
    %c0_i32_0 = arith.constant 0 : i32
    %c0_i32_1 = arith.constant 0 : i32
    return %c0_i32, %c0_i32_0 : i32, i32
  }
  func.func @transform_9(%arg0: i32) -> (i32, i32) {
    %c0_i32 = arith.constant 0 : i32
    %c0_i32_0 = arith.constant 0 : i32
    %c0_i32_1 = arith.constant 0 : i32
    return %c0_i32, %c0_i32_0 : i32, i32
  }
  func.func @transform_10(%arg0: i32) -> (i32, i32) {
    %c0_i32 = arith.constant 0 : i32
    %c0_i32_0 = arith.constant 0 : i32
    %c0_i32_1 = arith.constant 0 : i32
    return %c0_i32, %c0_i32_0 : i32, i32
  }
  func.func @transform_11(%arg0: i32) -> (i32, i32, i32) {
    %c0_i32 = arith.constant 0 : i32
    %c0_i32_0 = arith.constant 0 : i32
    %c0_i32_1 = arith.constant 0 : i32
    %c0_i32_2 = arith.constant 0 : i32
    return %c0_i32, %c0_i32_0, %c0_i32_1 : i32, i32, i32
  }
  func.func @transform_12(%arg0: i32) -> (i32, i32) {
    %c0_i32 = arith.constant 0 : i32
    %c0_i32_0 = arith.constant 0 : i32
    %c0_i32_1 = arith.constant 0 : i32
    return %c0_i32, %c0_i32_0 : i32, i32
  }
  func.func @transform_13(%arg0: i32) -> (i32, i32, i32) {
    %c0_i32 = arith.constant 0 : i32
    %c0_i32_0 = arith.constant 0 : i32
    %c0_i32_1 = arith.constant 0 : i32
    return %arg0, %c0_i32, %c0_i32_0 : i32, i32, i32
  }
}

</mosaic_0001>

<bundles_post_ra>
// kernel: tile.38
= control target key start
LH: loop header
LB: loop body
LE: loop exit
PB: predicated region body
PF: predicated region fallthrough
CT: control target
= control target key end

     0   :  { %s22_s0 = inlined_call_operand.vmem [shape: f32[32], index: 0, kind: input, shape index: {}]   ;;  %s23_s1 = inlined_call_operand.vmem [shape: f32[8,32], index: 1, kind: output, shape index: {}]  }
   0x1   :  { %v4_v0 = vld [vmem:[%s22_s0] ss:$0 sm:$0xff] }
   0x2   :  { %5 = vst [vmem:[%s23_s1] sm:$0xff] %v4_v0 }

// kernel: tile.39
= control target key start
LH: loop header
LB: loop body
LE: loop exit
PB: predicated region body
PF: predicated region fallthrough
CT: control target
= control target key end

     0   :  { %s7_s6 = smov 3  ;;  %s46_s9 = smov 96   ;;  %vm4_vm0 = vcmask 261120   ;;  %vm11_vm1 = vcmask 1048320   ;;  %vm18_vm2 = vcmask 785920   ;;  %vm25_vm3 = vcmask 523520   ;;  %s77_s0 = inlined_call_operand.vmem [shape: f32[8,32], index: 0, kind: input, shape index: {}]   ;;  %s78_s1 = inlined_call_operand.vmem [shape: f32[1,256], index: 1, kind: output, shape index: {}]  }
   0x1   :  { %v39_v0 = vld [vmem:[%s77_s0 + $0x3] ss:$4 sm:%s7_s6]   ;;  %s21_s10 = smov 3  ;;  %s14_s13 = smov 3 }
   0x2   :  { %9 = vrot.lane.b32.xlu0 %v39_v0, %s46_s9  ;;  %v41_v1 = vld [vmem:[%s77_s0 + $0x1] ss:$4 sm:%s21_s10]   ;;  %s47_s14 = smov 32   ;;  %s48_s17 = smov 64  }
   0x3   :  { %23 = vrot.lane.b32.xlu1 %v41_v1, %s47_s14  ;;  %v40_v2 = vld [vmem:[%s77_s0 + $0x2] ss:$4 sm:%s14_s13]   ;;  %s2_s18 = smov 3 }
   0x4   :  { %v3_v3 = vld [vmem:[%s77_s0] ss:$4 sm:%s2_s18]  }
   0x5   :  { %5 = vst.msk [vmem:[#allocation0] ss:$8 sm:$0x3] %vm4_vm0, %v3_v3  }
   0xa   :  { %16 = vrot.lane.b32.xlu0 %v40_v2, %s48_s17 }
  0x74   :  { %v10_v4 = vpop.permute.xlu0 %9  }
  0x75   :  { %12 = vst.msk [vmem:[#allocation0] ss:$8 sm:$0x3] %vm11_vm1, %v10_v4   ;;  %v24_v5 = vpop.permute.xlu1 %23  }
  0x7c   :  { %v17_v6 = vpop.permute.xlu0 %16  }
  0x7d   :  { %19 = vst.msk [vmem:[#allocation0] ss:$8 sm:$0x3] %vm18_vm2, %v17_v6  }
  0x7e   :  { %26 = vst.msk [vmem:[#allocation0] ss:$8 sm:$0x3] %vm25_vm3, %v24_v5  }
  0x85   :  { %v29_v7 = vld [vmem:[#allocation0] sm:$0x1]  ;;  %v34_v8 = vld [vmem:[#allocation0 + $0x8] sm:$0x1] }
  0x86   :  { %32 = vst [vmem:[%s78_s1] sm:$0x1] %v29_v7 }
  0x87   :  { %42 = vst [vmem:[%s78_s1 + $0x1] sm:$0x1] %v34_v8 }

// kernel: tile.30
= control target key start
LH: loop header
LB: loop body
LE: loop exit
PB: predicated region body
PF: predicated region fallthrough
CT: control target
= control target key end

     0   :  { %s22_s0 = inlined_call_operand.vmem [shape: f32[16], index: 0, kind: input, shape index: {}]   ;;  %s23_s1 = inlined_call_operand.vmem [shape: f32[8,16], index: 1, kind: output, shape index: {}]  }
   0x1   :  { %v4_v0 = vld [vmem:[%s22_s0] ss:$0 sm:$0xff] }
   0x2   :  { %5 = vst [vmem:[%s23_s1] sm:$0xff] %v4_v0 }

// kernel: tile.31
= control target key start
LH: loop header
LB: loop body
LE: loop exit
PB: predicated region body
PF: predicated region fallthrough
CT: control target
= control target key end

     0   :  { %s67_s10 = smov 112   ;;  %s68_s11 = smov 80   ;;  %vm3_vm0 = vcmask 130048   ;;  %vm9_vm1 = vcmask 1048448   ;;  %vm15_vm2 = vcmask 917248   ;;  %vm21_vm3 = vcmask 786048   ;;  %s111_s0 = inlined_call_operand.vmem [shape: f32[8,16], index: 0, kind: input, shape index: {}]   ;;  %s112_s1 = inlined_call_operand.vmem [shape: f32[1,128], index: 1, kind: output, shape index: {}]  }
   0x1   :  { %v53_v0 = vld [vmem:[%s111_s0 + $0x7] sm:$0x1]   ;;  %v55_v1 = vld [vmem:[%s111_s0 + $0x5] sm:$0x1]   ;;  %v57_v2 = vld [vmem:[%s111_s0 + $0x3] sm:$0x1]  }
   0x2   :  { %7 = vrot.lane.b32.xlu0 %v53_v0, %s67_s10  ;;  %19 = vrot.lane.b32.xlu1 %v55_v1, %s68_s11  ;;  %s69_s14 = smov 48   ;;  %v54_v3 = vld [vmem:[%s111_s0 + $0x6] sm:$0x1]   ;;  %v56_v4 = vld [vmem:[%s111_s0 + $0x4] sm:$0x1]   ;;  %s70_s21 = smov 96  }
   0x3   :  { %31 = vrot.lane.b32.xlu2 %v57_v2, %s69_s14  ;;  %v58_v5 = vld [vmem:[%s111_s0 + $0x2] sm:$0x1]   ;;  %s71_s22 = smov 64   ;;  %s72_s23 = smov 32   ;;  %v59_v6 = vld [vmem:[%s111_s0 + $0x1] sm:$0x1]  }
   0x4   :  { %s73_s26 = smov 16   ;;  %v2_v7 = vld [vmem:[%s111_s0] sm:$0x1]   ;;  %vm27_vm4 = vcmask 654848   ;;  %vm33_vm5 = vcmask 523648   ;;  %vm39_vm6 = vcmask 392448  }
   0x5   :  { %4 = vst.msk [vmem:[#allocation0] sm:$0x1] %vm3_vm0, %v2_v7   ;;  %vm45_vm7 = vcmask 261248  }
   0xa   :  { %13 = vrot.lane.b32.xlu0 %v54_v3, %s70_s21  ;;  %25 = vrot.lane.b32.xlu1 %v56_v4, %s71_s22 }
   0xb   :  { %37 = vrot.lane.b32.xlu2 %v58_v5, %s72_s23 }
  0x12   :  { %43 = vrot.lane.b32.xlu0 %v59_v6, %s73_s26 }
  0x5d   :  { %v32_v8 = vpop.permute.xlu2 %31  }
  0x65   :  { %v38_v9 = vpop.permute.xlu2 %37  }
  0x74   :  { %v8_v10 = vpop.permute.xlu0 %7   ;;  %v20_v11 = vpop.permute.xlu1 %19  }
  0x75   :  { %10 = vst.msk [vmem:[#allocation0] sm:$0x1] %vm9_vm1, %v8_v10  }
  0x7c   :  { %v14_v12 = vpop.permute.xlu0 %13   ;;  %v26_v13 = vpop.permute.xlu1 %25  }
  0x7d   :  { %16 = vst.msk [vmem:[#allocation0] sm:$0x1] %vm15_vm2, %v14_v12  }
  0x7e   :  { %22 = vst.msk [vmem:[#allocation0] sm:$0x1] %vm21_vm3, %v20_v11  }
  0x7f   :  { %28 = vst.msk [vmem:[#allocation0] sm:$0x1] %vm27_vm4, %v26_v13  }
  0x80   :  { %34 = vst.msk [vmem:[#allocation0] sm:$0x1] %vm33_vm5, %v32_v8  }
  0x81   :  { %40 = vst.msk [vmem:[#allocation0] sm:$0x1] %vm39_vm6, %v38_v9  }
  0x84   :  { %v44_v14 = vpop.permute.xlu0 %43  }
  0x85   :  { %46 = vst.msk [vmem:[#allocation0] sm:$0x1] %vm45_vm7, %v44_v14  }
  0x8c   :  { %v49_v15 = vld [vmem:[#allocation0] sm:$0x1] }
  0x8d   :  { %52 = vst [vmem:[%s112_s1] sm:$0x1] %v49_v15 }

// kernel: res_block_xy_forward.1
= control target key start
LH: loop header
LB: loop body
LE: loop exit
PB: predicated region body
PF: predicated region fallthrough
CT: control target
= control target key end

     0   :  { %s11077_s25 = smov 0   ;;  %s17072_s0 = inlined_call_operand.vmem [shape: f32[2,64,128], index: 0, kind: input, shape index: {}]   ;;  %s17073_s1 = inlined_call_operand.vmem [shape: f32[128,128], index: 1, kind: input, shape index: {}]   ;;  %s17074_s2 = inlined_call_operand.vmem [shape: f32[1,128], index: 2, kind: input, shape index: {}]   ;;  %s17075_s3 = inlined_call_operand.vmem [shape: f32[1,128], index: 3, kind: input, shape index: {}]   ;;  %s17076_s4 = inlined_call_operand.vmem [shape: f32[128,256], index: 4, kind: input, shape index: {}]   ;;  %s17077_s5 = inlined_call_operand.vmem [shape: f32[1,256], index: 5, kind: input, shape index: {}]   ;;  %s17078_s6 = inlined_call_operand.vmem [shape: bf16[9,128,256], index: 6, kind: input, shape index: {}]   ;;  %s17079_s7 = inlined_call_operand.vmem [shape: f32[1,256], index: 7, kind: input, shape index: {}]   ;;  %s17080_s8 = inlined_call_operand.vmem [shape: f32[256,256], index: 8, kind: input, shape index: {}]   ;;  %s17081_s9 = inlined_call_operand.vmem [shape: f32[1,256], index: 9, kind: input, shape index: {}]   ;;  %s17082_s10 = inlined_call_operand.vmem [shape: f32[1,256], index: 10, kind: input, shape index: {}]   ;;  %s17083_s11 = inlined_call_operand.vmem [shape: bf16[9,256,256], index: 11, kind: input, shape index: {}]   ;;  %s17084_s12 = inlined_call_operand.vmem [shape: f32[1,256], index: 12, kind: input, shape index: {}]   ;;  %s17085_s13 = inlined_call_operand.vmem [shape: f32[2,64,256], index: 13, kind: output, shape index: {}]  }
   0x1 LB: > { %s8041_s26 = sadd.s32 4294967295, %s11004_s25   ;;  %p8045_p0 = scmp.ge.s32.totalorder %s11004_s25, 1  ;;  %s11004_s25 = sphi %s11077_s25, %s23_s25  }
   0x2   : > { %p387_p1 = scmp.lt.s32.totalorder %s11004_s25, 3 }
   0x4   : > { %p388_p2 = pnand %p8045_p0, %p387_p1 }
   0x6   : > { %391 = sbr.rel (%p388_p2) target bundleno = 2050 (0x802), region = 72 }
   0xb   : > { %v585_v0 = vld [vmem:[%s17073_s1 + $0x78] sm:$0xff]  ;;  %v584_v1 = vld [vmem:[%s17073_s1 + $0x70] sm:$0xff]  ;;  %p431_p3 = scmp.lt.s32.totalorder %s8041_s26, 1  ;;  %v583_v2 = vld [vmem:[%s17073_s1 + $0x68] sm:$0xff]  ;;  %vm971_vm7 = vcmask 1043456   ;;  %vm977_vm10 = vcmask 1040384  }
   0xc   : > { %601 = vmatpush.msra.mxu2 %v585_v0  ;;  %651 = vmatpush.msra.mxu3 %v585_v0  ;;  %v582_v3 = vld [vmem:[%s17073_s1 + $0x60] sm:$0xff]  ;;  %v581_v4 = vld [vmem:[%s17073_s1 + $0x58] sm:$0xff]  ;;  %v580_v9 = vld [vmem:[%s17073_s1 + $0x50] sm:$0xff]  ;;  %vm972_vm8 = vsmask.f32 7938 }
   0xd   : > { %s17276_s26 = smov (!%p431_p3, %s8041_s26), 1  ;;  %v579_v12 = vld [vmem:[%s17073_s1 + $0x48] sm:$0xff]  ;;  %v578_v15 = vld [vmem:[%s17073_s1 + $0x40] sm:$0xff]  ;;  %v577_v18 = vld [vmem:[%s17073_s1 + $0x38] sm:$0xff]  ;;  %vm978_vm11 = vsmask.f32 256 }
   0xe   : > { %602 = vmatpush.msra.mxu2 %v584_v1  ;;  %652 = vmatpush.msra.mxu3 %v584_v1  ;;  %s10380_s18 = sshll.u32 %s17276_s26, 6  ;;  %v576_v21 = vld [vmem:[%s17073_s1 + $0x30] sm:$0xff]  ;;  %v575_v24 = vld [vmem:[%s17073_s1 + $0x28] sm:$0xff]  ;;  %v574_v26 = vld [vmem:[%s17073_s1 + $0x20] sm:$0xff]  ;;  %s10381_s15 = sshll.u32 %s17276_s26, 7 }
   0xf   : > { %s435_s23 = scalar_lea.vmem %s17072_s0, %s10380_s18  ;;  %v573_v28 = vld [vmem:[%s17073_s1 + $0x18] sm:$0xff]  ;;  %v572_v30 = vld [vmem:[%s17073_s1 + $0x10] sm:$0xff]  ;;  %v571_v32 = vld [vmem:[%s17073_s1 + $0x8] sm:$0xff]  ;;  %s16967_s18 = scalar_lea.vmem %s17085_s13, %s10381_s15 }
  0x10   : > { %603 = vmatpush.msra.mxu2 %v583_v2  ;;  %653 = vmatpush.msra.mxu3 %v583_v2  ;;  %v11106_v5 = vld [vmem:[%s435_s23] sm:$0xff]  ;;  %v11108_v6 = vld [vmem:[%s435_s23 + $0x8] sm:$0xff]  ;;  %v11110_v7 = vld [vmem:[%s435_s23 + $0x10] sm:$0xff] }
  0x11   : > { %v588_v8 = vadd.f32 %v11108_v6, %v11106_v5  ;;  %v11117_v10 = vld [vmem:[%s435_s23 + $0x18] sm:$0xff]  ;;  %v11123_v13 = vld [vmem:[%s435_s23 + $0x20] sm:$0xff]  ;;  %v11129_v16 = vld [vmem:[%s435_s23 + $0x28] sm:$0xff] }
  0x12   : > { %604 = vmatpush.msra.mxu2 %v582_v3  ;;  %654 = vmatpush.msra.mxu3 %v582_v3  ;;  %v11135_v19 = vld [vmem:[%s435_s23 + $0x30] sm:$0xff]  ;;  %v11141_v22 = vld [vmem:[%s435_s23 + $0x38] sm:$0xff]  ;;  %v570_v34 = vld [vmem:[%s17073_s1] sm:$0xff] }
  0x13   : > { %v589_v11 = vadd.f32 %v588_v8, %v11110_v7  ;;  %v480_v39 = vld [vmem:[%s17076_s4 + $0xf0] sm:$0xff]  ;;  %v481_v40 = vld [vmem:[%s17076_s4 + $0xf8] sm:$0xff]  ;;  %v478_v41 = vld [vmem:[%s17076_s4 + $0xe0] sm:$0xff] }
  0x14   : > { %605 = vmatpush.msra.mxu2 %v581_v4  ;;  %655 = vmatpush.msra.mxu3 %v581_v4  ;;  %v479_v42 = vld [vmem:[%s17076_s4 + $0xe8] sm:$0xff]  ;;  %v476_v46 = vld [vmem:[%s17076_s4 + $0xd0] sm:$0xff]  ;;  %v477_v47 = vld [vmem:[%s17076_s4 + $0xd8] sm:$0xff] }
  0x15   : > { %v590_v14 = vadd.f32 %v589_v11, %v11117_v10  ;;  %488 = vmatpush.msra.mxu0 %v480_v39  ;;  %529 = vmatpush.msra.mxu1 %v481_v40  ;;  %v474_v51 = vld [vmem:[%s17076_s4 + $0xc0] sm:$0xff]  ;;  %v475_v52 = vld [vmem:[%s17076_s4 + $0xc8] sm:$0xff]  ;;  %v472_v56 = vld [vmem:[%s17076_s4 + $0xb0] sm:$0xff] }
  0x16   : > { %606 = vmatpush.msra.mxu2 %v580_v9  ;;  %656 = vmatpush.msra.mxu3 %v580_v9  ;;  %v473_v57 = vld [vmem:[%s17076_s4 + $0xb8] sm:$0xff]  ;;  %v470_v61 = vld [vmem:[%s17076_s4 + $0xa0] sm:$0xff]  ;;  %v471_v62 = vld [vmem:[%s17076_s4 + $0xa8] sm:$0xff] }
  0x17   : > { %v591_v17 = vadd.f32 %v590_v14, %v11123_v13  ;;  %489 = vmatpush.msra.mxu0 %v478_v41  ;;  %530 = vmatpush.msra.mxu1 %v479_v42  ;;  %v468_v2 = vld [vmem:[%s17076_s4 + $0x90] sm:$0xff]  ;;  %v469_v3 = vld [vmem:[%s17076_s4 + $0x98] sm:$0xff]  ;;  %v466_v11 = vld [vmem:[%s17076_s4 + $0x80] sm:$0xff] }
  0x18   : > { %607 = vmatpush.msra.mxu2 %v579_v12  ;;  %657 = vmatpush.msra.mxu3 %v579_v12  ;;  %v467_v12 = vld [vmem:[%s17076_s4 + $0x88] sm:$0xff]  ;;  %v452_v40 = vld [vmem:[%s17076_s4 + $0x10] sm:$0xff]  ;;  %v453_v41 = vld [vmem:[%s17076_s4 + $0x18] sm:$0xff] }
  0x19   : > { %v592_v20 = vadd.f32 %v591_v17, %v11129_v16  ;;  %490 = vmatpush.msra.mxu0 %v476_v46  ;;  %531 = vmatpush.msra.mxu1 %v477_v47  ;;  %v464_v17 = vld [vmem:[%s17076_s4 + $0x70] sm:$0xff]  ;;  %v455_v39 = vld [vmem:[%s17076_s4 + $0x28] sm:$0xff]  ;;  %v450_v42 = vld [vmem:[%s17076_s4] sm:$0xff] }
  0x1a   : > { %608 = vmatpush.msra.mxu2 %v578_v15  ;;  %658 = vmatpush.msra.mxu3 %v578_v15  ;;  %v451_v46 = vld [vmem:[%s17076_s4 + $0x8] sm:$0xff]  ;;  %vm11655_vm13 = vmand %vm971_vm7, %vm972_vm8 }
  0x1b   : > { %v593_v23 = vadd.f32 %v592_v20, %v11135_v19  ;;  %491 = vmatpush.msra.mxu0 %v474_v51  ;;  %532 = vmatpush.msra.mxu1 %v475_v52 }
  0x1c   : > { %609 = vmatpush.msra.mxu2 %v577_v18  ;;  %659 = vmatpush.msra.mxu3 %v577_v18  ;;  %v465_v18 = vld [vmem:[%s17076_s4 + $0x78] sm:$0xff] }
  0x1d   : > { %v594_v25 = vadd.f32 %v593_v23, %v11141_v22  ;;  %492 = vmatpush.msra.mxu0 %v472_v56  ;;  %533 = vmatpush.msra.mxu1 %v473_v57  ;;  %v10401_v56 = vld [vmem:[%s17078_s6 + $0x74] sm:$0xf0] }
  0x1e   : > { %610 = vmatpush.msra.mxu2 %v576_v21  ;;  %660 = vmatpush.msra.mxu3 %v576_v21 }
  0x1f   : > { %v595_v27 = vrot.slane %v594_v25, 4  ;;  %493 = vmatpush.msra.mxu0 %v470_v61  ;;  %534 = vmatpush.msra.mxu1 %v471_v62 }
  0x20   : > { %611 = vmatpush.msra.mxu2 %v575_v24  ;;  %661 = vmatpush.msra.mxu3 %v575_v24 }
  0x21   : > { %v596_v29 = vadd.f32 %v595_v27, %v594_v25  ;;  %494 = vmatpush.msra.mxu0 %v468_v2  ;;  %535 = vmatpush.msra.mxu1 %v469_v3  ;;  %v8204_v2 = vld [vmem:[%s17078_s6 + $0x60] sm:$0xf]  ;;  %v10399_v3 = vld [vmem:[%s17078_s6 + $0x64] sm:$0xf0] }
  0x22   : > { %612 = vmatpush.msra.mxu2 %v574_v26  ;;  %662 = vmatpush.msra.mxu3 %v574_v26 }
  0x23   : > { %v597_v31 = vrot.slane %v596_v29, 2  ;;  %495 = vmatpush.msra.mxu0 %v466_v11  ;;  %536 = vmatpush.msra.mxu1 %v467_v12 }
  0x24   : > { %613 = vmatpush.msra.mxu2 %v573_v28  ;;  %663 = vmatpush.msra.mxu3 %v573_v28 }
  0x25   : > { %v598_v33 = vadd.f32 %v597_v31, %v596_v29  ;;  %496 = vmatpush.msra.mxu0 %v464_v17  ;;  %537 = vmatpush.msra.mxu1 %v465_v18  ;;  %v463_v31 = vld [vmem:[%s17076_s4 + $0x68] sm:$0xff]  ;;  %v10398_v17 = vld [vmem:[%s17078_s6 + $0x64] sm:$0xf] }
  0x26   : > { %614 = vmatpush.msra.mxu2 %v572_v30  ;;  %664 = vmatpush.msra.mxu3 %v572_v30  ;;  %v462_v30 = vld [vmem:[%s17076_s4 + $0x60] sm:$0xff]  ;;  %v8206_v18 = vld [vmem:[%s17078_s6 + $0x68] sm:$0xf0] }
  0x27   : > { %v599_v35 = vrot.slane %v598_v33, 1  ;;  %497 = vmatpush.msra.mxu0 %v462_v30  ;;  %538 = vmatpush.msra.mxu1 %v463_v31 }
  0x28   : > { %615 = vmatpush.msra.mxu2 %v571_v32  ;;  %665 = vmatpush.msra.mxu3 %v571_v32  ;;  %v460_v32 = vld [vmem:[%s17076_s4 + $0x50] sm:$0xff] }
  0x29   : > { %v600_v36 = vadd.f32 %v599_v35, %v598_v33  ;;  %v461_v33 = vld [vmem:[%s17076_s4 + $0x58] sm:$0xff]  ;;  %498 = vmatpush.msra.mxu0 %v460_v32  ;;  %v459_v35 = vld [vmem:[%s17076_s4 + $0x48] sm:$0xff] }
  0x2a   : > { %616 = vmatpush.msra.mxu2 %v570_v34  ;;  %666 = vmatpush.msra.mxu3 %v570_v34  ;;  %v458_v34 = vld [vmem:[%s17076_s4 + $0x40] sm:$0xff] }
  0x2b   : > { %617 = vmatmul.f32.vlgmr.msra.gmra.mxu2 %v600_v36  ;;  %539 = vmatpush.msra.mxu1 %v461_v33  ;;  %v456_v36 = vld [vmem:[%s17076_s4 + $0x30] sm:$0xff] }
  0x2c   : > { %499 = vmatpush.msra.mxu0 %v458_v34 }
  0x2d   : > { %540 = vmatpush.msra.mxu1 %v459_v35 }
  0x2e   : > { %500 = vmatpush.msra.mxu0 %v456_v36 }
  0xae   : > { %v618_v37 = vpop.f32.mrf.mxu2 }
  0xaf   : > { %v621_v38 = vperm.slane %v618_v37, 0  ;;  %v457_v37 = vld [vmem:[%s17076_s4 + $0x38] sm:$0xff] }
  0xb0   : > { %541 = vmatpush.msra.mxu1 %v457_v37  ;;  %v8188_v37 = vld [vmem:[%s17078_s6 + $0x40] sm:$0xf] }
  0xb1   : > { %v11176_v43 = vsub.f32 %v11106_v5, %v621_v38  ;;  %v11179_v44 = vsub.f32 %v11108_v6, %v621_v38  ;;  %v11182_v45 = vsub.f32 %v11110_v7, %v621_v38  ;;  %v11191_v48 = vsub.f32 %v11117_v10, %v621_v38 }
  0xb2   : > { %v11204_v53 = vsub.f32 %v11123_v13, %v621_v38  ;;  %v11215_v58 = vsub.f32 %v11129_v16, %v621_v38  ;;  %v11226_v63 = vsub.f32 %v11135_v19, %v621_v38  ;;  %v11237_v4 = vsub.f32 %v11141_v22, %v621_v38  ;;  %v454_v38 = vld [vmem:[%s17076_s4 + $0x20] sm:$0xff]  ;;  %542 = vmatpush.msra.mxu1 %v455_v39 }
  0xb3   : > { %v630_v49 = vmul.f32 %v11176_v43, %v11176_v43  ;;  %v631_v50 = vmul.f32 %v11179_v44, %v11179_v44  ;;  %v632_v54 = vmul.f32 %v11182_v45, %v11182_v45  ;;  %v633_v59 = vmul.f32 %v11191_v48, %v11191_v48  ;;  %501 = vmatpush.msra.mxu0 %v454_v38  ;;  %v10395_v38 = vld [vmem:[%s17078_s6 + $0x44] sm:$0xf0] }
  0xb4   : > { %v634_v0 = vmul.f32 %v11204_v53, %v11204_v53  ;;  %v635_v8 = vmul.f32 %v11215_v58, %v11215_v58  ;;  %v636_v14 = vmul.f32 %v11226_v63, %v11226_v63  ;;  %v637_v20 = vmul.f32 %v11237_v4, %v11237_v4  ;;  %543 = vmatpush.msra.mxu1 %v453_v41 }
  0xb5   : > { %v638_v55 = vadd.f32 %v631_v50, %v630_v49  ;;  %502 = vmatpush.msra.mxu0 %v452_v40  ;;  %v8189_v41 = vor.u32 %v10395_v38, %v8188_v37  ;;  %v10408_v37 = vld [vmem:[%s17078_s6 + $0xb4] sm:$0xf]  ;;  %v8102_v38 = vld [vmem:[%s17078_s6 + $0xb8] sm:$0xf0] }
  0xb6   : > { %544 = vmatpush.msra.mxu1 %v451_v46  ;;  %v8190_v46 = vld [vmem:[%s17078_s6 + $0x48] sm:$0xf0] }
  0xb7   : > { %v639_v60 = vadd.f32 %v638_v55, %v632_v54  ;;  %503 = vmatpush.msra.mxu0 %v450_v42  ;;  %545 = vmatmul.f32.vlgmr.msra.gmra.mxu1 %v11106_v5  ;;  %v10394_v42 = vld [vmem:[%s17078_s6 + $0x44] sm:$0xf] }
  0xb8   : > { %504 = vmatmul.f32.vlgmr.msra.gmra.mxu0 %v11106_v5 }
  0xb9   : > { %v640_v1 = vadd.f32 %v639_v60, %v633_v59  ;;  %v8214_v60 = vld [vmem:[%s17078_s6 + $0x78] sm:$0xf0] }
  0xbb   : > { %v641_v9 = vadd.f32 %v640_v1, %v634_v0  ;;  %v11327_v0 = vld [vmem:[%s17075_s3] ss:$0 sm:$0xff] }
  0xbd   : > { %v642_v15 = vadd.f32 %v641_v9, %v635_v8  ;;  %v8205_v8 = vor.u32 %v10399_v3, %v8204_v2  ;;  %v8172_v2 = vld [vmem:[%s17078_s6 + $0x20] sm:$0xf] }
  0xbf   : > { %v643_v21 = vadd.f32 %v642_v15, %v636_v14  ;;  %548 = vmatmul.f32.gmra.mxu1 %v11108_v6 }
  0xc0   : > { %507 = vmatmul.f32.gmra.mxu0 %v11108_v6  ;;  %v586_v6 = vld [vmem:[%s17074_s2] sm:$0x1] }
  0xc1   : > { %v644_v23 = vadd.f32 %v643_v21, %v637_v20 }
  0xc3   : > { %v645_v24 = vrot.slane %v644_v23, 4 }
  0xc5   : > { %v646_v25 = vadd.f32 %v645_v24, %v644_v23  ;;  %v10396_v23 = vld [vmem:[%s17078_s6 + $0x54] sm:$0xf]  ;;  %v8198_v24 = vld [vmem:[%s17078_s6 + $0x58] sm:$0xf0] }
  0xc6   : > { %v8201_v35 = vor.u32 %v10396_v23, %v8198_v24  ;;  %v10410_v23 = vld [vmem:[%s17078_s6 + $0xc4] sm:$0xf]  ;;  %v8110_v24 = vld [vmem:[%s17078_s6 + $0xc8] sm:$0xf0] }
  0xc7   : > { %v647_v26 = vrot.slane %v646_v25, 2  ;;  %551 = vmatmul.f32.gmra.mxu1 %v11110_v7 }
  0xc8   : > { %510 = vmatmul.f32.gmra.mxu0 %v11110_v7  ;;  %v8212_v7 = vld [vmem:[%s17078_s6 + $0x70] sm:$0xf] }
  0xc9   : > { %v648_v27 = vadd.f32 %v647_v26, %v646_v25  ;;  %v8213_v59 = vor.u32 %v10401_v56, %v8212_v7  ;;  %v8132_v25 = vld [vmem:[%s17078_s6 + $0xf0] sm:$0xf]  ;;  %v10392_v7 = vld [vmem:[%s17078_s6 + $0x34] sm:$0xf] }
  0xcb   : > { %v649_v28 = vrot.slane %v648_v27, 1  ;;  %1447 = vmatpush.bf16.msrb.mxu0 %v8213_v59  ;;  %v10413_v59 = vld [vmem:[%s17078_s6 + $0xd4] sm:$0xf0] }
  0xcd   : > { %v650_v29 = vadd.f32 %v649_v28, %v648_v27  ;;  %v8209_v28 = vor.u32 %v10398_v17, %v8206_v18  ;;  %v8174_v17 = vld [vmem:[%s17078_s6 + $0x28] sm:$0xf0]  ;;  %v10411_v18 = vld [vmem:[%s17078_s6 + $0xc4] sm:$0xf0] }
  0xcf   : > { %667 = vmatmul.f32.vlgmr.msra.gmra.mxu3 %v650_v29  ;;  %554 = vmatmul.f32.gmra.mxu1 %v11117_v10  ;;  %v10417_v29 = vld [vmem:[%s17078_s6 + $0xf4] sm:$0xf0] }
  0xd0   : > { %513 = vmatmul.f32.gmra.mxu0 %v11117_v10  ;;  %v10400_v10 = vld [vmem:[%s17078_s6 + $0x74] sm:$0xf]  ;;  %v8133_v36 = vor.u32 %v10417_v29, %v8132_v25  ;;  %v10389_v29 = vld [vmem:[%s17078_s6 + $0x14] sm:$0xf0] }
  0xd1   : > { %v8217_v62 = vor.u32 %v10400_v10, %v8214_v60  ;;  %1448 = vmatpush.bf16.msrb.mxu0 %v8205_v8  ;;  %v8182_v10 = vld [vmem:[%s17078_s6 + $0x38] sm:$0xf0] }
  0xd2   : > { %1285 = vmatpush.bf16.msrb.mxu2 %v8133_v36  ;;  %v10409_v36 = vld [vmem:[%s17078_s6 + $0xb4] sm:$0xf0] }
  0xd3   : > { %1476 = vmatpush.bf16.msrb.mxu1 %v8217_v62  ;;  %v10412_v62 = vld [vmem:[%s17078_s6 + $0xd4] sm:$0xf] }
  0xd7   : > { %557 = vmatmul.f32.gmra.mxu1 %v11123_v13 }
  0xd8   : > { %516 = vmatmul.f32.gmra.mxu0 %v11123_v13  ;;  %1477 = vmatpush.bf16.msrb.mxu1 %v8209_v28  ;;  %v8164_v28 = vld [vmem:[%s17078_s6 + $0x10] sm:$0xf] }
  0xdc   : > { %1478 = vmatpush.bf16.msrb.mxu1 %v8201_v35  ;;  %v8166_v35 = vld [vmem:[%s17078_s6 + $0x18] sm:$0xf0] }
  0xdf   : > { %560 = vmatmul.f32.gmra.mxu1 %v11129_v16 }
  0xe0   : > { %519 = vmatmul.f32.gmra.mxu0 %v11129_v16  ;;  %v10416_v16 = vld [vmem:[%s17078_s6 + $0xf4] sm:$0xf] }
  0xe7   : > { %563 = vmatmul.f32.gmra.mxu1 %v11135_v19 }
  0xe8   : > { %522 = vmatmul.f32.gmra.mxu0 %v11135_v19  ;;  %v10391_v19 = vld [vmem:[%s17078_s6 + $0x24] sm:$0xf0] }
  0xef   : > { %566 = vmatmul.f32.gmra.mxu1 %v11141_v22 }
  0xf0   : > { %525 = vmatmul.f32.gmra.mxu0 %v11141_v22  ;;  %v10387_v22 = vld [vmem:[%s17078_s6 + $0x4] sm:$0xf0] }
 0x152   : > { %v668_v47 = vpop.f32.mrf.mxu3 }
 0x153   : > { %v669_v49 = vadd.f32 1e-06, %v668_v47  ;;  %v8124_v47 = vld [vmem:[%s17078_s6 + $0xe0] sm:$0xf] }
 0x155   : > { %10876 = vrsqrt.f32 %v669_v49  ;;  %vm677_vm1 = vweird.f32 %v669_v49 }
 0x15b   : > { %v10877_v50 = vpop.eup %10876 }
 0x15c   : > { %v672_v51 = vmul.f32 %v10877_v50, %v669_v49  ;;  %vm678_vm0 = vweird.f32 %v10877_v50 }
 0x15d   : > { %vm679_vm2 = vmor %vm677_vm1, %vm678_vm0 }
 0x15e   : > { %v673_v52 = vmul.f32 %v10877_v50, %v672_v51  ;;  %v8126_v51 = vld [vmem:[%s17078_s6 + $0xe8] sm:$0xf0] }
 0x160   : > { %v674_v54 = vmul.f32 0.5, %v673_v52  ;;  %v8193_v52 = vor.u32 %v10394_v42, %v8190_v46  ;;  %v10386_v42 = vld [vmem:[%s17078_s6 + $0x4] sm:$0xf] }
 0x162   : > { %v675_v5 = vsub.f32 1.5, %v674_v54  ;;  %1479 = vmatpush.bf16.msrb.mxu1 %v8193_v52  ;;  %v8092_v52 = vld [vmem:[%s17078_s6 + $0xa0] sm:$0xf] }
 0x164   : > { %v676_v55 = vmul.f32 %v10877_v50, %v675_v5 }
 0x166   : > { %v680_v57 = vsel %vm679_vm2, %v10877_v50, %v676_v55  ;;  %v10414_v50 = vld [vmem:[%s17078_s6 + $0xe4] sm:$0xf]  ;;  %v10393_v55 = vld [vmem:[%s17078_s6 + $0x34] sm:$0xf0] }
 0x167   : > { %v681_v61 = vmul.f32 %v680_v57, %v586_v6  ;;  %v8129_v5 = vor.u32 %v10414_v50, %v8126_v51  ;;  %v8180_v6 = vld [vmem:[%s17078_s6 + $0x30] sm:$0xf]  ;;  %v8105_v50 = vor.u32 %v10408_v37, %v8102_v38  ;;  %v8158_v51 = vld [vmem:[%s17078_s6 + $0x8] sm:$0xf0] }
 0x168   : > { %v8181_v56 = vor.u32 %v10393_v55, %v8180_v6  ;;  %v8116_v57 = vld [vmem:[%s17078_s6 + $0xd0] sm:$0xf]  ;;  %v10406_v6 = vld [vmem:[%s17078_s6 + $0xa4] sm:$0xf]  ;;  %v8094_v55 = vld [vmem:[%s17078_s6 + $0xa8] sm:$0xf0] }
 0x169   : > { %v682_v1 = vperm.slane %v681_v61, 0  ;;  %v8117_v8 = vor.u32 %v10413_v59, %v8116_v57 }
 0x16b   : > { %v683_v13 = vmul.f32 %v682_v1, %v11176_v43  ;;  %v684_v9 = vmul.f32 %v682_v1, %v11179_v44  ;;  %v685_v11 = vmul.f32 %v682_v1, %v11182_v45  ;;  %v686_v12 = vmul.f32 %v682_v1, %v11191_v48 }
 0x16c   : > { %v687_v14 = vmul.f32 %v682_v1, %v11204_v53  ;;  %v690_v15 = vmul.f32 %v682_v1, %v11237_v4  ;;  %v8196_v53 = vld [vmem:[%s17078_s6 + $0x50] sm:$0xf]  ;;  %v10397_v4 = vld [vmem:[%s17078_s6 + $0x54] sm:$0xf0]  ;;  %v688_v30 = vmul.f32 %v682_v1, %v11215_v58  ;;  %v8134_v58 = vld [vmem:[%s17078_s6 + $0xf8] sm:$0xf0]  ;;  %v689_v39 = vmul.f32 %v682_v1, %v11226_v63 }
 0x16d   : > { %v11348_v43 = vadd.f32 %v11327_v0, %v683_v13  ;;  %v11351_v44 = vadd.f32 %v11327_v0, %v684_v9  ;;  %v11354_v45 = vadd.f32 %v11327_v0, %v685_v11  ;;  %v11357_v48 = vadd.f32 %v11327_v0, %v686_v12  ;;  %v10415_v63 = vld [vmem:[%s17078_s6 + $0xe4] sm:$0xf0]  ;;  %v8118_v1 = vld [vmem:[%s17078_s6 + $0xd8] sm:$0xf0]  ;;  %v10390_v12 = vld [vmem:[%s17078_s6 + $0x24] sm:$0xf] }
 0x16e   : > { %v11366_v20 = vadd.f32 %v11327_v0, %v687_v14  ;;  %v11369_v21 = vadd.f32 %v11327_v0, %v690_v15  ;;  %v8197_v32 = vor.u32 %v10397_v4, %v8196_v53  ;;  %v8137_v40 = vor.u32 %v10416_v16, %v8134_v58  ;;  %v8108_v14 = vld [vmem:[%s17078_s6 + $0xc0] sm:$0xf] }
 0x16f   : > { %v8050_v26 = vmul.f32 -1.442695, %v11348_v43  ;;  %v8051_v27 = vmul.f32 -1.442695, %v11351_v44  ;;  %v8052_v31 = vmul.f32 -1.442695, %v11354_v45  ;;  %v11416_v49 = vadd.f32 %v11327_v0, %v688_v30 }
 0x170   : > { %v8053_v33 = vmul.f32 -1.442695, %v11357_v48  ;;  %v11391_v34 = vmul.f32 -1.442695, %v11366_v20  ;;  %1449 = vmatpush.bf16.msrb.mxu0 %v8197_v32  ;;  %1314 = vmatpush.bf16.msrb.mxu3 %v8137_v40  ;;  %v8125_v54 = vor.u32 %v10415_v63, %v8124_v47  ;;  %v11446_v61 = vadd.f32 %v11327_v0, %v689_v39 }
 0x171   : > { %10878 = vpow2.f32 %v8050_v26  ;;  %v8055_v3 = vmul.f32 -1.442695, %v11416_v49  ;;  %v8185_v9 = vor.u32 %v10392_v7, %v8182_v10  ;;  %v8121_v11 = vor.u32 %v10412_v62, %v8118_v1 }
 0x172   : > { %10880 = vpow2.f32 %v8051_v27  ;;  %1286 = vmatpush.bf16.msrb.mxu2 %v8125_v54  ;;  %v8173_v15 = vor.u32 %v10391_v19, %v8172_v2  ;;  %v11006_v53 = vmov 0   ;;  %v8056_v4 = vmul.f32 -1.442695, %v11446_v61  ;;  %v10407_v54 = vld [vmem:[%s17078_s6 + $0xa4] sm:$0xf0] }
 0x173   : > { %10882 = vpow2.f32 %v8052_v31  ;;  %3994 = vst [vmem:[#allocation3] sm:$0xff] %v11006_v53  ;;  %v8109_v27 = vor.u32 %v10411_v18, %v8108_v14  ;;  %v8057_v30 = vmul.f32 -1.442695, %v11369_v21  ;;  %1480 = vmatpush.bf16.msrb.mxu1 %v8185_v9  ;;  %v8177_v31 = vor.u32 %v10390_v12, %v8174_v17  ;;  %v8084_v19 = vld [vmem:[%s17078_s6 + $0x90] sm:$0xf] }
 0x174   : > { %1450 = vmatpush.bf16.msrb.mxu0 %v8189_v41  ;;  %1315 = vmatpush.bf16.msrb.mxu3 %v8129_v5  ;;  %v8113_v32 = vor.u32 %v10410_v23, %v8110_v24  ;;  %v8165_v16 = vor.u32 %v10389_v29, %v8164_v28  ;;  %4012 = vst [vmem:[#allocation3 + $0x90] sm:$0xff] %v11006_v53  ;;  %v8156_v41 = vld [vmem:[%s17078_s6] sm:$0xf]  ;;  %v8086_v12 = vld [vmem:[%s17078_s6 + $0x98] sm:$0xf0] }
 0x175   : > { %v8157_v5 = vor.u32 %v10387_v22, %v8156_v41  ;;  %862 = vst [vmem:[#allocation2] sm:$0xf] %v11006_v53  ;;  %v8093_v62 = vor.u32 %v10407_v54, %v8092_v52  ;;  %v10432_v18 = vld [vmem:[%s17078_s6 + $0x174] sm:$0xf] }
 0x176   : > { %1287 = vmatpush.bf16.msrb.mxu2 %v8117_v8  ;;  %864 = vst [vmem:[#allocation2 + $0x8] sm:$0xf] %v11006_v53  ;;  %v8097_v8 = vor.u32 %v10406_v6, %v8094_v55 }
 0x177   : > { %v10879_v60 = vpop.eup %10878  ;;  %1481 = vmatpush.bf16.msrb.mxu1 %v8177_v31  ;;  %863 = vst [vmem:[#allocation2 + $0x4] sm:$0x1] %v11006_v53  ;;  %v10403_v31 = vld [vmem:[%s17078_s6 + $0x84] sm:$0xf0] }
 0x178   : > { %v11460_v0 = vadd.f32 1.0, %v10879_v60  ;;  %v10881_v13 = vpop.eup %10880  ;;  %1451 = vmatpush.bf16.msrb.mxu0 %v8181_v56  ;;  %1316 = vmatpush.bf16.msrb.mxu3 %v8121_v11  ;;  %865 = vst [vmem:[#allocation2 + $0xc] sm:$0x1] %v11006_v53  ;;  %v10404_v11 = vld [vmem:[%s17078_s6 + $0x94] sm:$0xf] }
 0x179   : > { %v10883_v25 = vpop.eup %10882  ;;  %v11486_v26 = vadd.f32 1.0, %v10881_v13  ;;  %v10405_v13 = vld [vmem:[%s17078_s6 + $0x94] sm:$0xf0]  ;;  %866 = vst [vmem:[#allocation2 + $0x10] sm:$0xf] %v11006_v53 }
 0x17a   : > { %10884 = vrcp.f32 %v11460_v0  ;;  %v11509_v58 = vadd.f32 1.0, %v10883_v25  ;;  %1288 = vmatpush.bf16.msrb.mxu2 %v8109_v27  ;;  %v743_v10 = vand.u32 2147483647, %v11460_v0  ;;  %v745_v60 = vand.u32 2147483648, %v11460_v0  ;;  %867 = vst [vmem:[#allocation2 + $0x14] sm:$0x1] %v11006_v53 }
 0x17b   : > { %10886 = vpow2.f32 %v8053_v33  ;;  %v10388_v33 = vld [vmem:[%s17078_s6 + $0x14] sm:$0xf]  ;;  %vm739_vm4 = vweird.f32 %v11460_v0  ;;  %868 = vst [vmem:[#allocation2 + $0x18] sm:$0xf] %v11006_v53  ;;  %v8085_v25 = vor.u32 %v10405_v13, %v8084_v19  ;;  %v8076_v27 = vld [vmem:[%s17078_s6 + $0x80] sm:$0xf]  ;;  %vm754_vm9 = vweird.f32 %v11486_v26 }
 0x17c   : > { %10888 = vpow2.f32 %v11391_v34  ;;  %1452 = vmatpush.bf16.msrb.mxu0 %v8173_v15  ;;  %v8100_v34 = vld [vmem:[%s17078_s6 + $0xb0] sm:$0xf]  ;;  %1317 = vmatpush.bf16.msrb.mxu3 %v8113_v32  ;;  %v8169_v63 = vor.u32 %v10388_v33, %v8166_v35  ;;  %vm11580_vm5 = vcmp.eq.f32.partialorder %v743_v10, 8.507059e+37  ;;  %v746_v24 = vor.u32 1.1754944e-38, %v745_v60  ;;  %869 = vst [vmem:[#allocation2 + $0x1c] sm:$0x1] %v11006_v53 }
 0x17d   : > { %10890 = vpow2.f32 %v8055_v3  ;;  %v8101_v40 = vor.u32 %v10409_v36, %v8100_v34  ;;  %v8161_v3 = vor.u32 %v10386_v42, %v8158_v51  ;;  %v1025_v32 = vld [vmem:[#allocation2] sm:$0xf]  ;;  %870 = vst [vmem:[#allocation2 + $0x20] sm:$0xf] %v11006_v53  ;;  %v8078_v34 = vld [vmem:[%s17078_s6 + $0x88] sm:$0xf0]  ;;  %vm769_vm14 = vweird.f32 %v11509_v58 }
 0x17e   : > { %10892 = vpow2.f32 %v8056_v4  ;;  %1482 = vmatpush.bf16.msrb.mxu1 %v8169_v63  ;;  %871 = vst [vmem:[#allocation2 + $0x24] sm:$0x1] %v11006_v53  ;;  %v1061_v37 = vshrl.u32 %v1025_v32, 16  ;;  %v1064_v38 = vshll.u32 %v1025_v32, 16  ;;  %v11641_v6 = vld [vmem:[#allocation2 + $0x4] sm:$0x1] }
 0x17f   : > { %10894 = vrcp.f32 %v11486_v26  ;;  %1289 = vmatpush.bf16.msrb.mxu2 %v8101_v40  ;;  %872 = vst [vmem:[#allocation2 + $0x28] sm:$0xf] %v11006_v53  ;;  %v8077_v40 = vor.u32 %v10403_v31, %v8076_v27  ;;  %v758_v55 = vand.u32 2147483647, %v11486_v26  ;;  %v775_v60 = vand.u32 2147483648, %v11509_v58 }
 0x180   : > { %v11519_v39 = vpop.eup %10884  ;;  %10896 = vpow2.f32 %v8057_v30  ;;  %1453 = vmatpush.bf16.msrb.mxu0 %v8165_v16  ;;  %1318 = vmatpush.bf16.msrb.mxu3 %v8105_v50  ;;  %v8089_v30 = vor.u32 %v10404_v11, %v8086_v12  ;;  %v10402_v16 = vld [vmem:[%s17078_s6 + $0x84] sm:$0xf]  ;;  %873 = vst [vmem:[#allocation2 + $0x2c] sm:$0x1] %v11006_v53  ;;  %v11635_v50 = vrot.slane %v1061_v37, 4  ;;  %v11637_v51 = vrot.slane %v1064_v38, 5 }
 0x181   : > { %v10887_v46 = vpop.eup %10886  ;;  %v735_v47 = vmul.f32 %v11519_v39, %v11460_v0  ;;  %10898 = vrcp.f32 %v11509_v58  ;;  %vm740_vm3 = vweird.f32 %v11519_v39  ;;  %874 = vst [vmem:[#allocation2 + $0x30] sm:$0xf] %v11006_v53  ;;  %v1070_v12 = vshll.u32 %v11641_v6, 16  ;;  %v8302_v27 = vld [vmem:[%s17078_s6 + $0x178] sm:$0xf0] }
 0x182   : > { %v10889_v7 = vpop.eup %10888  ;;  %v11552_v59 = vadd.f32 1.0, %v10887_v46  ;;  %vm11589_vm6 = vmor %vm739_vm4, %vm740_vm3  ;;  %1483 = vmatpush.bf16.msrb.mxu1 %v8161_v3  ;;  %875 = vst [vmem:[#allocation2 + $0x34] sm:$0x1] %v11006_v53  ;;  %v10433_v3 = vld [vmem:[%s17078_s6 + $0x174] sm:$0xf0]  ;;  %vm759_vm1 = vcmp.eq.f32.partialorder %v758_v55, 8.507059e+37  ;;  %v8305_v31 = vor.u32 %v10432_v18, %v8302_v27 }
 0x183   : > { %v736_v56 = vsub.f32 1.0, %v735_v47  ;;  %v10891_v57 = vpop.eup %10890  ;;  %v11575_v14 = vadd.f32 1.0, %v10889_v7  ;;  %1290 = vmatpush.bf16.msrb.mxu2 %v8093_v62  ;;  %v760_v47 = vand.u32 2147483648, %v11486_v26  ;;  %876 = vst [vmem:[#allocation2 + $0x38] sm:$0xf] %v11006_v53 }
 0x184   : > { %v10893_v1 = vpop.eup %10892  ;;  %1454 = vmatpush.bf16.msrb.mxu0 %v8157_v5  ;;  %v11577_v15 = vadd.f32 1.0, %v10891_v57  ;;  %10900 = vrcp.f32 %v11552_v59  ;;  %1319 = vmatpush.bf16.msrb.mxu3 %v8097_v8  ;;  %v974_v5 = vld [vmem:[#allocation2 + $0x8] sm:$0xf]  ;;  %877 = vst [vmem:[#allocation2 + $0x3c] sm:$0x1] %v11006_v53  ;;  %vm784_vm4 = vweird.f32 %v11552_v59 }
 0x185   : > { %v737_v2 = vmul.f32 %v11519_v39, %v736_v56  ;;  %v11565_v9 = vpop.eup %10894  ;;  %v11585_v4 = vadd.f32 1.0, %v10893_v1  ;;  %10902 = vrcp.f32 %v11575_v14  ;;  %v773_v57 = vand.u32 2147483647, %v11509_v58  ;;  %878 = vst [vmem:[#allocation2 + $0x40] sm:$0xf] %v11006_v53 }
 0x186   : > { %v10897_v0 = vpop.eup %10896  ;;  %v750_v33 = vmul.f32 %v11565_v9, %v11486_v26  ;;  %10904 = vrcp.f32 %v11577_v15  ;;  %vm755_vm12 = vweird.f32 %v11565_v9  ;;  %v17099_v1 = vmov 0  ;;  %879 = vst [vmem:[#allocation2 + $0x44] sm:$0x1] %v11006_v53  ;;  %v10430_v38 = vld [vmem:[%s17078_s6 + $0x164] sm:$0xf] }
 0x187   : > { %v738_v17 = vadd.f32 %v11519_v39, %v737_v2  ;;  %v11598_v28 = vpop.eup %10898  ;;  %1291 = vmatpush.bf16.msrb.mxu2 %v8085_v25  ;;  %10906 = vrcp.f32 %v11585_v4  ;;  %v17100_v1 = vsel %vm11655_vm13, 4294967295, %v17099_v1  ;;  %v8300_v2 = vld [vmem:[%s17078_s6 + $0x170] sm:$0xf]  ;;  %vm11685_vm0 = vmor %vm754_vm9, %vm755_vm12  ;;  %v761_v23 = vor.u32 1.1754944e-38, %v760_v47  ;;  %880 = vst [vmem:[#allocation2 + $0x48] sm:$0xf] %v11006_v53 }
 0x188   : > { %v765_v41 = vmul.f32 %v11598_v28, %v11509_v58  ;;  %1320 = vmatpush.bf16.msrb.mxu3 %v8089_v30  ;;  %v751_v42 = vsub.f32 1.0, %v750_v33  ;;  %17101 = vst [vmem:[#allocation4_spill] sm:$0xff] %v17100_v1  ;;  %vm770_vm15 = vweird.f32 %v11598_v28  ;;  %v1067_v25 = vor.u32 %v11637_v51, %v11635_v50  ;;  %v8292_v58 = vld [vmem:[%s17078_s6 + $0x160] sm:$0xf]  ;;  %vm11747_vm9 = vmand %vm977_vm10, %vm978_vm11  ;;  %v983_v18 = vld [vmem:[#allocation2 + $0x10] sm:$0xf] }
 0x189   : > { %v742_v29 = vsel %vm11589_vm6, %v11519_v39, %v738_v17  ;;  %v11620_v39 = vadd.f32 1.0, %v10897_v0  ;;  %v8301_v17 = vor.u32 %v10433_v3, %v8300_v2  ;;  %881 = vst [vmem:[#allocation2 + $0x4c] sm:$0x1] %v11006_v53  ;;  %vm11708_vm2 = vmor %vm769_vm14, %vm770_vm15  ;;  %vm774_vm3 = vcmp.eq.f32.partialorder %v773_v57, 8.507059e+37  ;;  %v986_v0 = vld [vmem:[#allocation2 + $0x14] sm:$0x1] }
 0x18a   : > { %v747_v35 = vsel %vm11580_vm5, %v746_v24, %v742_v29  ;;  %v11628_v46 = vpop.eup %10900  ;;  %v752_v52 = vmul.f32 %v11565_v9, %v751_v42  ;;  %v766_v7 = vsub.f32 1.0, %v765_v41  ;;  %vm1057_vm5 = vsmask.f32 3328  ;;  %3995 = vst [vmem:[#allocation3 + $0x8] sm:$0x11] %v11006_v53 }
 0x18b   : > { %v854_v36 = vmul.f32 %v747_v35, %v11348_v43  ;;  %v8081_v43 = vor.u32 %v10402_v16, %v8078_v34  ;;  %1292 = vmatpush.bf16.msrb.mxu2 %v8077_v40  ;;  %v11651_v62 = vpop.eup %10902  ;;  %v11671_v19 = vmul.f32 %v11628_v46, %v11552_v59  ;;  %vm1058_vm6 = vsmask.f32 7440  ;;  %v10431_v16 = vld [vmem:[%s17078_s6 + $0x164] sm:$0xf0]  ;;  %v8294_v40 = vld [vmem:[%s17078_s6 + $0x168] sm:$0xf0] }
 0x18c   : > { %v753_v10 = vadd.f32 %v11565_v9, %v752_v52  ;;  %v767_v8 = vmul.f32 %v11598_v28, %v766_v7  ;;  %v11673_v13 = vpop.eup %10904  ;;  %vm785_vm7 = vweird.f32 %v11628_v46  ;;  %v795_v34 = vmul.f32 %v11651_v62, %v11575_v14  ;;  %3997 = vst [vmem:[#allocation3 + $0x18] sm:$0x11] %v11006_v53  ;;  %v980_v41 = vld [vmem:[#allocation2 + $0xc] sm:$0x1]  ;;  %vm11796_vm15 = vmor %vm1057_vm5, %vm1058_vm6 }
 0x18d   : > { %v882_v22 = vpack.c.bf16 %v854_v36, %v854_v36  ;;  %1321 = vmatpush.bf16.msrb.mxu3 %v8081_v43  ;;  %v11689_v24 = vpop.eup %10906  ;;  %vm799_vm8 = vweird.f32 %v11575_v14  ;;  %v11737_v43 = vrot.slane %v1070_v12, 5  ;;  %v8297_v42 = vor.u32 %v10430_v38, %v8294_v40  ;;  %3999 = vst [vmem:[#allocation3 + $0x28] sm:$0x11] %v11006_v53  ;;  %vm11776_vm12 = vmor %vm784_vm4, %vm785_vm7 }
 0x18e   : > { %v757_v26 = vsel %vm11685_vm0, %v11565_v9, %v753_v10  ;;  %v768_v29 = vadd.f32 %v11598_v28, %v767_v8  ;;  %v776_v9 = vor.u32 1.1754944e-38, %v775_v60  ;;  %v781_v51 = vsub.f32 1.0, %v11671_v19  ;;  %4001 = vst [vmem:[#allocation3 + $0x38] sm:$0x11] %v11006_v53  ;;  %v10453_v8 = vld [vmem:[%s17078_s6 + $0x1f4] sm:$0xf0] }
 0x18f   : > { %v891_v63 = vshrl.u32 %v882_v22, 16  ;;  %v894_v54 = vshll.u32 %v882_v22, 16  ;;  %1677 = vmatpush.bf16.msra.mxu2 %v8301_v17  ;;  %v762_v33 = vsel %vm759_vm1, %v761_v23, %v757_v26  ;;  %v11735_v22 = vrot.slane %v1067_v25, 4  ;;  %4003 = vst [vmem:[#allocation3 + $0x48] sm:$0x11] %v11006_v53 }
 0x190   : > { %v772_v35 = vsel %vm11708_vm2, %v11598_v28, %v768_v29  ;;  %v855_v37 = vmul.f32 %v762_v33, %v11351_v44  ;;  %v8293_v28 = vor.u32 %v10431_v16, %v8292_v58  ;;  %v788_v52 = vand.u32 2147483647, %v11552_v59  ;;  %4005 = vst [vmem:[#allocation3 + $0x58] sm:$0x11] %v11006_v53  ;;  %v992_v33 = vld [vmem:[#allocation2 + $0x1c] sm:$0x1] }
 0x191   : > { %v11645_v56 = vrot.slane %v891_v63, 7  ;;  %1706 = vmatpush.bf16.msra.mxu3 %v8305_v31  ;;  %v777_v36 = vsel %vm774_vm3, %v776_v9, %v772_v35  ;;  %v8140_v63 = vld [vmem:[#allocation2] sm:$0xf]  ;;  %v796_v55 = vsub.f32 1.0, %v795_v34  ;;  %v803_v7 = vand.u32 2147483647, %v11575_v14 }
 0x192   : > { %v856_v44 = vmul.f32 %v777_v36, %v11354_v45  ;;  %v883_v50 = vpack.c.bf16 %v855_v37, %v855_v37  ;;  %v782_v57 = vmul.f32 %v11628_v46, %v781_v51  ;;  %v805_v60 = vand.u32 2147483648, %v11575_v14  ;;  %4007 = vst [vmem:[#allocation3 + $0x68] sm:$0x11] %v11006_v53  ;;  %v989_v31 = vld [vmem:[#allocation2 + $0x18] sm:$0xf] }
 0x193   : > { %v896_v11 = vor.u32 %v894_v54, %v11645_v56  ;;  %v897_v47 = vrot.slane %v11645_v56, 4  ;;  %1678 = vmatpush.bf16.msra.mxu2 %v8293_v28  ;;  %v17106_v54 = vmov 0  ;;  %vm11757_vm10 = vcmp.eq.f32.partialorder %v788_v52, 8.507059e+37  ;;  %4009 = vst [vmem:[#allocation3 + $0x78] sm:$0x11] %v11006_v53 }
 0x194   : > { %v17107_v54 = vsel %vm11747_vm9, 4294967295, %v17106_v54  ;;  %v884_v45 = vpack.c.bf16 %v856_v44, %v856_v44  ;;  %v899_v56 = vshrl.u32 %v883_v50, 16  ;;  %v902_v10 = vshll.u32 %v883_v50, 16  ;;  %4011 = vst [vmem:[#allocation3 + $0x88] sm:$0x11] %v11006_v53 }
 0x195   : > { %v975_v30 = vsel %vm11655_vm13, %v896_v11, %v974_v5  ;;  %17108 = vst [vmem:[#allocation5_spill] sm:$0xff] %v17107_v54  ;;  %v790_v5 = vand.u32 2147483648, %v11552_v59  ;;  %1707 = vmatpush.bf16.msra.mxu3 %v8297_v42  ;;  %v797_v19 = vmul.f32 %v11651_v62, %v796_v55  ;;  %v981_v12 = vsel %vm11747_vm9, %v897_v47, %v980_v41  ;;  %v10429_v50 = vld [vmem:[%s17078_s6 + $0x154] sm:$0xf0]  ;;  %v10428_v51 = vld [vmem:[%s17078_s6 + $0x154] sm:$0xf] }
 0x196   : > { %976 = vst [vmem:[#allocation2 + $0x8] sm:$0xf] %v975_v30  ;;  %v907_v2 = vshrl.u32 %v884_v45, 16  ;;  %v910_v3 = vshll.u32 %v884_v45, 16  ;;  %v783_v23 = vadd.f32 %v11628_v46, %v782_v57  ;;  %vm800_vm11 = vweird.f32 %v11651_v62  ;;  %v8286_v55 = vld [vmem:[%s17078_s6 + $0x158] sm:$0xf0] }
 0x197   : > { %v11769_v25 = vmul.f32 %v11673_v13, %v11577_v15  ;;  %v901_v30 = vrot.slane %v899_v56, 7  ;;  %v791_v58 = vor.u32 1.1754944e-38, %v790_v5  ;;  %v798_v16 = vadd.f32 %v11651_v62, %v797_v19  ;;  %4013 = vst [vmem:[#allocation3 + $0x98] sm:$0x11] %v11006_v53  ;;  %vm11790_vm14 = vmor %vm799_vm8, %vm800_vm11  ;;  %v10452_v14 = vld [vmem:[%s17078_s6 + $0x1f4] sm:$0xf] }
 0x198   : > { %v909_v9 = vrot.slane %v907_v2, 7  ;;  %v787_v35 = vsel %vm11776_vm12, %v11628_v46, %v783_v23  ;;  %982 = vst [vmem:[#allocation2 + $0xc] sm:$0x1] %v981_v12  ;;  %v17115_v46 = vmov 0  ;;  %v806_v56 = vor.u32 1.1754944e-38, %v805_v60 }
 0x199   : > { %v904_v36 = vor.u32 %v902_v10, %v901_v30  ;;  %v905_v37 = vrot.slane %v901_v30, 4  ;;  %v17116_v46 = vsel %vm11796_vm15, 4294967295, %v17115_v46  ;;  %v792_v40 = vsel %vm11757_vm10, %v791_v58, %v787_v35  ;;  %v8396_v2 = vld [vmem:[%s17078_s6 + $0x1f0] sm:$0xf] }
 0x19a   : > { %17117 = vst [vmem:[#allocation6_spill] sm:$0xff] %v17116_v46  ;;  %v912_v53 = vor.u32 %v910_v3, %v909_v9  ;;  %v913_v38 = vrot.slane %v909_v9, 4  ;;  %v802_v41 = vsel %vm11790_vm14, %v11651_v62, %v798_v16  ;;  %v857_v62 = vmul.f32 %v792_v40, %v11357_v48  ;;  %v8388_v9 = vld [vmem:[%s17078_s6 + $0x1e0] sm:$0xf] }
 0x19b   : > { %v984_v42 = vsel %vm11655_vm13, %v904_v36, %v983_v18  ;;  %v987_v47 = vsel %vm11747_vm9, %v905_v37, %v986_v0  ;;  %v8289_v57 = vor.u32 %v10428_v51, %v8286_v55  ;;  %vm804_vm0 = vcmp.eq.f32.partialorder %v803_v7, 8.507059e+37  ;;  %v10427_v18 = vld [vmem:[%s17078_s6 + $0x144] sm:$0xf0]  ;;  %v3348_v46 = vld [vmem:[%s17080_s8 + $0x1a0] sm:$0xff] }
 0x19c   : > { %985 = vst [vmem:[#allocation2 + $0x10] sm:$0xf] %v984_v42  ;;  %v990_v52 = vsel %vm11655_vm13, %v912_v53, %v989_v31  ;;  %v993_v45 = vsel %vm11747_vm9, %v913_v38, %v992_v33  ;;  %v885_v48 = vpack.c.bf16 %v857_v62, %v857_v62  ;;  %v1073_v3 = vsel %vm11796_vm15, %v11735_v22, %v11737_v43  ;;  %v8398_v22 = vld [vmem:[%s17078_s6 + $0x1f8] sm:$0xf0]  ;;  %v10451_v33 = vld [vmem:[%s17078_s6 + $0x1e4] sm:$0xf0] }
 0x19d   : > { %v10382_v11 = vld [vmem:[#allocation2 + $0x4] sm:$0xf0]  ;;  %991 = vst [vmem:[#allocation2 + $0x18] sm:$0xf] %v990_v52  ;;  %v807_v60 = vsel %vm804_vm0, %v806_v56, %v802_v41  ;;  %1708 = vmatpush.bf16.msra.mxu3 %v8289_v57  ;;  %v811_v43 = vsub.f32 1.0, %v11769_v25  ;;  %v8401_v12 = vor.u32 %v10452_v14, %v8398_v22  ;;  %v1189_v31 = vunpack.c.l.b16 %v1073_v3 }
 0x19e   : > { %v1026_v17 = vld [vmem:[#allocation2 + $0x8] sm:$0xf]  ;;  %v8141_v27 = vor.u32 %v10382_v11, %v8140_v63  ;;  %v8284_v63 = vld [vmem:[%s17078_s6 + $0x150] sm:$0xf]  ;;  %988 = vst [vmem:[#allocation2 + $0x14] sm:$0x1] %v987_v47  ;;  %v858_v7 = vmul.f32 %v807_v60, %v11366_v20  ;;  %v8397_v11 = vor.u32 %v10453_v8, %v8396_v2  ;;  %v8389_v36 = vor.u32 %v10451_v33, %v8388_v9 }
 0x19f   : > { %v1075_v26 = vshrl.u32 %v1026_v17, 16  ;;  %v1078_v29 = vshll.u32 %v1026_v17, 16  ;;  %v8285_v5 = vor.u32 %v10429_v50, %v8284_v63  ;;  %994 = vst [vmem:[#allocation2 + $0x1c] sm:$0x1] %v993_v45  ;;  %v915_v19 = vshrl.u32 %v885_v48, 16  ;;  %1909 = vmatpush.bf16.msra.mxu1 %v8401_v12 }
 0x1a0   : > { %1455 = vmatmul.bf16.vlgmr.msrb.gmra.mxu0 %v8141_v27  ;;  %1484 = vmatmul.bf16.vlgmr.msrb.gmra.mxu1 %v8141_v27  ;;  %v8276_v17 = vld [vmem:[%s17078_s6 + $0x140] sm:$0xf]  ;;  %v10426_v20 = vld [vmem:[%s17078_s6 + $0x144] sm:$0xf]  ;;  %v11857_v0 = vld [vmem:[#allocation2 + $0xc] sm:$0x1]  ;;  %v886_v23 = vpack.c.bf16 %v858_v7, %v858_v7  ;;  %v11875_v37 = vmul.f32 %v11689_v24, %v11585_v4  ;;  %vm815_vm1 = vweird.f32 %v11673_v13  ;;  %vm814_vm2 = vweird.f32 %v11577_v15 }
 0x1a1   : > { %v1077_v59 = vrot.slane %v1075_v26, 4  ;;  %v1080_v34 = vrot.slane %v1078_v29, 5  ;;  %1679 = vmatpush.bf16.msra.mxu2 %v8285_v5  ;;  %v11859_v27 = vrot.slane %v915_v19, 7  ;;  %v918_v26 = vshll.u32 %v885_v48, 16  ;;  %1880 = vmatpush.bf16.msra.mxu0 %v8397_v11  ;;  %v8278_v29 = vld [vmem:[%s17078_s6 + $0x148] sm:$0xf0]  ;;  %vm11942_vm3 = vmor %vm814_vm2, %vm815_vm1 }
 0x1a2   : > { %v8277_v25 = vor.u32 %v10427_v18, %v8276_v17  ;;  %v1084_v30 = vshll.u32 %v11857_v0, 16  ;;  %v8281_v32 = vor.u32 %v10426_v20, %v8278_v29  ;;  %v820_v35 = vand.u32 2147483648, %v11577_v15  ;;  %v995_v62 = vld [vmem:[#allocation2 + $0x20] sm:$0xf]  ;;  %v1001_v60 = vld [vmem:[#allocation2 + $0x28] sm:$0xf] }
 0x1a3   : > { %v1081_v44 = vor.u32 %v1080_v34, %v1077_v59  ;;  %v8144_v58 = vld [vmem:[#allocation2 + $0x10] sm:$0xf]  ;;  %v921_v59 = vrot.slane %v11859_v27, 4  ;;  %v923_v34 = vshrl.u32 %v886_v23, 16  ;;  %v920_v41 = vor.u32 %v918_v26, %v11859_v27  ;;  %v10450_v8 = vld [vmem:[%s17078_s6 + $0x1e4] sm:$0xf] }
 0x1a4   : > { %v1027_v16 = vld [vmem:[#allocation2 + $0x10] sm:$0xf]  ;;  %v1086_v28 = vrot.slane %v1084_v30, 5  ;;  %v10383_v53 = vld [vmem:[#allocation2 + $0x14] sm:$0xf0]  ;;  %1709 = vmatpush.bf16.msra.mxu3 %v8281_v32  ;;  %vm829_vm5 = vweird.f32 %v11585_v4  ;;  %vm830_vm6 = vweird.f32 %v11689_v24  ;;  %vm1529_vm10 = vcmask 1042432  }
 0x1a5   : > { %v11826_v10 = vrot.slane %v1081_v44, 4  ;;  %1680 = vmatpush.bf16.msra.mxu2 %v8277_v25  ;;  %v1028_v38 = vld [vmem:[#allocation2 + $0x18] sm:$0xf]  ;;  %v1089_v40 = vshrl.u32 %v1027_v16, 16  ;;  %v812_v44 = vmul.f32 %v11673_v13, %v811_v43  ;;  %v8145_v42 = vor.u32 %v10383_v53, %v8144_v58  ;;  %v11879_v47 = vld [vmem:[#allocation2 + $0x14] sm:$0x1]  ;;  %1881 = vmatpush.bf16.msra.mxu0 %v8389_v36  ;;  %vm831_vm8 = vmor %vm829_vm5, %vm830_vm6 }
 0x1a6   : > { %v1092_v63 = vshll.u32 %v1027_v16, 16  ;;  %v1103_v50 = vshrl.u32 %v1028_v38, 16  ;;  %v1106_v51 = vshll.u32 %v1028_v38, 16  ;;  %v11884_v45 = vld [vmem:[#allocation2 + $0x1c] sm:$0x1]  ;;  %v1098_v55 = vshll.u32 %v11879_v47, 16 }
 0x1a7   : > { %v1087_v52 = vsel %vm11796_vm15, %v11826_v10, %v1086_v28  ;;  %v1091_v5 = vrot.slane %v1089_v40, 4  ;;  %v925_v56 = vrot.slane %v923_v34, 7  ;;  %v1112_v7 = vshll.u32 %v11884_v45, 16  ;;  %v8390_v11 = vld [vmem:[%s17078_s6 + $0x1e8] sm:$0xf0] }
 0x1a8   : > { %v1190_v57 = vunpack.c.l.b16 %v1087_v52  ;;  %v1094_v48 = vrot.slane %v1092_v63, 5  ;;  %v1105_v2 = vrot.slane %v1103_v50, 4  ;;  %v1108_v3 = vrot.slane %v1106_v51, 5  ;;  %v8380_v17 = vld [vmem:[%s17078_s6 + $0x1d0] sm:$0xf] }
 0x1a9   : > { %v11890_v14 = vrot.slane %v1098_v55, 5  ;;  %v926_v10 = vshll.u32 %v886_v23, 16  ;;  %v929_v19 = vrot.slane %v925_v56, 4  ;;  %v10449_v18 = vld [vmem:[%s17078_s6 + $0x1d4] sm:$0xf0]  ;;  %v1114_v23 = vrot.slane %v1112_v7, 5 }
 0x1aa   : > { %v1197_v22 = vpack.c.b16 %v1190_v57, %v1189_v31  ;;  %v1095_v43 = vor.u32 %v1094_v48, %v1091_v5  ;;  %v1109_v12 = vor.u32 %v1108_v3, %v1105_v2  ;;  %v10448_v20 = vld [vmem:[%s17078_s6 + $0x1d4] sm:$0xf]  ;;  %v996_v26 = vsel %vm11655_vm13, %v920_v41, %v995_v62  ;;  %v8382_v29 = vld [vmem:[%s17078_s6 + $0x1d8] sm:$0xf0]  ;;  %v998_v30 = vld [vmem:[#allocation2 + $0x24] sm:$0x1] }
 0x1ab   : > { %v928_v27 = vor.u32 %v926_v10, %v925_v56  ;;  %v8393_v25 = vor.u32 %v10450_v8, %v8390_v11  ;;  %997 = vst [vmem:[#allocation2 + $0x20] sm:$0xf] %v996_v26  ;;  %v8381_v9 = vor.u32 %v10449_v18, %v8380_v17  ;;  %v1004_v33 = vld [vmem:[#allocation2 + $0x2c] sm:$0x1]  ;;  %v813_v58 = vadd.f32 %v11673_v13, %v812_v44  ;;  %v8268_v53 = vld [vmem:[%s17078_s6 + $0x130] sm:$0xf] }
 0x1ac   : > { %1293 = vmatmul.bf16.vlgmr.msrb.gmra.mxu2 %v1197_v22  ;;  %1322 = vmatmul.bf16.vlgmr.msrb.gmra.mxu3 %v1197_v22  ;;  %v1096_v31 = vrot.slane %v1095_v43, 4  ;;  %v1110_v32 = vrot.slane %v1109_v12, 4  ;;  %v8385_v34 = vor.u32 %v10448_v20, %v8382_v29  ;;  %v999_v36 = vsel %vm11747_vm9, %v921_v59, %v998_v30  ;;  %v10425_v38 = vld [vmem:[%s17078_s6 + $0x134] sm:$0xf0]  ;;  %v10424_v40 = vld [vmem:[%s17078_s6 + $0x134] sm:$0xf] }
 0x1ad   : > { %v1002_v16 = vsel %vm11655_vm13, %v928_v27, %v1001_v60  ;;  %1910 = vmatpush.bf16.msra.mxu1 %v8393_v25  ;;  %v1005_v28 = vsel %vm11747_vm9, %v929_v19, %v1004_v33  ;;  %1882 = vmatpush.bf16.msra.mxu0 %v8381_v9  ;;  %v8269_v41 = vor.u32 %v10425_v38, %v8268_v53  ;;  %v8270_v59 = vld [vmem:[%s17078_s6 + $0x138] sm:$0xf0]  ;;  %v8372_v44 = vld [vmem:[%s17078_s6 + $0x1c0] sm:$0xf]  ;;  %v10447_v63 = vld [vmem:[%s17078_s6 + $0x1c4] sm:$0xf0]  ;;  %10908 = vrcp.f32 %v11620_v39 }
 0x1ae   : > { %1003 = vst [vmem:[#allocation2 + $0x28] sm:$0xf] %v1002_v16  ;;  %v10446_v50 = vld [vmem:[%s17078_s6 + $0x1c4] sm:$0xf]  ;;  %v8373_v62 = vor.u32 %v10447_v63, %v8372_v44  ;;  %v8374_v52 = vld [vmem:[%s17078_s6 + $0x1c8] sm:$0xf0]  ;;  %v817_v5 = vsel %vm11942_vm3, %v11673_v13, %v813_v58  ;;  %v1101_v56 = vsel %vm11796_vm15, %v1096_v31, %v11890_v14  ;;  %v1115_v3 = vsel %vm11796_vm15, %v1110_v32, %v1114_v23 }
 0x1af   : > { %1000 = vst [vmem:[#allocation2 + $0x24] sm:$0x1] %v999_v36  ;;  %1681 = vmatpush.bf16.msra.mxu2 %v8269_v41  ;;  %v818_v55 = vand.u32 2147483647, %v11577_v15  ;;  %v8377_v57 = vor.u32 %v10446_v50, %v8374_v52  ;;  %v821_v48 = vor.u32 1.1754944e-38, %v820_v35  ;;  %v826_v2 = vsub.f32 1.0, %v11875_v37 }
 0x1b0   : > { %1460 = vmatmul.bf16.gmra.mxu0 %v8145_v42  ;;  %1489 = vmatmul.bf16.gmra.mxu1 %v8145_v42  ;;  %v8273_v42 = vor.u32 %v10424_v40, %v8270_v59  ;;  %1006 = vst [vmem:[#allocation2 + $0x2c] sm:$0x1] %v1005_v28  ;;  %v833_v13 = vand.u32 2147483647, %v11585_v4  ;;  %v835_v60 = vand.u32 2147483648, %v11585_v4  ;;  %v1191_v37 = vunpack.c.l.b16 %v1101_v56 }
 0x1b1   : > { %1911 = vmatpush.bf16.msra.mxu1 %v8385_v34  ;;  %1883 = vmatpush.bf16.msra.mxu0 %v8373_v62  ;;  %vm819_vm4 = vcmp.eq.f32.partialorder %v818_v55, 8.507059e+37  ;;  %v8364_v8 = vld [vmem:[%s17078_s6 + $0x1b0] sm:$0xf]  ;;  %v827_v15 = vmul.f32 %v11689_v24, %v826_v2  ;;  %v10445_v35 = vld [vmem:[%s17078_s6 + $0x1b4] sm:$0xf0]  ;;  %v1192_v43 = vunpack.c.l.b16 %v1115_v3  ;;  %vm1530_vm11 = vcmask 1046532  }
 0x1b2   : > { %1710 = vmatpush.bf16.msra.mxu3 %v8273_v42  ;;  %v1029_v14 = vld [vmem:[#allocation2 + $0x20] sm:$0xf]  ;;  %v822_v7 = vsel %vm819_vm4, %v821_v48, %v817_v5  ;;  %vm11972_vm7 = vcmp.eq.f32.partialorder %v833_v13, 8.507059e+37  ;;  %v8365_v23 = vor.u32 %v10445_v35, %v8364_v8  ;;  %v10444_v27 = vld [vmem:[%s17078_s6 + $0x1b4] sm:$0xf]  ;;  %v836_v31 = vor.u32 1.1754944e-38, %v835_v60  ;;  %vm12094_vm12 = vmor %vm1529_vm10, %vm1530_vm11 }
 0x1b3   : > { %v8148_v10 = vld [vmem:[#allocation2 + $0x20] sm:$0xf]  ;;  %v1117_v19 = vshrl.u32 %v1029_v14, 16  ;;  %v1120_v11 = vshll.u32 %v1029_v14, 16  ;;  %v828_v18 = vadd.f32 %v11689_v24, %v827_v15  ;;  %v859_v20 = vmul.f32 %v822_v7, %v11416_v49  ;;  %v8366_v16 = vld [vmem:[%s17078_s6 + $0x1b8] sm:$0xf0] }
 0x1b4   : > { %v8260_v53 = vld [vmem:[%s17078_s6 + $0x120] sm:$0xf]  ;;  %v1198_v38 = vpack.c.b16 %v1192_v43, %v1191_v37  ;;  %v10422_v44 = vld [vmem:[%s17078_s6 + $0x124] sm:$0xf]  ;;  %v8262_v42 = vld [vmem:[%s17078_s6 + $0x128] sm:$0xf0]  ;;  %v8369_v52 = vor.u32 %v10444_v27, %v8366_v16  ;;  %vm844_vm0 = vweird.f32 %v11620_v39 }
 0x1b5   : > { %v10384_v12 = vld [vmem:[#allocation2 + $0x24] sm:$0xf0]  ;;  %1912 = vmatpush.bf16.msra.mxu1 %v8377_v57  ;;  %v1119_v25 = vrot.slane %v1117_v19, 4  ;;  %v1122_v29 = vrot.slane %v1120_v11, 5  ;;  %v832_v33 = vsel %vm831_vm8, %v11689_v24, %v828_v18  ;;  %v887_v58 = vpack.c.bf16 %v859_v20, %v859_v20  ;;  %1884 = vmatpush.bf16.msra.mxu0 %v8365_v23  ;;  %v1007_v62 = vld [vmem:[#allocation2 + $0x30] sm:$0xf]  ;;  %v12036_v18 = vpop.f32.mrf.mxu1 }
 0x1b6   : > { %v1030_v17 = vld [vmem:[#allocation2 + $0x28] sm:$0xf]  ;;  %v11981_v26 = vld [vmem:[#allocation2 + $0x24] sm:$0x1]  ;;  %v8149_v32 = vor.u32 %v10384_v12, %v8148_v10  ;;  %v837_v4 = vsel %vm11972_vm7, %v836_v31, %v832_v33  ;;  %v8265_v3 = vor.u32 %v10422_v44, %v8262_v42  ;;  %v8358_v60 = vld [vmem:[%s17078_s6 + $0x1a8] sm:$0xf0] }
 0x1b7   : > { %v1131_v30 = vshrl.u32 %v1030_v17, 16  ;;  %v11987_v9 = vld [vmem:[#allocation2 + $0x2c] sm:$0x1]  ;;  %v1134_v49 = vshll.u32 %v1030_v17, 16  ;;  %v1123_v34 = vor.u32 %v1122_v29, %v1119_v25  ;;  %v1126_v36 = vshll.u32 %v11981_v26, 16  ;;  %17122 = vst [vmem:[#allocation7_spill] sm:$0xff] %v12036_v18 }
 0x1b8   : > { %v10423_v24 = vld [vmem:[%s17078_s6 + $0x124] sm:$0xf0]  ;;  %v860_v41 = vmul.f32 %v837_v4, %v11446_v61  ;;  %v931_v59 = vshrl.u32 %v887_v58, 16  ;;  %v1140_v50 = vshll.u32 %v11987_v9, 16  ;;  %v934_v51 = vshll.u32 %v887_v58, 16  ;;  %1711 = vmatpush.bf16.msra.mxu3 %v8265_v3 }
 0x1b9   : > { %v1133_v28 = vrot.slane %v1131_v30, 4  ;;  %v1136_v40 = vrot.slane %v1134_v49, 5  ;;  %v12009_v63 = vrot.slane %v1123_v34, 4  ;;  %v8356_v61 = vld [vmem:[%s17078_s6 + $0x1a0] sm:$0xf]  ;;  %v8261_v57 = vor.u32 %v10423_v24, %v8260_v53  ;;  %1913 = vmatpush.bf16.msra.mxu1 %v8369_v52 }
 0x1ba   : > { %v888_v55 = vpack.c.bf16 %v860_v41, %v860_v41  ;;  %v933_v56 = vrot.slane %v931_v59, 7  ;;  %v10443_v48 = vld [vmem:[%s17078_s6 + $0x1a4] sm:$0xf0]  ;;  %v10442_v2 = vld [vmem:[%s17078_s6 + $0x1a4] sm:$0xf]  ;;  %v1128_v7 = vrot.slane %v1126_v36, 5 }
 0x1bb   : > { %v1137_v5 = vor.u32 %v1136_v40, %v1133_v28  ;;  %v8357_v13 = vor.u32 %v10443_v48, %v8356_v61  ;;  %v8348_v8 = vld [vmem:[%s17078_s6 + $0x190] sm:$0xf]  ;;  %v10441_v14 = vld [vmem:[%s17078_s6 + $0x194] sm:$0xf0]  ;;  %1682 = vmatpush.bf16.msra.mxu2 %v8261_v57  ;;  %v10440_v10 = vld [vmem:[%s17078_s6 + $0x194] sm:$0xf]  ;;  %v8361_v22 = vor.u32 %v10442_v2, %v8358_v60 }
 0x1bc   : > { %1298 = vmatmul.bf16.gmra.mxu2 %v1198_v38  ;;  %1327 = vmatmul.bf16.gmra.mxu3 %v1198_v38  ;;  %v936_v35 = vor.u32 %v934_v51, %v933_v56  ;;  %v937_v37 = vrot.slane %v933_v56, 4  ;;  %v1142_v19 = vrot.slane %v1140_v50, 5  ;;  %v939_v11 = vshrl.u32 %v888_v55, 16  ;;  %v8350_v12 = vld [vmem:[%s17078_s6 + $0x198] sm:$0xf0] }
 0x1bd   : > { %v1138_v15 = vrot.slane %v1137_v5, 4  ;;  %1885 = vmatpush.bf16.msra.mxu0 %v8357_v13  ;;  %v8349_v43 = vor.u32 %v10441_v14, %v8348_v8  ;;  %v1010_v17 = vld [vmem:[#allocation2 + $0x34] sm:$0x1]  ;;  %v1013_v23 = vld [vmem:[#allocation2 + $0x38] sm:$0xf]  ;;  %v1129_v31 = vsel %vm11796_vm15, %v12009_v63, %v1128_v7  ;;  %v942_v49 = vshll.u32 %v888_v55, 16  ;;  %1914 = vmatpush.bf16.msra.mxu1 %v8361_v22  ;;  %v12090_v57 = vpop.f32.mrf.mxu1 }
 0x1be   : > { %v1008_v20 = vsel %vm11655_vm13, %v936_v35, %v1007_v62  ;;  %v1011_v27 = vsel %vm11747_vm9, %v937_v37, %v1010_v17  ;;  %v8252_v25 = vld [vmem:[%s17078_s6 + $0x110] sm:$0xf]  ;;  %v10421_v29 = vld [vmem:[%s17078_s6 + $0x114] sm:$0xf0]  ;;  %v10420_v30 = vld [vmem:[%s17078_s6 + $0x114] sm:$0xf]  ;;  %v8353_v34 = vor.u32 %v10440_v10, %v8350_v12  ;;  %v1193_v42 = vunpack.c.l.b16 %v1129_v31  ;;  %v12108_v31 = vpop.eup %10908 }
 0x1bf   : > { %1009 = vst [vmem:[#allocation2 + $0x30] sm:$0xf] %v1008_v20  ;;  %v8253_v33 = vor.u32 %v10421_v29, %v8252_v25  ;;  %v8254_v58 = vld [vmem:[%s17078_s6 + $0x118] sm:$0xf0]  ;;  %v1143_v16 = vsel %vm11796_vm15, %v1138_v15, %v1142_v19  ;;  %v8340_v4 = vld [vmem:[%s17078_s6 + $0x180] sm:$0xf]  ;;  %vm845_vm14 = vweird.f32 %v12108_v31 }
 0x1c0   : > { %1465 = vmatmul.bf16.gmra.mxu0 %v8149_v32  ;;  %1494 = vmatmul.bf16.gmra.mxu1 %v8149_v32  ;;  %v941_v32 = vrot.slane %v939_v11, 7  ;;  %1012 = vst [vmem:[#allocation2 + $0x34] sm:$0x1] %v1011_v27  ;;  %v1016_v36 = vld [vmem:[#allocation2 + $0x3c] sm:$0x1]  ;;  %v8257_v28 = vor.u32 %v10420_v30, %v8254_v58  ;;  %v1534_v53 = vrot.slane %v11641_v6, 5  ;;  %v1194_v63 = vunpack.c.l.b16 %v1143_v16  ;;  %vm846_vm1 = vmor %vm844_vm0, %vm845_vm14 }
 0x1c1   : > { %1886 = vmatpush.bf16.msra.mxu0 %v8349_v43  ;;  %1683 = vmatpush.bf16.msra.mxu2 %v8253_v33  ;;  %v10439_v40 = vld [vmem:[%s17078_s6 + $0x184] sm:$0xf0]  ;;  %v10438_v41 = vld [vmem:[%s17078_s6 + $0x184] sm:$0xf]  ;;  %v1538_v59 = vrot.slane %v11857_v0, 5  ;;  %17123 = vst [vmem:[#allocation8_spill] sm:$0xff] %v12090_v57 }
 0x1c2   : > { %v944_v24 = vor.u32 %v942_v49, %v941_v32  ;;  %v945_v38 = vrot.slane %v941_v32, 4  ;;  %1712 = vmatpush.bf16.msra.mxu3 %v8257_v28  ;;  %v8341_v44 = vor.u32 %v10439_v40, %v8340_v4  ;;  %v8342_v6 = vld [vmem:[%s17078_s6 + $0x188] sm:$0xf0]  ;;  %v8244_v0 = vld [vmem:[%s17078_s6 + $0x100] sm:$0xf]  ;;  %1915 = vmatpush.bf16.msra.mxu1 %v8353_v34  ;;  %v17124_v3 = vmov 0 }
 0x1c3   : > { %v10419_v62 = vld [vmem:[%s17078_s6 + $0x104] sm:$0xf0]  ;;  %v8345_v52 = vor.u32 %v10438_v41, %v8342_v6  ;;  %v10418_v5 = vld [vmem:[%s17078_s6 + $0x104] sm:$0xf]  ;;  %v8246_v55 = vld [vmem:[%s17078_s6 + $0x108] sm:$0xf0]  ;;  %v1199_v14 = vpack.c.b16 %v1194_v63, %v1193_v42 }
 0x1c4   : > { %v1014_v50 = vsel %vm11655_vm13, %v944_v24, %v1013_v23  ;;  %v1017_v51 = vsel %vm11747_vm9, %v945_v38, %v1016_v36  ;;  %v8245_v61 = vor.u32 %v10419_v62, %v8244_v0  ;;  %v8249_v56 = vor.u32 %v10418_v5, %v8246_v55  ;;  %v1505_v48 = vld [vmem:[#allocation2] sm:$0xe]  ;;  %v1506_v2 = vld [vmem:[#allocation2 + $0x8] sm:$0xe]  ;;  %v1507_v11 = vld [vmem:[#allocation2 + $0x10] sm:$0xe] }
 0x1c5   : > { %1015 = vst [vmem:[#allocation2 + $0x38] sm:$0xf] %v1014_v50  ;;  %1887 = vmatpush.bf16.msra.mxu0 %v8341_v44  ;;  %v17125_v3 = vsel %vm12094_vm12, 4294967295, %v17124_v3  ;;  %v8218_v60 = vrot.slane %v1505_v48, 9  ;;  %v8219_v8 = vrot.slane %v1506_v2, 9  ;;  %v1542_v22 = vrot.slane %v11879_v47, 5  ;;  %v12129_v44 = vpop.f32.mrf.mxu1 }
 0x1c6   : > { %1018 = vst [vmem:[#allocation2 + $0x3c] sm:$0x1] %v1017_v51  ;;  %v1031_v13 = vld [vmem:[#allocation2 + $0x30] sm:$0xf]  ;;  %1684 = vmatpush.bf16.msra.mxu2 %v8245_v61  ;;  %1713 = vmatpush.bf16.msra.mxu3 %v8249_v56  ;;  %v1508_v27 = vld [vmem:[#allocation2 + $0x18] sm:$0xe]  ;;  %v840_v0 = vmul.f32 %v12108_v31, %v11620_v39 }
 0x1c7   : > { %17126 = vst [vmem:[#allocation9_spill] sm:$0xff] %v17125_v3  ;;  %v12098_v7 = vld [vmem:[#allocation2 + $0x34] sm:$0x1]  ;;  %v1145_v15 = vshrl.u32 %v1031_v13, 16  ;;  %v1148_v35 = vshll.u32 %v1031_v13, 16  ;;  %1916 = vmatpush.bf16.msra.mxu1 %v8345_v52  ;;  %v1535_v10 = vsel %vm12094_vm12, %v8218_v60, %v1534_v53  ;;  %v1539_v19 = vsel %vm12094_vm12, %v8219_v8, %v1538_v59  ;;  %v12142_v52 = vpop.f32.mrf.mxu0 }
 0x1c8   : > { %v1154_v37 = vshll.u32 %v12098_v7, 16  ;;  %v8152_v43 = vld [vmem:[#allocation2 + $0x30] sm:$0xf]  ;;  %v1581_v20 = vunpack.c.l.b16 %v1535_v10  ;;  %v1582_v23 = vunpack.c.l.b16 %v1539_v19  ;;  %v8220_v29 = vrot.slane %v1507_v11, 9  ;;  %v10469_v4 = vld [vmem:[%s17078_s6 + $0x274] sm:$0xf0] }
 0x1c9   : > { %v1147_v12 = vrot.slane %v1145_v15, 4  ;;  %v1150_v17 = vrot.slane %v1148_v35, 5  ;;  %v8221_v30 = vrot.slane %v1508_v27, 9  ;;  %v8476_v47 = vld [vmem:[%s17078_s6 + $0x270] sm:$0xf]  ;;  %17127 = vst [vmem:[#allocation10_spill] sm:$0xff] %v12129_v44 }
 0x1ca   : > { %v12106_v25 = vrot.slane %v1154_v37, 5  ;;  %v12110_v58 = vpack.c.b16 %v1582_v23, %v1581_v20  ;;  %v1543_v53 = vsel %vm12094_vm12, %v8220_v29, %v1542_v22  ;;  %v8477_v40 = vor.u32 %v10469_v4, %v8476_v47  ;;  %v10468_v41 = vld [vmem:[%s17078_s6 + $0x274] sm:$0xf]  ;;  %v8478_v59 = vld [vmem:[%s17078_s6 + $0x278] sm:$0xf0]  ;;  %17128 = vst [vmem:[#allocation11_spill] sm:$0xff] %v12142_v52 }
 0x1cb   : > { %v1151_v33 = vor.u32 %v1150_v17, %v1147_v12  ;;  %v8481_v63 = vor.u32 %v10468_v41, %v8478_v59  ;;  %v8468_v50 = vld [vmem:[%s17078_s6 + $0x260] sm:$0xf]  ;;  %v10467_v51 = vld [vmem:[%s17078_s6 + $0x264] sm:$0xf0]  ;;  %v10466_v5 = vld [vmem:[%s17078_s6 + $0x264] sm:$0xf]  ;;  %v1583_v56 = vunpack.c.l.b16 %v1543_v53 }
 0x1cc   : > { %1303 = vmatmul.bf16.gmra.mxu2 %v1199_v14  ;;  %1332 = vmatmul.bf16.gmra.mxu3 %v1199_v14  ;;  %v10385_v32 = vld [vmem:[#allocation2 + $0x34] sm:$0xf0]  ;;  %v8469_v61 = vor.u32 %v10467_v51, %v8468_v50  ;;  %v8470_v55 = vld [vmem:[%s17078_s6 + $0x268] sm:$0xf0]  ;;  %v1546_v60 = vrot.slane %v11884_v45, 5  ;;  %v1550_v35 = vrot.slane %v11981_v26, 5 }
 0x1cd   : > { %v1032_v49 = vld [vmem:[#allocation2 + $0x38] sm:$0xf]  ;;  %v8153_v16 = vor.u32 %v10385_v32, %v8152_v43  ;;  %v12115_v34 = vld [vmem:[#allocation2 + $0x3c] sm:$0x1]  ;;  %v1152_v24 = vrot.slane %v1151_v33, 4  ;;  %2195 = vmatpush.bf16.msrb.mxu2 %v8477_v40  ;;  %2224 = vmatpush.bf16.msrb.mxu3 %v8481_v63  ;;  %v8473_v13 = vor.u32 %v10466_v5, %v8470_v55  ;;  %v1554_v10 = vrot.slane %v11987_v9, 5 }
 0x1ce   : > { %v1159_v36 = vshrl.u32 %v1032_v49, 16  ;;  %v1162_v28 = vshll.u32 %v1032_v49, 16  ;;  %v1168_v38 = vshll.u32 %v12115_v34, 16  ;;  %v1509_v8 = vld [vmem:[#allocation2 + $0x20] sm:$0xe]  ;;  %v1547_v11 = vsel %vm12094_vm12, %v8221_v30, %v1546_v60  ;;  %v12165_v30 = vpop.f32.mrf.mxu1  ;;  %v3322_v57 = vld [vmem:[%s17080_s8 + $0xd0] sm:$0xff] }
 0x1cf   : > { %v1157_v62 = vsel %vm11796_vm15, %v1152_v24, %v12106_v25  ;;  %v1510_v14 = vld [vmem:[#allocation2 + $0x28] sm:$0xe]  ;;  %v8222_v15 = vrot.slane %v1509_v8, 9  ;;  %v841_v22 = vsub.f32 1.0, %v840_v0  ;;  %v848_v43 = vand.u32 2147483647, %v11620_v39 }
 0x1d0   : > { %1470 = vmatmul.bf16.gmra.mxu0 %v8153_v16  ;;  %1499 = vmatmul.bf16.gmra.mxu1 %v8153_v16  ;;  %v1161_v6 = vrot.slane %v1159_v36, 4  ;;  %v1164_v42 = vrot.slane %v1162_v28, 5  ;;  %v1170_v2 = vrot.slane %v1168_v38, 5  ;;  %v8223_v37 = vrot.slane %v1510_v14, 9  ;;  %17129 = vst [vmem:[#allocation12_spill] sm:$0xff] %v12165_v30  ;;  %v3354_v52 = vld [vmem:[%s17080_s8 + $0x1d0] sm:$0xff] }
 0x1d1   : > { %2196 = vmatpush.bf16.msrb.mxu2 %v8469_v61  ;;  %v1584_v12 = vunpack.c.l.b16 %v1547_v11  ;;  %v1551_v45 = vsel %vm12094_vm12, %v8222_v15, %v1550_v35  ;;  %v850_v26 = vand.u32 2147483648, %v11620_v39  ;;  %2225 = vmatpush.bf16.msrb.mxu3 %v8473_v13  ;;  %v842_v27 = vmul.f32 %v12108_v31, %v841_v22  ;;  %v1511_v47 = vld [vmem:[#allocation2 + $0x30] sm:$0xe]  ;;  %v1512_v16 = vld [vmem:[#allocation2 + $0x38] sm:$0xe] }
 0x1d2   : > { %v1165_v48 = vor.u32 %v1164_v42, %v1161_v6  ;;  %v1555_v17 = vsel %vm12094_vm12, %v8223_v37, %v1554_v10  ;;  %v1585_v20 = vunpack.c.l.b16 %v1551_v45  ;;  %v1195_v25 = vunpack.c.l.b16 %v1157_v62  ;;  %v8324_v41 = vld [vmem:[#allocation2 + $0x8] sm:$0xf]  ;;  %v10434_v59 = vld [vmem:[#allocation2 + $0xc] sm:$0xf0]  ;;  %v12178_v6 = vpop.f32.mrf.mxu0  ;;  %v8462_v5 = vld [vmem:[%s17078_s6 + $0x258] sm:$0xf0] }
 0x1d3   : > { %v1586_v23 = vunpack.c.l.b16 %v1555_v17  ;;  %v12167_v32 = vpack.c.b16 %v1584_v12, %v1583_v56  ;;  %v843_v33 = vadd.f32 %v12108_v31, %v842_v27  ;;  %v851_v36 = vor.u32 1.1754944e-38, %v850_v26  ;;  %17130 = vst [vmem:[#allocation13_spill] sm:$0xff] %v12178_v6  ;;  %v10484_v13 = vld [vmem:[%s17078_s6 + $0x2f4] sm:$0xf]  ;;  %v8566_v8 = vld [vmem:[%s17078_s6 + $0x2f8] sm:$0xf0] }
 0x1d4   : > { %v1166_v19 = vrot.slane %v1165_v48, 4  ;;  %v8224_v28 = vrot.slane %v1511_v47, 9  ;;  %v1558_v4 = vrot.slane %v12098_v7, 5  ;;  %v8225_v53 = vrot.slane %v1512_v16, 9  ;;  %v8460_v7 = vld [vmem:[%s17078_s6 + $0x250] sm:$0xf] }
 0x1d5   : > { %v12169_v49 = vpack.c.b16 %v1586_v23, %v1585_v20  ;;  %v847_v24 = vsel %vm846_vm1, %v12108_v31, %v843_v33  ;;  %vm849_vm2 = vcmp.eq.f32.partialorder %v848_v43, 8.507059e+37  ;;  %v1562_v38 = vrot.slane %v12115_v34, 5  ;;  %v10465_v31 = vld [vmem:[%s17078_s6 + $0x254] sm:$0xf0]  ;;  %v10464_v34 = vld [vmem:[%s17078_s6 + $0x254] sm:$0xf] }
 0x1d6   : > { %v1171_v9 = vsel %vm11796_vm15, %v1166_v19, %v1170_v2  ;;  %v852_v39 = vsel %vm849_vm2, %v851_v36, %v847_v24  ;;  %v1559_v42 = vsel %vm12094_vm12, %v8224_v28, %v1558_v4  ;;  %v8325_v62 = vor.u32 %v10434_v59, %v8324_v41  ;;  %v12197_v56 = vpop.f32.mrf.mxu1  ;;  %v8564_v2 = vld [vmem:[%s17078_s6 + $0x2f0] sm:$0xf]  ;;  %v8452_v14 = vld [vmem:[%s17078_s6 + $0x240] sm:$0xf]  ;;  %v10463_v15 = vld [vmem:[%s17078_s6 + $0x244] sm:$0xf0] }
 0x1d7   : > { %v1196_v29 = vunpack.c.l.b16 %v1171_v9  ;;  %v1563_v63 = vsel %vm12094_vm12, %v8225_v53, %v1562_v38  ;;  %v1587_v50 = vunpack.c.l.b16 %v1559_v42  ;;  %v861_v51 = vmul.f32 %v852_v39, %v11369_v21  ;;  %17131 = vst [vmem:[#allocation14_spill] sm:$0xff] %v12197_v56  ;;  %v10485_v21 = vld [vmem:[%s17078_s6 + $0x2f4] sm:$0xf0]  ;;  %v10462_v19 = vld [vmem:[%s17078_s6 + $0x244] sm:$0xf]  ;;  %v3318_v3 = vld [vmem:[%s17080_s8 + $0xb0] sm:$0xff] }
 0x1d8   : > { %v1588_v0 = vunpack.c.l.b16 %v1563_v63  ;;  %v8461_v61 = vor.u32 %v10465_v31, %v8460_v7  ;;  %v8465_v55 = vor.u32 %v10464_v34, %v8462_v5  ;;  %v8565_v60 = vor.u32 %v10485_v21, %v8564_v2  ;;  %v8454_v11 = vld [vmem:[%s17078_s6 + $0x248] sm:$0xf0]  ;;  %v8556_v22 = vld [vmem:[%s17078_s6 + $0x2e0] sm:$0xf]  ;;  %v10483_v12 = vld [vmem:[%s17078_s6 + $0x2e4] sm:$0xf0] }
 0x1d9   : > { %v1200_v40 = vpack.c.b16 %v1196_v29, %v1195_v25  ;;  %v889_v35 = vpack.c.bf16 %v861_v51, %v861_v51  ;;  %v8569_v37 = vor.u32 %v10484_v13, %v8566_v8  ;;  %v8453_v10 = vor.u32 %v10463_v15, %v8452_v14  ;;  %v10482_v45 = vld [vmem:[%s17078_s6 + $0x2e4] sm:$0xf]  ;;  %v8558_v17 = vld [vmem:[%s17078_s6 + $0x2e8] sm:$0xf0]  ;;  %v8548_v20 = vld [vmem:[%s17078_s6 + $0x2d0] sm:$0xf] }
 0x1da   : > { %v12199_v48 = vpack.c.b16 %v1588_v0, %v1587_v50  ;;  %2197 = vmatpush.bf16.msrb.mxu2 %v8461_v61  ;;  %2226 = vmatpush.bf16.msrb.mxu3 %v8465_v55  ;;  %v8457_v43 = vor.u32 %v10462_v19, %v8454_v11  ;;  %v8557_v26 = vor.u32 %v10483_v12, %v8556_v22  ;;  %v10481_v23 = vld [vmem:[%s17078_s6 + $0x2d4] sm:$0xf0]  ;;  %v12243_v27 = vpop.f32.mrf.mxu0  ;;  %v10480_v25 = vld [vmem:[%s17078_s6 + $0x2d4] sm:$0xf]  ;;  %v8550_v29 = vld [vmem:[%s17078_s6 + $0x2d8] sm:$0xf0] }
 0x1db   : > { %2438 = vmatpush.bf16.msrb.mxu0 %v8565_v60  ;;  %2467 = vmatpush.bf16.msrb.mxu1 %v8569_v37  ;;  %v8561_v9 = vor.u32 %v10482_v45, %v8558_v17  ;;  %17132 = vst [vmem:[#allocation15_spill] sm:$0xff] %v12243_v27  ;;  %v947_v33 = vshrl.u32 %v889_v35, 16  ;;  %v8549_v16 = vor.u32 %v10481_v23, %v8548_v20  ;;  %v950_v28 = vshll.u32 %v889_v35, 16  ;;  %v1019_v53 = vld [vmem:[#allocation2 + $0x40] sm:$0xf] }
 0x1dc   : > { %1308 = vmatmul.bf16.gmra.mxu2 %v1200_v40  ;;  %1337 = vmatmul.bf16.gmra.mxu3 %v1200_v40  ;;  %v8553_v4 = vor.u32 %v10480_v25, %v8550_v29  ;;  %v482_v24 = vld [vmem:[%s17077_s5] sm:$0x3]  ;;  %v8328_v40 = vld [vmem:[#allocation2 + $0x18] sm:$0xf]  ;;  %v8444_v63 = vld [vmem:[%s17078_s6 + $0x230] sm:$0xf] }
 0x1dd   : > { %v949_v36 = vrot.slane %v947_v33, 7  ;;  %v10435_v41 = vld [vmem:[#allocation2 + $0x1c] sm:$0xf0]  ;;  %v12258_v39 = vperm.slane %v482_v24, 1  ;;  %v10461_v50 = vld [vmem:[%s17078_s6 + $0x234] sm:$0xf0] }
 0x1de   : > { %2198 = vmatpush.bf16.msrb.mxu2 %v8453_v10  ;;  %2227 = vmatpush.bf16.msrb.mxu3 %v8457_v43  ;;  %v12251_v47 = vpop.f32.mrf.mxu1  ;;  %v10460_v7 = vld [vmem:[%s17078_s6 + $0x234] sm:$0xf]  ;;  %v8329_v31 = vor.u32 %v10435_v41, %v8328_v40  ;;  %v8445_v34 = vor.u32 %v10461_v50, %v8444_v63  ;;  %v8446_v51 = vld [vmem:[%s17078_s6 + $0x238] sm:$0xf0]  ;;  %v10479_v0 = vld [vmem:[%s17078_s6 + $0x2c4] sm:$0xf0] }
 0x1df   : > { %17133 = vst [vmem:[#allocation16_spill] sm:$0xff] %v12251_v47  ;;  %2439 = vmatpush.bf16.msrb.mxu0 %v8557_v26  ;;  %2468 = vmatpush.bf16.msrb.mxu1 %v8561_v9  ;;  %v952_v38 = vor.u32 %v950_v28, %v949_v36  ;;  %v953_v42 = vrot.slane %v949_v36, 4  ;;  %v8449_v61 = vor.u32 %v10460_v7, %v8446_v51  ;;  %v10478_v2 = vld [vmem:[%s17078_s6 + $0x2c4] sm:$0xf]  ;;  %v8542_v21 = vld [vmem:[%s17078_s6 + $0x2c8] sm:$0xf0] }
 0x1e0   : > { %1888 = vmatmul.bf16.vlgmr.msra.gmra.mxu0 %v8325_v62  ;;  %1917 = vmatmul.bf16.vlgmr.msra.gmra.mxu1 %v8325_v62  ;;  %17134 = vst [vmem:[#allocation17_spill] sm:$0xff] %v12258_v39  ;;  %v1022_v13 = vld [vmem:[#allocation2 + $0x44] sm:$0x1]  ;;  %v8545_v8 = vor.u32 %v10478_v2, %v8542_v21  ;;  %v8532_v14 = vld [vmem:[%s17078_s6 + $0x2b0] sm:$0xf] }
 0x1e1   : > { %v1020_v59 = vsel %vm11655_vm13, %v952_v38, %v1019_v53  ;;  %v10477_v15 = vld [vmem:[%s17078_s6 + $0x2b4] sm:$0xf0]  ;;  %v10476_v35 = vld [vmem:[%s17078_s6 + $0x2b4] sm:$0xf]  ;;  %v8534_v37 = vld [vmem:[%s17078_s6 + $0x2b8] sm:$0xf0]  ;;  %v1023_v23 = vsel %vm11747_vm9, %v953_v42, %v1022_v13 }
 0x1e2   : > { %1021 = vst [vmem:[#allocation2 + $0x40] sm:$0xf] %v1020_v59  ;;  %v12280_v62 = vpop.f32.mrf.mxu0  ;;  %2199 = vmatpush.bf16.msrb.mxu2 %v8445_v34  ;;  %2228 = vmatpush.bf16.msrb.mxu3 %v8449_v61  ;;  %v8436_v10 = vld [vmem:[%s17078_s6 + $0x220] sm:$0xf]  ;;  %v10459_v19 = vld [vmem:[%s17078_s6 + $0x224] sm:$0xf0]  ;;  %v8533_v11 = vor.u32 %v10477_v15, %v8532_v14  ;;  %v8537_v22 = vor.u32 %v10476_v35, %v8534_v37 }
 0x1e3   : > { %2440 = vmatpush.bf16.msrb.mxu0 %v8549_v16  ;;  %2469 = vmatpush.bf16.msrb.mxu1 %v8553_v4  ;;  %17135 = vst [vmem:[#allocation18_spill] sm:$0xff] %v12280_v62  ;;  %v8437_v43 = vor.u32 %v10459_v19, %v8436_v10  ;;  %v10458_v12 = vld [vmem:[%s17078_s6 + $0x224] sm:$0xf]  ;;  %v8438_v45 = vld [vmem:[%s17078_s6 + $0x228] sm:$0xf0] }
 0x1e4   : > { %v8441_v17 = vor.u32 %v10458_v12, %v8438_v45  ;;  %v8524_v26 = vld [vmem:[%s17078_s6 + $0x2a0] sm:$0xf]  ;;  %v10475_v9 = vld [vmem:[%s17078_s6 + $0x2a4] sm:$0xf0]  ;;  %v10474_v20 = vld [vmem:[%s17078_s6 + $0x2a4] sm:$0xf] }
 0x1e5   : > { %v8526_v25 = vld [vmem:[%s17078_s6 + $0x2a8] sm:$0xf0]  ;;  %v8525_v29 = vor.u32 %v10475_v9, %v8524_v26  ;;  %v8516_v16 = vld [vmem:[%s17078_s6 + $0x290] sm:$0xf]  ;;  %1024 = vst [vmem:[#allocation2 + $0x44] sm:$0x1] %v1023_v23 }
 0x1e6   : > { %v564_v5 = vpop.f32.mrf.mxu1  ;;  %2200 = vmatpush.bf16.msrb.mxu2 %v8437_v43  ;;  %2229 = vmatpush.bf16.msrb.mxu3 %v8441_v17  ;;  %v8529_v33 = vor.u32 %v10474_v20, %v8526_v25  ;;  %v10473_v36 = vld [vmem:[%s17078_s6 + $0x294] sm:$0xf0]  ;;  %v10472_v28 = vld [vmem:[%s17078_s6 + $0x294] sm:$0xf]  ;;  %v8518_v4 = vld [vmem:[%s17078_s6 + $0x298] sm:$0xf0] }
 0x1e7   : > { %v12289_v60 = vadd.f32 %v564_v5, %v12258_v39  ;;  %2470 = vmatpush.bf16.msrb.mxu1 %v8545_v8  ;;  %v8517_v24 = vor.u32 %v10473_v36, %v8516_v16  ;;  %v8521_v38 = vor.u32 %v10472_v28, %v8518_v4  ;;  %v8332_v40 = vld [vmem:[#allocation2 + $0x28] sm:$0xf]  ;;  %v10436_v41 = vld [vmem:[#allocation2 + $0x2c] sm:$0xf0]  ;;  %v10457_v42 = vld [vmem:[%s17078_s6 + $0x214] sm:$0xf0] }
 0x1e8   : > { %v8428_v59 = vld [vmem:[%s17078_s6 + $0x210] sm:$0xf]  ;;  %v10456_v63 = vld [vmem:[%s17078_s6 + $0x214] sm:$0xf]  ;;  %v8333_v50 = vor.u32 %v10436_v41, %v8332_v40  ;;  %v10471_v34 = vld [vmem:[%s17078_s6 + $0x284] sm:$0xf0] }
 0x1e9   : > { %17136 = vst [vmem:[#allocation19_spill] sm:$0xff] %v12289_v60  ;;  %v8429_v7 = vor.u32 %v10457_v42, %v8428_v59  ;;  %v8510_v61 = vld [vmem:[%s17078_s6 + $0x288] sm:$0xf0]  ;;  %v10455_v2 = vld [vmem:[%s17078_s6 + $0x204] sm:$0xf0] }
 0x1ea   : > { %v12341_v53 = vpop.f32.mrf.mxu0  ;;  %v10454_v21 = vld [vmem:[%s17078_s6 + $0x204] sm:$0xf]  ;;  %v8422_v8 = vld [vmem:[%s17078_s6 + $0x208] sm:$0xf0]  ;;  %v8336_v35 = vld [vmem:[#allocation2 + $0x38] sm:$0xf] }
 0x1eb   : > { %2471 = vmatpush.bf16.msrb.mxu1 %v8537_v22  ;;  %17137 = vst [vmem:[#allocation20_spill] sm:$0xff] %v12341_v53  ;;  %2201 = vmatpush.bf16.msrb.mxu2 %v8429_v7  ;;  %v8425_v14 = vor.u32 %v10454_v21, %v8422_v8  ;;  %v10437_v37 = vld [vmem:[#allocation2 + $0x3c] sm:$0xf0]  ;;  %v1954_v10 = vld [vmem:[#allocation2 + $0x8] sm:$0xf] }
 0x1ec   : > { %1685 = vmatmul.bf16.vlgmr.msra.gmra.mxu2 %v12110_v58  ;;  %1714 = vmatmul.bf16.vlgmr.msra.gmra.mxu3 %v12110_v58  ;;  %v8540_v58 = vld [vmem:[%s17078_s6 + $0x2c0] sm:$0xf]  ;;  %v1955_v19 = vld [vmem:[#allocation2 + $0xc] sm:$0x1]  ;;  %v1956_v22 = vld [vmem:[#allocation2 + $0x10] sm:$0xf]  ;;  %v8337_v26 = vor.u32 %v10437_v37, %v8336_v35 }
 0x1ed   : > { %v8541_v55 = vor.u32 %v10479_v0, %v8540_v58  ;;  %v10470_v0 = vld [vmem:[%s17078_s6 + $0x284] sm:$0xf]  ;;  %v8660_v12 = vld [vmem:[%s17078_s6 + $0x370] sm:$0xf]  ;;  %v10505_v45 = vld [vmem:[%s17078_s6 + $0x374] sm:$0xf0] }
 0x1ee   : > { %v8513_v5 = vor.u32 %v10470_v0, %v8510_v61  ;;  %v10504_v17 = vld [vmem:[%s17078_s6 + $0x374] sm:$0xf]  ;;  %v1971_v20 = vshrl.u32 %v1954_v10, 16  ;;  %v8661_v23 = vor.u32 %v10505_v45, %v8660_v12  ;;  %v2270_v25 = vld [vmem:[#allocation2 + $0x10] sm:$0xe]  ;;  %v1988_v16 = vshll.u32 %v1956_v22, 16 }
 0x1ef   : > { %2441 = vmatpush.bf16.msrb.mxu0 %v8541_v55  ;;  %2472 = vmatpush.bf16.msrb.mxu1 %v8529_v33  ;;  %v8420_v55 = vld [vmem:[%s17078_s6 + $0x200] sm:$0xf]  ;;  %v12396_v9 = vld [vmem:[#allocation2 + $0x14] sm:$0x1]  ;;  %v1985_v33 = vshrl.u32 %v1956_v22, 16  ;;  %v2295_v4 = vrot.slane %v1955_v19, 5 }
 0x1f0   : > { %1893 = vmatmul.bf16.gmra.mxu0 %v8329_v31  ;;  %1922 = vmatmul.bf16.gmra.mxu1 %v8329_v31  ;;  %v8508_v31 = vld [vmem:[%s17078_s6 + $0x280] sm:$0xf]  ;;  %v8421_v13 = vor.u32 %v10455_v2, %v8420_v55  ;;  %v10502_v40 = vld [vmem:[%s17078_s6 + $0x364] sm:$0xf]  ;;  %v8483_v41 = vrot.slane %v2270_v25, 9  ;;  %v2299_v59 = vrot.slane %v12396_v9, 5 }
 0x1f1   : > { %v8509_v58 = vor.u32 %v10471_v34, %v8508_v31  ;;  %v1973_v42 = vrot.slane %v1971_v20, 4  ;;  %v1990_v31 = vrot.slane %v1988_v16, 5  ;;  %v1980_v2 = vshll.u32 %v1955_v19, 16  ;;  %v12424_v8 = vld [vmem:[#allocation2 + $0x1c] sm:$0x1] }
 0x1f2   : > { %v12381_v15 = vpop.f32.mrf.mxu0  ;;  %2202 = vmatpush.bf16.msrb.mxu2 %v8421_v13  ;;  %v2300_v0 = vsel %vm12094_vm12, %v8483_v41, %v2299_v59  ;;  %v12422_v13 = vld [vmem:[#allocation2 + $0x18] sm:$0xe]  ;;  %v1994_v22 = vshll.u32 %v12396_v9, 16  ;;  %v12427_v12 = vld [vmem:[#allocation2 + $0x24] sm:$0x1] }
 0x1f3   : > { %2442 = vmatpush.bf16.msrb.mxu0 %v8533_v11  ;;  %2473 = vmatpush.bf16.msrb.mxu1 %v8521_v38  ;;  %17138 = vst [vmem:[#allocation21_spill] sm:$0xff] %v12381_v15  ;;  %v2269_v11 = vld [vmem:[#allocation2 + $0x8] sm:$0xe]  ;;  %v12429_v45 = vld [vmem:[#allocation2 + $0x20] sm:$0xe]  ;;  %v1982_v19 = vrot.slane %v1980_v2, 5 }
 0x1f4   : > { %v8482_v28 = vrot.slane %v2269_v11, 9  ;;  %v10503_v38 = vld [vmem:[%s17078_s6 + $0x364] sm:$0xf0]  ;;  %v1960_v11 = vld [vmem:[#allocation2 + $0x20] sm:$0xf]  ;;  %v8485_v41 = vrot.slane %v12429_v45, 9 }
 0x1f5   : > { %v2016_v16 = vshll.u32 %v1960_v11, 16  ;;  %v8636_v45 = vld [vmem:[%s17078_s6 + $0x340] sm:$0xf] }
 0x1f6   : > { %2642 = vmatpush.bf16.msra.mxu2 %v8661_v23  ;;  %v2008_v23 = vshll.u32 %v12424_v8, 16 }
 0x1f7   : > { %2443 = vmatpush.bf16.msrb.mxu0 %v8525_v29  ;;  %2474 = vmatpush.bf16.msrb.mxu1 %v8513_v5  ;;  %v1974_v29 = vshll.u32 %v1954_v10, 16  ;;  %v12420_v5 = vpop.f32.mrf.mxu1  ;;  %v2343_v10 = vunpack.c.l.b16 %v2300_v0 }
 0x1f8   : > { %17141 = vst [vmem:[#allocation24_spill] sm:$0xff] %v12420_v5 }
 0x1f9   : > { %v1976_v7 = vrot.slane %v1974_v29, 5 }
 0x1fa   : > { %v12385_v43 = vpop.f32.mrf.mxu0 }
 0x1fb   : > { %2444 = vmatpush.bf16.msrb.mxu0 %v8517_v24  ;;  %17139 = vst [vmem:[#allocation22_spill] sm:$0xff] %v12385_v43  ;;  %v8652_v24 = vld [vmem:[%s17078_s6 + $0x360] sm:$0xf]  ;;  %v1977_v55 = vor.u32 %v1976_v7, %v1973_v42  ;;  %v2307_v42 = vrot.slane %v12427_v12, 5 }
 0x1fc   : > { %1690 = vmatmul.bf16.gmra.mxu2 %v12167_v32  ;;  %1719 = vmatmul.bf16.gmra.mxu3 %v12167_v32  ;;  %v8430_v32 = vld [vmem:[%s17078_s6 + $0x218] sm:$0xf0] }
 0x1fd   : > { %v8433_v51 = vor.u32 %v10456_v63, %v8430_v32  ;;  %v8653_v63 = vor.u32 %v10503_v38, %v8652_v24  ;;  %v1987_v32 = vrot.slane %v1985_v33, 4  ;;  %v2013_v33 = vshrl.u32 %v1960_v11, 16  ;;  %v10500_v24 = vld [vmem:[%s17078_s6 + $0x354] sm:$0xf]  ;;  %v3031_v11 = vld [vmem:[#allocation2 + $0x10] sm:$0xe] }
 0x1fe   : > { %v1996_v38 = vrot.slane %v1994_v22, 5 }
 0x1ff   : > { %2230 = vmatpush.bf16.msrb.mxu3 %v8433_v51  ;;  %2445 = vmatpush.bf16.msrb.mxu0 %v8509_v58  ;;  %v1958_v51 = vld [vmem:[#allocation2 + $0x18] sm:$0xf]  ;;  %v2296_v58 = vsel %vm12094_vm12, %v8482_v28, %v2295_v4  ;;  %v1991_v21 = vor.u32 %v1990_v31, %v1987_v32  ;;  %v8644_v28 = vld [vmem:[%s17078_s6 + $0x350] sm:$0xf]  ;;  %v12457_v32 = vrot.slane %v2013_v33, 4  ;;  %v12459_v31 = vrot.slane %v2016_v16, 5 }
 0x200   : > { %1898 = vmatmul.bf16.gmra.mxu0 %v8333_v50  ;;  %1927 = vmatmul.bf16.gmra.mxu1 %v8333_v50  ;;  %v8654_v50 = vld [vmem:[%s17078_s6 + $0x368] sm:$0xf0]  ;;  %v2002_v35 = vshll.u32 %v1958_v51, 16  ;;  %v2342_v37 = vunpack.c.l.b16 %v2296_v58  ;;  %v10501_v4 = vld [vmem:[%s17078_s6 + $0x354] sm:$0xf0] }
 0x201   : > { %v8657_v34 = vor.u32 %v10502_v40, %v8654_v50  ;;  %2643 = vmatpush.bf16.msra.mxu2 %v8653_v63  ;;  %v1992_v20 = vrot.slane %v1991_v21, 4  ;;  %v2303_v40 = vrot.slane %v12424_v8, 5  ;;  %v8645_v59 = vor.u32 %v10501_v4, %v8644_v28  ;;  %v12473_v8 = vld [vmem:[#allocation2 + $0x30] sm:$0xe]  ;;  %v10498_v16 = vld [vmem:[%s17078_s6 + $0x344] sm:$0xf] }
 0x202   : > { %v12418_v61 = vpop.f32.mrf.mxu0  ;;  %v2004_v29 = vrot.slane %v2002_v35, 5  ;;  %v2350_v9 = vpack.c.b16 %v2343_v10, %v2342_v37  ;;  %v12454_v63 = vrot.slane %v2008_v23, 5  ;;  %v2022_v50 = vshll.u32 %v12427_v12, 16  ;;  %v10521_v35 = vld [vmem:[%s17078_s6 + $0x3f4] sm:$0xf0] }
 0x203   : > { %2231 = vmatpush.bf16.msrb.mxu3 %v8425_v14  ;;  %17140 = vst [vmem:[#allocation23_spill] sm:$0xff] %v12418_v61  ;;  %v1999_v14 = vshrl.u32 %v1958_v51, 16  ;;  %v1997_v2 = vsel %vm11796_vm15, %v1992_v20, %v1996_v38  ;;  %v10520_v37 = vld [vmem:[%s17078_s6 + $0x3f4] sm:$0xf]  ;;  %v12484_v10 = vld [vmem:[#allocation2 + $0x28] sm:$0xf] }
 0x204   : > { %v8742_v12 = vld [vmem:[%s17078_s6 + $0x3f8] sm:$0xf0]  ;;  %v3032_v23 = vld [vmem:[#allocation2 + $0x18] sm:$0xe]  ;;  %v8732_v28 = vld [vmem:[%s17078_s6 + $0x3e0] sm:$0xf] }
 0x205   : > { %v2001_v25 = vrot.slane %v1999_v14, 4  ;;  %2644 = vmatpush.bf16.msra.mxu2 %v8645_v59  ;;  %v8740_v14 = vld [vmem:[%s17078_s6 + $0x3f0] sm:$0xf]  ;;  %v12497_v20 = vld [vmem:[#allocation2 + $0x1c] sm:$0x1] }
 0x206   : > { %v8741_v22 = vor.u32 %v10521_v35, %v8740_v14  ;;  %v10518_v59 = vld [vmem:[%s17078_s6 + $0x3e4] sm:$0xf]  ;;  %v3033_v14 = vld [vmem:[#allocation2 + $0x20] sm:$0xe] }
 0x207   : > { %v2005_v21 = vor.u32 %v2004_v29, %v2001_v25  ;;  %v8745_v29 = vor.u32 %v10520_v37, %v8742_v12  ;;  %v12569_v37 = vld [vmem:[#allocation2 + $0x34] sm:$0x1] }
 0x208   : > { %2957 = vmatpush.bf16.msra.mxu0 %v8741_v22  ;;  %v12533_v22 = vld [vmem:[#allocation2 + $0x30] sm:$0xf] }
 0x209   : > { %2986 = vmatpush.bf16.msra.mxu1 %v8745_v29  ;;  %v8747_v29 = vrot.slane %v3032_v23, 9  ;;  %v8724_v23 = vld [vmem:[%s17078_s6 + $0x3d0] sm:$0xf]  ;;  %v17148_v61 = vshrl.u32 %v12533_v22, 16 }
 0x20b   : > { %v2043_v43 = vrot.slane %v17148_v61, 4  ;;  %v10508_v61 = vld [vmem:[%s17078_s6 + $0x394] sm:$0xf] }
 0x20c   : > { %1695 = vmatmul.bf16.gmra.mxu2 %v12169_v49  ;;  %1724 = vmatmul.bf16.gmra.mxu3 %v12169_v49  ;;  %v8662_v49 = vld [vmem:[%s17078_s6 + $0x378] sm:$0xf0] }
 0x20d   : > { %v8665_v36 = vor.u32 %v10504_v17, %v8662_v49  ;;  %v8484_v17 = vrot.slane %v12422_v13, 9  ;;  %v12433_v49 = vld [vmem:[#allocation2 + $0x2c] sm:$0x1]  ;;  %v12471_v13 = vld [vmem:[#allocation2 + $0x34] sm:$0x1] }
 0x20f   : > { %2671 = vmatpush.bf16.msra.mxu3 %v8665_v36  ;;  %v12435_v36 = vld [vmem:[#allocation2 + $0x28] sm:$0xe]  ;;  %v12501_v25 = vsel %vm12094_vm12, %v8484_v17, %v2303_v40  ;;  %v12514_v17 = vsel %vm12094_vm12, %v8485_v41, %v2307_v42 }
 0x210   : > { %1903 = vmatmul.bf16.gmra.mxu0 %v8337_v26  ;;  %1932 = vmatmul.bf16.gmra.mxu1 %v8337_v26  ;;  %v1978_v26 = vrot.slane %v1977_v55, 4  ;;  %v10519_v40 = vld [vmem:[%s17078_s6 + $0x3e4] sm:$0xf0] }
 0x211   : > { %v8733_v41 = vor.u32 %v10519_v40, %v8732_v28  ;;  %v3034_v28 = vld [vmem:[#allocation2 + $0x28] sm:$0xe] }
 0x212   : > { %v1983_v55 = vsel %vm11796_vm15, %v1978_v26, %v1982_v19  ;;  %v10499_v26 = vld [vmem:[%s17078_s6 + $0x344] sm:$0xf0]  ;;  %v12495_v19 = vld [vmem:[#allocation2 + $0x14] sm:$0x1] }
 0x213   : > { %2672 = vmatpush.bf16.msra.mxu3 %v8657_v34  ;;  %v8637_v33 = vor.u32 %v10499_v26, %v8636_v45  ;;  %v2099_v4 = vunpack.c.l.b16 %v1983_v55  ;;  %v12527_v55 = vrot.slane %v2022_v50, 5  ;;  %v12537_v45 = vld [vmem:[#allocation2 + $0x2c] sm:$0x1]  ;;  %v3057_v26 = vrot.slane %v12495_v19, 5  ;;  %2958 = vmatpush.bf16.msra.mxu0 %v8733_v41 }
 0x215   : > { %2645 = vmatpush.bf16.msra.mxu2 %v8637_v33  ;;  %v3061_v33 = vrot.slane %v12497_v20, 5 }
 0x21c   : > { %1700 = vmatmul.bf16.gmra.mxu2 %v12199_v48  ;;  %1729 = vmatmul.bf16.gmra.mxu3 %v12199_v48  ;;  %v8646_v48 = vld [vmem:[%s17078_s6 + $0x358] sm:$0xf0] }
 0x21d   : > { %v8649_v7 = vor.u32 %v10500_v24, %v8646_v48  ;;  %v12463_v58 = vpop.f32.mrf.mxu0  ;;  %v12465_v0 = vpop.f32.mrf.mxu1  ;;  %v2100_v24 = vunpack.c.l.b16 %v1997_v2  ;;  %v8734_v48 = vld [vmem:[%s17078_s6 + $0x3e8] sm:$0xf0]  ;;  %v12529_v2 = vld [vmem:[#allocation2 + $0x24] sm:$0x1] }
 0x21e   : > { %v8737_v42 = vor.u32 %v10518_v59, %v8734_v48  ;;  %v3065_v40 = vrot.slane %v12529_v2, 5  ;;  %v2345_v48 = vunpack.c.l.b16 %v12514_v17  ;;  %v8726_v17 = vld [vmem:[%s17078_s6 + $0x3d8] sm:$0xf0] }
 0x21f   : > { %2673 = vmatpush.bf16.msra.mxu3 %v8649_v7  ;;  %v12525_v7 = vrot.slane %v2005_v21, 4  ;;  %v8746_v21 = vrot.slane %v3031_v11, 9  ;;  %v12545_v11 = vld [vmem:[#allocation2 + $0x30] sm:$0xe]  ;;  %v2107_v59 = vpack.c.b16 %v2100_v24, %v2099_v4  ;;  %v3062_v4 = vsel %vm12094_vm12, %v8747_v29, %v3061_v33 }
 0x220   : > { %2446 = vmatmul.bf16.vlgmr.msrb.gmra.mxu0 %v2350_v9  ;;  %2475 = vmatmul.bf16.vlgmr.msrb.gmra.mxu1 %v2350_v9  ;;  %v8638_v9 = vld [vmem:[%s17078_s6 + $0x348] sm:$0xf0]  ;;  %v3069_v29 = vrot.slane %v12537_v45, 5  ;;  %v8750_v41 = vrot.slane %v12545_v11, 9 }
 0x221   : > { %v8641_v38 = vor.u32 %v10498_v16, %v8638_v9  ;;  %v2344_v16 = vunpack.c.l.b16 %v12501_v25  ;;  %v2019_v9 = vor.u32 %v12459_v31, %v12457_v32  ;;  %2987 = vmatpush.bf16.msra.mxu1 %v8737_v42  ;;  %v10517_v25 = vld [vmem:[%s17078_s6 + $0x3d4] sm:$0xf0]  ;;  %v10516_v32 = vld [vmem:[%s17078_s6 + $0x3d4] sm:$0xf]  ;;  %v3058_v31 = vsel %vm12094_vm12, %v8746_v21, %v3057_v26 }
 0x222   : > { %v8725_v24 = vor.u32 %v10517_v25, %v8724_v23  ;;  %v3104_v42 = vunpack.c.l.b16 %v3058_v31  ;;  %v8729_v35 = vor.u32 %v10516_v32, %v8726_v17  ;;  %v8749_v26 = vrot.slane %v3034_v28, 9  ;;  %v12576_v23 = vld [vmem:[#allocation2 + $0x3c] sm:$0x1]  ;;  %v10496_v28 = vld [vmem:[%s17078_s6 + $0x334] sm:$0xf] }
 0x223   : > { %2674 = vmatpush.bf16.msra.mxu3 %v8641_v38  ;;  %v8748_v38 = vrot.slane %v3033_v14, 9  ;;  %v3105_v14 = vunpack.c.l.b16 %v3062_v4  ;;  %v12574_v33 = vrot.slane %v2019_v9, 4  ;;  %v3036_v4 = vld [vmem:[#allocation2 + $0x38] sm:$0xe]  ;;  %v2351_v32 = vpack.c.b16 %v2345_v48, %v2344_v16  ;;  %v8716_v17 = vld [vmem:[%s17078_s6 + $0x3c0] sm:$0xf] }
 0x224   : > { %2959 = vmatpush.bf16.msra.mxu0 %v8725_v24  ;;  %v10497_v9 = vld [vmem:[%s17078_s6 + $0x334] sm:$0xf0]  ;;  %v2011_v11 = vsel %vm11796_vm15, %v12525_v7, %v12454_v63  ;;  %v8630_v24 = vld [vmem:[%s17078_s6 + $0x338] sm:$0xf0]  ;;  %v10514_v63 = vld [vmem:[%s17078_s6 + $0x3c4] sm:$0xf] }
 0x225   : > { %v12565_v50 = vpop.f32.mrf.mxu0  ;;  %v12567_v12 = vpop.f32.mrf.mxu1  ;;  %v3066_v21 = vsel %vm12094_vm12, %v8748_v38, %v3065_v40  ;;  %v12578_v25 = vpack.c.b16 %v3105_v14, %v3104_v42  ;;  %v8628_v38 = vld [vmem:[%s17078_s6 + $0x330] sm:$0xf]  ;;  %v3070_v40 = vsel %vm12094_vm12, %v8749_v26, %v3069_v29  ;;  %2988 = vmatpush.bf16.msra.mxu1 %v8729_v35  ;;  %v10515_v42 = vld [vmem:[%s17078_s6 + $0x3c4] sm:$0xf0]  ;;  %v8633_v14 = vor.u32 %v10496_v28, %v8630_v24  ;;  %v8718_v7 = vld [vmem:[%s17078_s6 + $0x3c8] sm:$0xf0] }
 0x226   : > { %v3106_v31 = vunpack.c.l.b16 %v3066_v21  ;;  %v3107_v16 = vunpack.c.l.b16 %v3070_v40  ;;  %v8717_v21 = vor.u32 %v10515_v42, %v8716_v17  ;;  %v12612_v35 = vld [vmem:[#allocation2 + $0x44] sm:$0x1]  ;;  %v12614_v26 = vld [vmem:[#allocation2 + $0x4c] sm:$0x1]  ;;  %v3073_v29 = vrot.slane %v12569_v37, 5 }
 0x227   : > { %v8721_v28 = vor.u32 %v10514_v63, %v8718_v7  ;;  %v8751_v24 = vrot.slane %v3036_v4, 9  ;;  %v3077_v17 = vrot.slane %v12576_v23, 5  ;;  %v3037_v42 = vld [vmem:[#allocation2 + $0x40] sm:$0xe]  ;;  %v3038_v48 = vld [vmem:[#allocation2 + $0x48] sm:$0xe]  ;;  %2675 = vmatpush.bf16.msra.mxu3 %v8633_v14 }
 0x228   : > { %v12617_v40 = vpack.c.b16 %v3107_v16, %v3106_v31  ;;  %v10513_v31 = vld [vmem:[%s17078_s6 + $0x3b4] sm:$0xf0]  ;;  %v10512_v4 = vld [vmem:[%s17078_s6 + $0x3b4] sm:$0xf]  ;;  %2960 = vmatpush.bf16.msra.mxu0 %v8717_v21  ;;  %v8710_v16 = vld [vmem:[%s17078_s6 + $0x3b8] sm:$0xf0] }
 0x229   : > { %2989 = vmatpush.bf16.msra.mxu1 %v8721_v28  ;;  %v8620_v14 = vld [vmem:[%s17078_s6 + $0x320] sm:$0xf]  ;;  %v3078_v63 = vsel %vm12094_vm12, %v8751_v24, %v3077_v17  ;;  %v10494_v21 = vld [vmem:[%s17078_s6 + $0x324] sm:$0xf]  ;;  %v3085_v5 = vrot.slane %v12614_v26, 5 }
 0x22c   : > { %2203 = vmatmul.bf16.vlgmr.msrb.gmra.mxu2 %v2107_v59  ;;  %2232 = vmatmul.bf16.vlgmr.msrb.gmra.mxu3 %v2107_v59  ;;  %v8629_v59 = vor.u32 %v10497_v9, %v8628_v38 }
 0x22d   : > { %v12660_v24 = vpop.f32.mrf.mxu0  ;;  %v12662_v17 = vpop.f32.mrf.mxu1 }
 0x22e   : > { %2646 = vmatpush.bf16.msra.mxu2 %v8629_v59 }
 0x22f   : > { %v1294_v38 = vpop.f32.mrf.mxu2  ;;  %v1323_v9 = vpop.f32.mrf.mxu3 }
 0x230   : > { %2451 = vmatmul.bf16.gmra.mxu0 %v2351_v32  ;;  %2480 = vmatmul.bf16.gmra.mxu1 %v2351_v32  ;;  %v12621_v34 = vadd.f32 %v12463_v58, %v1294_v38  ;;  %v12624_v51 = vadd.f32 %v12465_v0, %v1323_v9  ;;  %v8708_v32 = vld [vmem:[%s17078_s6 + $0x3b0] sm:$0xf]  ;;  %v3074_v58 = vsel %vm12094_vm12, %v8750_v41, %v3073_v29  ;;  %v10495_v41 = vld [vmem:[%s17078_s6 + $0x324] sm:$0xf0]  ;;  %v8622_v29 = vld [vmem:[%s17078_s6 + $0x328] sm:$0xf0]  ;;  %v3109_v38 = vunpack.c.l.b16 %v3078_v63 }
 0x231   : > { %v2025_v0 = vsel %vm11796_vm15, %v12574_v33, %v12527_v55  ;;  %v8709_v59 = vor.u32 %v10513_v31, %v8708_v32  ;;  %v3108_v7 = vunpack.c.l.b16 %v3074_v58  ;;  %v8713_v55 = vor.u32 %v10512_v4, %v8710_v16  ;;  %v10511_v63 = vld [vmem:[%s17078_s6 + $0x3a4] sm:$0xf0] }
 0x232   : > { %v8621_v33 = vor.u32 %v10495_v41, %v8620_v14  ;;  %v8752_v9 = vrot.slane %v3037_v42, 9  ;;  %v8625_v28 = vor.u32 %v10494_v21, %v8622_v29  ;;  %v3081_v32 = vrot.slane %v12612_v35, 5  ;;  %v8700_v41 = vld [vmem:[%s17078_s6 + $0x3a0] sm:$0xf] }
 0x233   : > { %v8753_v31 = vrot.slane %v3038_v48, 9  ;;  %v17142_v4 = vrot.slane %v12433_v49, 5  ;;  %v17143_v58 = vrot.slane %v12435_v36, 9  ;;  %v17144_v14 = vrot.slane %v12471_v13, 5  ;;  %v10510_v36 = vld [vmem:[%s17078_s6 + $0x3a4] sm:$0xf]  ;;  %2961 = vmatpush.bf16.msra.mxu0 %v8709_v59  ;;  %2990 = vmatpush.bf16.msra.mxu1 %v8713_v55 }
 0x234   : > { %v17145_v42 = vrot.slane %v12473_v8, 9  ;;  %2647 = vmatpush.bf16.msra.mxu2 %v8621_v33  ;;  %v12685_v21 = vpack.c.b16 %v3109_v38, %v3108_v7  ;;  %v2101_v29 = vunpack.c.l.b16 %v2011_v11  ;;  %v8701_v8 = vor.u32 %v10511_v63, %v8700_v41  ;;  %v8702_v33 = vld [vmem:[%s17078_s6 + $0x3a8] sm:$0xf0]  ;;  %2676 = vmatpush.bf16.msra.mxu3 %v8625_v28 }
 0x235   : > { %v2312_v16 = vsel %vm12094_vm12, %v17143_v58, %v17142_v4  ;;  %v3082_v4 = vsel %vm12094_vm12, %v8752_v9, %v3081_v32  ;;  %v3086_v58 = vsel %vm12094_vm12, %v8753_v31, %v3085_v5  ;;  %v17146_v59 = vshrl.u32 %v12484_v10, 16  ;;  %v12702_v5 = vld [vmem:[#allocation2 + $0x38] sm:$0xe]  ;;  %v8692_v31 = vld [vmem:[%s17078_s6 + $0x390] sm:$0xf] }
 0x236   : > { %v2316_v48 = vsel %vm12094_vm12, %v17145_v42, %v17144_v14  ;;  %v2102_v14 = vunpack.c.l.b16 %v2025_v0  ;;  %v8705_v42 = vor.u32 %v10510_v36, %v8702_v33  ;;  %v3110_v60 = vunpack.c.l.b16 %v3082_v4  ;;  %v8694_v33 = vld [vmem:[%s17078_s6 + $0x398] sm:$0xf0] }
 0x237   : > { %v3111_v7 = vunpack.c.l.b16 %v3086_v58  ;;  %v1296_v38 = vpop.f32.mrf.mxu2  ;;  %v1325_v11 = vpop.f32.mrf.mxu3  ;;  %v2029_v55 = vrot.slane %v17146_v59, 4  ;;  %v17147_v41 = vshll.u32 %v12484_v10, 16  ;;  %v17149_v9 = vshll.u32 %v12533_v22, 16  ;;  %v10509_v10 = vld [vmem:[%s17078_s6 + $0x394] sm:$0xf0]  ;;  %2962 = vmatpush.bf16.msra.mxu0 %v8701_v8 }
 0x238   : > { %v12705_v0 = vadd.f32 %v12565_v50, %v1296_v38  ;;  %v12708_v28 = vadd.f32 %v12567_v12, %v1325_v11  ;;  %v2346_v36 = vunpack.c.l.b16 %v2312_v16  ;;  %v2347_v50 = vunpack.c.l.b16 %v2316_v48  ;;  %2991 = vmatpush.bf16.msra.mxu1 %v8705_v42  ;;  %v12725_v38 = vld [vmem:[#allocation2 + $0x3c] sm:$0x1]  ;;  %v2276_v16 = vld [vmem:[#allocation2 + $0x40] sm:$0xe]  ;;  %v1966_v8 = vld [vmem:[#allocation2 + $0x38] sm:$0xf] }
 0x239   : > { %v2032_v63 = vrot.slane %v17147_v41, 5  ;;  %v2046_v32 = vrot.slane %v17149_v9, 5  ;;  %v12719_v22 = vpack.c.b16 %v3111_v7, %v3110_v60  ;;  %v8693_v12 = vor.u32 %v10509_v10, %v8692_v31  ;;  %v12728_v7 = vld [vmem:[#allocation2 + $0x44] sm:$0x1]  ;;  %v8614_v42 = vld [vmem:[%s17078_s6 + $0x318] sm:$0xf0]  ;;  %v1463_v9 = vpop.f32.mrf.mxu0 }
 0x23a   : > { %v2108_v4 = vpack.c.b16 %v2102_v14, %v2101_v29  ;;  %v2036_v58 = vshll.u32 %v12433_v49, 16  ;;  %v8697_v11 = vor.u32 %v10508_v61, %v8694_v33  ;;  %v2050_v60 = vshll.u32 %v12471_v13, 16  ;;  %v8612_v29 = vld [vmem:[%s17078_s6 + $0x310] sm:$0xf]  ;;  %v10493_v49 = vld [vmem:[%s17078_s6 + $0x314] sm:$0xf0] }
 0x23b   : > { %v2033_v59 = vor.u32 %v2032_v63, %v2029_v55  ;;  %v2047_v41 = vor.u32 %v2046_v32, %v2043_v43  ;;  %v8488_v48 = vrot.slane %v12702_v5, 9  ;;  %v10492_v43 = vld [vmem:[%s17078_s6 + $0x314] sm:$0xf]  ;;  %v2352_v13 = vpack.c.b16 %v2347_v50, %v2346_v36  ;;  %2963 = vmatpush.bf16.msra.mxu0 %v8693_v12  ;;  %v8684_v55 = vld [vmem:[%s17078_s6 + $0x380] sm:$0xf]  ;;  %v1492_v32 = vpop.f32.mrf.mxu1 }
 0x23c   : > { %2208 = vmatmul.bf16.gmra.mxu2 %v2108_v4  ;;  %2237 = vmatmul.bf16.gmra.mxu3 %v2108_v4  ;;  %v8613_v14 = vor.u32 %v10493_v49, %v8612_v29  ;;  %v10507_v63 = vld [vmem:[%s17078_s6 + $0x384] sm:$0xf0]  ;;  %v2319_v5 = vrot.slane %v12725_v38, 5  ;;  %v8489_v31 = vrot.slane %v2276_v16, 9  ;;  %v8617_v10 = vor.u32 %v10492_v43, %v8614_v42  ;;  %v10506_v36 = vld [vmem:[%s17078_s6 + $0x384] sm:$0xf] }
 0x23d   : > { %2992 = vmatpush.bf16.msra.mxu1 %v8697_v11  ;;  %v8685_v61 = vor.u32 %v10507_v63, %v8684_v55  ;;  %v8686_v50 = vld [vmem:[%s17078_s6 + $0x388] sm:$0xf0]  ;;  %v2034_v4 = vrot.slane %v2033_v59, 4  ;;  %v2048_v11 = vrot.slane %v2047_v41, 4  ;;  %v2323_v29 = vrot.slane %v12728_v7, 5 }
 0x23e   : > { %v1968_v49 = vld [vmem:[#allocation2 + $0x40] sm:$0xf]  ;;  %v8689_v16 = vor.u32 %v10506_v36, %v8686_v50  ;;  %2648 = vmatpush.bf16.msra.mxu2 %v8613_v14  ;;  %2677 = vmatpush.bf16.msra.mxu3 %v8617_v10  ;;  %v10491_v59 = vld [vmem:[%s17078_s6 + $0x304] sm:$0xf0]  ;;  %v10490_v41 = vld [vmem:[%s17078_s6 + $0x304] sm:$0xf] }
 0x23f   : > { %v1299_v12 = vpop.f32.mrf.mxu2  ;;  %v1328_v33 = vpop.f32.mrf.mxu3  ;;  %v8604_v55 = vld [vmem:[%s17078_s6 + $0x300] sm:$0xf]  ;;  %2964 = vmatpush.bf16.msra.mxu0 %v8685_v61  ;;  %v8606_v14 = vld [vmem:[%s17078_s6 + $0x308] sm:$0xf0]  ;;  %v2055_v63 = vshrl.u32 %v1966_v8, 16  ;;  %v2058_v10 = vshll.u32 %v1966_v8, 16  ;;  %v2320_v61 = vsel %vm12094_vm12, %v8488_v48, %v2319_v5 }
 0x240   : > { %2456 = vmatmul.bf16.gmra.mxu0 %v2352_v13  ;;  %2485 = vmatmul.bf16.gmra.mxu1 %v2352_v13  ;;  %v12758_v43 = vadd.f32 %v12660_v24, %v1299_v12  ;;  %v12761_v42 = vadd.f32 %v12662_v17, %v1328_v33  ;;  %v2038_v13 = vrot.slane %v2036_v58, 5  ;;  %v2052_v24 = vrot.slane %v2050_v60, 5  ;;  %v2716_v36 = vld [vmem:[#allocation2 + $0x10] sm:$0xf]  ;;  %v2718_v50 = vld [vmem:[#allocation2 + $0x18] sm:$0xf] }
 0x241   : > { %2993 = vmatpush.bf16.msra.mxu1 %v8689_v16  ;;  %v8605_v17 = vor.u32 %v10491_v59, %v8604_v55  ;;  %v8609_v12 = vor.u32 %v10490_v41, %v8606_v14  ;;  %v2069_v58 = vshrl.u32 %v1968_v49, 16  ;;  %v2072_v60 = vshll.u32 %v1968_v49, 16  ;;  %v1466_v56 = vpop.f32.mrf.mxu0 }
 0x242   : > { %v2039_v33 = vsel %vm11796_vm15, %v2034_v4, %v2038_v13  ;;  %v2053_v15 = vsel %vm11796_vm15, %v2048_v11, %v2052_v24  ;;  %v2324_v16 = vsel %vm12094_vm12, %v8489_v31, %v2323_v29  ;;  %v2733_v8 = vshrl.u32 %v2716_v36, 16 }
 0x243   : > { %2649 = vmatpush.bf16.msra.mxu2 %v8605_v17  ;;  %2678 = vmatpush.bf16.msra.mxu3 %v8609_v12  ;;  %v2736_v55 = vshll.u32 %v2716_v36, 16  ;;  %v2747_v59 = vshrl.u32 %v2718_v50, 16  ;;  %v2750_v41 = vshll.u32 %v2718_v50, 16  ;;  %v2103_v14 = vunpack.c.l.b16 %v2039_v33  ;;  %v1495_v62 = vpop.f32.mrf.mxu1 }
 0x244   : > { %v2104_v47 = vunpack.c.l.b16 %v2053_v15  ;;  %v2057_v53 = vrot.slane %v2055_v63, 4  ;;  %v2060_v11 = vrot.slane %v2058_v10, 5  ;;  %v2071_v24 = vrot.slane %v2069_v58, 4  ;;  %v10536_v58 = vld [vmem:[%s17078_s6 + $0x474] sm:$0xf] }
 0x245   : > { %v2074_v49 = vrot.slane %v2072_v60, 5  ;;  %v2348_v31 = vunpack.c.l.b16 %v2320_v61  ;;  %v2349_v29 = vunpack.c.l.b16 %v2324_v16  ;;  %v2735_v17 = vrot.slane %v2733_v8, 4  ;;  %v8830_v61 = vld [vmem:[%s17078_s6 + $0x478] sm:$0xf0] }
 0x246   : > { %v2738_v36 = vrot.slane %v2736_v55, 5  ;;  %v2749_v12 = vrot.slane %v2747_v59, 4  ;;  %v2752_v50 = vrot.slane %v2750_v41, 5  ;;  %v2109_v33 = vpack.c.b16 %v2104_v47, %v2103_v14 }
 0x247   : > { %v1301_v4 = vpop.f32.mrf.mxu2  ;;  %v1330_v13 = vpop.f32.mrf.mxu3  ;;  %v2061_v15 = vor.u32 %v2060_v11, %v2057_v53  ;;  %v2064_v30 = vshll.u32 %v12725_v38, 16  ;;  %v2075_v63 = vor.u32 %v2074_v49, %v2071_v24  ;;  %v2353_v10 = vpack.c.b16 %v2349_v29, %v2348_v31  ;;  %v2720_v11 = vld [vmem:[#allocation2 + $0x20] sm:$0xf] }
 0x248   : > { %v12783_v48 = vadd.f32 %v1463_v9, %v1301_v4  ;;  %v12785_v5 = vadd.f32 %v1492_v32, %v1330_v13  ;;  %v8828_v9 = vld [vmem:[%s17078_s6 + $0x470] sm:$0xf]  ;;  %v10537_v32 = vld [vmem:[%s17078_s6 + $0x474] sm:$0xf0]  ;;  %v2078_v47 = vshll.u32 %v12728_v7, 16  ;;  %v2739_v53 = vor.u32 %v2738_v36, %v2735_v17 }
 0x249   : > { %v2753_v38 = vor.u32 %v2752_v50, %v2749_v12  ;;  %v8829_v60 = vor.u32 %v10537_v32, %v8828_v9  ;;  %v8833_v16 = vor.u32 %v10536_v58, %v8830_v61  ;;  %v2062_v59 = vrot.slane %v2061_v15, 4  ;;  %v2722_v17 = vld [vmem:[#allocation2 + $0x28] sm:$0xf]  ;;  %v1468_v36 = vpop.f32.mrf.mxu0  ;;  %v8822_v15 = vld [vmem:[%s17078_s6 + $0x468] sm:$0xf0] }
 0x24a   : > { %v2076_v41 = vrot.slane %v2075_v63, 4  ;;  %v2742_v14 = vshll.u32 %v12495_v19, 16  ;;  %v2756_v7 = vshll.u32 %v12497_v20, 16  ;;  %v2066_v24 = vrot.slane %v2064_v30, 5  ;;  %v8820_v19 = vld [vmem:[%s17078_s6 + $0x460] sm:$0xf] }
 0x24b   : > { %3200 = vmatpush.bf16.msrb.mxu2 %v8829_v60  ;;  %3229 = vmatpush.bf16.msrb.mxu3 %v8833_v16  ;;  %v2080_v49 = vrot.slane %v2078_v47, 5  ;;  %v2740_v31 = vrot.slane %v2739_v53, 4  ;;  %v2754_v29 = vrot.slane %v2753_v38, 4  ;;  %v1497_v12 = vpop.f32.mrf.mxu1  ;;  %v2764_v58 = vshll.u32 %v2720_v11, 16 }
 0x24c   : > { %2213 = vmatmul.bf16.gmra.mxu2 %v2109_v33  ;;  %2242 = vmatmul.bf16.gmra.mxu3 %v2109_v33  ;;  %v2067_v30 = vsel %vm11796_vm15, %v2062_v59, %v2066_v24  ;;  %v2744_v50 = vrot.slane %v2742_v14, 5  ;;  %v2758_v63 = vrot.slane %v2756_v7, 5  ;;  %v2775_v47 = vshrl.u32 %v2722_v17, 16 }
 0x24d   : > { %v2081_v20 = vsel %vm11796_vm15, %v2076_v41, %v2080_v49  ;;  %v2778_v53 = vshll.u32 %v2722_v17, 16  ;;  %v2105_v38 = vunpack.c.l.b16 %v2067_v30  ;;  %v2766_v24 = vrot.slane %v2764_v58, 5 }
 0x24e   : > { %v2745_v32 = vsel %vm11796_vm15, %v2740_v31, %v2744_v50  ;;  %v2106_v60 = vunpack.c.l.b16 %v2081_v20  ;;  %v2759_v61 = vsel %vm11796_vm15, %v2754_v29, %v2758_v63  ;;  %v8812_v29 = vld [vmem:[%s17078_s6 + $0x450] sm:$0xf]  ;;  %v8814_v50 = vld [vmem:[%s17078_s6 + $0x458] sm:$0xf0]  ;;  %v2784_v58 = vshll.u32 %v12537_v45, 16 }
 0x24f   : > { %v1304_v8 = vpop.f32.mrf.mxu2  ;;  %v1333_v55 = vpop.f32.mrf.mxu3  ;;  %v2861_v41 = vunpack.c.l.b16 %v2745_v32  ;;  %v2862_v7 = vunpack.c.l.b16 %v2759_v61  ;;  %v2780_v49 = vrot.slane %v2778_v53, 5  ;;  %v2770_v32 = vshll.u32 %v12529_v2, 16  ;;  %v8804_v61 = vld [vmem:[%s17078_s6 + $0x440] sm:$0xf]  ;;  %v10530_v2 = vld [vmem:[%s17078_s6 + $0x444] sm:$0xf] }
 0x250   : > { %2461 = vmatmul.bf16.gmra.mxu0 %v2353_v10  ;;  %2490 = vmatmul.bf16.gmra.mxu1 %v2353_v10  ;;  %v12802_v4 = vadd.f32 %v1466_v56, %v1304_v8  ;;  %v12804_v13 = vadd.f32 %v1495_v62, %v1333_v55  ;;  %v10535_v56 = vld [vmem:[%s17078_s6 + $0x464] sm:$0xf0]  ;;  %v10534_v62 = vld [vmem:[%s17078_s6 + $0x464] sm:$0xf]  ;;  %v2761_v10 = vshrl.u32 %v2720_v11, 16  ;;  %v2777_v11 = vrot.slane %v2775_v47, 4 }
 0x251   : > { %v8821_v33 = vor.u32 %v10535_v56, %v8820_v19  ;;  %v8825_v9 = vor.u32 %v10534_v62, %v8822_v15  ;;  %v2110_v31 = vpack.c.b16 %v2106_v60, %v2105_v38  ;;  %v1471_v17 = vpop.f32.mrf.mxu0  ;;  %v2869_v56 = vpack.c.b16 %v2862_v7, %v2861_v41  ;;  %v2724_v47 = vld [vmem:[#allocation2 + $0x30] sm:$0xf]  ;;  %v2726_v60 = vld [vmem:[#allocation2 + $0x38] sm:$0xf]  ;;  %v8806_v41 = vld [vmem:[%s17078_s6 + $0x448] sm:$0xf0] }
 0x252   : > { %v2763_v14 = vrot.slane %v2761_v10, 4  ;;  %v2781_v30 = vor.u32 %v2780_v49, %v2777_v11  ;;  %v2786_v7 = vrot.slane %v2784_v58, 5  ;;  %v8809_v11 = vor.u32 %v10530_v2, %v8806_v41  ;;  %v8798_v41 = vld [vmem:[%s17078_s6 + $0x438] sm:$0xf0] }
 0x253   : > { %3201 = vmatpush.bf16.msrb.mxu2 %v8821_v33  ;;  %3230 = vmatpush.bf16.msrb.mxu3 %v8825_v9  ;;  %v1500_v19 = vpop.f32.mrf.mxu1  ;;  %v2803_v49 = vshrl.u32 %v2726_v60, 16 }
 0x254   : > { %v2767_v62 = vor.u32 %v2766_v24, %v2763_v14  ;;  %v2782_v38 = vrot.slane %v2781_v30, 4  ;;  %v2772_v14 = vrot.slane %v2770_v32, 5  ;;  %v2792_v24 = vshll.u32 %v2724_v47, 16  ;;  %v10486_v30 = vld [vmem:[#allocation2 + $0x14] sm:$0xf0] }
 0x255   : > { %v2805_v58 = vrot.slane %v2803_v49, 4 }
 0x256   : > { %v2768_v53 = vrot.slane %v2767_v62, 4  ;;  %v8588_v62 = vld [vmem:[#allocation2 + $0x10] sm:$0xf] }
 0x257   : > { %v1306_v16 = vpop.f32.mrf.mxu2  ;;  %v1335_v8 = vpop.f32.mrf.mxu3 }
 0x258   : > { %v12827_v55 = vadd.f32 %v1468_v36, %v1306_v16  ;;  %v12829_v59 = vadd.f32 %v1497_v12, %v1335_v8  ;;  %v10533_v36 = vld [vmem:[%s17078_s6 + $0x454] sm:$0xf0]  ;;  %v10532_v12 = vld [vmem:[%s17078_s6 + $0x454] sm:$0xf]  ;;  %v10531_v16 = vld [vmem:[%s17078_s6 + $0x444] sm:$0xf0] }
 0x259   : > { %v8813_v20 = vor.u32 %v10533_v36, %v8812_v29  ;;  %v8817_v33 = vor.u32 %v10532_v12, %v8814_v50  ;;  %v2789_v8 = vshrl.u32 %v2724_v47, 16  ;;  %v8805_v45 = vor.u32 %v10531_v16, %v8804_v61  ;;  %v10528_v61 = vld [vmem:[%s17078_s6 + $0x434] sm:$0xf] }
 0x25a   : > { %v2773_v29 = vsel %vm11796_vm15, %v2768_v53, %v2772_v14  ;;  %v2787_v36 = vsel %vm11796_vm15, %v2782_v38, %v2786_v7  ;;  %v8796_v53 = vld [vmem:[%s17078_s6 + $0x430] sm:$0xf]  ;;  %v10529_v38 = vld [vmem:[%s17078_s6 + $0x434] sm:$0xf0]  ;;  %v8801_v14 = vor.u32 %v10528_v61, %v8798_v41 }
 0x25b   : > { %3202 = vmatpush.bf16.msrb.mxu2 %v8813_v20  ;;  %3231 = vmatpush.bf16.msrb.mxu3 %v8817_v33  ;;  %v2791_v33 = vrot.slane %v2789_v8, 4  ;;  %v2864_v32 = vunpack.c.l.b16 %v2787_v36 }
 0x25c   : > { %2218 = vmatmul.bf16.gmra.mxu2 %v2110_v31  ;;  %2247 = vmatmul.bf16.gmra.mxu3 %v2110_v31  ;;  %v2806_v31 = vshll.u32 %v2726_v60, 16  ;;  %v8589_v60 = vor.u32 %v10486_v30, %v8588_v62  ;;  %v8790_v30 = vld [vmem:[%s17078_s6 + $0x428] sm:$0xf0] }
 0x25e   : > { %v2808_v47 = vrot.slane %v2806_v31, 5 }
 0x25f   : > { %v1309_v15 = vpop.f32.mrf.mxu2  ;;  %v1338_v63 = vpop.f32.mrf.mxu3  ;;  %3203 = vmatpush.bf16.msrb.mxu2 %v8805_v45  ;;  %3232 = vmatpush.bf16.msrb.mxu3 %v8809_v11  ;;  %v8797_v45 = vor.u32 %v10529_v38, %v8796_v53  ;;  %v2798_v11 = vshll.u32 %v12569_v37, 16  ;;  %v8788_v37 = vld [vmem:[%s17078_s6 + $0x420] sm:$0xf] }
 0x260   : > { %2965 = vmatmul.bf16.vlgmr.msra.gmra.mxu0 %v2869_v56  ;;  %2994 = vmatmul.bf16.vlgmr.msra.gmra.mxu1 %v2869_v56  ;;  %v12843_v10 = vadd.f32 %v1471_v17, %v1309_v15  ;;  %v12845_v9 = vadd.f32 %v1500_v19, %v1338_v63  ;;  %v1473_v17 = vpop.f32.mrf.mxu0  ;;  %v1502_v19 = vpop.f32.mrf.mxu1  ;;  %v2794_v15 = vrot.slane %v2792_v24, 5  ;;  %v2863_v63 = vunpack.c.l.b16 %v2773_v29 }
 0x261   : > { %v2809_v8 = vor.u32 %v2808_v47, %v2805_v58  ;;  %v2800_v62 = vrot.slane %v2798_v11, 5 }
 0x262   : > { %v2870_v16 = vpack.c.b16 %v2864_v32, %v2863_v63  ;;  %v2795_v2 = vor.u32 %v2794_v15, %v2791_v33 }
 0x263   : > { %3204 = vmatpush.bf16.msrb.mxu2 %v8797_v45  ;;  %3233 = vmatpush.bf16.msrb.mxu3 %v8801_v14  ;;  %v2810_v36 = vrot.slane %v2809_v8, 4  ;;  %v10487_v8 = vld [vmem:[#allocation2 + $0x24] sm:$0xf0] }
 0x264   : > { %v2796_v29 = vrot.slane %v2795_v2, 4  ;;  %v8592_v2 = vld [vmem:[#allocation2 + $0x20] sm:$0xf] }
 0x266   : > { %v2801_v58 = vsel %vm11796_vm15, %v2796_v29, %v2800_v62 }
 0x267   : > { %v1311_v12 = vpop.f32.mrf.mxu2  ;;  %v1340_v56 = vpop.f32.mrf.mxu3  ;;  %v2865_v14 = vunpack.c.l.b16 %v2801_v58 }
 0x268   : > { %v12865_v20 = vadd.f32 %v1473_v17, %v1311_v12  ;;  %v12867_v50 = vadd.f32 %v1502_v19, %v1340_v56  ;;  %v12882_v49 = vpop.f32.mrf.mxu0  ;;  %v2812_v19 = vshll.u32 %v12576_v23, 16  ;;  %v2728_v12 = vld [vmem:[#allocation2 + $0x40] sm:$0xf]  ;;  %v2730_v56 = vld [vmem:[#allocation2 + $0x48] sm:$0xf]  ;;  %v12903_v33 = vpop.f32.mrf.mxu1 }
 0x269   : > { %v2817_v63 = vshrl.u32 %v2728_v12, 16  ;;  %v2820_v47 = vshll.u32 %v2728_v12, 16  ;;  %v2834_v53 = vshll.u32 %v2730_v56, 16 }
 0x26a   : > { %v2814_v15 = vrot.slane %v2812_v19, 5 }
 0x26b   : > { %v2822_v11 = vrot.slane %v2820_v47, 5  ;;  %v2836_v29 = vrot.slane %v2834_v53, 5 }
 0x26c   : > { %2650 = vmatmul.bf16.vlgmr.msra.gmra.mxu2 %v8589_v60  ;;  %2679 = vmatmul.bf16.vlgmr.msra.gmra.mxu3 %v8589_v60  ;;  %v2831_v60 = vshrl.u32 %v2730_v56, 16  ;;  %v2815_v38 = vsel %vm11796_vm15, %v2810_v36, %v2814_v15  ;;  %v8593_v36 = vor.u32 %v10487_v8, %v8592_v2  ;;  %v2840_v56 = vshll.u32 %v12614_v26, 16  ;;  %v8782_v26 = vld [vmem:[%s17078_s6 + $0x418] sm:$0xf0]  ;;  %v10523_v2 = vld [vmem:[%s17078_s6 + $0x404] sm:$0xf0] }
 0x26e   : > { %v2833_v19 = vrot.slane %v2831_v60, 4  ;;  %v2826_v60 = vshll.u32 %v12612_v35, 16  ;;  %v8774_v35 = vld [vmem:[%s17078_s6 + $0x408] sm:$0xf0] }
 0x26f   : > { %v1686_v7 = vpop.f32.mrf.mxu2  ;;  %v1715_v24 = vpop.f32.mrf.mxu3 }
 0x270   : > { %2970 = vmatmul.bf16.gmra.mxu0 %v2870_v16  ;;  %2999 = vmatmul.bf16.gmra.mxu1 %v2870_v16  ;;  %v12885_v31 = vadd.f32 %v1686_v7, %v12621_v34  ;;  %v12888_v17 = vadd.f32 %v1715_v24, %v12624_v51  ;;  %v10527_v34 = vld [vmem:[%s17078_s6 + $0x424] sm:$0xf0]  ;;  %v10526_v51 = vld [vmem:[%s17078_s6 + $0x424] sm:$0xf]  ;;  %v2819_v7 = vrot.slane %v2817_v63, 4  ;;  %v2866_v24 = vunpack.c.l.b16 %v2815_v38  ;;  %v12915_v12 = vpop.f32.mrf.mxu0 }
 0x271   : > { %v8789_v23 = vor.u32 %v10527_v34, %v8788_v37  ;;  %v8793_v32 = vor.u32 %v10526_v51, %v8790_v30  ;;  %v10524_v37 = vld [vmem:[%s17078_s6 + $0x414] sm:$0xf]  ;;  %v2837_v62 = vor.u32 %v2836_v29, %v2833_v19  ;;  %v12930_v30 = vpop.f32.mrf.mxu1 }
 0x272   : > { %v2871_v34 = vpack.c.b16 %v2866_v24, %v2865_v14  ;;  %v2823_v51 = vor.u32 %v2822_v11, %v2819_v7  ;;  %v8785_v15 = vor.u32 %v10524_v37, %v8782_v26  ;;  %v2828_v14 = vrot.slane %v2826_v60, 5 }
 0x273   : > { %3205 = vmatpush.bf16.msrb.mxu2 %v8789_v23  ;;  %3234 = vmatpush.bf16.msrb.mxu3 %v8793_v32  ;;  %v2838_v38 = vrot.slane %v2837_v62, 4 }
 0x274   : > { %v2824_v53 = vrot.slane %v2823_v51, 4 }
 0x276   : > { %v2829_v24 = vsel %vm11796_vm15, %v2824_v53, %v2828_v14 }
 0x277   : > { %v1688_v61 = vpop.f32.mrf.mxu2  ;;  %v1717_v16 = vpop.f32.mrf.mxu3  ;;  %3235 = vmatpush.bf16.msrb.mxu3 %v8785_v15 }
 0x278   : > { %v12910_v45 = vadd.f32 %v1688_v61, %v12705_v0  ;;  %v12913_v41 = vadd.f32 %v1717_v16, %v12708_v28  ;;  %v8780_v0 = vld [vmem:[%s17078_s6 + $0x410] sm:$0xf]  ;;  %v10525_v28 = vld [vmem:[%s17078_s6 + $0x414] sm:$0xf0]  ;;  %v2842_v61 = vrot.slane %v2840_v56, 5  ;;  %v12951_v8 = vpop.f32.mrf.mxu0 }
 0x279   : > { %v8781_v23 = vor.u32 %v10525_v28, %v8780_v0  ;;  %v8772_v16 = vld [vmem:[%s17078_s6 + $0x400] sm:$0xf]  ;;  %v10488_v56 = vld [vmem:[#allocation2 + $0x34] sm:$0xf0]  ;;  %v12957_v0 = vpop.f32.mrf.mxu1 }
 0x27a   : > { %v2843_v11 = vsel %vm11796_vm15, %v2838_v38, %v2842_v61  ;;  %v8600_v38 = vld [vmem:[#allocation2 + $0x40] sm:$0xf]  ;;  %v10489_v61 = vld [vmem:[#allocation2 + $0x44] sm:$0xf0] }
 0x27b   : > { %3206 = vmatpush.bf16.msrb.mxu2 %v8781_v23  ;;  %v2868_v51 = vunpack.c.l.b16 %v2843_v11 }
 0x27c   : > { %2655 = vmatmul.bf16.gmra.mxu2 %v8593_v36  ;;  %2684 = vmatmul.bf16.gmra.mxu3 %v8593_v36  ;;  %v8596_v36 = vld [vmem:[#allocation2 + $0x30] sm:$0xf] }
 0x27d   : > { %v8597_v62 = vor.u32 %v10488_v56, %v8596_v36 }
 0x27f   : > { %v1691_v63 = vpop.f32.mrf.mxu2  ;;  %v1720_v32 = vpop.f32.mrf.mxu3 }
 0x280   : > { %2975 = vmatmul.bf16.gmra.mxu0 %v2871_v34  ;;  %3004 = vmatmul.bf16.gmra.mxu1 %v2871_v34  ;;  %v12933_v58 = vadd.f32 %v1691_v63, %v12758_v43  ;;  %v12936_v47 = vadd.f32 %v1720_v32, %v12761_v42  ;;  %v10522_v43 = vld [vmem:[%s17078_s6 + $0x404] sm:$0xf]  ;;  %v8773_v42 = vor.u32 %v10523_v2, %v8772_v16  ;;  %v2867_v34 = vunpack.c.l.b16 %v2829_v24  ;;  %v1896_v26 = vpop.f32.mrf.mxu0 }
 0x281   : > { %v8777_v7 = vor.u32 %v10522_v43, %v8774_v35 }
 0x282   : > { %3207 = vmatpush.bf16.msrb.mxu2 %v8773_v42  ;;  %v2872_v23 = vpack.c.b16 %v2868_v51, %v2867_v34  ;;  %v8601_v42 = vor.u32 %v10489_v61, %v8600_v38 }
 0x283   : > { %3236 = vmatpush.bf16.msrb.mxu3 %v8777_v7 }
 0x287   : > { %v1693_v19 = vpop.f32.mrf.mxu2  ;;  %v1722_v29 = vpop.f32.mrf.mxu3 }
 0x288   : > { %v1741_v28 = vadd.f32 %v1693_v19, %v12783_v48  ;;  %v1742_v37 = vadd.f32 %v1722_v29, %v12785_v5  ;;  %v1925_v48 = vpop.f32.mrf.mxu1  ;;  %v12967_v16 = vpop.f32.mrf.mxu0 }
 0x28a   : > { %v1944_v11 = vadd.f32 %v1896_v26, %v1741_v28  ;;  %v1945_v56 = vadd.f32 %v1925_v48, %v1742_v37 }
 0x28c   : > { %2660 = vmatmul.bf16.gmra.mxu2 %v8597_v62  ;;  %2689 = vmatmul.bf16.gmra.mxu3 %v8597_v62 }
 0x28f   : > { %v1696_v15 = vpop.f32.mrf.mxu2  ;;  %v1725_v63 = vpop.f32.mrf.mxu3 }
 0x290   : > { %2980 = vmatmul.bf16.gmra.mxu0 %v2872_v23  ;;  %3009 = vmatmul.bf16.gmra.mxu1 %v2872_v23  ;;  %v12962_v32 = vadd.f32 %v1696_v15, %v12802_v4  ;;  %v12965_v60 = vadd.f32 %v1725_v63, %v12804_v13  ;;  %v12971_v35 = vpop.f32.mrf.mxu1  ;;  %v1901_v24 = vpop.f32.mrf.mxu0 }
 0x297   : > { %v1698_v53 = vpop.f32.mrf.mxu2  ;;  %v1727_v5 = vpop.f32.mrf.mxu3 }
 0x298   : > { %v1745_v2 = vadd.f32 %v1698_v53, %v12827_v55  ;;  %v1746_v43 = vadd.f32 %v1727_v5, %v12829_v59  ;;  %v1930_v19 = vpop.f32.mrf.mxu1  ;;  %v12981_v34 = vpop.f32.mrf.mxu0 }
 0x29a   : > { %v1948_v28 = vadd.f32 %v1901_v24, %v1745_v2  ;;  %v1949_v63 = vadd.f32 %v1930_v19, %v1746_v43 }
 0x29c   : > { %2665 = vmatmul.bf16.gmra.mxu2 %v8601_v42  ;;  %2694 = vmatmul.bf16.gmra.mxu3 %v8601_v42 }
 0x29f   : > { %v1701_v4 = vpop.f32.mrf.mxu2  ;;  %v1730_v14 = vpop.f32.mrf.mxu3 }
 0x2a0   : > { %v12974_v13 = vadd.f32 %v1701_v4, %v12843_v10  ;;  %v12977_v7 = vadd.f32 %v1730_v14, %v12845_v9  ;;  %v12989_v51 = vpop.f32.mrf.mxu1  ;;  %v1906_v62 = vpop.f32.mrf.mxu0 }
 0x2a7   : > { %v1703_v29 = vpop.f32.mrf.mxu2  ;;  %v1732_v55 = vpop.f32.mrf.mxu3 }
 0x2a8   : > { %v1749_v59 = vadd.f32 %v1703_v29, %v12865_v20  ;;  %v1750_v36 = vadd.f32 %v1732_v55, %v12867_v50  ;;  %v1940_v20 = vadd.f32 %v12915_v12, %v12910_v45  ;;  %v1941_v50 = vadd.f32 %v12930_v30, %v12913_v41  ;;  %v13001_v5 = vpop.f32.mrf.mxu0 }
 0x2aa   : > { %v1952_v12 = vadd.f32 %v1906_v62, %v1749_v59 }
 0x2ac   : > { %3208 = vmatmul.bf16.vlgmr.msrb.gmra.mxu2 %v12578_v25  ;;  %3237 = vmatmul.bf16.vlgmr.msrb.gmra.mxu3 %v12578_v25  ;;  %v1935_v25 = vpop.f32.mrf.mxu1 }
 0x2ad   : > { %v1953_v2 = vadd.f32 %v1935_v25, %v1750_v36 }
 0x2af   : > { %v12985_v10 = vpop.f32.mrf.mxu2  ;;  %v12987_v9 = vpop.f32.mrf.mxu3 }
 0x2b0   : > { %v2449_v43 = vpop.f32.mrf.mxu0 }
 0x2b4   : > { %v13003_v45 = vpop.f32.mrf.mxu1 }
 0x2b7   : > { %v2206_v37 = vpop.f32.mrf.mxu2  ;;  %v2235_v23 = vpop.f32.mrf.mxu3 }
 0x2b8   : > { %v2255_v26 = vadd.f32 %v2206_v37, %v1940_v20  ;;  %v2256_v15 = vadd.f32 %v2235_v23, %v1941_v50  ;;  %v13011_v14 = vpop.f32.mrf.mxu0 }
 0x2ba   : > { %v2498_v24 = vadd.f32 %v2449_v43, %v2255_v26 }
 0x2bc   : > { %3213 = vmatmul.bf16.gmra.mxu2 %v12617_v40  ;;  %3242 = vmatmul.bf16.gmra.mxu3 %v12617_v40  ;;  %v2478_v40 = vpop.f32.mrf.mxu1 }
 0x2bd   : > { %v2499_v36 = vadd.f32 %v2478_v40, %v2256_v15 }
 0x2bf   : > { %v12997_v48 = vpop.f32.mrf.mxu2  ;;  %v12999_v53 = vpop.f32.mrf.mxu3 }
 0x2c4   : > { %v13013_v55 = vpop.f32.mrf.mxu1 }
 0x2c7   : > { %v2211_v41 = vpop.f32.mrf.mxu2  ;;  %v2240_v30 = vpop.f32.mrf.mxu3 }
 0x2c8   : > { %v2259_v38 = vadd.f32 %v2211_v41, %v1944_v11  ;;  %v2260_v61 = vadd.f32 %v2240_v30, %v1945_v56 }
 0x2cc   : > { %3218 = vmatmul.bf16.gmra.mxu2 %v12685_v21  ;;  %3247 = vmatmul.bf16.gmra.mxu3 %v12685_v21  ;;  %v2454_v21 = vpop.f32.mrf.mxu0  ;;  %v2483_v20 = vpop.f32.mrf.mxu1 }
 0x2cd   : > { %v2502_v50 = vadd.f32 %v2454_v21, %v2259_v38 }
 0x2cf   : > { %v13007_v42 = vpop.f32.mrf.mxu2  ;;  %v13009_v4 = vpop.f32.mrf.mxu3 }
 0x2d4   : > { %v13027_v15 = vpop.f32.mrf.mxu1 }
 0x2d7   : > { %v2216_v19 = vpop.f32.mrf.mxu2  ;;  %v2245_v29 = vpop.f32.mrf.mxu3 }
 0x2d8   : > { %v2263_v11 = vadd.f32 %v2216_v19, %v1948_v28  ;;  %v2264_v59 = vadd.f32 %v2245_v29, %v1949_v63  ;;  %v2503_v28 = vadd.f32 %v2483_v20, %v2260_v61  ;;  %v13025_v63 = vpop.f32.mrf.mxu0 }
 0x2dc   : > { %3223 = vmatmul.bf16.gmra.mxu2 %v12719_v22  ;;  %3252 = vmatmul.bf16.gmra.mxu3 %v12719_v22  ;;  %v2488_v40 = vpop.f32.mrf.mxu1 }
 0x2df   : > { %v13017_v56 = vpop.f32.mrf.mxu2  ;;  %v13019_v62 = vpop.f32.mrf.mxu3 }
 0x2e0   : > { %v2459_v30 = vpop.f32.mrf.mxu0 }
 0x2e1   : > { %v2506_v43 = vadd.f32 %v2459_v30, %v2263_v11 }
 0x2e4   : > { %v13047_v11 = vpop.f32.mrf.mxu1 }
 0x2e7   : > { %v2221_v37 = vpop.f32.mrf.mxu2  ;;  %v2250_v23 = vpop.f32.mrf.mxu3 }
 0x2e8   : > { %v13021_v26 = vadd.f32 %v2221_v37, %v1952_v12  ;;  %v13023_v25 = vadd.f32 %v2250_v23, %v1953_v2  ;;  %v2507_v2 = vadd.f32 %v2488_v40, %v2264_v59  ;;  %v13045_v44 = vpop.f32.mrf.mxu0 }
 0x2ec   : > { %v13055_v59 = vpop.f32.mrf.mxu1 }
 0x2ef   : > { %v13029_v41 = vpop.f32.mrf.mxu2  ;;  %v13031_v22 = vpop.f32.mrf.mxu3 }
 0x2f7   : > { %v2653_v19 = vpop.f32.mrf.mxu2  ;;  %v2682_v38 = vpop.f32.mrf.mxu3 }
 0x2f8   : > { %v13033_v29 = vadd.f32 %v2653_v19, %v2498_v24  ;;  %v13035_v12 = vadd.f32 %v2682_v38, %v2499_v36  ;;  %v13053_v36 = vpop.f32.mrf.mxu0 }
 0x2ff   : > { %v13037_v21 = vpop.f32.mrf.mxu2  ;;  %v13039_v61 = vpop.f32.mrf.mxu3 }
 0x307   : > { %v2658_v20 = vpop.f32.mrf.mxu2  ;;  %v2687_v37 = vpop.f32.mrf.mxu3 }
 0x308   : > { %v13041_v23 = vadd.f32 %v2658_v20, %v2502_v50  ;;  %v13043_v27 = vadd.f32 %v2687_v37, %v2503_v28  ;;  %v3326_v28 = vld [vmem:[%s17080_s8 + $0xf0] sm:$0xff]  ;;  %v3324_v37 = vld [vmem:[%s17080_s8 + $0xe0] sm:$0xff] }
 0x309   : > { %v3358_v20 = vld [vmem:[%s17080_s8 + $0x1f0] sm:$0xff]  ;;  %3388 = vmatpush.msrb.mxu0 %v3326_v28  ;;  %3528 = vmatpush.msra.mxu2 %v3326_v28  ;;  %v3320_v28 = vld [vmem:[%s17080_s8 + $0xc0] sm:$0xff] }
 0x30a   : > { %17150 = vst [vmem:[#allocation25_spill] sm:$0xff] %v13041_v23  ;;  %3408 = vmatpush.msrb.mxu1 %v3358_v20  ;;  %3548 = vmatpush.msra.mxu3 %v3358_v20  ;;  %v3352_v20 = vld [vmem:[%s17080_s8 + $0x1c0] sm:$0xff] }
 0x30b   : > { %17151 = vst [vmem:[#allocation26_spill] sm:$0xff] %v13043_v27  ;;  %3389 = vmatpush.msrb.mxu0 %v3324_v37  ;;  %3529 = vmatpush.msra.mxu2 %v3324_v37  ;;  %v3340_v23 = vld [vmem:[%s17080_s8 + $0x160] sm:$0xff] }
 0x30d   : > { %3390 = vmatpush.msrb.mxu0 %v3322_v57  ;;  %3530 = vmatpush.msra.mxu2 %v3322_v57  ;;  %v3350_v57 = vld [vmem:[%s17080_s8 + $0x1b0] sm:$0xff] }
 0x30f   : > { %v13049_v30 = vpop.f32.mrf.mxu2  ;;  %v13051_v24 = vpop.f32.mrf.mxu3  ;;  %3391 = vmatpush.msrb.mxu0 %v3320_v28  ;;  %3531 = vmatpush.msra.mxu2 %v3320_v28 }
 0x311   : > { %3392 = vmatpush.msrb.mxu0 %v3318_v3  ;;  %3532 = vmatpush.msra.mxu2 %v3318_v3  ;;  %v3346_v3 = vld [vmem:[%s17080_s8 + $0x190] sm:$0xff] }
 0x317   : > { %v2663_v40 = vpop.f32.mrf.mxu2  ;;  %v2692_v19 = vpop.f32.mrf.mxu3 }
 0x318   : > { %v13057_v38 = vadd.f32 %v2663_v40, %v2506_v43  ;;  %v13059_v50 = vadd.f32 %v2692_v19, %v2507_v2  ;;  %v3356_v43 = vld [vmem:[%s17080_s8 + $0x1e0] sm:$0xff]  ;;  %v13073_v2 = vpop.f32.mrf.mxu0  ;;  %v13075_v40 = vpop.f32.mrf.mxu1 }
 0x319   : > { %3409 = vmatpush.msrb.mxu1 %v3356_v43  ;;  %3549 = vmatpush.msra.mxu3 %v3356_v43 }
 0x31a   : > { %17152 = vst [vmem:[#allocation27_spill] sm:$0xff] %v13057_v38 }
 0x31b   : > { %17153 = vst [vmem:[#allocation28_spill] sm:$0xff] %v13059_v50  ;;  %3410 = vmatpush.msrb.mxu1 %v3354_v52  ;;  %3550 = vmatpush.msra.mxu3 %v3354_v52  ;;  %v3316_v52 = vld [vmem:[%s17080_s8 + $0xa0] sm:$0xff]  ;;  %v3342_v50 = vld [vmem:[%s17080_s8 + $0x170] sm:$0xff] }
 0x31c   : > { %3393 = vmatpush.msrb.mxu0 %v3316_v52  ;;  %3533 = vmatpush.msra.mxu2 %v3316_v52  ;;  %v3310_v52 = vld [vmem:[%s17080_s8 + $0x70] sm:$0xff] }
 0x31d   : > { %3411 = vmatpush.msrb.mxu1 %v3352_v20  ;;  %3551 = vmatpush.msra.mxu3 %v3352_v20 }
 0x31f   : > { %v13077_v19 = vpop.f32.mrf.mxu2  ;;  %v13079_v6 = vpop.f32.mrf.mxu3  ;;  %3412 = vmatpush.msrb.mxu1 %v3350_v57  ;;  %3552 = vmatpush.msra.mxu3 %v3350_v57  ;;  %v3312_v57 = vld [vmem:[%s17080_s8 + $0x80] sm:$0xff] }
 0x320   : > { %17154 = vst [vmem:[#allocation29_spill] sm:$0xff] %v13077_v19  ;;  %v13097_v18 = vpop.f32.mrf.mxu0  ;;  %v13099_v39 = vpop.f32.mrf.mxu1  ;;  %v13214_v19 = vld [vmem:[%s17080_s8 + $0xe8] sm:$0xff] }
 0x321   : > { %17155 = vst [vmem:[#allocation30_spill] sm:$0xff] %v13079_v6  ;;  %3413 = vmatpush.msrb.mxu1 %v3348_v46  ;;  %3553 = vmatpush.msra.mxu3 %v3348_v46  ;;  %v3344_v46 = vld [vmem:[%s17080_s8 + $0x180] sm:$0xff]  ;;  %v3306_v6 = vld [vmem:[%s17080_s8 + $0x50] sm:$0xff] }
 0x323   : > { %3414 = vmatpush.msrb.mxu1 %v3346_v3  ;;  %3554 = vmatpush.msra.mxu3 %v3346_v3 }
 0x325   : > { %3415 = vmatpush.msrb.mxu1 %v3344_v46  ;;  %3555 = vmatpush.msra.mxu3 %v3344_v46  ;;  %v3302_v46 = vld [vmem:[%s17080_s8 + $0x30] sm:$0xff] }
 0x327   : > { %v13093_v37 = vpop.f32.mrf.mxu2  ;;  %v13095_v43 = vpop.f32.mrf.mxu3  ;;  %3416 = vmatpush.msrb.mxu1 %v3342_v50  ;;  %3556 = vmatpush.msra.mxu3 %v3342_v50  ;;  %v3336_v50 = vld [vmem:[%s17080_s8 + $0x140] sm:$0xff] }
 0x328   : > { %17156 = vst [vmem:[#allocation31_spill] sm:$0xff] %v13093_v37  ;;  %v13117_v54 = vpop.f32.mrf.mxu0  ;;  %v13119_v1 = vpop.f32.mrf.mxu1  ;;  %v3308_v37 = vld [vmem:[%s17080_s8 + $0x60] sm:$0xff] }
 0x329   : > { %17157 = vst [vmem:[#allocation32_spill] sm:$0xff] %v13095_v43  ;;  %v3314_v43 = vld [vmem:[%s17080_s8 + $0x90] sm:$0xff]  ;;  %3417 = vmatpush.msrb.mxu1 %v3340_v23  ;;  %3557 = vmatpush.msra.mxu3 %v3340_v23 }
 0x32a   : > { %17160 = vst [vmem:[#allocation35_spill] sm:$0xff] %v13117_v54  ;;  %3394 = vmatpush.msrb.mxu0 %v3314_v43  ;;  %3534 = vmatpush.msra.mxu2 %v3314_v43  ;;  %v3330_v23 = vld [vmem:[%s17080_s8 + $0x110] sm:$0xff]  ;;  %v13219_v54 = vld [vmem:[%s17080_s8 + $0x1e8] sm:$0xff] }
 0x32b   : > { %17161 = vst [vmem:[#allocation36_spill] sm:$0xff] %v13119_v1  ;;  %v3338_v1 = vld [vmem:[%s17080_s8 + $0x150] sm:$0xff] }
 0x32c   : > { %3395 = vmatpush.msrb.mxu0 %v3312_v57  ;;  %3535 = vmatpush.msra.mxu2 %v3312_v57  ;;  %v3304_v57 = vld [vmem:[%s17080_s8 + $0x40] sm:$0xff] }
 0x32d   : > { %3418 = vmatpush.msrb.mxu1 %v3338_v1  ;;  %3558 = vmatpush.msra.mxu3 %v3338_v1  ;;  %v3328_v1 = vld [vmem:[%s17080_s8 + $0x100] sm:$0xff] }
 0x32e   : > { %3396 = vmatpush.msrb.mxu0 %v3310_v52  ;;  %3536 = vmatpush.msra.mxu2 %v3310_v52  ;;  %v3334_v52 = vld [vmem:[%s17080_s8 + $0x130] sm:$0xff] }
 0x32f   : > { %v13113_v28 = vpop.f32.mrf.mxu2  ;;  %v13115_v20 = vpop.f32.mrf.mxu3  ;;  %3419 = vmatpush.msrb.mxu1 %v3336_v50  ;;  %3559 = vmatpush.msra.mxu3 %v3336_v50  ;;  %v13201_v50 = vld [vmem:[%s17080_s8 + $0x1f8] sm:$0xff] }
 0x330   : > { %17158 = vst [vmem:[#allocation33_spill] sm:$0xff] %v13113_v28  ;;  %3397 = vmatpush.msrb.mxu0 %v3308_v37  ;;  %v13149_v43 = vpop.f32.mrf.mxu0  ;;  %v13151_v3 = vpop.f32.mrf.mxu1  ;;  %3537 = vmatpush.msra.mxu2 %v3308_v37  ;;  %v3300_v37 = vld [vmem:[%s17080_s8 + $0x20] sm:$0xff] }
 0x331   : > { %17159 = vst [vmem:[#allocation34_spill] sm:$0xff] %v13115_v20  ;;  %v3332_v20 = vld [vmem:[%s17080_s8 + $0x120] sm:$0xff]  ;;  %3420 = vmatpush.msrb.mxu1 %v3334_v52  ;;  %3560 = vmatpush.msra.mxu3 %v3334_v52 }
 0x332   : > { %17162 = vst [vmem:[#allocation37_spill] sm:$0xff] %v13149_v43  ;;  %3398 = vmatpush.msrb.mxu0 %v3306_v6  ;;  %3538 = vmatpush.msra.mxu2 %v3306_v6  ;;  %v3298_v6 = vld [vmem:[%s17080_s8 + $0x10] sm:$0xff] }
 0x333   : > { %17163 = vst [vmem:[#allocation38_spill] sm:$0xff] %v13151_v3  ;;  %3421 = vmatpush.msrb.mxu1 %v3332_v20  ;;  %3561 = vmatpush.msra.mxu3 %v3332_v20  ;;  %v1938_v20 = vadd.f32 %v12882_v49, %v12885_v31  ;;  %v1946_v31 = vadd.f32 %v12967_v16, %v12962_v32 }
 0x334   : > { %3399 = vmatpush.msrb.mxu0 %v3304_v57  ;;  %3539 = vmatpush.msra.mxu2 %v3304_v57  ;;  %v13196_v57 = vld [vmem:[%s17080_s8 + $0xf8] sm:$0xff]  ;;  %17166 = vst [vmem:[#allocation41_spill] sm:$0xff] %v13201_v50 }
 0x335   : > { %3422 = vmatpush.msrb.mxu1 %v3330_v23  ;;  %3562 = vmatpush.msra.mxu3 %v3330_v23  ;;  %v13308_v23 = vld [vmem:[%s17080_s8 + $0xc8] sm:$0xff] }
 0x336   : > { %3400 = vmatpush.msrb.mxu0 %v3302_v46  ;;  %3540 = vmatpush.msra.mxu2 %v3302_v46 }
 0x337   : > { %v13139_v38 = vpop.f32.mrf.mxu2  ;;  %v13141_v27 = vpop.f32.mrf.mxu3  ;;  %3423 = vmatpush.msrb.mxu1 %v3328_v1  ;;  %3563 = vmatpush.msra.mxu3 %v3328_v1  ;;  %v17174_v1 = vld [vmem:[#allocation30_spill] sm:$0xff] }
 0x338   : > { %3401 = vmatpush.msrb.mxu0 %v3300_v37  ;;  %v13203_v46 = vpop.f32.mrf.mxu0  ;;  %3541 = vmatpush.msra.mxu2 %v3300_v37  ;;  %v1939_v37 = vadd.f32 %v12903_v33, %v12888_v17  ;;  %v1947_v17 = vadd.f32 %v12971_v35, %v12965_v60 }
 0x339   : > { %3448 = vmatpush.msra.mxu1 %v13201_v50  ;;  %v1943_v50 = vadd.f32 %v12957_v0, %v12936_v47  ;;  %v2261_v47 = vadd.f32 %v13007_v42, %v1946_v31  ;;  %v17177_v31 = vld [vmem:[#allocation37_spill] sm:$0xff] }
 0x33a   : > { %3402 = vmatpush.msrb.mxu0 %v3298_v6  ;;  %3542 = vmatpush.msra.mxu2 %v3298_v6  ;;  %v2254_v49 = vadd.f32 %v12987_v9, %v1939_v37  ;;  %v2262_v0 = vadd.f32 %v13009_v4, %v1947_v17  ;;  %v17173_v6 = vld [vmem:[#allocation36_spill] sm:$0xff] }
 0x33b   : > { %3449 = vmatpush.msra.mxu1 %v13219_v54  ;;  %v2504_v4 = vadd.f32 %v13025_v63, %v2261_v47  ;;  %v13276_v63 = vadd.f32 %v13055_v59, %v13023_v25 }
 0x33f   : > { %v13171_v3 = vpop.f32.mrf.mxu2  ;;  %v13173_v43 = vpop.f32.mrf.mxu3 }
 0x340   : > { %17164 = vst [vmem:[#allocation39_spill] sm:$0xff] %v13171_v3  ;;  %v13205_v3 = vpop.f32.mrf.mxu1 }
 0x341   : > { %17165 = vst [vmem:[#allocation40_spill] sm:$0xff] %v13173_v43  ;;  %v3296_v43 = vld [vmem:[%s17080_s8] sm:$0xff] }
 0x342   : > { %17167 = vst [vmem:[#allocation42_spill] sm:$0xff] %v13205_v3  ;;  %3403 = vmatpush.msrb.mxu0 %v3296_v43  ;;  %v1942_v3 = vadd.f32 %v12951_v8, %v12933_v58  ;;  %3543 = vmatpush.msra.mxu2 %v3296_v43  ;;  %v1950_v58 = vadd.f32 %v12981_v34, %v12974_v13  ;;  %v2978_v34 = vpop.f32.mrf.mxu0  ;;  %v17170_v43 = vld [vmem:[#allocation29_spill] sm:$0xff] }
 0x343   : > { %v1951_v8 = vadd.f32 %v12989_v51, %v12977_v7  ;;  %v2497_v13 = vadd.f32 %v13003_v45, %v2254_v49  ;;  %v17176_v49 = vld [vmem:[#allocation25_spill] sm:$0xff] }
 0x344   : > { %3428 = vmatpush.msra.mxu0 %v13196_v57  ;;  %v2257_v33 = vadd.f32 %v12997_v48, %v1942_v3  ;;  %v2265_v60 = vadd.f32 %v13017_v56, %v1950_v58  ;;  %v2505_v56 = vadd.f32 %v13027_v15, %v2262_v0  ;;  %v17172_v3 = vld [vmem:[#allocation34_spill] sm:$0xff]  ;;  %v3021_v17 = vadd.f32 %v17177_v31, %v17176_v49 }
 0x345   : > { %v2266_v35 = vadd.f32 %v13019_v62, %v1951_v8  ;;  %v17178_v8 = vld [vmem:[#allocation31_spill] sm:$0xff] }
 0x346   : > { %3429 = vmatpush.msra.mxu0 %v13214_v19  ;;  %v2500_v51 = vadd.f32 %v13011_v14, %v2257_v33  ;;  %v2508_v45 = vadd.f32 %v13045_v44, %v2265_v60  ;;  %v3274_v14 = vld [vmem:[%s17079_s7] sm:$0x3]  ;;  %v3018_v44 = vadd.f32 %v13099_v39, %v13035_v12  ;;  %v17171_v12 = vld [vmem:[#allocation33_spill] sm:$0xff]  ;;  %v13319_v33 = vld [vmem:[%s17080_s8 + $0x1c8] sm:$0xff] }
 0x347   : > { %v13207_v52 = vpop.f32.mrf.mxu2  ;;  %v13209_v28 = vpop.f32.mrf.mxu3  ;;  %v17180_v60 = vld [vmem:[#allocation26_spill] sm:$0xff] }
 0x348   : > { %17168 = vst [vmem:[#allocation43_spill] sm:$0xff] %v13209_v28  ;;  %v2253_v28 = vadd.f32 %v12985_v10, %v1938_v20  ;;  %v2258_v10 = vadd.f32 %v12999_v53, %v1943_v50  ;;  %v13257_v48 = vpop.f32.mrf.mxu1  ;;  %v2701_v53 = vadd.f32 %v13031_v22, %v2497_v13  ;;  %v2704_v42 = vadd.f32 %v13037_v21, %v2500_v51  ;;  %v17175_v20 = vld [vmem:[#allocation39_spill] sm:$0xff]  ;;  %v17179_v0 = vld [vmem:[#allocation40_spill] sm:$0xff]  ;;  %v13338_v51 = vld [vmem:[%s17080_s8 + $0x1b8] sm:$0xff] }
 0x349   : > { %v3017_v22 = vadd.f32 %v13097_v18, %v13033_v29  ;;  %v2708_v21 = vadd.f32 %v13049_v30, %v2504_v4  ;;  %v13285_v29 = vperm.slane %v3274_v14, 0  ;;  %v3261_v25 = vadd.f32 %v13141_v27, %v3018_v44  ;;  %v13303_v27 = vld [vmem:[%s17080_s8 + $0x1d8] sm:$0xff]  ;;  %v17184_v44 = vld [vmem:[#allocation27_spill] sm:$0xff] }
 0x34a   : > { %v2496_v9 = vadd.f32 %v13001_v5, %v2253_v28  ;;  %v2501_v5 = vadd.f32 %v13013_v55, %v2258_v10  ;;  %v2510_v55 = vadd.f32 %v13053_v36, %v13021_v26  ;;  %v13287_v26 = vperm.slane %v3274_v14, 1  ;;  %v17169_v36 = vld [vmem:[#allocation35_spill] sm:$0xff]  ;;  %3450 = vmatpush.msra.mxu1 %v13303_v27  ;;  %v2981_v58 = vpop.f32.mrf.mxu0  ;;  %v17183_v14 = vld [vmem:[#allocation42_spill] sm:$0xff] }
 0x34b   : > { %v3260_v18 = vadd.f32 %v13139_v38, %v3017_v22  ;;  %v3019_v59 = vadd.f32 %v17169_v36, %v2704_v42  ;;  %v2712_v39 = vadd.f32 %v17170_v43, %v2508_v45  ;;  %v13298_v38 = vld [vmem:[%s17080_s8 + $0xd8] sm:$0xff]  ;;  %v3264_v42 = vadd.f32 %v13207_v52, %v3021_v17  ;;  %v13358_v52 = vld [vmem:[%s17080_s8 + $0xa8] sm:$0xff] }
 0x34c   : > { %v2700_v7 = vadd.f32 %v13029_v41, %v2496_v9  ;;  %v2705_v62 = vadd.f32 %v13039_v61, %v2501_v5  ;;  %v2509_v41 = vadd.f32 %v13047_v11, %v2266_v35  ;;  %v2709_v61 = vadd.f32 %v13051_v24, %v2505_v56  ;;  %3430 = vmatpush.msra.mxu0 %v13298_v38  ;;  %v17181_v35 = vld [vmem:[#allocation38_spill] sm:$0xff]  ;;  %v13430_v17 = vld [vmem:[%s17080_s8 + $0x178] sm:$0xff] }
 0x34d   : > { %v3016_v11 = vadd.f32 %v13075_v40, %v2701_v53  ;;  %v3262_v37 = vadd.f32 %v17175_v20, %v3019_v59  ;;  %v13322_v10 = vadd.f32 %v17178_v8, %v2510_v55  ;;  %v13325_v47 = vadd.f32 %v13285_v29, %v3260_v18  ;;  %3451 = vmatpush.msra.mxu1 %v13319_v33 }
 0x34e   : > { %v3015_v15 = vadd.f32 %v13073_v2, %v2700_v7  ;;  %v3020_v40 = vadd.f32 %v17173_v6, %v2705_v62  ;;  %v2713_v50 = vadd.f32 %v17174_v1, %v2509_v41  ;;  %v3022_v13 = vadd.f32 %v17181_v35, %v17180_v60  ;;  %v13333_v7 = vld [vmem:[%s17080_s8 + $0xb8] sm:$0xff]  ;;  %3431 = vmatpush.msra.mxu0 %v13308_v23  ;;  %v17186_v1 = vld [vmem:[#allocation32_spill] sm:$0xff]  ;;  %v13445_v35 = vld [vmem:[%s17080_s8 + $0x68] sm:$0xff] }
 0x34f   : > { %v13248_v32 = vpop.f32.mrf.mxu2  ;;  %v13250_v16 = vpop.f32.mrf.mxu3  ;;  %v3259_v24 = vadd.f32 %v17172_v3, %v3016_v11  ;;  %v13341_v5 = vadd.f32 %v13287_v26, %v3261_v25  ;;  %v3023_v4 = vadd.f32 %v13203_v46, %v2708_v21  ;;  %v17182_v45 = vld [vmem:[#allocation43_spill] sm:$0xff]  ;;  %v3024_v22 = vadd.f32 %v17183_v14, %v2709_v61  ;;  %3452 = vmatpush.msra.mxu1 %v13338_v51  ;;  %v17185_v25 = vld [vmem:[#allocation28_spill] sm:$0xff] }
 0x350   : > { %v3258_v30 = vadd.f32 %v17171_v12, %v3015_v15  ;;  %v3263_v9 = vadd.f32 %v17179_v0, %v3020_v40  ;;  %v3010_v53 = vpop.f32.mrf.mxu1  ;;  %v3265_v41 = vadd.f32 %v17182_v45, %v3022_v13  ;;  %v13363_v46 = vld [vmem:[%s17080_s8 + $0x1a8] sm:$0xff]  ;;  %v13366_v55 = vadd.f32 %v13285_v29, %v3262_v37  ;;  %3432 = vmatpush.msra.mxu0 %v13333_v7 }
 0x351   : > { %v13351_v62 = vadd.f32 %v13287_v26, %v3259_v24  ;;  %v3266_v15 = vadd.f32 %v13248_v32, %v3023_v4  ;;  %v3025_v21 = vadd.f32 %v2978_v34, %v17184_v44  ;;  %v3267_v18 = vadd.f32 %v13250_v16, %v3024_v22  ;;  %v13383_v32 = vld [vmem:[%s17080_s8 + $0x98] sm:$0xff]  ;;  %3453 = vmatpush.msra.mxu1 %v13363_v46  ;;  %v13403_v40 = vld [vmem:[%s17080_s8 + $0x88] sm:$0xff] }
 0x352   : > { %v13348_v56 = vadd.f32 %v13285_v29, %v3258_v30  ;;  %v13375_v11 = vadd.f32 %v13287_v26, %v3263_v9  ;;  %v3026_v36 = vadd.f32 %v13257_v48, %v17185_v25  ;;  %v13388_v34 = vld [vmem:[%s17080_s8 + $0x198] sm:$0xff]  ;;  %v13393_v43 = vadd.f32 %v13285_v29, %v3264_v42  ;;  %3433 = vmatpush.msra.mxu0 %v13358_v52  ;;  %v2983_v8 = vpop.f32.mrf.mxu0  ;;  %v13450_v13 = vld [vmem:[%s17080_s8 + $0x168] sm:$0xff] }
 0x353   : > { %v3375_v59 = vadd.f32 %v13341_v5, %v13351_v62  ;;  %v3027_v16 = vadd.f32 %v2981_v58, %v2712_v39  ;;  %v13398_v48 = vadd.f32 %v13287_v26, %v3265_v41  ;;  %v3028_v6 = vadd.f32 %v3010_v53, %v2713_v50  ;;  %v13408_v39 = vld [vmem:[%s17080_s8 + $0x188] sm:$0xff]  ;;  %3454 = vmatpush.msra.mxu1 %v13388_v34 }
 0x354   : > { %v3362_v61 = vadd.f32 %v13325_v47, %v13348_v56  ;;  %v2715_v20 = vadd.f32 %v17186_v1, %v13276_v63  ;;  %v13414_v49 = vadd.f32 %v13285_v29, %v3266_v15  ;;  %3434 = vmatpush.msra.mxu0 %v13383_v32  ;;  %v13425_v63 = vld [vmem:[%s17080_s8 + $0x78] sm:$0xff]  ;;  %v3029_v4 = vadd.f32 %v2983_v8, %v13322_v10 }
 0x355   : > { %3455 = vmatpush.msra.mxu1 %v13408_v39  ;;  %v13466_v15 = vld [vmem:[%s17080_s8 + $0x58] sm:$0xff] }
 0x356   : > { %v3363_v37 = vadd.f32 %v3362_v61, %v13366_v55  ;;  %3435 = vmatpush.msra.mxu0 %v13403_v40  ;;  %v13471_v10 = vld [vmem:[%s17080_s8 + $0x158] sm:$0xff] }
 0x357   : > { %v3221_v2 = vpop.f32.mrf.mxu2  ;;  %v3250_v28 = vpop.f32.mrf.mxu3  ;;  %3456 = vmatpush.msra.mxu1 %v13430_v17  ;;  %v3335_v1 = vld [vmem:[%s17080_s8 + $0x138] sm:$0xff] }
 0x358   : > { %v3268_v3 = vadd.f32 %v3221_v2, %v3025_v21  ;;  %v3269_v24 = vadd.f32 %v3250_v28, %v3026_v36  ;;  %v3376_v2 = vadd.f32 %v3375_v59, %v13375_v11  ;;  %v13420_v28 = vadd.f32 %v13287_v26, %v3267_v18  ;;  %v3012_v53 = vpop.f32.mrf.mxu1  ;;  %3436 = vmatpush.msra.mxu0 %v13425_v63  ;;  %v13480_v59 = vld [vmem:[%s17080_s8 + $0x48] sm:$0xff] }
 0x359   : > { %v3364_v58 = vadd.f32 %v3363_v37, %v13393_v43  ;;  %v3030_v22 = vadd.f32 %v3012_v53, %v2715_v20  ;;  %3457 = vmatpush.msra.mxu1 %v13450_v13  ;;  %v3333_v37 = vld [vmem:[%s17080_s8 + $0x128] sm:$0xff] }
 0x35a   : > { %v3377_v0 = vadd.f32 %v3376_v2, %v13398_v48  ;;  %v13437_v9 = vadd.f32 %v13285_v29, %v3268_v3  ;;  %v13440_v60 = vadd.f32 %v13287_v26, %v3269_v24  ;;  %3437 = vmatpush.msra.mxu0 %v13445_v35  ;;  %v3297_v53 = vld [vmem:[%s17080_s8 + $0x8] sm:$0xff] }
 0x35b   : > { %v3365_v42 = vadd.f32 %v3364_v58, %v13414_v49  ;;  %3458 = vmatpush.msra.mxu1 %v13471_v10  ;;  %v3331_v58 = vld [vmem:[%s17080_s8 + $0x118] sm:$0xff] }
 0x35c   : > { %v3378_v45 = vadd.f32 %v3377_v0, %v13420_v28  ;;  %3438 = vmatpush.msra.mxu0 %v13466_v15 }
 0x35d   : > { %v3366_v61 = vadd.f32 %v3365_v42, %v13437_v9  ;;  %v3329_v42 = vld [vmem:[%s17080_s8 + $0x108] sm:$0xff] }
 0x35e   : > { %v3379_v18 = vadd.f32 %v3378_v45, %v13440_v60  ;;  %3439 = vmatpush.msra.mxu0 %v13480_v59 }
 0x35f   : > { %v3224_v12 = vpop.f32.mrf.mxu2  ;;  %v3253_v30 = vpop.f32.mrf.mxu3 }
 0x360   : > { %v3270_v50 = vadd.f32 %v3224_v12, %v3027_v16  ;;  %v3271_v31 = vadd.f32 %v3253_v30, %v3028_v6  ;;  %v13485_v16 = vld [vmem:[%s17080_s8 + $0x148] sm:$0xff]  ;;  %v3303_v6 = vld [vmem:[%s17080_s8 + $0x38] sm:$0xff] }
 0x361   : > { %3459 = vmatpush.msra.mxu1 %v13485_v16  ;;  %3440 = vmatpush.msra.mxu0 %v3303_v6 }
 0x362   : > { %v13458_v41 = vadd.f32 %v13285_v29, %v3270_v50  ;;  %v13461_v14 = vadd.f32 %v13287_v26, %v3271_v31  ;;  %v3299_v31 = vld [vmem:[%s17080_s8 + $0x18] sm:$0xff] }
 0x363   : > { %3460 = vmatpush.msra.mxu1 %v3335_v1 }
 0x364   : > { %v3367_v12 = vadd.f32 %v3366_v61, %v13458_v41  ;;  %v3380_v30 = vadd.f32 %v3379_v18, %v13461_v14 }
 0x365   : > { %3461 = vmatpush.msra.mxu1 %v3333_v37 }
 0x367   : > { %v3226_v44 = vpop.f32.mrf.mxu2  ;;  %v3255_v21 = vpop.f32.mrf.mxu3  ;;  %3462 = vmatpush.msra.mxu1 %v3331_v58 }
 0x368   : > { %v3272_v25 = vadd.f32 %v3226_v44, %v3029_v4  ;;  %v3273_v36 = vadd.f32 %v3255_v21, %v3030_v22 }
 0x369   : > { %3463 = vmatpush.msra.mxu1 %v3329_v42 }
 0x36a   : > { %v13492_v3 = vadd.f32 %v13285_v29, %v3272_v25  ;;  %v13495_v24 = vadd.f32 %v13287_v26, %v3273_v36  ;;  %v3301_v26 = vld [vmem:[%s17080_s8 + $0x28] sm:$0xff]  ;;  %v17187_v36 = vld [vmem:[#allocation41_spill] sm:$0xff] }
 0x36b   : > { %3441 = vmatpush.msra.mxu0 %v3301_v26 }
 0x36c   : > { %v3368_v20 = vadd.f32 %v3367_v12, %v13492_v3  ;;  %v3381_v29 = vadd.f32 %v3380_v30, %v13495_v24 }
 0x36d   : > { %3442 = vmatpush.msra.mxu0 %v3299_v31 }
 0x36e   : > { %v3369_v2 = vrot.slane %v3368_v20, 4  ;;  %v3382_v50 = vrot.slane %v3381_v29, 4 }
 0x36f   : > { %3443 = vmatpush.msra.mxu0 %v3297_v53 }
 0x370   : > { %v3370_v8 = vadd.f32 %v3369_v2, %v3368_v20  ;;  %v3383_v0 = vadd.f32 %v3382_v50, %v3381_v29 }
 0x372   : > { %v3371_v4 = vrot.slane %v3370_v8, 2  ;;  %v3384_v45 = vrot.slane %v3383_v0, 2 }
 0x374   : > { %v3372_v22 = vadd.f32 %v3371_v4, %v3370_v8  ;;  %v3385_v44 = vadd.f32 %v3384_v45, %v3383_v0 }
 0x376   : > { %v3373_v21 = vrot.slane %v3372_v22, 1  ;;  %v3386_v61 = vrot.slane %v3385_v44, 1 }
 0x378   : > { %v3374_v18 = vadd.f32 %v3373_v21, %v3372_v22  ;;  %v3387_v25 = vadd.f32 %v3386_v61, %v3385_v44 }
 0x37a   : > { %3404 = vmatmul.f32.vlgmr.msrb.gmra.mxu0 %v3374_v18  ;;  %3424 = vmatmul.f32.vlgmr.msrb.gmra.mxu1 %v3387_v25 }
 0x37b   : > { %3568 = vmatpush.msrb.mxu0 %v13196_v57  ;;  %3588 = vmatpush.msrb.mxu1 %v17187_v36 }
 0x37d   : > { %3569 = vmatpush.msrb.mxu0 %v13214_v19  ;;  %3589 = vmatpush.msrb.mxu1 %v13219_v54 }
 0x37f   : > { %3570 = vmatpush.msrb.mxu0 %v13298_v38  ;;  %3590 = vmatpush.msrb.mxu1 %v13303_v27 }
 0x381   : > { %3571 = vmatpush.msrb.mxu0 %v13308_v23  ;;  %3591 = vmatpush.msrb.mxu1 %v13319_v33 }
 0x382   : > { %3444 = vmatmul.f32.vlgmr.msra.gmra.mxu0 %v3374_v18  ;;  %3464 = vmatmul.f32.vlgmr.msra.gmra.mxu1 %v3387_v25 }
 0x383   : > { %3572 = vmatpush.msrb.mxu0 %v13333_v7  ;;  %3592 = vmatpush.msrb.mxu1 %v13338_v51 }
 0x385   : > { %3573 = vmatpush.msrb.mxu0 %v13358_v52  ;;  %3593 = vmatpush.msrb.mxu1 %v13363_v46 }
 0x387   : > { %3574 = vmatpush.msrb.mxu0 %v13383_v32  ;;  %3594 = vmatpush.msrb.mxu1 %v13388_v34 }
 0x389   : > { %3575 = vmatpush.msrb.mxu0 %v13403_v40  ;;  %3595 = vmatpush.msrb.mxu1 %v13408_v39 }
 0x38b   : > { %3576 = vmatpush.msrb.mxu0 %v13425_v63  ;;  %3596 = vmatpush.msrb.mxu1 %v13430_v17 }
 0x38d   : > { %3577 = vmatpush.msrb.mxu0 %v13445_v35  ;;  %3597 = vmatpush.msrb.mxu1 %v13450_v13 }
 0x38f   : > { %3578 = vmatpush.msrb.mxu0 %v13466_v15  ;;  %3598 = vmatpush.msrb.mxu1 %v13471_v10 }
 0x391   : > { %3579 = vmatpush.msrb.mxu0 %v13480_v59  ;;  %3599 = vmatpush.msrb.mxu1 %v13485_v16 }
 0x393   : > { %3580 = vmatpush.msrb.mxu0 %v3303_v6  ;;  %3600 = vmatpush.msrb.mxu1 %v3335_v1 }
 0x395   : > { %3581 = vmatpush.msrb.mxu0 %v3301_v26  ;;  %3601 = vmatpush.msrb.mxu1 %v3333_v37 }
 0x397   : > { %3582 = vmatpush.msrb.mxu0 %v3299_v31  ;;  %3602 = vmatpush.msrb.mxu1 %v3331_v58 }
 0x399   : > { %3583 = vmatpush.msrb.mxu0 %v3297_v53  ;;  %3603 = vmatpush.msrb.mxu1 %v3329_v42 }
 0x3f7   : > { %v3405_v54 = vpop.f32.mrf.mxu0  ;;  %v3425_v19 = vpop.f32.mrf.mxu1 }
 0x3f8   : > { %v3426_v57 = vadd.f32 %v3425_v19, %v3405_v54 }
 0x3fa   : > { %v3468_v38 = vperm.slane %v3426_v57, 0 }
 0x3fc   : > { %v13550_v27 = vsub.f32 %v13348_v56, %v3468_v38  ;;  %v13553_v23 = vsub.f32 %v13325_v47, %v3468_v38  ;;  %v13556_v33 = vsub.f32 %v13366_v55, %v3468_v38  ;;  %v13559_v7 = vsub.f32 %v13393_v43, %v3468_v38 }
 0x3fd   : > { %v13566_v56 = vsub.f32 %v13414_v49, %v3468_v38  ;;  %v13571_v40 = vsub.f32 %v13437_v9, %v3468_v38  ;;  %v13576_v17 = vsub.f32 %v13458_v41, %v3468_v38  ;;  %v13590_v10 = vsub.f32 %v13492_v3, %v3468_v38 }
 0x3fe   : > { %v3486_v51 = vmul.f32 %v13550_v27, %v13550_v27  ;;  %v3488_v52 = vmul.f32 %v13553_v23, %v13553_v23  ;;  %v3490_v47 = vmul.f32 %v13556_v33, %v13556_v33  ;;  %v3492_v39 = vmul.f32 %v13559_v7, %v13559_v7 }
 0x3ff   : > { %v3445_v46 = vpop.f32.mrf.mxu0  ;;  %v3465_v32 = vpop.f32.mrf.mxu1  ;;  %v3494_v49 = vmul.f32 %v13566_v56, %v13566_v56  ;;  %v3496_v41 = vmul.f32 %v13571_v40, %v13571_v40 }
 0x400   : > { %v3466_v34 = vadd.f32 %v3465_v32, %v3445_v46  ;;  %v3502_v55 = vadd.f32 %v3488_v52, %v3486_v51 }
 0x402   : > { %v3469_v43 = vperm.slane %v3466_v34, 0  ;;  %v3503_v63 = vadd.f32 %v3502_v55, %v3490_v47 }
 0x404   : > { %v13581_v35 = vsub.f32 %v13351_v62, %v3469_v43  ;;  %v13584_v13 = vsub.f32 %v13341_v5, %v3469_v43  ;;  %v3504_v15 = vadd.f32 %v3503_v63, %v3492_v39  ;;  %v13587_v9 = vsub.f32 %v13375_v11, %v3469_v43 }
 0x405   : > { %v13595_v16 = vsub.f32 %v13398_v48, %v3469_v43  ;;  %v3498_v11 = vmul.f32 %v13576_v17, %v13576_v17  ;;  %v13604_v30 = vsub.f32 %v13420_v28, %v3469_v43  ;;  %v3500_v48 = vmul.f32 %v13590_v10, %v13590_v10 }
 0x406   : > { %v3505_v59 = vadd.f32 %v3504_v15, %v3494_v49  ;;  %v3487_v62 = vmul.f32 %v13581_v35, %v13581_v35  ;;  %v3489_v5 = vmul.f32 %v13584_v13, %v13584_v13  ;;  %v3491_v3 = vmul.f32 %v13587_v9, %v13587_v9 }
 0x407   : > { %v13611_v20 = vsub.f32 %v13440_v60, %v3469_v43  ;;  %v3493_v29 = vmul.f32 %v13595_v16, %v13595_v16  ;;  %v13616_v2 = vsub.f32 %v13461_v14, %v3469_v43  ;;  %v3495_v28 = vmul.f32 %v13604_v30, %v13604_v30 }
 0x408   : > { %v3506_v12 = vadd.f32 %v3505_v59, %v3496_v41  ;;  %v3515_v6 = vadd.f32 %v3489_v5, %v3487_v62  ;;  %v13621_v58 = vsub.f32 %v13495_v24, %v3469_v43  ;;  %v13632_v43 = vld [vmem:[%s17081_s9] sm:$0x3] }
 0x409   : > { %v3497_v60 = vmul.f32 %v13611_v20, %v13611_v20  ;;  %v3499_v53 = vmul.f32 %v13616_v2, %v13616_v2  ;;  %v3630_v63 = vperm.slane %v13632_v43, 1  ;;  %v13638_v59 = vld [vmem:[%s17082_s10] sm:$0x3] }
 0x40a   : > { %v3507_v1 = vadd.f32 %v3506_v12, %v3498_v11  ;;  %v3516_v26 = vadd.f32 %v3515_v6, %v3491_v3  ;;  %v3501_v14 = vmul.f32 %v13621_v58, %v13621_v58  ;;  %v3655_v5 = vperm.slane %v13638_v59, 1 }
 0x40c   : > { %v3508_v37 = vadd.f32 %v3507_v1, %v3500_v48  ;;  %v3517_v50 = vadd.f32 %v3516_v26, %v3493_v29 }
 0x40e   : > { %v3509_v31 = vrot.slane %v3508_v37, 4  ;;  %v3518_v8 = vadd.f32 %v3517_v50, %v3495_v28 }
 0x410   : > { %v3510_v0 = vadd.f32 %v3509_v31, %v3508_v37  ;;  %v3519_v42 = vadd.f32 %v3518_v8, %v3497_v60 }
 0x412   : > { %v3511_v4 = vrot.slane %v3510_v0, 2  ;;  %v3520_v45 = vadd.f32 %v3519_v42, %v3499_v53 }
 0x414   : > { %v3512_v22 = vadd.f32 %v3511_v4, %v3510_v0  ;;  %v3521_v44 = vadd.f32 %v3520_v45, %v3501_v14 }
 0x416   : > { %v3513_v21 = vrot.slane %v3512_v22, 1  ;;  %v3522_v61 = vrot.slane %v3521_v44, 4 }
 0x418   : > { %v3514_v24 = vadd.f32 %v3513_v21, %v3512_v22  ;;  %v3523_v18 = vadd.f32 %v3522_v61, %v3521_v44 }
 0x41a   : > { %3544 = vmatmul.f32.vlgmr.msra.gmra.mxu2 %v3514_v24  ;;  %3584 = vmatmul.f32.vlgmr.msrb.gmra.mxu0 %v3514_v24  ;;  %v3524_v25 = vrot.slane %v3523_v18, 2 }
 0x41c   : > { %v3525_v36 = vadd.f32 %v3524_v25, %v3523_v18 }
 0x41e   : > { %v3526_v54 = vrot.slane %v3525_v36, 1 }
 0x420   : > { %v3527_v19 = vadd.f32 %v3526_v54, %v3525_v36 }
 0x422   : > { %3564 = vmatmul.f32.vlgmr.msra.gmra.mxu3 %v3527_v19  ;;  %3604 = vmatmul.f32.vlgmr.msrb.gmra.mxu1 %v3527_v19 }
 0x497   : > { %v3585_v57 = vpop.f32.mrf.mxu0 }
 0x498   : > { %v3586_v38 = vadd.f32 1e-06, %v3585_v57 }
 0x49f   : > { %v3605_v51 = vpop.f32.mrf.mxu1 }
 0x4a0   : > { %v3606_v52 = vadd.f32 %v3605_v51, %v3586_v38 }
 0x4a2   : > { %10910 = vrsqrt.f32 %v3606_v52  ;;  %vm3624_vm4 = vweird.f32 %v3606_v52 }
 0x4a5   : > { %v3565_v60 = vpop.f32.mrf.mxu3 }
 0x4a8   : > { %v10911_v46 = vpop.eup %10910 }
 0x4a9   : > { %v3619_v32 = vmul.f32 %v10911_v46, %v3606_v52  ;;  %vm3625_vm3 = vweird.f32 %v10911_v46 }
 0x4aa   : > { %vm3626_vm5 = vmor %vm3624_vm4, %vm3625_vm3 }
 0x4ab   : > { %v3620_v34 = vmul.f32 %v10911_v46, %v3619_v32 }
 0x4ad   : > { %v3621_v47 = vmul.f32 0.5, %v3620_v34 }
 0x4af   : > { %v3622_v55 = vsub.f32 1.5, %v3621_v47 }
 0x4b1   : > { %v3623_v39 = vmul.f32 %v10911_v46, %v3622_v55 }
 0x4b3   : > { %v3627_v49 = vsel %vm3626_vm5, %v10911_v46, %v3623_v39 }
 0x4b4   : > { %v3634_v15 = vmul.f32 %v3630_v63, %v3627_v49 }
 0x4b6   : > { %v3636_v41 = vperm.slane %v3634_v15, 0 }
 0x4b8   : > { %v3638_v62 = vmul.f32 %v3636_v41, %v13581_v35  ;;  %v3640_v11 = vmul.f32 %v3636_v41, %v13584_v13  ;;  %v3642_v12 = vmul.f32 %v3636_v41, %v13587_v9  ;;  %v3644_v48 = vmul.f32 %v3636_v41, %v13595_v16  ;;  %v3545_v9 = vpop.f32.mrf.mxu2 }
 0x4b9   : > { %v3646_v26 = vmul.f32 %v3636_v41, %v13604_v30  ;;  %v3648_v28 = vmul.f32 %v3636_v41, %v13611_v20  ;;  %v3650_v16 = vmul.f32 %v3636_v41, %v13616_v2  ;;  %v3546_v30 = vadd.f32 1e-06, %v3545_v9 }
 0x4ba   : > { %v13644_v3 = vadd.f32 %v3655_v5, %v3638_v62  ;;  %v13646_v6 = vadd.f32 %v3655_v5, %v3640_v11  ;;  %v13649_v1 = vadd.f32 %v3655_v5, %v3642_v12  ;;  %v13654_v37 = vadd.f32 %v3655_v5, %v3644_v48 }
 0x4bb   : > { %v13658_v50 = vadd.f32 %v3655_v5, %v3646_v26  ;;  %v3652_v0 = vmul.f32 %v3636_v41, %v13621_v58  ;;  %v13663_v53 = vadd.f32 %v3655_v5, %v3648_v28  ;;  %v13666_v4 = vadd.f32 %v3655_v5, %v3650_v16 }
 0x4bc   : > { %v8835_v29 = vmul.f32 -1.442695, %v13644_v3  ;;  %v8837_v35 = vmul.f32 -1.442695, %v13646_v6  ;;  %v8839_v13 = vmul.f32 -1.442695, %v13649_v1  ;;  %v3566_v20 = vadd.f32 %v3565_v60, %v3546_v30 }
 0x4bd   : > { %v8841_v31 = vmul.f32 -1.442695, %v13654_v37  ;;  %v8843_v42 = vmul.f32 -1.442695, %v13658_v50  ;;  %v13670_v22 = vadd.f32 %v3655_v5, %v3652_v0  ;;  %v8845_v44 = vmul.f32 -1.442695, %v13663_v53 }
 0x4be   : > { %10912 = vpow2.f32 %v8835_v29  ;;  %v8847_v58 = vmul.f32 -1.442695, %v13666_v4  ;;  %v3629_v41 = vperm.slane %v13632_v43, 0  ;;  %vm3614_vm7 = vweird.f32 %v3566_v20 }
 0x4bf   : > { %10914 = vpow2.f32 %v8837_v35  ;;  %v8849_v18 = vmul.f32 -1.442695, %v13670_v22 }
 0x4c0   : > { %10916 = vpow2.f32 %v8839_v13 }
 0x4c1   : > { %10918 = vpow2.f32 %v8841_v31 }
 0x4c2   : > { %10920 = vrsqrt.f32 %v3566_v20 }
 0x4c3   : > { %10922 = vpow2.f32 %v8843_v42 }
 0x4c4   : > { %v10913_v8 = vpop.eup %10912 }
 0x4c5   : > { %v10915_v14 = vpop.eup %10914  ;;  %v13668_v45 = vadd.f32 1.0, %v10913_v8 }
 0x4c6   : > { %v10917_v2 = vpop.eup %10916  ;;  %v13674_v21 = vadd.f32 1.0, %v10915_v14 }
 0x4c7   : > { %v13676_v61 = vadd.f32 1.0, %v10917_v2  ;;  %10924 = vrcp.f32 %v13668_v45  ;;  %v10919_v24 = vpop.eup %10918  ;;  %v3764_v34 = vand.u32 2147483648, %v13668_v45  ;;  %v3762_v49 = vand.u32 2147483647, %v13668_v45 }
 0x4c8   : > { %10926 = vpow2.f32 %v8845_v44  ;;  %v10921_v25 = vpop.eup %10920  ;;  %v13681_v19 = vadd.f32 1.0, %v10919_v24  ;;  %v3794_v15 = vand.u32 2147483648, %v13674_v21  ;;  %v3792_v26 = vand.u32 2147483647, %v13674_v21 }
 0x4c9   : > { %10928 = vpow2.f32 %v8847_v58  ;;  %v10923_v36 = vpop.eup %10922  ;;  %v3609_v54 = vmul.f32 %v10921_v25, %v3566_v20  ;;  %vm3615_vm6 = vweird.f32 %v10921_v25  ;;  %v3824_v11 = vand.u32 2147483648, %v13676_v61 }
 0x4ca   : > { %10930 = vrcp.f32 %v13674_v21  ;;  %v13686_v51 = vadd.f32 1.0, %v10923_v36  ;;  %v13705_v29 = vor.u32 1.1754944e-38, %v3764_v34  ;;  %v3854_v35 = vand.u32 2147483648, %v13681_v19  ;;  %vm3616_vm8 = vmor %vm3614_vm7, %vm3615_vm6 }
 0x4cb   : > { %10932 = vrcp.f32 %v13676_v61  ;;  %v3610_v57 = vmul.f32 %v10921_v25, %v3609_v54  ;;  %v13718_v60 = vor.u32 1.1754944e-38, %v3794_v15  ;;  %v3822_v30 = vand.u32 2147483647, %v13676_v61 }
 0x4cc   : > { %10934 = vpow2.f32 %v8849_v18  ;;  %v13722_v0 = vor.u32 1.1754944e-38, %v3824_v11  ;;  %v3852_v42 = vand.u32 2147483647, %v13681_v19  ;;  %vm3758_vm11 = vweird.f32 %v13668_v45 }
 0x4cd   : > { %v13684_v38 = vpop.eup %10924  ;;  %v3611_v46 = vmul.f32 0.5, %v3610_v57  ;;  %10936 = vrcp.f32 %v13681_v19  ;;  %v13729_v14 = vor.u32 1.1754944e-38, %v3854_v35  ;;  %v3884_v2 = vand.u32 2147483648, %v13686_v51 }
 0x4ce   : > { %v10927_v52 = vpop.eup %10926  ;;  %v3754_v55 = vmul.f32 %v13684_v38, %v13668_v45  ;;  %10938 = vrcp.f32 %v13686_v51  ;;  %vm3759_vm10 = vweird.f32 %v13684_v38  ;;  %v13735_v58 = vperm.slane %v13638_v59, 0 }
 0x4cf   : > { %v10929_v32 = vpop.eup %10928  ;;  %v3612_v39 = vsub.f32 1.5, %v3611_v46  ;;  %v13700_v5 = vadd.f32 1.0, %v10927_v52  ;;  %vm3788_vm0 = vweird.f32 %v13674_v21  ;;  %vm13771_vm1 = vcmp.eq.f32.partialorder %v3762_v49, 8.507059e+37  ;;  %vm13802_vm4 = vmor %vm3758_vm11, %vm3759_vm10 }
 0x4d0   : > { %v13690_v47 = vpop.eup %10930  ;;  %v13703_v48 = vadd.f32 1.0, %v10929_v32  ;;  %v3755_v13 = vsub.f32 1.0, %v3754_v55  ;;  %vm3818_vm2 = vweird.f32 %v13676_v61  ;;  %vm13817_vm7 = vcmp.eq.f32.partialorder %v3792_v26, 8.507059e+37 }
 0x4d1   : > { %v13694_v63 = vpop.eup %10932  ;;  %v3613_v12 = vmul.f32 %v10921_v25, %v3612_v39  ;;  %v3784_v43 = vmul.f32 %v13690_v47, %v13674_v21  ;;  %10940 = vrcp.f32 %v13700_v5  ;;  %vm3789_vm14 = vweird.f32 %v13690_v47 }
 0x4d2   : > { %v10935_v62 = vpop.eup %10934  ;;  %v3814_v9 = vmul.f32 %v13694_v63, %v13676_v61  ;;  %v3756_v24 = vmul.f32 %v13684_v38, %v3755_v13  ;;  %10942 = vrcp.f32 %v13703_v48  ;;  %vm3819_vm5 = vweird.f32 %v13694_v63  ;;  %vm13844_vm11 = vmor %vm3788_vm0, %vm3789_vm14 }
 0x4d3   : > { %v3617_v28 = vsel %vm3616_vm8, %v10921_v25, %v3613_v12  ;;  %v13714_v16 = vpop.eup %10936  ;;  %v13716_v31 = vadd.f32 1.0, %v10935_v62  ;;  %v3785_v18 = vsub.f32 1.0, %v3784_v43  ;;  %vm13829_vm8 = vcmp.eq.f32.partialorder %v3822_v30, 8.507059e+37  ;;  %vm13866_vm14 = vmor %vm3818_vm2, %vm3819_vm5 }
 0x4d4   : > { %v3633_v8 = vmul.f32 %v3629_v41, %v3617_v28  ;;  %v13726_v20 = vpop.eup %10938  ;;  %v3815_v25 = vsub.f32 1.0, %v3814_v9  ;;  %v3844_v36 = vmul.f32 %v13714_v16, %v13681_v19  ;;  %v3757_v62 = vadd.f32 %v13684_v38, %v3756_v24 }
 0x4d5   : > { %v3874_v46 = vmul.f32 %v13726_v20, %v13686_v51  ;;  %v3882_v28 = vand.u32 2147483647, %v13686_v51  ;;  %vm13833_vm10 = vcmp.eq.f32.partialorder %v3852_v42, 8.507059e+37  ;;  %vm3879_vm6 = vweird.f32 %v13726_v20 }
 0x4d6   : > { %v13732_v44 = vperm.slane %v3633_v8, 0  ;;  %v3845_v39 = vsub.f32 1.0, %v3844_v36  ;;  %v3816_v35 = vmul.f32 %v13694_v63, %v3815_v25  ;;  %v13808_v25 = vor.u32 1.1754944e-38, %v3884_v2 }
 0x4d7   : > { %v13769_v55 = vpop.eup %10940  ;;  %v3875_v13 = vsub.f32 1.0, %v3874_v46  ;;  %vm13850_vm3 = vcmp.eq.f32.partialorder %v3882_v28, 8.507059e+37  ;;  %vm3908_vm0 = vweird.f32 %v13700_v5  ;;  %vm17207_vm5 = vweird.f32 %v13686_v51 }
 0x4d8   : > { %v3637_v54 = vmul.f32 %v13732_v44, %v13550_v27  ;;  %v3639_v57 = vmul.f32 %v13732_v44, %v13553_v23  ;;  %v3641_v52 = vmul.f32 %v13732_v44, %v13556_v33  ;;  %v3643_v59 = vmul.f32 %v13732_v44, %v13559_v7 }
 0x4d9   : > { %v3645_v32 = vmul.f32 %v13732_v44, %v13566_v56  ;;  %v3647_v27 = vmul.f32 %v13732_v44, %v13571_v40  ;;  %v3786_v40 = vmul.f32 %v13690_v47, %v3785_v18  ;;  %v3649_v43 = vmul.f32 %v13732_v44, %v13576_v17  ;;  %v13796_v18 = vpop.eup %10942 }
 0x4da   : > { %v13758_v23 = vadd.f32 %v13735_v58, %v3637_v54  ;;  %v13761_v33 = vadd.f32 %v13735_v58, %v3639_v57  ;;  %v13764_v7 = vadd.f32 %v13735_v58, %v3641_v52  ;;  %v13767_v34 = vadd.f32 %v13735_v58, %v3643_v59 }
 0x4db   : > { %v13778_v15 = vadd.f32 %v13735_v58, %v3645_v32  ;;  %v13781_v41 = vadd.f32 %v13735_v58, %v3647_v27  ;;  %v3904_v8 = vmul.f32 %v13769_v55, %v13700_v5  ;;  %v3761_v54 = vsel %vm13802_vm4, %v13684_v38, %v3757_v62 }
 0x4dc   : > { %v8834_v11 = vmul.f32 -1.442695, %v13758_v23  ;;  %v8836_v49 = vmul.f32 -1.442695, %v13761_v33  ;;  %v8838_v12 = vmul.f32 -1.442695, %v13764_v7  ;;  %v3787_v57 = vadd.f32 %v13690_v47, %v3786_v40 }
 0x4dd   : > { %v8840_v9 = vmul.f32 -1.442695, %v13767_v34  ;;  %v8842_v24 = vmul.f32 -1.442695, %v13778_v15  ;;  %v8844_v36 = vmul.f32 -1.442695, %v13781_v41  ;;  %v3846_v52 = vmul.f32 %v13714_v16, %v3845_v39 }
 0x4de   : > { %10944 = vpow2.f32 %v8834_v11  ;;  %v3817_v2 = vadd.f32 %v13694_v63, %v3816_v35  ;;  %v3876_v59 = vmul.f32 %v13726_v20, %v3875_v13  ;;  %v13825_v46 = vadd.f32 %v13735_v58, %v3649_v43 }
 0x4df   : > { %10946 = vpow2.f32 %v8836_v49  ;;  %v3905_v32 = vsub.f32 1.0, %v3904_v8  ;;  %v3912_v27 = vand.u32 2147483647, %v13700_v5  ;;  %v3934_v40 = vmul.f32 %v13796_v18, %v13703_v48 }
 0x4e0   : > { %10948 = vpow2.f32 %v8838_v12  ;;  %vm3849_vm4 = vweird.f32 %v13714_v16  ;;  %v3651_v39 = vmul.f32 %v13732_v44, %v13590_v10  ;;  %v3766_v21 = vsel %vm13771_vm1, %v13705_v29, %v3761_v54 }
 0x4e1   : > { %10950 = vpow2.f32 %v8840_v9  ;;  %v3791_v11 = vsel %vm13844_vm11, %v13690_v47, %v3787_v57  ;;  %v3847_v10 = vadd.f32 %v13714_v16, %v3846_v52  ;;  %v3914_v44 = vand.u32 2147483648, %v13700_v5  ;;  %vm13906_vm11 = vmor %vm17207_vm5, %vm3879_vm6 }
 0x4e2   : > { %10952 = vpow2.f32 %v8842_v24  ;;  %v3821_v29 = vsel %vm13866_vm14, %v13694_v63, %v3817_v2  ;;  %v3877_v47 = vadd.f32 %v13726_v20, %v3876_v59  ;;  %v8846_v12 = vmul.f32 -1.442695, %v13825_v46 }
 0x4e3   : > { %10954 = vpow2.f32 %v8844_v36  ;;  %v3906_v13 = vmul.f32 %v13769_v55, %v3905_v32  ;;  %v3935_v43 = vsub.f32 1.0, %v3934_v40  ;;  %vm17204_vm1 = vweird.f32 %v13681_v19 }
 0x4e4   : > { %v10945_v62 = vpop.eup %10944  ;;  %10956 = vrcp.f32 %v13716_v31  ;;  %vm13888_vm2 = vmor %vm17204_vm1, %vm3849_vm4  ;;  %v3942_v8 = vand.u32 2147483647, %v13703_v48  ;;  %v13894_v24 = vadd.f32 %v13735_v58, %v3651_v39  ;;  %vm13910_vm4 = vcmp.eq.f32.partialorder %v3912_v27, 8.507059e+37 }
 0x4e5   : > { %v10947_v56 = vpop.eup %10946  ;;  %v13878_v61 = vadd.f32 1.0, %v10945_v62  ;;  %v3851_v54 = vsel %vm13888_vm2, %v13714_v16, %v3847_v10  ;;  %vm3938_vm14 = vweird.f32 %v13703_v48  ;;  %v3944_v57 = vand.u32 2147483648, %v13703_v48 }
 0x4e6   : > { %v10949_v35 = vpop.eup %10948  ;;  %v13882_v9 = vadd.f32 1.0, %v10947_v56  ;;  %v3796_v51 = vsel %vm13817_vm7, %v13718_v60, %v3791_v11  ;;  %v3881_v2 = vsel %vm13906_vm11, %v13726_v20, %v3877_v47  ;;  %v3907_v32 = vadd.f32 %v13769_v55, %v3906_v13 }
 0x4e7   : > { %v10951_v28 = vpop.eup %10950  ;;  %v13896_v17 = vadd.f32 1.0, %v10949_v35  ;;  %10958 = vrcp.f32 %v13878_v61  ;;  %vm3909_vm6 = vweird.f32 %v13769_v55  ;;  %v3936_v27 = vmul.f32 %v13796_v18, %v3935_v43 }
 0x4e8   : > { %v10953_v36 = vpop.eup %10952  ;;  %v13916_v52 = vadd.f32 1.0, %v10951_v28  ;;  %10960 = vrcp.f32 %v13882_v9  ;;  %v3826_v45 = vsel %vm13829_vm8, %v13722_v0, %v3821_v29  ;;  %v3856_v60 = vsel %vm13833_vm10, %v13729_v14, %v3851_v54  ;;  %vm13954_vm8 = vmor %vm3908_vm0, %vm3909_vm6  ;;  %v8932_v14 = vld [vmem:[%s17083_s11 + $0x160] sm:$0xf] }
 0x4e9   : > { %v10955_v16 = vpop.eup %10954  ;;  %10962 = vpow2.f32 %v8846_v12  ;;  %v13925_v59 = vadd.f32 1.0, %v10953_v36  ;;  %v3915_v20 = vor.u32 1.1754944e-38, %v3914_v44  ;;  %v8848_v40 = vmul.f32 -1.442695, %v13894_v24 }
 0x4ea   : > { %10964 = vrcp.f32 %v13896_v17  ;;  %v13938_v30 = vpop.eup %10956  ;;  %v3886_v39 = vsel %vm13850_vm3, %v13808_v25, %v3881_v2  ;;  %vm13943_vm7 = vcmp.eq.f32.partialorder %v3942_v8, 8.507059e+37  ;;  %v3945_v11 = vor.u32 1.1754944e-38, %v3944_v57 }
 0x4eb   : > { %v13947_v38 = vadd.f32 1.0, %v10955_v16  ;;  %10966 = vrcp.f32 %v13916_v52  ;;  %vm3939_vm10 = vweird.f32 %v13796_v18  ;;  %v3972_v25 = vand.u32 2147483647, %v13716_v31 }
 0x4ec   : > { %v3974_v26 = vand.u32 2147483648, %v13716_v31  ;;  %10968 = vrcp.f32 %v13925_v59  ;;  %v3911_v49 = vsel %vm13954_vm8, %v13769_v55, %v3907_v32  ;;  %v3937_v5 = vadd.f32 %v13796_v18, %v3936_v27  ;;  %vm13999_vm3 = vmor %vm3938_vm14, %vm3939_vm10 }
 0x4ed   : > { %v13950_v0 = vpop.eup %10958  ;;  %v13969_v10 = vmul.f32 %v3766_v21, %v13644_v3  ;;  %v13975_v29 = vmul.f32 %v13938_v30, %v13716_v31  ;;  %v13978_v47 = vmul.f32 %v3796_v51, %v13646_v6  ;;  %10970 = vpow2.f32 %v8848_v40 }
 0x4ee   : > { %v13962_v42 = vpop.eup %10960  ;;  %v3739_v44 = vmul.f32 %v13950_v0, %v13878_v61  ;;  %v13985_v3 = vmul.f32 %v3826_v45, %v13649_v1  ;;  %v13988_v21 = vmul.f32 %v3856_v60, %v13654_v37  ;;  %10972 = vrcp.f32 %v13947_v38 }
 0x4ef   : > { %v10963_v56 = vpop.eup %10962  ;;  %v3769_v55 = vmul.f32 %v13962_v42, %v13882_v9  ;;  %v13993_v13 = vsel %vm13910_vm4, %v3915_v20, %v3911_v49  ;;  %v14003_v1 = vor.u32 1.1754944e-38, %v3974_v26  ;;  %v14006_v37 = vmul.f32 %v3886_v39, %v13658_v50 }
 0x4f0   : > { %v13982_v12 = vpop.eup %10964  ;;  %v3740_v35 = vsub.f32 1.0, %v3739_v44  ;;  %v3941_v63 = vsel %vm13999_vm3, %v13796_v18, %v3937_v5  ;;  %v14015_v8 = vadd.f32 1.0, %v10963_v56  ;;  %v3965_v19 = vsub.f32 1.0, %v13975_v29 }
 0x4f1   : > { %v3799_v43 = vmul.f32 %v13982_v12, %v13896_v17  ;;  %v14010_v28 = vpop.eup %10966  ;;  %v3770_v36 = vsub.f32 1.0, %v3769_v55  ;;  %v3747_v50 = vand.u32 2147483647, %v13878_v61  ;;  %v3749_v58 = vand.u32 2147483648, %v13878_v61 }
 0x4f2   : > { %v3741_v48 = vmul.f32 %v13950_v0, %v3740_v35  ;;  %v14018_v54 = vpop.eup %10968  ;;  %v3829_v57 = vmul.f32 %v14010_v28, %v13916_v52  ;;  %vm3744_vm0 = vweird.f32 %v13950_v0  ;;  %v14031_v32 = vsel %vm13943_vm7, %v3945_v11, %v3941_v63 }
 0x4f3   : > { %v3800_v18 = vsub.f32 1.0, %v3799_v43  ;;  %v3859_v51 = vmul.f32 %v14018_v54, %v13925_v59  ;;  %v10971_v2 = vpop.eup %10970  ;;  %v3777_v27 = vand.u32 2147483647, %v13882_v9  ;;  %v3779_v45 = vand.u32 2147483648, %v13882_v9 }
 0x4f4   : > { %v3742_v16 = vadd.f32 %v13950_v0, %v3741_v48  ;;  %v3830_v60 = vsub.f32 1.0, %v3829_v57  ;;  %v14035_v20 = vpop.eup %10972  ;;  %vm3743_vm1 = vweird.f32 %v13878_v61  ;;  %v3771_v40 = vmul.f32 %v13962_v42, %v3770_v36 }
 0x4f5   : > { %v3860_v39 = vsub.f32 1.0, %v3859_v51  ;;  %10974 = vrcp.f32 %v14015_v8  ;;  %vm14040_vm2 = vmor %vm3743_vm1, %vm3744_vm0  ;;  %vm14044_vm5 = vcmp.eq.f32.partialorder %v3747_v50, 8.507059e+37  ;;  %v3750_v11 = vor.u32 1.1754944e-38, %v3749_v58 }
 0x4f6   : > { %vm3773_vm11 = vweird.f32 %v13882_v9  ;;  %vm3803_vm4 = vweird.f32 %v13896_v17  ;;  %v3746_v61 = vsel %vm14040_vm2, %v13950_v0, %v3742_v16  ;;  %v3801_v26 = vmul.f32 %v13982_v12, %v3800_v18  ;;  %v10592_v9 = vld [vmem:[%s17083_s11 + $0x174] sm:$0xf] }
 0x4f7   : > { %v3831_v49 = vmul.f32 %v14010_v28, %v3830_v60  ;;  %v3889_v5 = vmul.f32 %v14035_v20, %v13947_v38  ;;  %v14057_v44 = vadd.f32 1.0, %v10971_v2  ;;  %vm14059_vm14 = vcmp.eq.f32.partialorder %v3777_v27, 8.507059e+37 }
 0x4f8   : > { %v3780_v55 = vor.u32 1.1754944e-38, %v3779_v45  ;;  %v3807_v35 = vand.u32 2147483647, %v13896_v17  ;;  %v3772_v6 = vadd.f32 %v13962_v42, %v3771_v40  ;;  %vm3774_vm6 = vweird.f32 %v13962_v42 }
 0x4f9   : > { %v3861_v0 = vmul.f32 %v14018_v54, %v3860_v39  ;;  %v3890_v43 = vsub.f32 1.0, %v3889_v5  ;;  %v3751_v63 = vsel %vm14044_vm5, %v3750_v11, %v3746_v61  ;;  %vm3804_vm7 = vweird.f32 %v13982_v12  ;;  %vm14080_vm3 = vmor %vm3773_vm11, %vm3774_vm6 }
 0x4fa   : > { %v3809_v48 = vand.u32 2147483648, %v13896_v17  ;;  %v3837_v36 = vand.u32 2147483647, %v13916_v52  ;;  %v3802_v58 = vadd.f32 %v13982_v12, %v3801_v26  ;;  %v3832_v57 = vadd.f32 %v14010_v28, %v3831_v49  ;;  %vm14094_vm1 = vmor %vm3803_vm4, %vm3804_vm7  ;;  %v10591_v17 = vld [vmem:[%s17083_s11 + $0x164] sm:$0xf0] }
 0x4fb   : > { %v14072_v50 = vpop.eup %10974  ;;  %vm3833_vm8 = vweird.f32 %v13916_v52  ;;  %vm3834_vm10 = vweird.f32 %v14010_v28  ;;  %v3839_v18 = vand.u32 2147483648, %v13916_v52  ;;  %vm3864_vm0 = vweird.f32 %v14018_v54 }
 0x4fc   : > { %v3869_v51 = vand.u32 2147483648, %v13925_v59  ;;  %v3919_v2 = vmul.f32 %v14072_v50, %v14015_v8  ;;  %v3776_v27 = vsel %vm14080_vm3, %v13962_v42, %v3772_v6  ;;  %v3862_v45 = vadd.f32 %v14018_v54, %v3861_v0  ;;  %vm14105_vm5 = vmor %vm3833_vm8, %vm3834_vm10 }
 0x4fd   : > { %v3891_v52 = vmul.f32 %v14035_v20, %v3890_v43  ;;  %v3978_v60 = vmul.f32 %v3751_v63, %v13758_v23  ;;  %vm14101_vm2 = vcmp.eq.f32.partialorder %v3807_v35, 8.507059e+37  ;;  %v3810_v39 = vor.u32 1.1754944e-38, %v3809_v48  ;;  %v14280_v63 = vld [vmem:[%s17083_s11 + $0x154] sm:$0xf0] }
 0x4fe   : > { %vm14109_vm11 = vcmp.eq.f32.partialorder %v3837_v36, 8.507059e+37  ;;  %vm3863_vm4 = vweird.f32 %v13925_v59  ;;  %v3806_v42 = vsel %vm14094_vm1, %v13982_v12, %v3802_v58  ;;  %v3836_v23 = vsel %vm14105_vm5, %v14010_v28, %v3832_v57 }
 0x4ff   : > { %v3867_v62 = vand.u32 2147483647, %v13925_v59  ;;  %v4014_v11 = vpack.c.bf16 %v13969_v10, %v3978_v60  ;;  %v3781_v61 = vsel %vm14059_vm14, %v3780_v55, %v3776_v27  ;;  %v3840_v26 = vor.u32 1.1754944e-38, %v3839_v18  ;;  %vm14126_vm6 = vmor %vm3863_vm4, %vm3864_vm0  ;;  %v9006_v60 = vld [vmem:[%s17083_s11 + $0x1f8] sm:$0xf0] }
 0x500   : > { %v3870_v5 = vor.u32 1.1754944e-38, %v3869_v51  ;;  %v3920_v12 = vsub.f32 1.0, %v3919_v2  ;;  %v3866_v28 = vsel %vm14126_vm6, %v14018_v54, %v3862_v45  ;;  %v3892_v59 = vadd.f32 %v14035_v20, %v3891_v52  ;;  %v8942_v45 = vld [vmem:[%s17083_s11 + $0x178] sm:$0xf0]  ;;  %v10608_v52 = vld [vmem:[%s17083_s11 + $0x1f4] sm:$0xf] }
 0x501   : > { %vm3894_vm7 = vweird.f32 %v14035_v20  ;;  %10976 = vrcp.f32 %v14057_v44  ;;  %v3811_v10 = vsel %vm14101_vm2, %v3810_v39, %v3806_v42  ;;  %v3841_v56 = vsel %vm14109_vm11, %v3840_v26, %v3836_v23 }
 0x502   : > { %v3899_v55 = vand.u32 2147483648, %v13947_v38  ;;  %v4023_v35 = vshrl.u32 %v4014_v11, 16  ;;  %v3966_v6 = vmul.f32 %v13938_v30, %v3965_v19  ;;  %vm3868_vm14 = vcmp.eq.f32.partialorder %v3867_v62, 8.507059e+37  ;;  %v10607_v62 = vld [vmem:[%s17083_s11 + $0x1e4] sm:$0xf0] }
 0x503   : > { %vm3893_vm8 = vweird.f32 %v13947_v38  ;;  %v3897_v54 = vand.u32 2147483647, %v13947_v38  ;;  %v14148_v0 = vmul.f32 %v13993_v13, %v13663_v53  ;;  %v3871_v43 = vsel %vm3868_vm14, %v3870_v5, %v3866_v28  ;;  %v8934_v5 = vld [vmem:[%s17083_s11 + $0x168] sm:$0xf0] }
 0x504   : > { %vm14150_vm10 = vmor %vm3893_vm8, %vm3894_vm7  ;;  %v3921_v48 = vmul.f32 %v14072_v50, %v3920_v12  ;;  %v3980_v29 = vmul.f32 %v3781_v61, %v13761_v33  ;;  %v3927_v36 = vand.u32 2147483647, %v14015_v8  ;;  %v3982_v38 = vmul.f32 %v3811_v10, %v13764_v7 }
 0x505   : > { %v3896_v19 = vsel %vm14150_vm10, %v14035_v20, %v3892_v59  ;;  %v3984_v53 = vmul.f32 %v3841_v56, %v13767_v34  ;;  %v14164_v13 = vmul.f32 %v14031_v32, %v13666_v4  ;;  %v3900_v58 = vor.u32 1.1754944e-38, %v3899_v55  ;;  %v8940_v4 = vld [vmem:[%s17083_s11 + $0x170] sm:$0xf]  ;;  %v10593_v34 = vld [vmem:[%s17083_s11 + $0x174] sm:$0xf0] }
 0x506   : > { %v3929_v57 = vand.u32 2147483648, %v14015_v8  ;;  %v14167_v16 = vrot.slane %v4023_v35, 7  ;;  %v14172_v18 = vadd.f32 %v13938_v30, %v3966_v6  ;;  %vm3898_vm3 = vcmp.eq.f32.partialorder %v3897_v54, 8.507059e+37  ;;  %v9004_v32 = vld [vmem:[%s17083_s11 + $0x1f0] sm:$0xf] }
 0x507   : > { %v14169_v33 = vpop.eup %10976  ;;  %vm3924_vm0 = vweird.f32 %v14072_v50  ;;  %v3986_v7 = vmul.f32 %v3871_v43, %v13778_v15  ;;  %v10609_v20 = vld [vmem:[%s17083_s11 + $0x1f4] sm:$0xf0]  ;;  %v3901_v51 = vsel %vm3898_vm3, %v3900_v58, %v3896_v19  ;;  %v14189_v2 = vadd.f32 %v14072_v50, %v3921_v48  ;;  %v14275_v43 = vld [vmem:[%s17083_s11 + $0x150] sm:$0xf] }
 0x508   : > { %v14192_v15 = vpack.c.bf16 %v13978_v47, %v3980_v29  ;;  %v4026_v27 = vshll.u32 %v4014_v11, 16  ;;  %vm3923_vm1 = vweird.f32 %v14015_v8  ;;  %vm14207_vm2 = vcmp.eq.f32.partialorder %v3927_v36, 8.507059e+37  ;;  %v8996_v8 = vld [vmem:[%s17083_s11 + $0x1e0] sm:$0xf]  ;;  %v14238_v11 = vld [vmem:[%s17083_s11 + $0x164] sm:$0xf] }
 0x509   : > { %v14212_v40 = vpack.c.bf16 %v13985_v3, %v3982_v38  ;;  %v14215_v39 = vpack.c.bf16 %v13988_v21, %v3984_v53  ;;  %v3930_v42 = vor.u32 1.1754944e-38, %v3929_v57  ;;  %v14228_v3 = vmul.f32 %v14169_v33, %v14057_v44  ;;  %vm14242_vm5 = vmor %vm3923_vm1, %vm3924_vm0  ;;  %v14285_v48 = vld [vmem:[%s17083_s11 + $0x1d0] sm:$0xf]  ;;  %v14290_v29 = vld [vmem:[%s17083_s11 + $0x1d4] sm:$0xf0] }
 0x50a   : > { %v3959_v21 = vand.u32 2147483648, %v14057_v44  ;;  %v4028_v23 = vor.u32 %v4026_v27, %v14167_v16  ;;  %v3988_v26 = vmul.f32 %v3901_v51, %v13781_v41  ;;  %v14248_v49 = vpack.c.bf16 %v14006_v37, %v3986_v7  ;;  %v10606_v41 = vld [vmem:[%s17083_s11 + $0x1e4] sm:$0xf]  ;;  %v8998_v37 = vld [vmem:[%s17083_s11 + $0x1e8] sm:$0xf0]  ;;  %v14293_v36 = vld [vmem:[#allocation3] sm:$0xff] }
 0x50b   : > { %vm4103_vm11 = vcmask 1047556   ;;  %vm4104_vm4 = vsmask.f32 7954  ;;  %v3926_v12 = vsel %vm14242_vm5, %v14072_v50, %v14189_v2  ;;  %v4031_v28 = vshrl.u32 %v14192_v15, 16  ;;  %v14303_v57 = vld [vmem:[%s17083_s11 + $0x154] sm:$0xf] }
 0x50c   : > { %vm4105_vm6 = vmand %vm4103_vm11, %vm4104_vm4  ;;  %v8941_v59 = vor.u32 %v10593_v34, %v8940_v4  ;;  %v9005_v10 = vor.u32 %v10609_v20, %v9004_v32  ;;  %v4039_v56 = vshrl.u32 %v14212_v40, 16  ;;  %v4047_v55 = vshrl.u32 %v14215_v39, 16  ;;  %v8926_v7 = vld [vmem:[%s17083_s11 + $0x158] sm:$0xf0]  ;;  %v10604_v4 = vld [vmem:[%s17083_s11 + $0x1d4] sm:$0xf] }
 0x50d   : > { %vm14268_vm7 = vmor %vm4105_vm6, %vm11655_vm13  ;;  %v8945_v6 = vor.u32 %v10592_v9, %v8942_v45  ;;  %v9009_v54 = vor.u32 %v10608_v52, %v9006_v60  ;;  %v3957_v19 = vand.u32 2147483647, %v14057_v44  ;;  %v8933_v53 = vor.u32 %v10591_v17, %v8932_v14  ;;  %v8990_v2 = vld [vmem:[%s17083_s11 + $0x1d8] sm:$0xf0]  ;;  %v14328_v52 = vld [vmem:[%s17083_s11 + $0x140] sm:$0xf] }
 0x50e   : > { %v14298_v38 = vsel %vm14268_vm7, %v4028_v23, %v14293_v36  ;;  %4544 = vmatpush.bf16.msrb.mxu2 %v8941_v59  ;;  %4573 = vmatpush.bf16.msrb.mxu3 %v9005_v10  ;;  %v8997_v58 = vor.u32 %v10607_v62, %v8996_v8  ;;  %v3950_v34 = vsub.f32 1.0, %v14228_v3  ;;  %v14312_v32 = vor.u32 1.1754944e-38, %v3959_v21  ;;  %v14333_v60 = vld [vmem:[%s17083_s11 + $0x144] sm:$0xf0]  ;;  %v14365_v23 = vld [vmem:[%s17083_s11 + $0x148] sm:$0xf0] }
 0x50f   : > { %4109 = vst [vmem:[#allocation3 + $0x10] sm:$0xff] %v14298_v38  ;;  %4602 = vmatpush.bf16.msra.mxu0 %v8945_v6  ;;  %4631 = vmatpush.bf16.msra.mxu1 %v9009_v54  ;;  %v8937_v20 = vor.u32 %v14238_v11, %v8934_v5  ;;  %v9001_v51 = vor.u32 %v10606_v41, %v8998_v37  ;;  %v14322_v9 = vrot.slane %v4031_v28, 7  ;;  %v4034_v45 = vshll.u32 %v14192_v15, 16  ;;  %v14345_v15 = vld [vmem:[%s17083_s11 + $0x1c0] sm:$0xf] }
 0x510   : > { %v14320_v27 = vpack.c.bf16 %v14148_v0, %v3988_v26  ;;  %vm4110_vm13 = vcmask 1044484   ;;  %v3931_v14 = vsel %vm14207_vm2, %v3930_v42, %v3926_v12  ;;  %v14337_v0 = vrot.slane %v4039_v56, 7  ;;  %v14350_v3 = vld [vmem:[%s17083_s11 + $0x1c4] sm:$0xf0]  ;;  %v14360_v42 = vld [vmem:[%s17083_s11 + $0x144] sm:$0xf] }
 0x511   : > { %v4042_v17 = vshll.u32 %v14212_v40, 16  ;;  %v14340_v8 = vrot.slane %v4047_v55, 7  ;;  %v4029_v21 = vrot.slane %v14167_v16, 4  ;;  %v8925_v47 = vor.u32 %v14280_v63, %v14275_v43  ;;  %v14370_v16 = vld [vmem:[%s17083_s11 + $0x1c4] sm:$0xf] }
 0x512   : > { %4545 = vmatpush.bf16.msrb.mxu2 %v8933_v53  ;;  %4574 = vmatpush.bf16.msrb.mxu3 %v8997_v58  ;;  %v8989_v40 = vor.u32 %v14290_v29, %v14285_v48  ;;  %vm4111_vm14 = vsmask.f32 4352  ;;  %v4050_v62 = vshll.u32 %v14215_v39, 16  ;;  %v8929_v11 = vor.u32 %v14303_v57, %v8926_v7  ;;  %v8982_v26 = vld [vmem:[%s17083_s11 + $0x1c8] sm:$0xf0] }
 0x513   : > { %4603 = vmatpush.bf16.msra.mxu0 %v8937_v20  ;;  %4632 = vmatpush.bf16.msra.mxu1 %v9001_v51  ;;  %v8993_v61 = vor.u32 %v10604_v4, %v8990_v2  ;;  %vm4112_vm8 = vmand %vm4110_vm13, %vm4111_vm14  ;;  %v4114_v5 = vld [vmem:[#allocation3 + $0x18] sm:$0x11]  ;;  %v4208_v12 = vshrl.u32 %v14293_v36, 16  ;;  %v14380_v28 = vmul.f32 %v14169_v33, %v3950_v34  ;;  %v14383_v59 = vmul.f32 %v3931_v14, %v13825_v46  ;;  %v14390_v41 = vld [vmem:[%s17083_s11 + $0x130] sm:$0xf] }
 0x514   : > { %v4036_v39 = vor.u32 %v4034_v45, %v14322_v9  ;;  %v4055_v10 = vshrl.u32 %v14248_v49, 16  ;;  %v14395_v37 = vld [vmem:[%s17083_s11 + $0x134] sm:$0xf0]  ;;  %vm14399_vm10 = vmor %vm4112_vm8, %vm11747_vm9  ;;  %v4044_v46 = vor.u32 %v4042_v17, %v14337_v0  ;;  %v14405_v35 = vor.u32 %v4050_v62, %v14340_v8  ;;  %v14413_v43 = vld [vmem:[%s17083_s11 + $0x1b0] sm:$0xf] }
 0x515   : > { %v4058_v6 = vshll.u32 %v14248_v49, 16  ;;  %v8917_v54 = vor.u32 %v14333_v60, %v14328_v52  ;;  %v14418_v63 = vld [vmem:[%s17083_s11 + $0x1b4] sm:$0xf0]  ;;  %v8981_v48 = vor.u32 %v14350_v3, %v14345_v15  ;;  %v14425_v49 = vld [vmem:[%s17083_s11 + $0x134] sm:$0xf]  ;;  %v4115_v53 = vsel %vm14399_vm10, %v4029_v21, %v4114_v5 }
 0x516   : > { %4546 = vmatpush.bf16.msrb.mxu2 %v8925_v47  ;;  %4575 = vmatpush.bf16.msrb.mxu3 %v8989_v40  ;;  %v14430_v29 = vld [vmem:[%s17083_s11 + $0x138] sm:$0xf0]  ;;  %v4210_v57 = vrot.slane %v4208_v12, 4  ;;  %v4211_v7 = vshll.u32 %v14293_v36, 16  ;;  %v8921_v4 = vor.u32 %v14360_v42, %v14365_v23  ;;  %v8985_v34 = vor.u32 %v14370_v16, %v8982_v26  ;;  %v14443_v20 = vld [vmem:[%s17083_s11 + $0x1b4] sm:$0xf] }
 0x517   : > { %v14434_v58 = vld [vmem:[#allocation3 + $0x8] sm:$0x11]  ;;  %4604 = vmatpush.bf16.msra.mxu0 %v8929_v11  ;;  %4633 = vmatpush.bf16.msra.mxu1 %v8993_v61  ;;  %4116 = vst [vmem:[#allocation3 + $0x18] sm:$0x11] %v4115_v53  ;;  %v4222_v51 = vshrl.u32 %v14298_v38, 16  ;;  %v4225_v2 = vshll.u32 %v14298_v38, 16  ;;  %v8909_v52 = vor.u32 %v14395_v37, %v14390_v41  ;;  %v8973_v60 = vor.u32 %v14418_v63, %v14413_v43 }
 0x518   : > { %v14447_v45 = vrot.slane %v4055_v10, 7  ;;  %v8974_v14 = vld [vmem:[%s17083_s11 + $0x1b8] sm:$0xf0]  ;;  %v4213_v17 = vrot.slane %v4211_v7, 5  ;;  %v14459_v3 = vld [vmem:[%s17083_s11 + $0x120] sm:$0xf]  ;;  %v14501_v12 = vsel %vm14268_vm7, %v4036_v39, %v14293_v36  ;;  %v14506_v10 = vsel %vm14268_vm7, %v4044_v46, %v14293_v36 }
 0x519   : > { %v4120_v15 = vld [vmem:[#allocation3 + $0x28] sm:$0x11]  ;;  %v14464_v38 = vld [vmem:[%s17083_s11 + $0x124] sm:$0xf0]  ;;  %v14469_v21 = vld [vmem:[%s17083_s11 + $0x1a0] sm:$0xf]  ;;  %vm3969_vm9 = vweird.f32 %v13938_v30  ;;  %v8913_v41 = vor.u32 %v14425_v49, %v14430_v29  ;;  %v8977_v37 = vor.u32 %v14443_v20, %v8974_v14  ;;  %v14525_v46 = vadd.f32 %v14169_v33, %v14380_v28 }
 0x51a   : > { %v14474_v47 = vld [vmem:[%s17083_s11 + $0x1a4] sm:$0xf0]  ;;  %v4217_v40 = vshll.u32 %v14434_v58, 16  ;;  %v14477_v42 = vrot.slane %v4222_v51, 4  ;;  %v14479_v23 = vrot.slane %v4225_v2, 5  ;;  %v4037_v16 = vrot.slane %v14322_v9, 4  ;;  %4547 = vmatpush.bf16.msrb.mxu2 %v8917_v54  ;;  %4576 = vmatpush.bf16.msrb.mxu3 %v8981_v48 }
 0x51b   : > { %v4126_v62 = vld [vmem:[#allocation3 + $0x38] sm:$0x11]  ;;  %v14485_v11 = vld [vmem:[%s17083_s11 + $0x124] sm:$0xf]  ;;  %v4214_v5 = vor.u32 %v4213_v17, %v4210_v57  ;;  %v4045_v9 = vrot.slane %v14337_v0, 4  ;;  %4605 = vmatpush.bf16.msra.mxu0 %v8921_v4  ;;  %4634 = vmatpush.bf16.msra.mxu1 %v8985_v34  ;;  %4119 = vst [vmem:[#allocation3 + $0x20] sm:$0xff] %v14501_v12  ;;  %v14529_v54 = vpack.c.bf16 %v14164_v13, %v14383_v59  ;;  %vm3968_vm3 = vweird.f32 %v13716_v31 }
 0x51c   : > { %v14490_v61 = vld [vmem:[%s17083_s11 + $0x128] sm:$0xf0]  ;;  %v14495_v26 = vld [vmem:[%s17083_s11 + $0x1a4] sm:$0xf]  ;;  %v14518_v39 = vld [vmem:[%s17083_s11 + $0x110] sm:$0xf]  ;;  %v4121_v56 = vsel %vm14399_vm10, %v4037_v16, %v4120_v15  ;;  %v4060_v43 = vor.u32 %v4058_v6, %v14447_v45  ;;  %v4228_v29 = vor.u32 %v14479_v23, %v14477_v42  ;;  %v8901_v53 = vor.u32 %v14464_v38, %v14459_v3 }
 0x51d   : > { %v8966_v0 = vld [vmem:[%s17083_s11 + $0x1a8] sm:$0xf0]  ;;  %v14535_v63 = vld [vmem:[%s17083_s11 + $0x114] sm:$0xf0]  ;;  %v14540_v48 = vld [vmem:[%s17083_s11 + $0x190] sm:$0xf]  ;;  %v4127_v28 = vsel %vm14399_vm10, %v4045_v9, %v4126_v62  ;;  %v8965_v57 = vor.u32 %v14474_v47, %v14469_v21  ;;  %v14579_v51 = vsel %vm14268_vm7, %v14405_v35, %v14293_v36  ;;  %vm3953_vm0 = vweird.f32 %v14057_v44 }
 0x51e   : > { %4122 = vst [vmem:[#allocation3 + $0x28] sm:$0x11] %v4121_v56  ;;  %v4063_v13 = vshrl.u32 %v14320_v27, 16  ;;  %v14549_v59 = vld [vmem:[%s17083_s11 + $0x194] sm:$0xf0]  ;;  %v4215_v6 = vrot.slane %v4214_v5, 4  ;;  %4548 = vmatpush.bf16.msrb.mxu2 %v8909_v52  ;;  %4577 = vmatpush.bf16.msrb.mxu3 %v8973_v60  ;;  %v8905_v2 = vor.u32 %v14485_v11, %v14490_v61  ;;  %v8969_v52 = vor.u32 %v14495_v26, %v8966_v0  ;;  %vm14686_vm11 = vmor %vm3968_vm3, %vm3969_vm9 }
 0x51f   : > { %v4219_v49 = vrot.slane %v4217_v40, 5  ;;  %4125 = vst [vmem:[#allocation3 + $0x30] sm:$0xff] %v14506_v10  ;;  %v14561_v7 = vld [vmem:[%s17083_s11 + $0x114] sm:$0xf]  ;;  %v14566_v4 = vld [vmem:[%s17083_s11 + $0x118] sm:$0xf0]  ;;  %4606 = vmatpush.bf16.msra.mxu0 %v8913_v41  ;;  %4635 = vmatpush.bf16.msra.mxu1 %v8977_v37  ;;  %v8893_v17 = vor.u32 %v14535_v63, %v14518_v39  ;;  %v8957_v15 = vor.u32 %v14549_v59, %v14540_v48  ;;  %vm3954_vm1 = vweird.f32 %v14169_v33 }
 0x520   : > { %v14571_v34 = vld [vmem:[%s17083_s11 + $0x194] sm:$0xf]  ;;  %v14573_v20 = vld [vmem:[#allocation3 + $0x18] sm:$0x11]  ;;  %4128 = vst [vmem:[#allocation3 + $0x38] sm:$0x11] %v4127_v28  ;;  %v14613_v47 = vsel %vm14268_vm7, %v4060_v43, %v14293_v36  ;;  %v8897_v37 = vor.u32 %v14561_v7, %v14566_v4  ;;  %vm14694_vm4 = vmor %vm3953_vm0, %vm3954_vm1 }
 0x521   : > { %v8958_v60 = vld [vmem:[%s17083_s11 + $0x198] sm:$0xf0]  ;;  %v14591_v14 = vld [vmem:[%s17083_s11 + $0x100] sm:$0xf]  ;;  %v4231_v35 = vshll.u32 %v14573_v20, 16  ;;  %4131 = vst [vmem:[#allocation3 + $0x40] sm:$0xff] %v14579_v51  ;;  %v4220_v23 = vsel %vm11796_vm15, %v4215_v6, %v4219_v49 }
 0x522   : > { %v14602_v3 = vld [vmem:[%s17083_s11 + $0x104] sm:$0xf0]  ;;  %v14607_v38 = vld [vmem:[%s17083_s11 + $0x180] sm:$0xf]  ;;  %v4236_v21 = vshrl.u32 %v14501_v12, 16  ;;  %v4229_v16 = vrot.slane %v4228_v29, 4  ;;  %4549 = vmatpush.bf16.msrb.mxu2 %v8901_v53  ;;  %4578 = vmatpush.bf16.msrb.mxu3 %v8965_v57  ;;  %v8961_v0 = vor.u32 %v14571_v34, %v8958_v60  ;;  %v4352_v28 = vunpack.c.l.b16 %v4220_v23 }
 0x523   : > { %v14618_v40 = vld [vmem:[%s17083_s11 + $0x184] sm:$0xf0]  ;;  %v4233_v62 = vrot.slane %v4231_v35, 5  ;;  %v4239_v11 = vshll.u32 %v14501_v12, 16  ;;  %v14626_v61 = vld [vmem:[%s17083_s11 + $0x104] sm:$0xf]  ;;  %4607 = vmatpush.bf16.msra.mxu0 %v8905_v2  ;;  %4636 = vmatpush.bf16.msra.mxu1 %v8969_v52  ;;  %v8885_v43 = vor.u32 %v14602_v3, %v14591_v14  ;;  %v4353_v53 = vunpack.c.h.b16 %v4220_v23 }
 0x524   : > { %v14631_v26 = vld [vmem:[%s17083_s11 + $0x108] sm:$0xf0]  ;;  %v4250_v5 = vshrl.u32 %v14506_v10, 16  ;;  %v4253_v9 = vshll.u32 %v14506_v10, 16  ;;  %v4053_v41 = vrot.slane %v14340_v8, 4  ;;  %v4061_v12 = vrot.slane %v14447_v45, 4 }
 0x525   : > { %4137 = vst [vmem:[#allocation3 + $0x50] sm:$0xff] %v14613_v47  ;;  %v10594_v39 = vld [vmem:[%s17083_s11 + $0x184] sm:$0xf]  ;;  %v4234_v8 = vsel %vm11796_vm15, %v4229_v16, %v4233_v62  ;;  %v4132_v10 = vld [vmem:[#allocation3 + $0x48] sm:$0x11]  ;;  %vm14649_vm2 = vcmp.eq.f32.partialorder %v3972_v25, 8.507059e+37  ;;  %v8949_v63 = vor.u32 %v14618_v40, %v14607_v38  ;;  %v3971_v16 = vsel %vm14686_vm11, %v13938_v30, %v14172_v18 }
 0x526   : > { %v4138_v45 = vld [vmem:[#allocation3 + $0x58] sm:$0x11]  ;;  %v9100_v59 = vld [vmem:[%s17083_s11 + $0x70] sm:$0xf]  ;;  %v10561_v25 = vld [vmem:[%s17083_s11 + $0x74] sm:$0xf0]  ;;  %v4133_v6 = vsel %vm14399_vm10, %v4053_v41, %v4132_v10  ;;  %v4354_v29 = vunpack.c.l.b16 %v4234_v8  ;;  %v4355_v57 = vunpack.c.h.b16 %v4234_v8  ;;  %4550 = vmatpush.bf16.msrb.mxu2 %v8893_v17  ;;  %4579 = vmatpush.bf16.msrb.mxu3 %v8957_v15  ;;  %v8889_v17 = vor.u32 %v14626_v61, %v14631_v26 }
 0x527   : > { %v8950_v48 = vld [vmem:[%s17083_s11 + $0x188] sm:$0xf0]  ;;  %vm14670_vm5 = vcmp.eq.f32.partialorder %v3957_v19, 8.507059e+37  ;;  %v9164_v7 = vld [vmem:[%s17083_s11 + $0xf0] sm:$0xf]  ;;  %v4139_v34 = vsel %vm14399_vm10, %v4061_v12, %v4138_v45  ;;  %v4238_v2 = vrot.slane %v4236_v21, 4  ;;  %4608 = vmatpush.bf16.msra.mxu0 %v8897_v37  ;;  %4637 = vmatpush.bf16.msra.mxu1 %v8961_v0  ;;  %v9101_v38 = vor.u32 %v10561_v25, %v9100_v59 }
 0x528   : > { %v10577_v4 = vld [vmem:[%s17083_s11 + $0xf4] sm:$0xf0]  ;;  %4134 = vst [vmem:[#allocation3 + $0x48] sm:$0x11] %v4133_v6  ;;  %v4241_v52 = vrot.slane %v4239_v11, 5  ;;  %v4252_v60 = vrot.slane %v4250_v5, 4  ;;  %v8953_v15 = vor.u32 %v10594_v39, %v8950_v48  ;;  %v3956_v62 = vsel %vm14694_vm4, %v14169_v33, %v14525_v46 }
 0x529   : > { %v4255_v14 = vrot.slane %v4253_v9, 5  ;;  %4140 = vst [vmem:[#allocation3 + $0x58] sm:$0x11] %v4139_v34  ;;  %v4066_v31 = vshll.u32 %v14320_v27, 16  ;;  %v4071_v3 = vshrl.u32 %v14529_v54, 16  ;;  %v9165_v21 = vor.u32 %v10577_v4, %v9164_v7 }
 0x52a   : > { %v9092_v44 = vld [vmem:[%s17083_s11 + $0x60] sm:$0xf]  ;;  %v14705_v40 = vld [vmem:[#allocation3 + $0x28] sm:$0x11]  ;;  %v14707_v23 = vld [vmem:[#allocation3 + $0x38] sm:$0x11]  ;;  %v4368_v11 = vpack.c.b16 %v4354_v29, %v4352_v28  ;;  %v4369_v61 = vpack.c.b16 %v4355_v57, %v4353_v53  ;;  %4551 = vmatpush.bf16.msrb.mxu2 %v8885_v43  ;;  %4580 = vmatpush.bf16.msrb.mxu3 %v8949_v63  ;;  %v4242_v18 = vor.u32 %v4241_v52, %v4238_v2 }
 0x52b   : > { %v10559_v26 = vld [vmem:[%s17083_s11 + $0x64] sm:$0xf0]  ;;  %v9156_v5 = vld [vmem:[%s17083_s11 + $0xe0] sm:$0xf]  ;;  %v14728_v30 = vrot.slane %v4063_v13, 7  ;;  %v4074_v33 = vshll.u32 %v14529_v54, 16  ;;  %v4256_v46 = vor.u32 %v4255_v14, %v4252_v60  ;;  %4609 = vmatpush.bf16.msra.mxu0 %v8889_v17  ;;  %4638 = vmatpush.bf16.msra.mxu1 %v8953_v15  ;;  %v3976_v10 = vsel %vm14649_vm2, %v14003_v1, %v3971_v16 }
 0x52c   : > { %v10575_v9 = vld [vmem:[%s17083_s11 + $0xe4] sm:$0xf0]  ;;  %v4245_v41 = vshll.u32 %v14705_v40, 16  ;;  %v4259_v12 = vshll.u32 %v14707_v23, 16  ;;  %v4264_v37 = vshrl.u32 %v14579_v51, 16  ;;  %v4267_v0 = vshll.u32 %v14579_v51, 16 }
 0x52d   : > { %v14735_v39 = vrot.slane %v4071_v3, 7  ;;  %v9093_v27 = vor.u32 %v10559_v26, %v9092_v44  ;;  %v9157_v54 = vor.u32 %v10575_v9, %v9156_v5  ;;  %v9084_v13 = vld [vmem:[%s17083_s11 + $0x50] sm:$0xf]  ;;  %v4278_v8 = vshrl.u32 %v14613_v47, 16  ;;  %4552 = vmatmul.bf16.vlgmr.msrb.gmra.mxu2 %v4368_v11  ;;  %4581 = vmatmul.bf16.vlgmr.msrb.gmra.mxu3 %v4369_v61  ;;  %v10557_v51 = vld [vmem:[%s17083_s11 + $0x54] sm:$0xf0] }
 0x52e   : > { %4860 = vmatpush.bf16.msra.mxu2 %v9101_v38  ;;  %4889 = vmatpush.bf16.msra.mxu3 %v9165_v21  ;;  %v9148_v45 = vld [vmem:[%s17083_s11 + $0xd0] sm:$0xf]  ;;  %v10573_v43 = vld [vmem:[%s17083_s11 + $0xd4] sm:$0xf0]  ;;  %v3961_v63 = vsel %vm14670_vm5, %v14312_v32, %v3956_v62  ;;  %v4068_v1 = vor.u32 %v4066_v31, %v14728_v30  ;;  %v4243_v56 = vrot.slane %v4242_v18, 4  ;;  %v4257_v48 = vrot.slane %v4256_v46, 4 }
 0x52f   : > { %4610 = vmatmul.bf16.vlgmr.msra.gmra.mxu0 %v4368_v11  ;;  %4639 = vmatmul.bf16.vlgmr.msra.gmra.mxu1 %v4369_v61  ;;  %v14760_v28 = vld [vmem:[%s17083_s11 + $0x40] sm:$0xf]  ;;  %v14765_v59 = vld [vmem:[%s17083_s11 + $0x44] sm:$0xf0]  ;;  %v4247_v25 = vrot.slane %v4245_v41, 5  ;;  %v4261_v6 = vrot.slane %v4259_v12, 5  ;;  %v9085_v57 = vor.u32 %v10557_v51, %v9084_v13  ;;  %v9149_v7 = vor.u32 %v10573_v43, %v9148_v45 }
 0x530   : > { %v14770_v32 = vld [vmem:[%s17083_s11 + $0xc0] sm:$0xf]  ;;  %v14775_v49 = vld [vmem:[%s17083_s11 + $0xc4] sm:$0xf0]  ;;  %v14777_v29 = vrot.slane %v4264_v37, 4  ;;  %v14779_v53 = vrot.slane %v4267_v0, 5  ;;  %v3992_v52 = vmul.f32 %v3961_v63, %v13894_v24  ;;  %v4076_v60 = vor.u32 %v4074_v33, %v14735_v39 }
 0x531   : > { %v14781_v4 = vrot.slane %v4278_v8, 4  ;;  %v4281_v34 = vshll.u32 %v14613_v47, 16  ;;  %v10560_v19 = vld [vmem:[%s17083_s11 + $0x74] sm:$0xf]  ;;  %v9102_v2 = vld [vmem:[%s17083_s11 + $0x78] sm:$0xf0]  ;;  %v3993_v3 = vmul.f32 %v3976_v10, %v13670_v22  ;;  %v4248_v21 = vsel %vm11796_vm15, %v4243_v56, %v4247_v25 }
 0x532   : > { %4861 = vmatpush.bf16.msra.mxu2 %v9093_v27  ;;  %4890 = vmatpush.bf16.msra.mxu3 %v9157_v54  ;;  %v9105_v14 = vor.u32 %v10560_v19, %v9102_v2  ;;  %v10576_v35 = vld [vmem:[%s17083_s11 + $0xf4] sm:$0xf]  ;;  %v9166_v47 = vld [vmem:[%s17083_s11 + $0xf8] sm:$0xf0]  ;;  %v10558_v31 = vld [vmem:[%s17083_s11 + $0x64] sm:$0xf]  ;;  %v4262_v44 = vsel %vm11796_vm15, %v4257_v48, %v4261_v6  ;;  %v9077_v22 = vor.u32 %v14765_v59, %v14760_v28  ;;  %v4356_v27 = vunpack.c.l.b16 %v4248_v21 }
 0x533   : > { %v9169_v17 = vor.u32 %v10576_v35, %v9166_v47  ;;  %v9094_v24 = vld [vmem:[%s17083_s11 + $0x68] sm:$0xf0]  ;;  %v10574_v15 = vld [vmem:[%s17083_s11 + $0xe4] sm:$0xf]  ;;  %v14817_v16 = vld [vmem:[#allocation3 + $0x48] sm:$0x11]  ;;  %v9141_v26 = vor.u32 %v14775_v49, %v14770_v32  ;;  %v14838_v46 = vsel %vm14268_vm7, %v4068_v1, %v14293_v36  ;;  %v4358_v54 = vunpack.c.l.b16 %v4262_v44 }
 0x534   : > { %v9158_v38 = vld [vmem:[%s17083_s11 + $0xe8] sm:$0xf0]  ;;  %v9068_v62 = vld [vmem:[%s17083_s11 + $0x30] sm:$0xf]  ;;  %v10553_v11 = vld [vmem:[%s17083_s11 + $0x34] sm:$0xf0]  ;;  %4918 = vmatpush.bf16.msrb.mxu0 %v9105_v14  ;;  %v9097_v61 = vor.u32 %v10558_v31, %v9094_v24  ;;  %v4357_v13 = vunpack.c.h.b16 %v4248_v21  ;;  %v4359_v8 = vunpack.c.h.b16 %v4262_v44  ;;  %v4270_v43 = vor.u32 %v14779_v53, %v14777_v29 }
 0x535   : > { %v10556_v5 = vld [vmem:[%s17083_s11 + $0x54] sm:$0xf]  ;;  %v9086_v9 = vld [vmem:[%s17083_s11 + $0x58] sm:$0xf0]  ;;  %v4069_v33 = vrot.slane %v14728_v30, 4  ;;  %v4077_v18 = vrot.slane %v14735_v39, 4  ;;  %4947 = vmatpush.bf16.msrb.mxu1 %v9169_v17  ;;  %v9161_v0 = vor.u32 %v10574_v15, %v9158_v38  ;;  %v14851_v30 = vsel %vm14268_vm7, %v4076_v60, %v14293_v36 }
 0x536   : > { %4862 = vmatpush.bf16.msra.mxu2 %v9085_v57  ;;  %4891 = vmatpush.bf16.msra.mxu3 %v9149_v7  ;;  %v14840_v41 = vrot.slane %v4281_v34, 5  ;;  %v9132_v12 = vld [vmem:[%s17083_s11 + $0xb0] sm:$0xf]  ;;  %v10569_v37 = vld [vmem:[%s17083_s11 + $0xb4] sm:$0xf0]  ;;  %v4021_v39 = vpack.c.bf16 %v3993_v3, %v3992_v52  ;;  %v4273_v63 = vshll.u32 %v14817_v16, 16  ;;  %v9069_v1 = vor.u32 %v10553_v11, %v9068_v62 }
 0x537   : > { %v14853_v10 = vld [vmem:[#allocation3 + $0x58] sm:$0x11]  ;;  %v10572_v51 = vld [vmem:[%s17083_s11 + $0xd4] sm:$0xf]  ;;  %v9150_v45 = vld [vmem:[%s17083_s11 + $0xd8] sm:$0xf0]  ;;  %v9089_v59 = vor.u32 %v10556_v5, %v9086_v9  ;;  %v9133_v32 = vor.u32 %v10569_v37, %v9132_v12  ;;  %v4370_v2 = vpack.c.b16 %v4358_v54, %v4356_v27  ;;  %v4371_v52 = vpack.c.b16 %v4359_v8, %v4357_v13 }
 0x538   : > { %4919 = vmatpush.bf16.msrb.mxu0 %v9097_v61  ;;  %v9060_v56 = vld [vmem:[%s17083_s11 + $0x20] sm:$0xf]  ;;  %v10551_v48 = vld [vmem:[%s17083_s11 + $0x24] sm:$0xf0]  ;;  %4143 = vst [vmem:[#allocation3 + $0x60] sm:$0xff] %v14838_v46  ;;  %v4287_v7 = vshll.u32 %v14853_v10, 16  ;;  %v4284_v60 = vor.u32 %v14840_v41, %v14781_v4  ;;  %v9153_v14 = vor.u32 %v10572_v51, %v9150_v45 }
 0x539   : > { %v9124_v28 = vld [vmem:[%s17083_s11 + $0xa0] sm:$0xf]  ;;  %v4144_v25 = vld [vmem:[#allocation3 + $0x68] sm:$0x11]  ;;  %v4150_v6 = vld [vmem:[#allocation3 + $0x78] sm:$0x11]  ;;  %4948 = vmatpush.bf16.msrb.mxu1 %v9161_v0  ;;  %v9061_v24 = vor.u32 %v10551_v48, %v9060_v56 }
 0x53a   : > { %4863 = vmatpush.bf16.msra.mxu2 %v9077_v22  ;;  %4892 = vmatpush.bf16.msra.mxu3 %v9141_v26  ;;  %v10554_v49 = vld [vmem:[%s17083_s11 + $0x44] sm:$0xf]  ;;  %v9078_v29 = vld [vmem:[%s17083_s11 + $0x48] sm:$0xf0]  ;;  %v4145_v53 = vsel %vm14399_vm10, %v4069_v33, %v4144_v25  ;;  %4149 = vst [vmem:[#allocation3 + $0x70] sm:$0xff] %v14851_v30  ;;  %v4151_v57 = vsel %vm14399_vm10, %v4077_v18, %v4150_v6  ;;  %v4079_v19 = vshrl.u32 %v4021_v39, 16 }
 0x53b   : > { %v10567_v34 = vld [vmem:[%s17083_s11 + $0xa4] sm:$0xf0]  ;;  %4146 = vst [vmem:[#allocation3 + $0x68] sm:$0x11] %v4145_v53  ;;  %v9081_v35 = vor.u32 %v10554_v49, %v9078_v29  ;;  %v4292_v47 = vshrl.u32 %v14838_v46, 16  ;;  %v4082_v3 = vshll.u32 %v4021_v39, 16 }
 0x53c   : > { %4152 = vst [vmem:[#allocation3 + $0x78] sm:$0x11] %v4151_v57  ;;  %4920 = vmatpush.bf16.msrb.mxu0 %v9089_v59  ;;  %v14892_v31 = vrot.slane %v4079_v19, 7  ;;  %v4271_v17 = vrot.slane %v4270_v43, 4  ;;  %v9125_v15 = vor.u32 %v10567_v34, %v9124_v28  ;;  %v10570_v38 = vld [vmem:[%s17083_s11 + $0xc4] sm:$0xf] }
 0x53d   : > { %v9142_v4 = vld [vmem:[%s17083_s11 + $0xc8] sm:$0xf0]  ;;  %4557 = vmatmul.bf16.gmra.mxu2 %v4370_v2  ;;  %4586 = vmatmul.bf16.gmra.mxu3 %v4371_v52  ;;  %v4275_v21 = vrot.slane %v4273_v63, 5  ;;  %v4289_v44 = vrot.slane %v4287_v7, 5  ;;  %v4295_v22 = vshll.u32 %v14838_v46, 16  ;;  %v4306_v11 = vshrl.u32 %v14851_v30, 16 }
 0x53e   : > { %4864 = vmatpush.bf16.msra.mxu2 %v9069_v1  ;;  %4893 = vmatpush.bf16.msra.mxu3 %v9133_v32  ;;  %v4084_v62 = vor.u32 %v4082_v3, %v14892_v31  ;;  %v4309_v61 = vshll.u32 %v14851_v30, 16  ;;  %v9052_v26 = vld [vmem:[%s17083_s11 + $0x10] sm:$0xf]  ;;  %v10549_v5 = vld [vmem:[%s17083_s11 + $0x14] sm:$0xf0]  ;;  %v4285_v9 = vrot.slane %v4284_v60, 4  ;;  %v9145_v33 = vor.u32 %v10570_v38, %v9142_v4 }
 0x53f   : > { %4615 = vmatmul.bf16.gmra.mxu0 %v4370_v2  ;;  %4644 = vmatmul.bf16.gmra.mxu1 %v4371_v52  ;;  %v4294_v18 = vrot.slane %v4292_v47, 4  ;;  %v9116_v46 = vld [vmem:[%s17083_s11 + $0x90] sm:$0xf]  ;;  %v10565_v41 = vld [vmem:[%s17083_s11 + $0x94] sm:$0xf0]  ;;  %v9053_v0 = vor.u32 %v10549_v5, %v9052_v26  ;;  %v4297_v13 = vrot.slane %v4295_v22, 5 }
 0x540   : > { %4949 = vmatpush.bf16.msrb.mxu1 %v9153_v14  ;;  %4921 = vmatpush.bf16.msrb.mxu0 %v9081_v35  ;;  %v4154_v12 = vsel %vm14268_vm7, %v4084_v62, %v14293_v36  ;;  %v9117_v30 = vor.u32 %v10565_v41, %v9116_v46  ;;  %v10552_v39 = vld [vmem:[%s17083_s11 + $0x34] sm:$0xf]  ;;  %v9070_v27 = vld [vmem:[%s17083_s11 + $0x38] sm:$0xf0]  ;;  %v4276_v36 = vsel %vm11796_vm15, %v4271_v17, %v4275_v21  ;;  %v4308_v45 = vrot.slane %v4306_v11, 4 }
 0x541   : > { %v9073_v8 = vor.u32 %v10552_v39, %v9070_v27  ;;  %v10568_v50 = vld [vmem:[%s17083_s11 + $0xb4] sm:$0xf]  ;;  %4155 = vst [vmem:[#allocation3 + $0x80] sm:$0xff] %v4154_v12  ;;  %v4290_v51 = vsel %vm11796_vm15, %v4285_v9, %v4289_v44  ;;  %v4311_v43 = vrot.slane %v4309_v61, 5  ;;  %v9134_v63 = vld [vmem:[%s17083_s11 + $0xb8] sm:$0xf0]  ;;  %v4360_v29 = vunpack.c.l.b16 %v4276_v36 }
 0x542   : > { %4865 = vmatpush.bf16.msra.mxu2 %v9061_v24  ;;  %4894 = vmatpush.bf16.msra.mxu3 %v9125_v15  ;;  %v14919_v37 = vld [vmem:[#allocation3 + $0x68] sm:$0x11]  ;;  %v10550_v1 = vld [vmem:[%s17083_s11 + $0x24] sm:$0xf]  ;;  %v9137_v28 = vor.u32 %v10568_v50, %v9134_v63  ;;  %v9062_v59 = vld [vmem:[%s17083_s11 + $0x28] sm:$0xf0]  ;;  %v4362_v53 = vunpack.c.l.b16 %v4290_v51  ;;  %v4361_v57 = vunpack.c.h.b16 %v4276_v36  ;;  %v4363_v2 = vunpack.c.h.b16 %v4290_v51 }
 0x543   : > { %v14927_v54 = vld [vmem:[#allocation3 + $0x78] sm:$0x11]  ;;  %v4301_v56 = vshll.u32 %v14919_v37, 16  ;;  %v9065_v25 = vor.u32 %v10550_v1, %v9062_v59  ;;  %v10566_v6 = vld [vmem:[%s17083_s11 + $0xa4] sm:$0xf]  ;;  %v4298_v52 = vor.u32 %v4297_v13, %v4294_v18  ;;  %v4312_v60 = vor.u32 %v4311_v43, %v4308_v45 }
 0x544   : > { %4950 = vmatpush.bf16.msrb.mxu1 %v9145_v33  ;;  %v4315_v48 = vshll.u32 %v14927_v54, 16  ;;  %4922 = vmatpush.bf16.msrb.mxu0 %v9073_v8  ;;  %v9126_v32 = vld [vmem:[%s17083_s11 + $0xa8] sm:$0xf0]  ;;  %v9044_v49 = vld [vmem:[%s17083_s11] sm:$0xf]  ;;  %v4372_v62 = vpack.c.b16 %v4362_v53, %v4360_v29  ;;  %v4373_v11 = vpack.c.b16 %v4363_v2, %v4361_v57  ;;  %v5002_v12 = vrot.slane %v14434_v58, 5 }
 0x545   : > { %v10547_v7 = vld [vmem:[%s17083_s11 + $0x4] sm:$0xf0]  ;;  %v9108_v34 = vld [vmem:[%s17083_s11 + $0x80] sm:$0xf]  ;;  %v10548_v35 = vld [vmem:[%s17083_s11 + $0x14] sm:$0xf]  ;;  %v9129_v3 = vor.u32 %v10566_v6, %v9126_v32 }
 0x546   : > { %4866 = vmatpush.bf16.msra.mxu2 %v9053_v0  ;;  %4895 = vmatpush.bf16.msra.mxu3 %v9117_v30  ;;  %v10563_v19 = vld [vmem:[%s17083_s11 + $0x84] sm:$0xf0]  ;;  %v9045_v14 = vor.u32 %v10547_v7, %v9044_v49  ;;  %v9054_v47 = vld [vmem:[%s17083_s11 + $0x18] sm:$0xf0]  ;;  %v10564_v15 = vld [vmem:[%s17083_s11 + $0x94] sm:$0xf] }
 0x547   : > { %v9109_v17 = vor.u32 %v10563_v19, %v9108_v34  ;;  %v9057_v24 = vor.u32 %v10548_v35, %v9054_v47  ;;  %v9118_v38 = vld [vmem:[%s17083_s11 + $0x98] sm:$0xf0]  ;;  %v10546_v4 = vld [vmem:[%s17083_s11 + $0x4] sm:$0xf]  ;;  %v9046_v21 = vld [vmem:[%s17083_s11 + $0x8] sm:$0xf0] }
 0x548   : > { %4951 = vmatpush.bf16.msrb.mxu1 %v9137_v28  ;;  %4923 = vmatpush.bf16.msrb.mxu0 %v9065_v25  ;;  %v4303_v44 = vrot.slane %v4301_v56, 5  ;;  %v4317_v22 = vrot.slane %v4315_v48, 5  ;;  %v4299_v61 = vrot.slane %v4298_v52, 4  ;;  %v4313_v26 = vrot.slane %v4312_v60, 4  ;;  %v10562_v33 = vld [vmem:[%s17083_s11 + $0x84] sm:$0xf] }
 0x549   : > { %v9121_v5 = vor.u32 %v10564_v15, %v9118_v38  ;;  %v9049_v9 = vor.u32 %v10546_v4, %v9046_v21  ;;  %v9110_v18 = vld [vmem:[%s17083_s11 + $0x88] sm:$0xf0]  ;;  %v9268_v0 = vld [vmem:[%s17083_s11 + $0x270] sm:$0xf]  ;;  %v10625_v30 = vld [vmem:[%s17083_s11 + $0x274] sm:$0xf0] }
 0x54a   : > { %4867 = vmatpush.bf16.msra.mxu2 %v9045_v14  ;;  %4896 = vmatpush.bf16.msra.mxu3 %v9109_v17  ;;  %v14991_v46 = vsel %vm11796_vm15, %v4299_v61, %v4303_v44  ;;  %v14995_v41 = vsel %vm11796_vm15, %v4313_v26, %v4317_v22  ;;  %v9332_v39 = vld [vmem:[%s17083_s11 + $0x2f0] sm:$0xf]  ;;  %v9113_v27 = vor.u32 %v10562_v33, %v9110_v18  ;;  %v10641_v58 = vld [vmem:[%s17083_s11 + $0x2f4] sm:$0xf0]  ;;  %v9260_v8 = vld [vmem:[%s17083_s11 + $0x260] sm:$0xf] }
 0x54b   : > { %v9269_v13 = vor.u32 %v10625_v30, %v9268_v0  ;;  %v10623_v50 = vld [vmem:[%s17083_s11 + $0x264] sm:$0xf0]  ;;  %v4364_v36 = vunpack.c.l.b16 %v14991_v46  ;;  %v4366_v51 = vunpack.c.l.b16 %v14995_v41  ;;  %v4365_v45 = vunpack.c.h.b16 %v14991_v46  ;;  %v9324_v63 = vld [vmem:[%s17083_s11 + $0x2e0] sm:$0xf]  ;;  %v4976_v56 = vld [vmem:[#allocation3] sm:$0xee] }
 0x54c   : > { %4952 = vmatpush.bf16.msrb.mxu1 %v9129_v3  ;;  %4924 = vmatpush.bf16.msrb.mxu0 %v9057_v24  ;;  %v9333_v43 = vor.u32 %v10641_v58, %v9332_v39  ;;  %v10639_v1 = vld [vmem:[%s17083_s11 + $0x2e4] sm:$0xf0]  ;;  %v9261_v48 = vor.u32 %v10623_v50, %v9260_v8  ;;  %v4977_v59 = vld [vmem:[#allocation3 + $0x10] sm:$0xee]  ;;  %v9170_v25 = vrot.slane %v4976_v56, 9  ;;  %v5006_v6 = vrot.slane %v14573_v20, 5 }
 0x54d   : > { %4562 = vmatmul.bf16.gmra.mxu2 %v4372_v62  ;;  %4591 = vmatmul.bf16.gmra.mxu3 %v4373_v11  ;;  %v9325_v28 = vor.u32 %v10639_v1, %v9324_v63  ;;  %v4978_v32 = vld [vmem:[#allocation3 + $0x20] sm:$0xee]  ;;  %v9171_v49 = vrot.slane %v4977_v59, 9  ;;  %v4979_v29 = vld [vmem:[#allocation3 + $0x30] sm:$0xee]  ;;  %v5010_v57 = vrot.slane %v14705_v40, 5  ;;  %v4367_v34 = vunpack.c.h.b16 %v14995_v41 }
 0x54e   : > { %5257 = vmatpush.bf16.msrb.mxu2 %v9269_v13  ;;  %5286 = vmatpush.bf16.msrb.mxu3 %v9333_v43  ;;  %v9172_v53 = vrot.slane %v4978_v32, 9  ;;  %v5014_v7 = vrot.slane %v14707_v23, 5  ;;  %v5003_v2 = vsel %vm12094_vm12, %v9170_v25, %v5002_v12  ;;  %v9173_v52 = vrot.slane %v4979_v29, 9  ;;  %v4980_v60 = vld [vmem:[#allocation3 + $0x40] sm:$0xee] }
 0x54f   : > { %4620 = vmatmul.bf16.gmra.mxu0 %v4372_v62  ;;  %4649 = vmatmul.bf16.gmra.mxu1 %v4373_v11  ;;  %v5018_v14 = vrot.slane %v14817_v16, 5  ;;  %v5007_v20 = vsel %vm12094_vm12, %v9171_v49, %v5006_v6  ;;  %v5065_v35 = vunpack.c.l.b16 %v5003_v2  ;;  %v5066_v47 = vunpack.c.h.b16 %v5003_v2  ;;  %v4981_v3 = vld [vmem:[#allocation3 + $0x50] sm:$0xee]  ;;  %v4982_v38 = vld [vmem:[#allocation3 + $0x60] sm:$0xee] }
 0x550   : > { %4953 = vmatpush.bf16.msrb.mxu1 %v9121_v5  ;;  %4925 = vmatpush.bf16.msrb.mxu0 %v9049_v9  ;;  %v5011_v40 = vsel %vm12094_vm12, %v9172_v53, %v5010_v57  ;;  %v5067_v23 = vunpack.c.l.b16 %v5007_v20  ;;  %v5068_v17 = vunpack.c.h.b16 %v5007_v20  ;;  %v5015_v24 = vsel %vm12094_vm12, %v9173_v52, %v5014_v7  ;;  %v4983_v26 = vld [vmem:[#allocation3 + $0x70] sm:$0xee]  ;;  %v10619_v25 = vld [vmem:[%s17083_s11 + $0x244] sm:$0xf0]  ;;  %v10538_v52 = vld [vmem:[#allocation3 + $0x4] sm:$0xf] }
 0x551   : > { %v5069_v15 = vunpack.c.l.b16 %v5011_v40  ;;  %v5071_v4 = vunpack.c.l.b16 %v5015_v24  ;;  %v5070_v16 = vunpack.c.h.b16 %v5011_v40  ;;  %v5072_v21 = vunpack.c.h.b16 %v5015_v24  ;;  %v9244_v59 = vld [vmem:[%s17083_s11 + $0x240] sm:$0xf]  ;;  %v10635_v53 = vld [vmem:[%s17083_s11 + $0x2c4] sm:$0xf0]  ;;  %v10617_v40 = vld [vmem:[%s17083_s11 + $0x234] sm:$0xf0] }
 0x552   : > { %5258 = vmatpush.bf16.msrb.mxu2 %v9261_v48  ;;  %5287 = vmatpush.bf16.msrb.mxu3 %v9325_v28  ;;  %v9174_v44 = vrot.slane %v4980_v60, 9  ;;  %v15038_v22 = vpack.c.b16 %v5067_v23, %v5065_v35  ;;  %v15040_v62 = vpack.c.b16 %v5068_v17, %v5066_v47  ;;  %v9175_v11 = vrot.slane %v4981_v3, 9  ;;  %v10637_v28 = vld [vmem:[%s17083_s11 + $0x2d4] sm:$0xf0]  ;;  %v9308_v29 = vld [vmem:[%s17083_s11 + $0x2c0] sm:$0xf] }
 0x553   : > { %v5022_v61 = vrot.slane %v14853_v10, 5  ;;  %v15043_v5 = vpack.c.b16 %v5071_v4, %v5069_v15  ;;  %v15045_v9 = vpack.c.b16 %v5072_v21, %v5070_v16  ;;  %v9176_v18 = vrot.slane %v4982_v38, 9  ;;  %v10539_v2 = vld [vmem:[#allocation3 + $0xc] sm:$0xf0]  ;;  %v9014_v60 = vld [vmem:[#allocation3 + $0x10] sm:$0xf0] }
 0x554   : > { %4954 = vmatpush.bf16.msrb.mxu1 %v9113_v27  ;;  %v5019_v33 = vsel %vm12094_vm12, %v9174_v44, %v5018_v14  ;;  %v5026_v0 = vrot.slane %v14919_v37, 5  ;;  %v9177_v27 = vrot.slane %v4983_v26, 9  ;;  %v5030_v10 = vrot.slane %v14927_v54, 5  ;;  %v9252_v54 = vld [vmem:[%s17083_s11 + $0x250] sm:$0xf] }
 0x555   : > { %v5023_v46 = vsel %vm12094_vm12, %v9175_v11, %v5022_v61  ;;  %v5073_v41 = vunpack.c.l.b16 %v5019_v33  ;;  %v5074_v12 = vunpack.c.h.b16 %v5019_v33  ;;  %v4374_v13 = vpack.c.b16 %v4366_v51, %v4364_v36  ;;  %v10621_v36 = vld [vmem:[%s17083_s11 + $0x254] sm:$0xf0]  ;;  %v9316_v51 = vld [vmem:[%s17083_s11 + $0x2d0] sm:$0xf]  ;;  %v10624_v24 = vld [vmem:[%s17083_s11 + $0x274] sm:$0xf] }
 0x556   : > { %v5075_v30 = vunpack.c.l.b16 %v5023_v46  ;;  %v5076_v39 = vunpack.c.h.b16 %v5023_v46  ;;  %v4375_v58 = vpack.c.b16 %v4367_v34, %v4365_v45  ;;  %v5027_v8 = vsel %vm12094_vm12, %v9176_v18, %v5026_v0  ;;  %v9012_v34 = vld [vmem:[#allocation3] sm:$0xf]  ;;  %v4156_v23 = vld [vmem:[#allocation3 + $0x88] sm:$0x11]  ;;  %v10640_v16 = vld [vmem:[%s17083_s11 + $0x2f4] sm:$0xf] }
 0x557   : > { %v5031_v63 = vsel %vm12094_vm12, %v9177_v27, %v5030_v10  ;;  %v5077_v1 = vunpack.c.l.b16 %v5027_v8  ;;  %v5078_v56 = vunpack.c.h.b16 %v5027_v8  ;;  %v9253_v45 = vor.u32 %v10621_v36, %v9252_v54  ;;  %v9236_v47 = vld [vmem:[%s17083_s11 + $0x230] sm:$0xf]  ;;  %v9270_v15 = vld [vmem:[%s17083_s11 + $0x278] sm:$0xf0]  ;;  %v10622_v44 = vld [vmem:[%s17083_s11 + $0x264] sm:$0xf] }
 0x558   : > { %v15055_v50 = vpack.c.b16 %v5075_v30, %v5073_v41  ;;  %v15057_v43 = vpack.c.b16 %v5076_v39, %v5074_v12  ;;  %v5079_v37 = vunpack.c.l.b16 %v5031_v63  ;;  %v5080_v48 = vunpack.c.h.b16 %v5031_v63  ;;  %v9300_v3 = vld [vmem:[%s17083_s11 + $0x2b0] sm:$0xf]  ;;  %v9334_v21 = vld [vmem:[%s17083_s11 + $0x2f8] sm:$0xf0]  ;;  %v9262_v61 = vld [vmem:[%s17083_s11 + $0x268] sm:$0xf0] }
 0x559   : > { %v9317_v49 = vor.u32 %v10637_v28, %v9316_v51  ;;  %5259 = vmatpush.bf16.msrb.mxu2 %v9253_v45  ;;  %v9245_v57 = vor.u32 %v10619_v25, %v9244_v59  ;;  %v9309_v7 = vor.u32 %v10635_v53, %v9308_v29  ;;  %v9013_v14 = vor.u32 %v10539_v2, %v9012_v34  ;;  %v10638_v26 = vld [vmem:[%s17083_s11 + $0x2e4] sm:$0xf]  ;;  %v9326_v33 = vld [vmem:[%s17083_s11 + $0x2e8] sm:$0xf0]  ;;  %v9228_v46 = vld [vmem:[%s17083_s11 + $0x220] sm:$0xf] }
 0x55a   : > { %v15079_v6 = vpack.c.b16 %v5079_v37, %v5077_v1  ;;  %v15081_v32 = vpack.c.b16 %v5080_v48, %v5078_v56  ;;  %v9017_v20 = vor.u32 %v10538_v52, %v9014_v60  ;;  %v4085_v35 = vrot.slane %v14892_v31, 4  ;;  %v10633_v31 = vld [vmem:[%s17083_s11 + $0x2b4] sm:$0xf0]  ;;  %v10615_v41 = vld [vmem:[%s17083_s11 + $0x224] sm:$0xf0] }
 0x55b   : > { %5288 = vmatpush.bf16.msrb.mxu3 %v9317_v49  ;;  %v9237_v17 = vor.u32 %v10617_v40, %v9236_v47  ;;  %v9301_v38 = vor.u32 %v10633_v31, %v9300_v3  ;;  %v9273_v4 = vor.u32 %v10624_v24, %v9270_v15  ;;  %v9337_v11 = vor.u32 %v10640_v16, %v9334_v21  ;;  %v9292_v12 = vld [vmem:[%s17083_s11 + $0x2a0] sm:$0xf]  ;;  %v10631_v39 = vld [vmem:[%s17083_s11 + $0x2a4] sm:$0xf0]  ;;  %v10620_v27 = vld [vmem:[%s17083_s11 + $0x254] sm:$0xf] }
 0x55c   : > { %v9265_v18 = vor.u32 %v10622_v44, %v9262_v61  ;;  %v9329_v0 = vor.u32 %v10638_v26, %v9326_v33  ;;  %v9229_v30 = vor.u32 %v10615_v41, %v9228_v46  ;;  %v9254_v10 = vld [vmem:[%s17083_s11 + $0x258] sm:$0xf0]  ;;  %v10636_v8 = vld [vmem:[%s17083_s11 + $0x2d4] sm:$0xf]  ;;  %v9020_v1 = vld [vmem:[#allocation3 + $0x20] sm:$0xf] }
 0x55d   : > { %4567 = vmatmul.bf16.gmra.mxu2 %v4374_v13  ;;  %4596 = vmatmul.bf16.gmra.mxu3 %v4375_v58  ;;  %v9318_v63 = vld [vmem:[%s17083_s11 + $0x2d8] sm:$0xf0]  ;;  %v10541_v37 = vld [vmem:[#allocation3 + $0x2c] sm:$0xf0]  ;;  %v10540_v56 = vld [vmem:[#allocation3 + $0x24] sm:$0xf]  ;;  %v9257_v54 = vor.u32 %v10620_v27, %v9254_v10 }
 0x55e   : > { %5260 = vmatpush.bf16.msrb.mxu2 %v9245_v57  ;;  %5315 = vmatpush.bf16.msra.mxu0 %v9273_v4  ;;  %v9022_v48 = vld [vmem:[#allocation3 + $0x30] sm:$0xf0]  ;;  %v5763_v36 = vld [vmem:[#allocation3 + $0x18] sm:$0x11]  ;;  %v9321_v55 = vor.u32 %v10636_v8, %v9318_v63  ;;  %v6248_v49 = vld [vmem:[#allocation3 + $0x20] sm:$0xee]  ;;  %v9021_v53 = vor.u32 %v10541_v37, %v9020_v1 }
 0x55f   : > { %4625 = vmatmul.bf16.gmra.mxu0 %v4374_v13  ;;  %4654 = vmatmul.bf16.gmra.mxu1 %v4375_v58  ;;  %v4157_v13 = vsel %vm14399_vm10, %v4085_v35, %v4156_v23  ;;  %v9293_v58 = vor.u32 %v10631_v39, %v9292_v12  ;;  %v10618_v51 = vld [vmem:[%s17083_s11 + $0x244] sm:$0xf]  ;;  %v9246_v45 = vld [vmem:[%s17083_s11 + $0x248] sm:$0xf0]  ;;  %v5765_v29 = vld [vmem:[#allocation3 + $0x28] sm:$0x11]  ;;  %v9025_v57 = vor.u32 %v10540_v56, %v9022_v48 }
 0x560   : > { %5289 = vmatpush.bf16.msrb.mxu3 %v9309_v7  ;;  %5344 = vmatpush.bf16.msra.mxu1 %v9337_v11  ;;  %4158 = vst [vmem:[#allocation3 + $0x88] sm:$0x11] %v4157_v13  ;;  %v6247_v28 = vld [vmem:[#allocation3 + $0x10] sm:$0xee]  ;;  %v9310_v25 = vld [vmem:[%s17083_s11 + $0x2c8] sm:$0xf0]  ;;  %v9249_v7 = vor.u32 %v10618_v51, %v9246_v45 }
 0x561   : > { %v10634_v59 = vld [vmem:[%s17083_s11 + $0x2c4] sm:$0xf]  ;;  %v9690_v2 = vrot.slane %v6247_v28, 9  ;;  %v6273_v52 = vrot.slane %v5763_v36, 5  ;;  %v9691_v60 = vrot.slane %v6248_v49, 9 }
 0x562   : > { %5261 = vmatpush.bf16.msrb.mxu2 %v9237_v17  ;;  %5316 = vmatpush.bf16.msra.mxu0 %v9265_v18  ;;  %v9313_v34 = vor.u32 %v10634_v59, %v9310_v25  ;;  %v9220_v35 = vld [vmem:[%s17083_s11 + $0x210] sm:$0xf]  ;;  %v10613_v47 = vld [vmem:[%s17083_s11 + $0x214] sm:$0xf0]  ;;  %v6249_v31 = vld [vmem:[#allocation3 + $0x30] sm:$0xee] }
 0x563   : > { %v9284_v40 = vld [vmem:[%s17083_s11 + $0x290] sm:$0xf]  ;;  %v9221_v24 = vor.u32 %v10613_v47, %v9220_v35  ;;  %v10629_v15 = vld [vmem:[%s17083_s11 + $0x294] sm:$0xf0]  ;;  %v9238_v4 = vld [vmem:[%s17083_s11 + $0x238] sm:$0xf0] }
 0x564   : > { %5290 = vmatpush.bf16.msrb.mxu3 %v9301_v38  ;;  %5345 = vmatpush.bf16.msra.mxu1 %v9329_v0  ;;  %v10616_v38 = vld [vmem:[%s17083_s11 + $0x234] sm:$0xf]  ;;  %v9285_v21 = vor.u32 %v10629_v15, %v9284_v40  ;;  %v9302_v61 = vld [vmem:[%s17083_s11 + $0x2b8] sm:$0xf0]  ;;  %v10614_v26 = vld [vmem:[%s17083_s11 + $0x224] sm:$0xf] }
 0x565   : > { %v9241_v44 = vor.u32 %v10616_v38, %v9238_v4  ;;  %v10632_v11 = vld [vmem:[%s17083_s11 + $0x2b4] sm:$0xf]  ;;  %v5767_v33 = vld [vmem:[#allocation3 + $0x38] sm:$0x11]  ;;  %v10630_v0 = vld [vmem:[%s17083_s11 + $0x2a4] sm:$0xf] }
 0x566   : > { %5262 = vmatpush.bf16.msrb.mxu2 %v9229_v30  ;;  %5317 = vmatpush.bf16.msra.mxu0 %v9257_v54  ;;  %v6250_v46 = vld [vmem:[#allocation3 + $0x40] sm:$0xee]  ;;  %v9305_v41 = vor.u32 %v10632_v11, %v9302_v61  ;;  %v9230_v12 = vld [vmem:[%s17083_s11 + $0x228] sm:$0xf0]  ;;  %v5769_v39 = vld [vmem:[#allocation3 + $0x48] sm:$0x11] }
 0x567   : > { %v9294_v30 = vld [vmem:[%s17083_s11 + $0x2a8] sm:$0xf0]  ;;  %v6251_v13 = vld [vmem:[#allocation3 + $0x50] sm:$0xee]  ;;  %v10611_v8 = vld [vmem:[%s17083_s11 + $0x204] sm:$0xf0]  ;;  %v9233_v37 = vor.u32 %v10614_v26, %v9230_v12 }
 0x568   : > { %5291 = vmatpush.bf16.msrb.mxu3 %v9293_v58  ;;  %5346 = vmatpush.bf16.msra.mxu1 %v9321_v55  ;;  %v5771_v27 = vld [vmem:[#allocation3 + $0x58] sm:$0x11]  ;;  %v9212_v58 = vld [vmem:[%s17083_s11 + $0x200] sm:$0xf]  ;;  %v9297_v56 = vor.u32 %v10630_v0, %v9294_v30  ;;  %v10612_v36 = vld [vmem:[%s17083_s11 + $0x214] sm:$0xf] }
 0x569   : > { %v9276_v63 = vld [vmem:[%s17083_s11 + $0x280] sm:$0xf]  ;;  %v9213_v48 = vor.u32 %v10611_v8, %v9212_v58  ;;  %v10627_v54 = vld [vmem:[%s17083_s11 + $0x284] sm:$0xf0]  ;;  %v9692_v55 = vrot.slane %v6249_v31, 9 }
 0x56a   : > { %5318 = vmatpush.bf16.msra.mxu0 %v9249_v7  ;;  %5263 = vmatpush.bf16.msrb.mxu2 %v9221_v24  ;;  %v9277_v51 = vor.u32 %v10627_v54, %v9276_v63  ;;  %v9222_v45 = vld [vmem:[%s17083_s11 + $0x218] sm:$0xf0]  ;;  %v10628_v28 = vld [vmem:[%s17083_s11 + $0x294] sm:$0xf]  ;;  %v9028_v25 = vld [vmem:[#allocation3 + $0x40] sm:$0xf] }
 0x56b   : > { %v9286_v59 = vld [vmem:[%s17083_s11 + $0x298] sm:$0xf0]  ;;  %v10543_v49 = vld [vmem:[#allocation3 + $0x4c] sm:$0xf0]  ;;  %v6252_v7 = vld [vmem:[#allocation3 + $0x60] sm:$0xee] }
 0x56c   : > { %5347 = vmatpush.bf16.msra.mxu1 %v9313_v34  ;;  %5292 = vmatpush.bf16.msrb.mxu3 %v9285_v21  ;;  %v9694_v34 = vrot.slane %v6251_v13, 9  ;;  %v5773_v35 = vld [vmem:[#allocation3 + $0x68] sm:$0x11]  ;;  %v6253_v31 = vld [vmem:[#allocation3 + $0x70] sm:$0xee]  ;;  %v9695_v38 = vrot.slane %v6252_v7, 9  ;;  %v9029_v4 = vor.u32 %v10543_v49, %v9028_v25 }
 0x56d   : > { %4868 = vmatmul.bf16.vlgmr.msra.gmra.mxu2 %v9013_v14  ;;  %4897 = vmatmul.bf16.vlgmr.msra.gmra.mxu3 %v9017_v20  ;;  %v5775_v21 = vld [vmem:[#allocation3 + $0x78] sm:$0x11]  ;;  %v10626_v0 = vld [vmem:[%s17083_s11 + $0x284] sm:$0xf]  ;;  %v5777_v13 = vld [vmem:[#allocation3 + $0x88] sm:$0x11] }
 0x56e   : > { %5319 = vmatpush.bf16.msra.mxu0 %v9241_v44  ;;  %5264 = vmatpush.bf16.msrb.mxu2 %v9213_v48  ;;  %v6293_v44 = vrot.slane %v5773_v35, 5  ;;  %v9214_v12 = vld [vmem:[%s17083_s11 + $0x208] sm:$0xf0]  ;;  %v6297_v63 = vrot.slane %v5775_v21, 5  ;;  %v10665_v48 = vld [vmem:[%s17083_s11 + $0x374] sm:$0xf0] }
 0x56f   : > { %4926 = vmatmul.bf16.vlgmr.msrb.gmra.mxu0 %v9013_v14  ;;  %4955 = vmatmul.bf16.vlgmr.msrb.gmra.mxu1 %v9017_v20  ;;  %v6277_v14 = vrot.slane %v5765_v29, 5  ;;  %v6274_v20 = vsel %vm12094_vm12, %v9690_v2, %v6273_v52  ;;  %v6281_v29 = vrot.slane %v5767_v33, 5  ;;  %v6289_v2 = vrot.slane %v5771_v27, 5  ;;  %v10542_v52 = vld [vmem:[#allocation3 + $0x44] sm:$0xf] }
 0x570   : > { %v6336_v23 = vunpack.c.l.b16 %v6274_v20  ;;  %v6337_v17 = vunpack.c.h.b16 %v6274_v20  ;;  %5348 = vmatpush.bf16.msra.mxu1 %v9305_v41  ;;  %5293 = vmatpush.bf16.msrb.mxu3 %v9277_v51  ;;  %v9289_v20 = vor.u32 %v10628_v28, %v9286_v59  ;;  %v10610_v41 = vld [vmem:[%s17083_s11 + $0x204] sm:$0xf]  ;;  %v6294_v30 = vsel %vm12094_vm12, %v9695_v38, %v6293_v44  ;;  %v9278_v27 = vld [vmem:[%s17083_s11 + $0x288] sm:$0xf0]  ;;  %v9524_v54 = vld [vmem:[%s17083_s11 + $0x3f0] sm:$0xf] }
 0x571   : > { %v6278_v3 = vsel %vm12094_vm12, %v9691_v60, %v6277_v14  ;;  %v9030_v60 = vld [vmem:[#allocation3 + $0x50] sm:$0xf0]  ;;  %v9225_v14 = vor.u32 %v10612_v36, %v9222_v45  ;;  %v6282_v47 = vsel %vm12094_vm12, %v9692_v55, %v6281_v29  ;;  %v6346_v58 = vunpack.c.l.b16 %v6294_v30  ;;  %v10681_v55 = vld [vmem:[%s17083_s11 + $0x3f4] sm:$0xf0]  ;;  %v9444_v38 = vld [vmem:[%s17083_s11 + $0x350] sm:$0xf] }
 0x572   : > { %v6338_v16 = vunpack.c.l.b16 %v6278_v3  ;;  %v6339_v18 = vunpack.c.h.b16 %v6278_v3  ;;  %5320 = vmatpush.bf16.msra.mxu0 %v9233_v37  ;;  %v6340_v3 = vunpack.c.l.b16 %v6282_v47  ;;  %v6347_v8 = vunpack.c.h.b16 %v6294_v30  ;;  %v10677_v44 = vld [vmem:[%s17083_s11 + $0x3d4] sm:$0xf0] }
 0x573   : > { %v9281_v37 = vor.u32 %v10626_v0, %v9278_v27  ;;  %v9525_v59 = vor.u32 %v10681_v55, %v9524_v54  ;;  %v6301_v49 = vrot.slane %v5777_v13, 5  ;;  %v7035_v30 = vld [vmem:[#allocation3 + $0x28] sm:$0x11]  ;;  %v7037_v27 = vld [vmem:[#allocation3 + $0x38] sm:$0x11] }
 0x574   : > { %v15204_v10 = vpack.c.b16 %v6338_v16, %v6336_v23  ;;  %v15215_v1 = vpack.c.b16 %v6339_v18, %v6337_v17  ;;  %5349 = vmatpush.bf16.msra.mxu1 %v9297_v56  ;;  %v6341_v23 = vunpack.c.h.b16 %v6282_v47  ;;  %v6290_v17 = vsel %vm12094_vm12, %v9694_v34, %v6289_v2  ;;  %v6254_v18 = vld [vmem:[#allocation3 + $0x80] sm:$0xee]  ;;  %v9452_v2 = vld [vmem:[%s17083_s11 + $0x360] sm:$0xf]  ;;  %v7039_v55 = vld [vmem:[#allocation3 + $0x48] sm:$0x11] }
 0x575   : > { %v9033_v16 = vor.u32 %v10542_v52, %v9030_v60  ;;  %v6344_v11 = vunpack.c.l.b16 %v6290_v17  ;;  %v6345_v33 = vunpack.c.h.b16 %v6290_v17  ;;  %v9460_v56 = vld [vmem:[%s17083_s11 + $0x370] sm:$0xf]  ;;  %v9697_v25 = vrot.slane %v6254_v18, 9  ;;  %5659 = vmatpush.bf16.msra.mxu3 %v9525_v59  ;;  %v10663_v52 = vld [vmem:[%s17083_s11 + $0x364] sm:$0xf0] }
 0x576   : > { %5321 = vmatpush.bf16.msra.mxu0 %v9225_v14  ;;  %v9461_v36 = vor.u32 %v10665_v48, %v9460_v56  ;;  %v9516_v60 = vld [vmem:[%s17083_s11 + $0x3e0] sm:$0xf]  ;;  %v9453_v14 = vor.u32 %v10663_v52, %v9452_v2  ;;  %v10544_v17 = vld [vmem:[#allocation3 + $0x64] sm:$0xf]  ;;  %v10659_v18 = vld [vmem:[%s17083_s11 + $0x344] sm:$0xf0] }
 0x577   : > { %v15268_v51 = vpack.c.b16 %v6346_v58, %v6344_v11  ;;  %v15270_v45 = vpack.c.b16 %v6347_v8, %v6345_v33  ;;  %v9436_v33 = vld [vmem:[%s17083_s11 + $0x340] sm:$0xf]  ;;  %v7545_v8 = vrot.slane %v7035_v30, 5  ;;  %v7549_v48 = vrot.slane %v7037_v27, 5  ;;  %v7521_v59 = vld [vmem:[#allocation3 + $0x40] sm:$0xee] }
 0x578   : > { %5350 = vmatpush.bf16.msra.mxu1 %v9289_v20  ;;  %5630 = vmatpush.bf16.msra.mxu2 %v9461_v36  ;;  %v10679_v20 = vld [vmem:[%s17083_s11 + $0x3e4] sm:$0xf0]  ;;  %v7520_v13 = vld [vmem:[#allocation3 + $0x30] sm:$0xee]  ;;  %v10664_v52 = vld [vmem:[%s17083_s11 + $0x374] sm:$0xf] }
 0x579   : > { %v10211_v56 = vrot.slane %v7520_v13, 9  ;;  %v10678_v30 = vld [vmem:[%s17083_s11 + $0x3e4] sm:$0xf] }
 0x57a   : > { %v7524_v13 = vld [vmem:[#allocation3 + $0x70] sm:$0xee] }
 0x57c   : > { %5351 = vmatpush.bf16.msra.mxu1 %v9281_v37  ;;  %5631 = vmatpush.bf16.msra.mxu2 %v9453_v14 }
 0x57d   : > { %4873 = vmatmul.bf16.gmra.mxu2 %v9021_v53  ;;  %4902 = vmatmul.bf16.gmra.mxu3 %v9025_v57 }
 0x57f   : > { %4931 = vmatmul.bf16.gmra.mxu0 %v9021_v53  ;;  %4960 = vmatmul.bf16.gmra.mxu1 %v9025_v57  ;;  %v9693_v53 = vrot.slane %v6250_v46, 9  ;;  %v6285_v57 = vrot.slane %v5769_v39, 5  ;;  %v9696_v46 = vrot.slane %v6253_v31, 9  ;;  %v9217_v39 = vor.u32 %v10610_v41, %v9214_v12  ;;  %v9038_v31 = vld [vmem:[#allocation3 + $0x70] sm:$0xf0] }
 0x580   : > { %v9437_v41 = vor.u32 %v10659_v18, %v9436_v33  ;;  %v10675_v12 = vld [vmem:[%s17083_s11 + $0x3c4] sm:$0xf0] }
 0x581   : > { %v6286_v40 = vsel %vm12094_vm12, %v9693_v53, %v6285_v57  ;;  %5322 = vmatpush.bf16.msra.mxu0 %v9217_v39  ;;  %v6298_v28 = vsel %vm12094_vm12, %v9696_v46, %v6297_v63  ;;  %v6302_v57 = vsel %vm12094_vm12, %v9697_v25, %v6301_v49  ;;  %v9500_v46 = vld [vmem:[%s17083_s11 + $0x3c0] sm:$0xf]  ;;  %v7519_v39 = vld [vmem:[#allocation3 + $0x20] sm:$0xee]  ;;  %v10657_v49 = vld [vmem:[%s17083_s11 + $0x334] sm:$0xf0] }
 0x582   : > { %v6342_v24 = vunpack.c.l.b16 %v6286_v40  ;;  %v6343_v15 = vunpack.c.h.b16 %v6286_v40  ;;  %v6348_v29 = vunpack.c.l.b16 %v6298_v28  ;;  %v6349_v53 = vunpack.c.h.b16 %v6298_v28  ;;  %v9428_v25 = vld [vmem:[%s17083_s11 + $0x330] sm:$0xf] }
 0x583   : > { %v6350_v7 = vunpack.c.l.b16 %v6302_v57  ;;  %v6351_v34 = vunpack.c.h.b16 %v6302_v57  ;;  %v9517_v40 = vor.u32 %v10679_v20, %v9516_v60  ;;  %v9501_v0 = vor.u32 %v10675_v12, %v9500_v46  ;;  %v9462_v60 = vld [vmem:[%s17083_s11 + $0x378] sm:$0xf0]  ;;  %v7523_v46 = vld [vmem:[#allocation3 + $0x60] sm:$0xee]  ;;  %v10662_v12 = vld [vmem:[%s17083_s11 + $0x364] sm:$0xf] }
 0x584   : > { %v15238_v61 = vpack.c.b16 %v6342_v24, %v6340_v3  ;;  %v15240_v26 = vpack.c.b16 %v6343_v15, %v6341_v23  ;;  %v9036_v3 = vld [vmem:[#allocation3 + $0x60] sm:$0xf]  ;;  %v10545_v23 = vld [vmem:[#allocation3 + $0x6c] sm:$0xf0]  ;;  %v9041_v15 = vor.u32 %v10544_v17, %v9038_v31  ;;  %v10210_v58 = vrot.slane %v7519_v39, 9 }
 0x585   : > { %v15288_v35 = vpack.c.b16 %v6350_v7, %v6348_v29  ;;  %v15290_v47 = vpack.c.b16 %v6351_v34, %v6349_v53  ;;  %5660 = vmatpush.bf16.msra.mxu3 %v9517_v40  ;;  %v9037_v24 = vor.u32 %v10545_v23, %v9036_v3  ;;  %v7550_v28 = vsel %vm12094_vm12, %v10211_v56, %v7549_v48  ;;  %v9492_v29 = vld [vmem:[%s17083_s11 + $0x3b0] sm:$0xf]  ;;  %v7041_v53 = vld [vmem:[#allocation3 + $0x58] sm:$0x11]  ;;  %v10680_v23 = vld [vmem:[%s17083_s11 + $0x3f4] sm:$0xf] }
 0x586   : > { %v7546_v36 = vsel %vm12094_vm12, %v10210_v58, %v7545_v8  ;;  %v7610_v7 = vunpack.c.l.b16 %v7550_v28  ;;  %v7611_v2 = vunpack.c.h.b16 %v7550_v28  ;;  %v9465_v3 = vor.u32 %v10664_v52, %v9462_v60  ;;  %v9526_v17 = vld [vmem:[%s17083_s11 + $0x3f8] sm:$0xf0]  ;;  %v7522_v31 = vld [vmem:[#allocation3 + $0x50] sm:$0xee]  ;;  %v9518_v8 = vld [vmem:[%s17083_s11 + $0x3e8] sm:$0xf0] }
 0x587   : > { %v7608_v57 = vunpack.c.l.b16 %v7546_v36  ;;  %v7609_v34 = vunpack.c.h.b16 %v7546_v36  ;;  %v10213_v33 = vrot.slane %v7522_v31, 9  ;;  %v7557_v18 = vrot.slane %v7041_v53, 5  ;;  %v7043_v39 = vld [vmem:[#allocation3 + $0x68] sm:$0x11]  ;;  %v7045_v56 = vld [vmem:[#allocation3 + $0x78] sm:$0x11] }
 0x588   : > { %5688 = vmatpush.bf16.msrb.mxu0 %v9465_v3  ;;  %v7047_v48 = vld [vmem:[#allocation3 + $0x88] sm:$0x11]  ;;  %v7526_v28 = vld [vmem:[#allocation3 + $0x90] sm:$0xee]  ;;  %v10660_v53 = vld [vmem:[%s17083_s11 + $0x354] sm:$0xf] }
 0x589   : > { %v7558_v36 = vsel %vm12094_vm12, %v10213_v33, %v7557_v18  ;;  %v10214_v31 = vrot.slane %v7523_v46, 9  ;;  %v7569_v18 = vrot.slane %v7047_v48, 5  ;;  %v10658_v46 = vld [vmem:[%s17083_s11 + $0x344] sm:$0xf] }
 0x58a   : > { %v7615_v60 = vunpack.c.h.b16 %v7558_v36 }
 0x58d   : > { %4878 = vmatmul.bf16.gmra.mxu2 %v9029_v4  ;;  %4907 = vmatmul.bf16.gmra.mxu3 %v9033_v16 }
 0x58f   : > { %4936 = vmatmul.bf16.gmra.mxu0 %v9029_v4  ;;  %4965 = vmatmul.bf16.gmra.mxu1 %v9033_v16  ;;  %v10661_v4 = vld [vmem:[%s17083_s11 + $0x354] sm:$0xf0]  ;;  %v9508_v16 = vld [vmem:[%s17083_s11 + $0x3d0] sm:$0xf] }
 0x590   : > { %v9445_v21 = vor.u32 %v10661_v4, %v9444_v38  ;;  %v9509_v11 = vor.u32 %v10677_v44, %v9508_v16  ;;  %v15352_v38 = vpack.c.b16 %v7610_v7, %v7608_v57  ;;  %v15354_v4 = vpack.c.b16 %v7611_v2, %v7609_v34  ;;  %v9446_v2 = vld [vmem:[%s17083_s11 + $0x358] sm:$0xf0] }
 0x591   : > { %v10212_v16 = vrot.slane %v7521_v59, 9  ;;  %v9521_v59 = vor.u32 %v10678_v30, %v9518_v8  ;;  %v7614_v7 = vunpack.c.l.b16 %v7558_v36  ;;  %v9502_v36 = vld [vmem:[%s17083_s11 + $0x3c8] sm:$0xf0] }
 0x592   : > { %5632 = vmatpush.bf16.msra.mxu2 %v9445_v21  ;;  %5661 = vmatpush.bf16.msra.mxu3 %v9509_v11  ;;  %v7553_v21 = vrot.slane %v7039_v55, 5  ;;  %v7525_v55 = vld [vmem:[#allocation3 + $0x80] sm:$0xee] }
 0x593   : > { %v10216_v33 = vrot.slane %v7525_v55, 9 }
 0x594   : > { %v7554_v27 = vsel %vm12094_vm12, %v10212_v16, %v7553_v21  ;;  %v7561_v21 = vrot.slane %v7043_v39, 5  ;;  %v9438_v39 = vld [vmem:[%s17083_s11 + $0x348] sm:$0xf0] }
 0x595   : > { %v7612_v57 = vunpack.c.l.b16 %v7554_v27  ;;  %v7613_v52 = vunpack.c.h.b16 %v7554_v27  ;;  %v9441_v48 = vor.u32 %v10658_v46, %v9438_v39  ;;  %v9486_v39 = vld [vmem:[%s17083_s11 + $0x3a8] sm:$0xf0] }
 0x596   : > { %5633 = vmatpush.bf16.msra.mxu2 %v9437_v41  ;;  %5662 = vmatpush.bf16.msra.mxu3 %v9501_v0  ;;  %v9454_v0 = vld [vmem:[%s17083_s11 + $0x368] sm:$0xf0]  ;;  %v7562_v27 = vsel %vm12094_vm12, %v10214_v31, %v7561_v21 }
 0x597   : > { %v9457_v58 = vor.u32 %v10662_v12, %v9454_v0  ;;  %v15402_v16 = vpack.c.b16 %v7615_v60, %v7613_v52  ;;  %v10217_v12 = vrot.slane %v7526_v28, 9 }
 0x599   : > { %5689 = vmatpush.bf16.msrb.mxu0 %v9457_v58 }
 0x59d   : > { %4883 = vmatmul.bf16.gmra.mxu2 %v9037_v24  ;;  %4912 = vmatmul.bf16.gmra.mxu3 %v9041_v15 }
 0x59f   : > { %4941 = vmatmul.bf16.gmra.mxu0 %v9037_v24  ;;  %4970 = vmatmul.bf16.gmra.mxu1 %v9041_v15  ;;  %v9529_v15 = vor.u32 %v10680_v23, %v9526_v17  ;;  %v7049_v23 = vld [vmem:[#allocation3 + $0x98] sm:$0x11]  ;;  %v15398_v17 = vpack.c.b16 %v7614_v7, %v7612_v57 }
 0x5a0   : > { %v7573_v58 = vrot.slane %v7049_v23, 5  ;;  %v9494_v23 = vld [vmem:[%s17083_s11 + $0x3b8] sm:$0xf0] }
 0x5a1   : > { %5717 = vmatpush.bf16.msrb.mxu1 %v9529_v15 }
 0x5a2   : > { %v7574_v57 = vsel %vm12094_vm12, %v10217_v12, %v7573_v58  ;;  %v10670_v58 = vld [vmem:[%s17083_s11 + $0x3a4] sm:$0xf] }
 0x5a3   : > { %v7622_v52 = vunpack.c.l.b16 %v7574_v57  ;;  %v7623_v31 = vunpack.c.h.b16 %v7574_v57 }
 0x5a5   : > { %5718 = vmatpush.bf16.msrb.mxu1 %v9521_v59  ;;  %v7570_v59 = vsel %vm12094_vm12, %v10216_v33, %v7569_v18 }
 0x5a6   : > { %v7620_v7 = vunpack.c.l.b16 %v7570_v59 }
 0x5ac   : > { %v4611_v63 = vpop.f32.mrf.mxu0  ;;  %v4640_v37 = vpop.f32.mrf.mxu1 }
 0x5ad   : > { %v15316_v54 = vadd.f32 %v4640_v37, %v4611_v63  ;;  %5265 = vmatmul.bf16.vlgmr.msrb.gmra.mxu2 %v15038_v22  ;;  %5294 = vmatmul.bf16.vlgmr.msrb.gmra.mxu3 %v15040_v62  ;;  %v9420_v63 = vld [vmem:[%s17083_s11 + $0x320] sm:$0xf]  ;;  %v10655_v37 = vld [vmem:[%s17083_s11 + $0x324] sm:$0xf0] }
 0x5af   : > { %5323 = vmatmul.bf16.vlgmr.msra.gmra.mxu0 %v15038_v22  ;;  %5352 = vmatmul.bf16.vlgmr.msra.gmra.mxu1 %v15040_v62  ;;  %v9429_v22 = vor.u32 %v10657_v49, %v9428_v25  ;;  %v10673_v62 = vld [vmem:[%s17083_s11 + $0x3b4] sm:$0xf0]  ;;  %v9421_v25 = vor.u32 %v10655_v37, %v9420_v63  ;;  %v9484_v49 = vld [vmem:[%s17083_s11 + $0x3a0] sm:$0xf]  ;;  %v7616_v37 = vunpack.c.l.b16 %v7562_v27 }
 0x5b0   : > { %v4553_v14 = vpop.f32.mrf.mxu2  ;;  %v4582_v20 = vpop.f32.mrf.mxu3  ;;  %v9493_v40 = vor.u32 %v10673_v62, %v9492_v29  ;;  %v10671_v29 = vld [vmem:[%s17083_s11 + $0x3a4] sm:$0xf0]  ;;  %v9510_v62 = vld [vmem:[%s17083_s11 + $0x3d8] sm:$0xf0] }
 0x5b1   : > { %v15350_v24 = vadd.f32 %v4582_v20, %v4553_v14  ;;  %5634 = vmatpush.bf16.msra.mxu2 %v9429_v22  ;;  %v9485_v34 = vor.u32 %v10671_v29, %v9484_v49  ;;  %v10676_v22 = vld [vmem:[%s17083_s11 + $0x3d4] sm:$0xf]  ;;  %v9412_v49 = vld [vmem:[%s17083_s11 + $0x310] sm:$0xf]  ;;  %v10653_v29 = vld [vmem:[%s17083_s11 + $0x314] sm:$0xf0] }
 0x5b2   : > { %5663 = vmatpush.bf16.msra.mxu3 %v9493_v40  ;;  %v9449_v40 = vor.u32 %v10660_v53, %v9446_v2  ;;  %v9513_v3 = vor.u32 %v10676_v22, %v9510_v62  ;;  %v9476_v53 = vld [vmem:[%s17083_s11 + $0x390] sm:$0xf]  ;;  %v10656_v2 = vld [vmem:[%s17083_s11 + $0x334] sm:$0xf]  ;;  %v9430_v22 = vld [vmem:[%s17083_s11 + $0x338] sm:$0xf0] }
 0x5b4   : > { %v4613_v44 = vpop.f32.mrf.mxu0  ;;  %v4642_v11 = vpop.f32.mrf.mxu1  ;;  %5690 = vmatpush.bf16.msrb.mxu0 %v9449_v40  ;;  %5719 = vmatpush.bf16.msrb.mxu1 %v9513_v3  ;;  %v9433_v40 = vor.u32 %v10656_v2, %v9430_v22  ;;  %v10672_v3 = vld [vmem:[%s17083_s11 + $0x3b4] sm:$0xf]  ;;  %v10650_v22 = vld [vmem:[%s17083_s11 + $0x304] sm:$0xf] }
 0x5b5   : > { %v15356_v41 = vadd.f32 %v4642_v11, %v4613_v44  ;;  %5635 = vmatpush.bf16.msra.mxu2 %v9421_v25  ;;  %v10215_v44 = vrot.slane %v7524_v13, 9  ;;  %v7565_v11 = vrot.slane %v7045_v56, 5  ;;  %v10674_v13 = vld [vmem:[%s17083_s11 + $0x3c4] sm:$0xf]  ;;  %v7617_v56 = vunpack.c.h.b16 %v7562_v27  ;;  %v9422_v27 = vld [vmem:[%s17083_s11 + $0x328] sm:$0xf0] }
 0x5b6   : > { %5664 = vmatpush.bf16.msra.mxu3 %v9485_v34  ;;  %v9505_v25 = vor.u32 %v10674_v13, %v9502_v36  ;;  %v10669_v34 = vld [vmem:[%s17083_s11 + $0x394] sm:$0xf0]  ;;  %v9404_v13 = vld [vmem:[%s17083_s11 + $0x300] sm:$0xf]  ;;  %v10667_v36 = vld [vmem:[%s17083_s11 + $0x384] sm:$0xf0] }
 0x5b7   : > { %v7566_v63 = vsel %vm12094_vm12, %v10215_v44, %v7565_v11  ;;  %v9497_v44 = vor.u32 %v10672_v3, %v9494_v23  ;;  %v15460_v11 = vpack.c.b16 %v7622_v52, %v7620_v7  ;;  %v9406_v52 = vld [vmem:[%s17083_s11 + $0x308] sm:$0xf0] }
 0x5b8   : > { %v4555_v14 = vpop.f32.mrf.mxu2  ;;  %v4584_v20 = vpop.f32.mrf.mxu3  ;;  %v7618_v55 = vunpack.c.l.b16 %v7566_v63  ;;  %v7619_v28 = vunpack.c.h.b16 %v7566_v63  ;;  %5691 = vmatpush.bf16.msrb.mxu0 %v9441_v48  ;;  %5720 = vmatpush.bf16.msrb.mxu1 %v9505_v25  ;;  %v10651_v63 = vld [vmem:[%s17083_s11 + $0x304] sm:$0xf0]  ;;  %v9468_v48 = vld [vmem:[%s17083_s11 + $0x380] sm:$0xf]  ;;  %v10668_v25 = vld [vmem:[%s17083_s11 + $0x394] sm:$0xf] }
 0x5b9   : > { %v15400_v15 = vadd.f32 %v4584_v20, %v4555_v14  ;;  %v9477_v20 = vor.u32 %v10669_v34, %v9476_v53 }
 0x5ba   : > { %v15448_v62 = vpack.c.b16 %v7618_v55, %v7616_v37  ;;  %v15450_v19 = vpack.c.b16 %v7619_v28, %v7617_v56  ;;  %v9489_v37 = vor.u32 %v10670_v58, %v9486_v39  ;;  %v9405_v56 = vor.u32 %v10651_v63, %v9404_v13  ;;  %v10652_v55 = vld [vmem:[%s17083_s11 + $0x314] sm:$0xf]  ;;  %v9612_v39 = vld [vmem:[%s17083_s11 + $0x460] sm:$0xf]  ;;  %v10695_v13 = vld [vmem:[%s17083_s11 + $0x464] sm:$0xf0] }
 0x5bb   : > { %5665 = vmatpush.bf16.msra.mxu3 %v9477_v20  ;;  %v9469_v28 = vor.u32 %v10667_v36, %v9468_v48  ;;  %v9470_v20 = vld [vmem:[%s17083_s11 + $0x388] sm:$0xf0]  ;;  %v9676_v63 = vld [vmem:[%s17083_s11 + $0x4e0] sm:$0xf] }
 0x5bc   : > { %v4616_v0 = vpop.f32.mrf.mxu0  ;;  %v4645_v30 = vpop.f32.mrf.mxu1  ;;  %5692 = vmatpush.bf16.msrb.mxu0 %v9433_v40  ;;  %5721 = vmatpush.bf16.msrb.mxu1 %v9497_v44  ;;  %v9684_v44 = vld [vmem:[%s17083_s11 + $0x4f0] sm:$0xf] }
 0x5bd   : > { %v15406_v8 = vadd.f32 %v4645_v30, %v4616_v0  ;;  %5270 = vmatmul.bf16.gmra.mxu2 %v15043_v5  ;;  %5299 = vmatmul.bf16.gmra.mxu3 %v15045_v9  ;;  %v10654_v30 = vld [vmem:[%s17083_s11 + $0x324] sm:$0xf] }
 0x5be   : > { %v9425_v46 = vor.u32 %v10654_v30, %v9422_v27 }
 0x5bf   : > { %5328 = vmatmul.bf16.gmra.mxu0 %v15043_v5  ;;  %5357 = vmatmul.bf16.gmra.mxu1 %v15045_v9  ;;  %v7621_v5 = vunpack.c.h.b16 %v7570_v59  ;;  %v9413_v9 = vor.u32 %v10653_v29, %v9412_v49  ;;  %v9414_v59 = vld [vmem:[%s17083_s11 + $0x318] sm:$0xf0] }
 0x5c0   : > { %v4558_v60 = vpop.f32.mrf.mxu2  ;;  %v4587_v14 = vpop.f32.mrf.mxu3  ;;  %5693 = vmatpush.bf16.msrb.mxu0 %v9425_v46  ;;  %v9478_v49 = vld [vmem:[%s17083_s11 + $0x398] sm:$0xf0]  ;;  %5722 = vmatpush.bf16.msrb.mxu1 %v9489_v37  ;;  %v9417_v57 = vor.u32 %v10652_v55, %v9414_v59  ;;  %v9613_v37 = vor.u32 %v10695_v13, %v9612_v39 }
 0x5c1   : > { %v15458_v21 = vadd.f32 %v4587_v14, %v4558_v60  ;;  %5636 = vmatpush.bf16.msra.mxu2 %v9413_v9  ;;  %v15462_v33 = vpack.c.b16 %v7623_v31, %v7621_v5  ;;  %v9481_v7 = vor.u32 %v10668_v25, %v9478_v49  ;;  %5666 = vmatpush.bf16.msra.mxu3 %v9469_v28  ;;  %v10666_v60 = vld [vmem:[%s17083_s11 + $0x384] sm:$0xf] }
 0x5c2   : > { %v9409_v14 = vor.u32 %v10650_v22, %v9406_v52  ;;  %v9473_v23 = vor.u32 %v10666_v60, %v9470_v20  ;;  %v9596_v20 = vld [vmem:[%s17083_s11 + $0x440] sm:$0xf] }
 0x5c4   : > { %v4618_v18 = vpop.f32.mrf.mxu0  ;;  %v4647_v12 = vpop.f32.mrf.mxu1  ;;  %5694 = vmatpush.bf16.msrb.mxu0 %v9417_v57  ;;  %5723 = vmatpush.bf16.msrb.mxu1 %v9481_v7  ;;  %v9668_v57 = vld [vmem:[%s17083_s11 + $0x4d0] sm:$0xf] }
 0x5c5   : > { %v15464_v0 = vadd.f32 %v4647_v12, %v4618_v18  ;;  %5637 = vmatpush.bf16.msra.mxu2 %v9405_v56  ;;  %v10713_v18 = vld [vmem:[%s17083_s11 + $0x4f4] sm:$0xf0]  ;;  %v10711_v56 = vld [vmem:[%s17083_s11 + $0x4e4] sm:$0xf0] }
 0x5c6   : > { %v9685_v30 = vor.u32 %v10713_v18, %v9684_v44  ;;  %v9677_v55 = vor.u32 %v10711_v56, %v9676_v63  ;;  %v10643_v18 = vld [vmem:[#allocation3 + $0x1c] sm:$0xf0] }
 0x5c8   : > { %v4560_v29 = vpop.f32.mrf.mxu2  ;;  %v4589_v53 = vpop.f32.mrf.mxu3  ;;  %5695 = vmatpush.bf16.msrb.mxu0 %v9409_v14  ;;  %5724 = vmatpush.bf16.msrb.mxu1 %v9473_v23  ;;  %v10707_v23 = vld [vmem:[%s17083_s11 + $0x4c4] sm:$0xf0] }
 0x5c9   : > { %v15502_v5 = vadd.f32 %v4589_v53, %v4560_v29  ;;  %6144 = vmatpush.bf16.msrb.mxu3 %v9685_v30  ;;  %v9604_v29 = vld [vmem:[%s17083_s11 + $0x450] sm:$0xf]  ;;  %v10693_v53 = vld [vmem:[%s17083_s11 + $0x454] sm:$0xf0]  ;;  %v10642_v30 = vld [vmem:[#allocation3 + $0x14] sm:$0xf] }
 0x5ca   : > { %v9605_v7 = vor.u32 %v10693_v53, %v9604_v29  ;;  %v10696_v53 = vld [vmem:[%s17083_s11 + $0x474] sm:$0xf] }
 0x5cc   : > { %v4621_v9 = vpop.f32.mrf.mxu0  ;;  %v4650_v34 = vpop.f32.mrf.mxu1 }
 0x5cd   : > { %v15504_v2 = vadd.f32 %v4650_v34, %v4621_v9  ;;  %5275 = vmatmul.bf16.gmra.mxu2 %v15055_v50  ;;  %5304 = vmatmul.bf16.gmra.mxu3 %v15057_v43  ;;  %v10709_v9 = vld [vmem:[%s17083_s11 + $0x4d4] sm:$0xf0] }
 0x5ce   : > { %6145 = vmatpush.bf16.msrb.mxu3 %v9677_v55  ;;  %v9588_v55 = vld [vmem:[%s17083_s11 + $0x430] sm:$0xf] }
 0x5cf   : > { %5333 = vmatmul.bf16.gmra.mxu0 %v15055_v50  ;;  %5362 = vmatmul.bf16.gmra.mxu1 %v15057_v43  ;;  %v9620_v50 = vld [vmem:[%s17083_s11 + $0x470] sm:$0xf]  ;;  %v10697_v43 = vld [vmem:[%s17083_s11 + $0x474] sm:$0xf0] }
 0x5d0   : > { %v4563_v40 = vpop.f32.mrf.mxu2  ;;  %v4592_v3 = vpop.f32.mrf.mxu3  ;;  %v9621_v31 = vor.u32 %v10697_v43, %v9620_v50  ;;  %v10691_v50 = vld [vmem:[%s17083_s11 + $0x444] sm:$0xf0]  ;;  %v9660_v43 = vld [vmem:[%s17083_s11 + $0x4c0] sm:$0xf] }
 0x5d1   : > { %v15534_v12 = vadd.f32 %v4592_v3, %v4563_v40  ;;  %v9372_v40 = vld [vmem:[#allocation3 + $0x10] sm:$0xf]  ;;  %v9597_v3 = vor.u32 %v10691_v50, %v9596_v20 }
 0x5d2   : > { %6115 = vmatpush.bf16.msrb.mxu2 %v9621_v31 }
 0x5d4   : > { %v4623_v27 = vpop.f32.mrf.mxu0  ;;  %v4652_v58 = vpop.f32.mrf.mxu1 }
 0x5d5   : > { %v15536_v46 = vadd.f32 %v4652_v58, %v4623_v27  ;;  %v9374_v27 = vld [vmem:[#allocation3 + $0x20] sm:$0xf0]  ;;  %v9661_v58 = vor.u32 %v10707_v23, %v9660_v43  ;;  %v9380_v23 = vld [vmem:[#allocation3 + $0x30] sm:$0xf] }
 0x5d6   : > { %6116 = vmatpush.bf16.msrb.mxu2 %v9613_v37  ;;  %v9373_v37 = vor.u32 %v10643_v18, %v9372_v40  ;;  %v9377_v56 = vor.u32 %v10642_v30, %v9374_v27  ;;  %v10644_v18 = vld [vmem:[#allocation3 + $0x34] sm:$0xf]  ;;  %v9382_v30 = vld [vmem:[#allocation3 + $0x40] sm:$0xf0]  ;;  %v9614_v27 = vld [vmem:[%s17083_s11 + $0x468] sm:$0xf0] }
 0x5d8   : > { %v4565_v48 = vpop.f32.mrf.mxu2  ;;  %v4594_v36 = vpop.f32.mrf.mxu3 }
 0x5d9   : > { %v15550_v28 = vadd.f32 %v4594_v36, %v4565_v48 }
 0x5da   : > { %6117 = vmatpush.bf16.msrb.mxu2 %v9605_v7 }
 0x5dc   : > { %v4626_v59 = vpop.f32.mrf.mxu0  ;;  %v4655_v25 = vpop.f32.mrf.mxu1 }
 0x5dd   : > { %v15552_v49 = vadd.f32 %v4655_v25, %v4626_v59  ;;  %5280 = vmatmul.bf16.gmra.mxu2 %v15079_v6  ;;  %5309 = vmatmul.bf16.gmra.mxu3 %v15081_v32  ;;  %v10689_v59 = vld [vmem:[%s17083_s11 + $0x434] sm:$0xf0]  ;;  %v9652_v25 = vld [vmem:[%s17083_s11 + $0x4b0] sm:$0xf] }
 0x5de   : > { %6118 = vmatpush.bf16.msrb.mxu2 %v9597_v3  ;;  %v9589_v29 = vor.u32 %v10689_v59, %v9588_v55 }
 0x5df   : > { %5338 = vmatmul.bf16.gmra.mxu0 %v15079_v6  ;;  %5367 = vmatmul.bf16.gmra.mxu1 %v15081_v32  ;;  %v9669_v32 = vor.u32 %v10709_v9, %v9668_v57  ;;  %v9622_v57 = vld [vmem:[%s17083_s11 + $0x478] sm:$0xf0] }
 0x5e0   : > { %v4568_v6 = vpop.f32.mrf.mxu2  ;;  %v4597_v34 = vpop.f32.mrf.mxu3 }
 0x5e1   : > { %v15570_v22 = vadd.f32 %v4597_v34, %v4568_v6  ;;  %6146 = vmatpush.bf16.msrb.mxu3 %v9669_v32  ;;  %v9625_v34 = vor.u32 %v10696_v53, %v9622_v57  ;;  %v10712_v32 = vld [vmem:[%s17083_s11 + $0x4f4] sm:$0xf] }
 0x5e2   : > { %6119 = vmatpush.bf16.msrb.mxu2 %v9589_v29  ;;  %v10703_v29 = vld [vmem:[%s17083_s11 + $0x4a4] sm:$0xf0] }
 0x5e3   : > { %6173 = vmatpush.bf16.msra.mxu0 %v9625_v34 }
 0x5e4   : > { %v4628_v52 = vpop.f32.mrf.mxu0  ;;  %v4657_v60 = vpop.f32.mrf.mxu1 }
 0x5e5   : > { %v15572_v14 = vadd.f32 %v4657_v60, %v4628_v52  ;;  %6147 = vmatpush.bf16.msrb.mxu3 %v9661_v58  ;;  %v9686_v52 = vld [vmem:[%s17083_s11 + $0x4f8] sm:$0xf0]  ;;  %v10710_v58 = vld [vmem:[%s17083_s11 + $0x4e4] sm:$0xf] }
 0x5e6   : > { %v9689_v20 = vor.u32 %v10712_v32, %v9686_v52 }
 0x5e8   : > { %v4570_v31 = vpop.f32.mrf.mxu2  ;;  %v4599_v44 = vpop.f32.mrf.mxu3  ;;  %6202 = vmatpush.bf16.msra.mxu1 %v9689_v20 }
 0x5e9   : > { %v15586_v39 = vadd.f32 %v4599_v44, %v4570_v31  ;;  %v10645_v31 = vld [vmem:[#allocation3 + $0x3c] sm:$0xf0] }
 0x5ea   : > { %v9381_v34 = vor.u32 %v10645_v31, %v9380_v23  ;;  %v10690_v23 = vld [vmem:[%s17083_s11 + $0x444] sm:$0xf]  ;;  %v9598_v31 = vld [vmem:[%s17083_s11 + $0x448] sm:$0xf0] }
 0x5ec   : > { %v4927_v13 = vpop.f32.mrf.mxu0  ;;  %v4956_v63 = vpop.f32.mrf.mxu1 }
 0x5ed   : > { %v4928_v48 = vadd.f32 %v4927_v13, %v15316_v54  ;;  %5638 = vmatmul.bf16.vlgmr.msra.gmra.mxu2 %v9373_v37  ;;  %5667 = vmatmul.bf16.vlgmr.msra.gmra.mxu3 %v9377_v56  ;;  %v10705_v54 = vld [vmem:[%s17083_s11 + $0x4b4] sm:$0xf0] }
 0x5ee   : > { %v9653_v6 = vor.u32 %v10705_v54, %v9652_v25  ;;  %v9644_v25 = vld [vmem:[%s17083_s11 + $0x4a0] sm:$0xf]  ;;  %v10692_v54 = vld [vmem:[%s17083_s11 + $0x454] sm:$0xf] }
 0x5ef   : > { %v15589_v36 = vadd.f32 %v4956_v63, %v4928_v48  ;;  %5696 = vmatmul.bf16.vlgmr.msrb.gmra.mxu0 %v9373_v37  ;;  %5725 = vmatmul.bf16.vlgmr.msrb.gmra.mxu1 %v9377_v56  ;;  %v9580_v63 = vld [vmem:[%s17083_s11 + $0x420] sm:$0xf]  ;;  %v10687_v37 = vld [vmem:[%s17083_s11 + $0x424] sm:$0xf0]  ;;  %v9645_v57 = vor.u32 %v10703_v29, %v9644_v25  ;;  %v9590_v25 = vld [vmem:[%s17083_s11 + $0x438] sm:$0xf0] }
 0x5f0   : > { %v4869_v7 = vpop.f32.mrf.mxu2  ;;  %v4898_v9 = vpop.f32.mrf.mxu3  ;;  %6148 = vmatpush.bf16.msrb.mxu3 %v9653_v6  ;;  %v9581_v59 = vor.u32 %v10687_v37, %v9580_v63  ;;  %v9670_v6 = vld [vmem:[%s17083_s11 + $0x4d8] sm:$0xf0]  ;;  %v9636_v37 = vld [vmem:[%s17083_s11 + $0x490] sm:$0xf]  ;;  %v10704_v29 = vld [vmem:[%s17083_s11 + $0x4b4] sm:$0xf] }
 0x5f1   : > { %v4870_v60 = vadd.f32 %v4869_v7, %v15350_v24  ;;  %v10694_v24 = vld [vmem:[%s17083_s11 + $0x464] sm:$0xf]  ;;  %v9606_v7 = vld [vmem:[%s17083_s11 + $0x458] sm:$0xf0] }
 0x5f2   : > { %v9617_v13 = vor.u32 %v10694_v24, %v9614_v27  ;;  %6120 = vmatpush.bf16.msrb.mxu2 %v9581_v59  ;;  %v9609_v20 = vor.u32 %v10692_v54, %v9606_v7  ;;  %v9572_v24 = vld [vmem:[%s17083_s11 + $0x410] sm:$0xf]  ;;  %v10685_v27 = vld [vmem:[%s17083_s11 + $0x414] sm:$0xf0]  ;;  %v9654_v54 = vld [vmem:[%s17083_s11 + $0x4b8] sm:$0xf0] }
 0x5f3   : > { %v15616_v50 = vadd.f32 %v4898_v9, %v4870_v60  ;;  %v10708_v9 = vld [vmem:[%s17083_s11 + $0x4d4] sm:$0xf]  ;;  %v9385_v60 = vor.u32 %v10644_v18, %v9382_v30  ;;  %v10706_v18 = vld [vmem:[%s17083_s11 + $0x4c4] sm:$0xf]  ;;  %v9662_v30 = vld [vmem:[%s17083_s11 + $0x4c8] sm:$0xf0]  ;;  %v9573_v63 = vor.u32 %v10685_v27, %v9572_v24 }
 0x5f4   : > { %v4929_v43 = vpop.f32.mrf.mxu0  ;;  %v4958_v40 = vpop.f32.mrf.mxu1  ;;  %6174 = vmatpush.bf16.msra.mxu0 %v9617_v13  ;;  %6149 = vmatpush.bf16.msrb.mxu3 %v9645_v57 }
 0x5f5   : > { %v4930_v3 = vadd.f32 %v4929_v43, %v15356_v41  ;;  %v9678_v41 = vld [vmem:[%s17083_s11 + $0x4e8] sm:$0xf0]  ;;  %v9673_v43 = vor.u32 %v10708_v9, %v9670_v6  ;;  %v9657_v9 = vor.u32 %v10704_v29, %v9654_v54 }
 0x5f6   : > { %v9681_v55 = vor.u32 %v10710_v58, %v9678_v41  ;;  %v9665_v41 = vor.u32 %v10706_v18, %v9662_v30  ;;  %6121 = vmatpush.bf16.msrb.mxu2 %v9573_v63  ;;  %v9564_v18 = vld [vmem:[%s17083_s11 + $0x400] sm:$0xf]  ;;  %v10684_v63 = vld [vmem:[%s17083_s11 + $0x414] sm:$0xf] }
 0x5f7   : > { %v15619_v44 = vadd.f32 %v4958_v40, %v4930_v3 }
 0x5f8   : > { %v4871_v56 = vpop.f32.mrf.mxu2  ;;  %v4900_v48 = vpop.f32.mrf.mxu3  ;;  %6203 = vmatpush.bf16.msra.mxu1 %v9681_v55  ;;  %6175 = vmatpush.bf16.msra.mxu0 %v9609_v20 }
 0x5f9   : > { %v4872_v53 = vadd.f32 %v4871_v56, %v15400_v15  ;;  %v10701_v56 = vld [vmem:[%s17083_s11 + $0x494] sm:$0xf0] }
 0x5fa   : > { %v9637_v59 = vor.u32 %v10701_v56, %v9636_v37 }
 0x5fb   : > { %v15658_v32 = vadd.f32 %v4900_v48, %v4872_v53  ;;  %v10688_v48 = vld [vmem:[%s17083_s11 + $0x434] sm:$0xf] }
 0x5fc   : > { %v4932_v15 = vpop.f32.mrf.mxu0  ;;  %v4961_v52 = vpop.f32.mrf.mxu1  ;;  %6204 = vmatpush.bf16.msra.mxu1 %v9673_v43  ;;  %6150 = vmatpush.bf16.msrb.mxu3 %v9637_v59  ;;  %v10686_v43 = vld [vmem:[%s17083_s11 + $0x424] sm:$0xf]  ;;  %v9638_v59 = vld [vmem:[%s17083_s11 + $0x498] sm:$0xf0] }
 0x5fd   : > { %v4933_v40 = vadd.f32 %v4932_v15, %v15406_v8  ;;  %5643 = vmatmul.bf16.gmra.mxu2 %v9381_v34  ;;  %5672 = vmatmul.bf16.gmra.mxu3 %v9385_v60  ;;  %v9601_v8 = vor.u32 %v10690_v23, %v9598_v31  ;;  %v10647_v15 = vld [vmem:[#allocation3 + $0x5c] sm:$0xf0]  ;;  %v10702_v23 = vld [vmem:[%s17083_s11 + $0x4a4] sm:$0xf]  ;;  %v9646_v31 = vld [vmem:[%s17083_s11 + $0x4a8] sm:$0xf0] }
 0x5fe   : > { %v9649_v27 = vor.u32 %v10702_v23, %v9646_v31 }
 0x5ff   : > { %v15661_v3 = vadd.f32 %v4961_v52, %v4933_v40  ;;  %5701 = vmatmul.bf16.gmra.mxu0 %v9381_v34  ;;  %5730 = vmatmul.bf16.gmra.mxu1 %v9385_v60  ;;  %v9388_v34 = vld [vmem:[#allocation3 + $0x50] sm:$0xf]  ;;  %v10646_v52 = vld [vmem:[#allocation3 + $0x54] sm:$0xf]  ;;  %v9390_v60 = vld [vmem:[#allocation3 + $0x60] sm:$0xf0] }
 0x600   : > { %v4874_v58 = vpop.f32.mrf.mxu2  ;;  %v4903_v13 = vpop.f32.mrf.mxu3  ;;  %6176 = vmatpush.bf16.msra.mxu0 %v9601_v8  ;;  %6205 = vmatpush.bf16.msra.mxu1 %v9665_v41  ;;  %v9582_v40 = vld [vmem:[%s17083_s11 + $0x428] sm:$0xf0]  ;;  %v10683_v8 = vld [vmem:[%s17083_s11 + $0x404] sm:$0xf0]  ;;  %v9393_v29 = vor.u32 %v10646_v52, %v9390_v60  ;;  %v10698_v52 = vld [vmem:[%s17083_s11 + $0x484] sm:$0xf] }
 0x601   : > { %v4875_v55 = vadd.f32 %v4874_v58, %v15458_v21  ;;  %v9593_v21 = vor.u32 %v10688_v48, %v9590_v25  ;;  %v9565_v58 = vor.u32 %v10683_v8, %v9564_v18  ;;  %v10699_v41 = vld [vmem:[%s17083_s11 + $0x484] sm:$0xf0]  ;;  %v9574_v48 = vld [vmem:[%s17083_s11 + $0x418] sm:$0xf0]  ;;  %v9389_v25 = vor.u32 %v10647_v15, %v9388_v34  ;;  %v10682_v34 = vld [vmem:[%s17083_s11 + $0x404] sm:$0xf] }
 0x602   : > { %v9566_v15 = vld [vmem:[%s17083_s11 + $0x408] sm:$0xf0]  ;;  %v5762_v18 = vld [vmem:[#allocation3 + $0x10] sm:$0xff] }
 0x603   : > { %v15700_v53 = vadd.f32 %v4903_v13, %v4875_v55  ;;  %v9628_v13 = vld [vmem:[%s17083_s11 + $0x480] sm:$0xf]  ;;  %v10700_v55 = vld [vmem:[%s17083_s11 + $0x494] sm:$0xf]  ;;  %6122 = vmatpush.bf16.msrb.mxu2 %v9565_v58  ;;  %v9630_v60 = vld [vmem:[%s17083_s11 + $0x488] sm:$0xf0] }
 0x604   : > { %v4934_v57 = vpop.f32.mrf.mxu0  ;;  %v4963_v7 = vpop.f32.mrf.mxu1  ;;  %6177 = vmatpush.bf16.msra.mxu0 %v9593_v21  ;;  %6206 = vmatpush.bf16.msra.mxu1 %v9657_v9  ;;  %v9629_v56 = vor.u32 %v10699_v41, %v9628_v13  ;;  %v9641_v21 = vor.u32 %v10700_v55, %v9638_v59  ;;  %v9633_v31 = vor.u32 %v10698_v52, %v9630_v60  ;;  %v5764_v58 = vld [vmem:[#allocation3 + $0x20] sm:$0xff]  ;;  %v10648_v60 = vld [vmem:[#allocation3 + $0x74] sm:$0xf] }
 0x605   : > { %v4935_v6 = vadd.f32 %v4934_v57, %v15464_v0  ;;  %v9585_v0 = vor.u32 %v10686_v43, %v9582_v40  ;;  %v9788_v43 = vld [vmem:[%s17083_s11 + $0x570] sm:$0xf]  ;;  %v10729_v40 = vld [vmem:[%s17083_s11 + $0x574] sm:$0xf0]  ;;  %v5793_v59 = vshrl.u32 %v5764_v58, 16 }
 0x606   : > { %6151 = vmatpush.bf16.msrb.mxu3 %v9629_v56  ;;  %v9789_v8 = vor.u32 %v10729_v40, %v9788_v43  ;;  %v5779_v56 = vshrl.u32 %v5762_v18, 16  ;;  %v9398_v43 = vld [vmem:[#allocation3 + $0x80] sm:$0xf0] }
 0x607   : > { %v15703_v20 = vadd.f32 %v4963_v7, %v4935_v6  ;;  %v9577_v7 = vor.u32 %v10684_v63, %v9574_v48  ;;  %v5782_v48 = vshll.u32 %v5762_v18, 16  ;;  %v5795_v40 = vrot.slane %v5793_v59, 4  ;;  %v5766_v59 = vld [vmem:[#allocation3 + $0x30] sm:$0xff] }
 0x608   : > { %v4876_v30 = vpop.f32.mrf.mxu2  ;;  %v4905_v24 = vpop.f32.mrf.mxu3  ;;  %6178 = vmatpush.bf16.msra.mxu0 %v9585_v0  ;;  %6207 = vmatpush.bf16.msra.mxu1 %v9649_v27 }
 0x609   : > { %v4877_v37 = vadd.f32 %v4876_v30, %v15502_v5  ;;  %v9852_v30 = vld [vmem:[%s17083_s11 + $0x5f0] sm:$0xf]  ;;  %6528 = vmatpush.bf16.msra.mxu2 %v9789_v8 }
 0x60b   : > { %v15742_v54 = vadd.f32 %v4905_v24, %v4877_v37  ;;  %v10745_v24 = vld [vmem:[%s17083_s11 + $0x5f4] sm:$0xf0] }
 0x60c   : > { %v4937_v57 = vpop.f32.mrf.mxu0  ;;  %v4966_v5 = vpop.f32.mrf.mxu1  ;;  %6179 = vmatpush.bf16.msra.mxu0 %v9577_v7  ;;  %6208 = vmatpush.bf16.msra.mxu1 %v9641_v21  ;;  %v9853_v13 = vor.u32 %v10745_v24, %v9852_v30  ;;  %v9844_v7 = vld [vmem:[%s17083_s11 + $0x5e0] sm:$0xf]  ;;  %v10649_v21 = vld [vmem:[#allocation3 + $0x7c] sm:$0xf0] }
 0x60d   : > { %v4938_v9 = vadd.f32 %v4937_v57, %v15504_v2  ;;  %5648 = vmatmul.bf16.gmra.mxu2 %v9389_v25  ;;  %5677 = vmatmul.bf16.gmra.mxu3 %v9393_v29  ;;  %v9569_v2 = vor.u32 %v10682_v34, %v9566_v15  ;;  %v9396_v57 = vld [vmem:[#allocation3 + $0x70] sm:$0xf]  ;;  %v10743_v15 = vld [vmem:[%s17083_s11 + $0x5e4] sm:$0xf0] }
 0x60e   : > { %6557 = vmatpush.bf16.msra.mxu3 %v9853_v13  ;;  %v9397_v24 = vor.u32 %v10649_v21, %v9396_v57  ;;  %v9772_v57 = vld [vmem:[%s17083_s11 + $0x550] sm:$0xf]  ;;  %v10741_v21 = vld [vmem:[%s17083_s11 + $0x5d4] sm:$0xf0] }
 0x60f   : > { %v15745_v6 = vadd.f32 %v4966_v5, %v4938_v9  ;;  %5706 = vmatmul.bf16.gmra.mxu0 %v9389_v25  ;;  %5735 = vmatmul.bf16.gmra.mxu1 %v9393_v29  ;;  %v5796_v25 = vshll.u32 %v5764_v58, 16  ;;  %v10727_v5 = vld [vmem:[%s17083_s11 + $0x564] sm:$0xf0]  ;;  %v5784_v9 = vrot.slane %v5782_v48, 5  ;;  %v10980_v48 = vld [vmem:[#allocation3 + $0x28] sm:$0x11] }
 0x610   : > { %v4879_v23 = vpop.f32.mrf.mxu2  ;;  %v4908_v0 = vpop.f32.mrf.mxu3  ;;  %6180 = vmatpush.bf16.msra.mxu0 %v9569_v2  ;;  %6209 = vmatpush.bf16.msra.mxu1 %v9633_v31 }
 0x611   : > { %v4880_v27 = vadd.f32 %v4879_v23, %v15534_v12  ;;  %v9780_v12 = vld [vmem:[%s17083_s11 + $0x560] sm:$0xf]  ;;  %v5798_v23 = vrot.slane %v5796_v25, 5 }
 0x612   : > { %v9781_v34 = vor.u32 %v10727_v5, %v9780_v12  ;;  %v9836_v12 = vld [vmem:[%s17083_s11 + $0x5d0] sm:$0xf] }
 0x613   : > { %v15772_v41 = vadd.f32 %v4908_v0, %v4880_v27  ;;  %v9845_v0 = vor.u32 %v10743_v15, %v9844_v7  ;;  %v9401_v27 = vor.u32 %v10648_v60, %v9398_v43  ;;  %v5810_v43 = vshll.u32 %v5766_v59, 16 }
 0x614   : > { %v4939_v63 = vpop.f32.mrf.mxu0  ;;  %v4968_v37 = vpop.f32.mrf.mxu1  ;;  %6529 = vmatpush.bf16.msra.mxu2 %v9781_v34 }
 0x615   : > { %v4940_v55 = vadd.f32 %v4939_v63, %v15536_v46  ;;  %v5781_v46 = vrot.slane %v5779_v56, 4  ;;  %6558 = vmatpush.bf16.msra.mxu3 %v9845_v0  ;;  %v10979_v63 = vld [vmem:[#allocation3 + $0x18] sm:$0x11]  ;;  %v5799_v56 = vor.u32 %v5798_v23, %v5795_v40 }
 0x617   : > { %v15775_v29 = vadd.f32 %v4968_v37, %v4940_v55  ;;  %v5785_v58 = vor.u32 %v5784_v9, %v5781_v46  ;;  %v5788_v37 = vshll.u32 %v10979_v63, 16  ;;  %v5802_v55 = vshll.u32 %v10980_v48, 16 }
 0x618   : > { %v4881_v52 = vpop.f32.mrf.mxu2  ;;  %v4910_v2 = vpop.f32.mrf.mxu3  ;;  %v5800_v15 = vrot.slane %v5799_v56, 4 }
 0x619   : > { %v4882_v31 = vadd.f32 %v4881_v52, %v15550_v28  ;;  %v5768_v28 = vld [vmem:[#allocation3 + $0x40] sm:$0xff]  ;;  %v5786_v5 = vrot.slane %v5785_v58, 4  ;;  %v5790_v34 = vrot.slane %v5788_v37, 5  ;;  %v5807_v52 = vshrl.u32 %v5766_v59, 16  ;;  %v10723_v59 = vld [vmem:[%s17083_s11 + $0x544] sm:$0xf0] }
 0x61a   : > { %v5821_v40 = vshrl.u32 %v5768_v28, 16  ;;  %v5824_v23 = vshll.u32 %v5768_v28, 16  ;;  %v5804_v0 = vrot.slane %v5802_v55, 5  ;;  %v9764_v55 = vld [vmem:[%s17083_s11 + $0x540] sm:$0xf] }
 0x61b   : > { %v15790_v18 = vadd.f32 %v4910_v2, %v4882_v31  ;;  %v9837_v2 = vor.u32 %v10741_v21, %v9836_v12  ;;  %v9765_v12 = vor.u32 %v10723_v59, %v9764_v55  ;;  %v9820_v59 = vld [vmem:[%s17083_s11 + $0x5b0] sm:$0xf] }
 0x61c   : > { %v4942_v8 = vpop.f32.mrf.mxu0  ;;  %v4971_v30 = vpop.f32.mrf.mxu1  ;;  %v5805_v58 = vsel %vm11796_vm15, %v5800_v15, %v5804_v0  ;;  %v5823_v63 = vrot.slane %v5821_v40, 4  ;;  %v5826_v37 = vrot.slane %v5824_v23, 5  ;;  %v10981_v15 = vld [vmem:[#allocation3 + $0x38] sm:$0x11] }
 0x61d   : > { %v4943_v13 = vadd.f32 %v4942_v8, %v15552_v49  ;;  %5653 = vmatmul.bf16.gmra.mxu2 %v9397_v24  ;;  %5682 = vmatmul.bf16.gmra.mxu3 %v9401_v27  ;;  %v10725_v49 = vld [vmem:[%s17083_s11 + $0x554] sm:$0xf0]  ;;  %v5925_v28 = vunpack.c.l.b16 %v5805_v58 }
 0x61e   : > { %v9773_v7 = vor.u32 %v10725_v49, %v9772_v57  ;;  %6559 = vmatpush.bf16.msra.mxu3 %v9837_v2  ;;  %v5926_v49 = vunpack.c.h.b16 %v5805_v58  ;;  %v5827_v2 = vor.u32 %v5826_v37, %v5823_v63  ;;  %v9756_v37 = vld [vmem:[%s17083_s11 + $0x530] sm:$0xf] }
 0x61f   : > { %v15793_v25 = vadd.f32 %v4971_v30, %v4943_v13  ;;  %5711 = vmatmul.bf16.gmra.mxu0 %v9397_v24  ;;  %5740 = vmatmul.bf16.gmra.mxu1 %v9401_v27  ;;  %v5791_v24 = vsel %vm11796_vm15, %v5786_v5, %v5790_v34  ;;  %v5809_v13 = vrot.slane %v5807_v52, 4  ;;  %v10739_v5 = vld [vmem:[%s17083_s11 + $0x5c4] sm:$0xf0]  ;;  %v5816_v52 = vshll.u32 %v10981_v15, 16 }
 0x620   : > { %v4884_v46 = vpop.f32.mrf.mxu2  ;;  %v4913_v9 = vpop.f32.mrf.mxu3  ;;  %6530 = vmatpush.bf16.msra.mxu2 %v9773_v7  ;;  %v5923_v48 = vunpack.c.l.b16 %v5791_v24  ;;  %v5924_v57 = vunpack.c.h.b16 %v5791_v24  ;;  %v10982_v24 = vld [vmem:[#allocation3 + $0x48] sm:$0x11] }
 0x621   : > { %v4885_v60 = vadd.f32 %v4884_v46, %v15570_v22  ;;  %v5812_v22 = vrot.slane %v5810_v43, 5 }
 0x622   : > { %v5939_v0 = vpack.c.b16 %v5925_v28, %v5923_v48  ;;  %v10721_v48 = vld [vmem:[%s17083_s11 + $0x534] sm:$0xf0]  ;;  %v10728_v28 = vld [vmem:[%s17083_s11 + $0x574] sm:$0xf] }
 0x623   : > { %v15808_v31 = vadd.f32 %v4913_v9, %v4885_v60  ;;  %v5813_v34 = vor.u32 %v5812_v22, %v5809_v13  ;;  %v5770_v60 = vld [vmem:[#allocation3 + $0x50] sm:$0xff]  ;;  %v5828_v13 = vrot.slane %v5827_v2, 4  ;;  %v5772_v22 = vld [vmem:[#allocation3 + $0x60] sm:$0xff] }
 0x624   : > { %v4944_v8 = vpop.f32.mrf.mxu0  ;;  %v4973_v30 = vpop.f32.mrf.mxu1  ;;  %6531 = vmatpush.bf16.msra.mxu2 %v9765_v12  ;;  %v5835_v55 = vshrl.u32 %v5770_v60, 16  ;;  %v5852_v2 = vshll.u32 %v5772_v22, 16 }
 0x625   : > { %v4945_v27 = vadd.f32 %v4944_v8, %v15572_v14  ;;  %v9828_v14 = vld [vmem:[%s17083_s11 + $0x5c0] sm:$0xf]  ;;  %v5940_v8 = vpack.c.b16 %v5926_v49, %v5924_v57  ;;  %v5814_v58 = vrot.slane %v5813_v34, 4  ;;  %v9790_v57 = vld [vmem:[%s17083_s11 + $0x578] sm:$0xf0] }
 0x626   : > { %v9829_v46 = vor.u32 %v10739_v5, %v9828_v14  ;;  %v9757_v14 = vor.u32 %v10721_v48, %v9756_v37  ;;  %v9854_v34 = vld [vmem:[%s17083_s11 + $0x5f8] sm:$0xf0] }
 0x627   : > { %v15815_v56 = vadd.f32 %v4973_v30, %v4945_v27  ;;  %v5830_v27 = vshll.u32 %v10982_v24, 16 }
 0x628   : > { %v4886_v7 = vpop.f32.mrf.mxu2  ;;  %v4915_v21 = vpop.f32.mrf.mxu3  ;;  %6560 = vmatpush.bf16.msra.mxu3 %v9829_v46  ;;  %v9793_v46 = vor.u32 %v10728_v28, %v9790_v57  ;;  %6532 = vmatpush.bf16.msra.mxu2 %v9757_v14  ;;  %v5854_v14 = vrot.slane %v5852_v2, 5  ;;  %v9812_v2 = vld [vmem:[%s17083_s11 + $0x5a0] sm:$0xf] }
 0x629   : > { %v4887_v9 = vadd.f32 %v4886_v7, %v15586_v39  ;;  %v5818_v39 = vrot.slane %v5816_v52, 5  ;;  %v5832_v5 = vrot.slane %v5830_v27, 5  ;;  %v5838_v7 = vshll.u32 %v5770_v60, 16 }
 0x62a   : > { %v5849_v52 = vshrl.u32 %v5772_v22, 16  ;;  %6586 = vmatpush.bf16.msrb.mxu0 %v9793_v46  ;;  %v5837_v27 = vrot.slane %v5835_v55, 4  ;;  %v10983_v22 = vld [vmem:[#allocation3 + $0x58] sm:$0x11] }
 0x62b   : > { %v15830_v43 = vadd.f32 %v4915_v21, %v4887_v9  ;;  %v10744_v9 = vld [vmem:[%s17083_s11 + $0x5f4] sm:$0xf]  ;;  %v5840_v37 = vrot.slane %v5838_v7, 5  ;;  %v5844_v48 = vshll.u32 %v10983_v22, 16  ;;  %v9748_v7 = vld [vmem:[%s17083_s11 + $0x520] sm:$0xf] }
 0x62c   : > { %v5324_v40 = vpop.f32.mrf.mxu0  ;;  %v5353_v23 = vpop.f32.mrf.mxu1 }
 0x62d   : > { %v5354_v30 = vadd.f32 %v5353_v23, %v5324_v40  ;;  %6123 = vmatmul.bf16.vlgmr.msrb.gmra.mxu2 %v5939_v0  ;;  %6152 = vmatmul.bf16.vlgmr.msrb.gmra.mxu3 %v5940_v8  ;;  %v9857_v40 = vor.u32 %v10744_v9, %v9854_v34  ;;  %v5841_v34 = vor.u32 %v5840_v37, %v5837_v27  ;;  %v10740_v27 = vld [vmem:[%s17083_s11 + $0x5d4] sm:$0xf]  ;;  %v9838_v37 = vld [vmem:[%s17083_s11 + $0x5d8] sm:$0xf0] }
 0x62f   : > { %v15833_v63 = vadd.f32 %v5354_v30, %v15589_v36  ;;  %6181 = vmatmul.bf16.vlgmr.msra.gmra.mxu0 %v5939_v0  ;;  %6210 = vmatmul.bf16.vlgmr.msra.gmra.mxu1 %v5940_v8  ;;  %v10737_v36 = vld [vmem:[%s17083_s11 + $0x5b4] sm:$0xf0]  ;;  %v5819_v8 = vsel %vm11796_vm15, %v5814_v58, %v5818_v39  ;;  %v5833_v30 = vsel %vm11796_vm15, %v5828_v13, %v5832_v5  ;;  %v10726_v58 = vld [vmem:[%s17083_s11 + $0x564] sm:$0xf]  ;;  %v9782_v39 = vld [vmem:[%s17083_s11 + $0x568] sm:$0xf0] }
 0x630   : > { %v5266_v49 = vpop.f32.mrf.mxu2  ;;  %v5295_v12 = vpop.f32.mrf.mxu3  ;;  %v9821_v21 = vor.u32 %v10737_v36, %v9820_v59  ;;  %6615 = vmatpush.bf16.msrb.mxu1 %v9857_v40  ;;  %v5851_v59 = vrot.slane %v5849_v52, 4  ;;  %v10984_v36 = vld [vmem:[#allocation3 + $0x68] sm:$0x11]  ;;  %v5927_v57 = vunpack.c.l.b16 %v5819_v8  ;;  %v10742_v13 = vld [vmem:[%s17083_s11 + $0x5e4] sm:$0xf]  ;;  %v5928_v55 = vunpack.c.h.b16 %v5819_v8 }
 0x631   : > { %v5296_v15 = vadd.f32 %v5295_v12, %v5266_v49  ;;  %v5858_v28 = vshll.u32 %v10984_v36, 16  ;;  %v5929_v49 = vunpack.c.l.b16 %v5833_v30  ;;  %v5930_v12 = vunpack.c.h.b16 %v5833_v30  ;;  %v10735_v40 = vld [vmem:[%s17083_s11 + $0x5a4] sm:$0xf0]  ;;  %v5774_v36 = vld [vmem:[#allocation3 + $0x70] sm:$0xff] }
 0x632   : > { %6561 = vmatpush.bf16.msra.mxu3 %v9821_v21  ;;  %v9785_v5 = vor.u32 %v10726_v58, %v9782_v39  ;;  %v10719_v21 = vld [vmem:[%s17083_s11 + $0x524] sm:$0xf0]  ;;  %v5855_v8 = vor.u32 %v5854_v14, %v5851_v59  ;;  %v9813_v30 = vor.u32 %v10735_v40, %v9812_v2 }
 0x633   : > { %v15860_v23 = vadd.f32 %v5296_v15, %v15616_v50  ;;  %v9749_v52 = vor.u32 %v10719_v21, %v9748_v7  ;;  %v5941_v22 = vpack.c.b16 %v5929_v49, %v5927_v57  ;;  %v5942_v39 = vpack.c.b16 %v5930_v12, %v5928_v55  ;;  %v9766_v55 = vld [vmem:[%s17083_s11 + $0x548] sm:$0xf0]  ;;  %v9740_v12 = vld [vmem:[%s17083_s11 + $0x510] sm:$0xf] }
 0x634   : > { %v5326_v60 = vpop.f32.mrf.mxu0  ;;  %v5355_v0 = vpop.f32.mrf.mxu1  ;;  %6587 = vmatpush.bf16.msrb.mxu0 %v9785_v5  ;;  %v9841_v5 = vor.u32 %v10740_v27, %v9838_v37  ;;  %v5842_v7 = vrot.slane %v5841_v34, 4  ;;  %v5846_v21 = vrot.slane %v5844_v48, 5  ;;  %v5863_v57 = vshrl.u32 %v5774_v36, 16  ;;  %v10738_v48 = vld [vmem:[%s17083_s11 + $0x5c4] sm:$0xf] }
 0x635   : > { %v5356_v24 = vadd.f32 %v5355_v0, %v5326_v60  ;;  %v10724_v60 = vld [vmem:[%s17083_s11 + $0x554] sm:$0xf]  ;;  %6533 = vmatpush.bf16.msra.mxu2 %v9749_v52  ;;  %v5866_v49 = vshll.u32 %v5774_v36, 16  ;;  %v10717_v34 = vld [vmem:[%s17083_s11 + $0x514] sm:$0xf0] }
 0x636   : > { %6562 = vmatpush.bf16.msra.mxu3 %v9813_v30  ;;  %v10720_v30 = vld [vmem:[%s17083_s11 + $0x534] sm:$0xf]  ;;  %v9758_v37 = vld [vmem:[%s17083_s11 + $0x538] sm:$0xf0] }
 0x637   : > { %v15867_v50 = vadd.f32 %v5356_v24, %v15619_v44  ;;  %v9846_v44 = vld [vmem:[%s17083_s11 + $0x5e8] sm:$0xf0]  ;;  %v9774_v24 = vld [vmem:[%s17083_s11 + $0x558] sm:$0xf0] }
 0x638   : > { %v5268_v46 = vpop.f32.mrf.mxu2  ;;  %v5297_v9 = vpop.f32.mrf.mxu3  ;;  %v9849_v15 = vor.u32 %v10742_v13, %v9846_v44  ;;  %v9777_v13 = vor.u32 %v10724_v60, %v9774_v24  ;;  %v9741_v60 = vor.u32 %v10717_v34, %v9740_v12  ;;  %v9822_v36 = vld [vmem:[%s17083_s11 + $0x5b8] sm:$0xf0]  ;;  %v15954_v34 = vrot.slane %v5863_v57, 4  ;;  %v10734_v57 = vld [vmem:[%s17083_s11 + $0x5a4] sm:$0xf] }
 0x639   : > { %v5298_v0 = vadd.f32 %v5297_v9, %v5268_v46  ;;  %v5856_v46 = vrot.slane %v5855_v8, 4  ;;  %v5860_v9 = vrot.slane %v5858_v28, 5  ;;  %v10733_v8 = vld [vmem:[%s17083_s11 + $0x594] sm:$0xf0] }
 0x63a   : > { %6616 = vmatpush.bf16.msrb.mxu1 %v9849_v15  ;;  %6588 = vmatpush.bf16.msrb.mxu0 %v9777_v13 }
 0x63b   : > { %v15906_v59 = vadd.f32 %v5298_v0, %v15658_v32  ;;  %v10722_v32 = vld [vmem:[%s17083_s11 + $0x544] sm:$0xf]  ;;  %v9804_v0 = vld [vmem:[%s17083_s11 + $0x590] sm:$0xf]  ;;  %6534 = vmatpush.bf16.msra.mxu2 %v9741_v60  ;;  %v10715_v60 = vld [vmem:[%s17083_s11 + $0x504] sm:$0xf0] }
 0x63c   : > { %v5329_v14 = vpop.f32.mrf.mxu0  ;;  %v5358_v58 = vpop.f32.mrf.mxu1  ;;  %v9769_v28 = vor.u32 %v10722_v32, %v9766_v55  ;;  %v9805_v27 = vor.u32 %v10733_v8, %v9804_v0 }
 0x63d   : > { %v5359_v44 = vadd.f32 %v5358_v58, %v5329_v14  ;;  %6128 = vmatmul.bf16.gmra.mxu2 %v5941_v22  ;;  %6157 = vmatmul.bf16.gmra.mxu3 %v5942_v39  ;;  %v5847_v14 = vsel %vm11796_vm15, %v5842_v7, %v5846_v21  ;;  %v5861_v58 = vsel %vm11796_vm15, %v5856_v46, %v5860_v9  ;;  %v5868_v7 = vrot.slane %v5866_v49, 5 }
 0x63e   : > { %6617 = vmatpush.bf16.msrb.mxu1 %v9841_v5  ;;  %6589 = vmatpush.bf16.msrb.mxu0 %v9769_v28  ;;  %v5931_v12 = vunpack.c.l.b16 %v5847_v14  ;;  %v5932_v9 = vunpack.c.h.b16 %v5847_v14  ;;  %v10718_v28 = vld [vmem:[%s17083_s11 + $0x524] sm:$0xf] }
 0x63f   : > { %v15909_v15 = vadd.f32 %v5359_v44, %v15661_v3  ;;  %6186 = vmatmul.bf16.gmra.mxu0 %v5941_v22  ;;  %6215 = vmatmul.bf16.gmra.mxu1 %v5942_v39  ;;  %v9830_v3 = vld [vmem:[%s17083_s11 + $0x5c8] sm:$0xf0]  ;;  %v10736_v22 = vld [vmem:[%s17083_s11 + $0x5b4] sm:$0xf]  ;;  %v9761_v44 = vor.u32 %v10720_v30, %v9758_v37  ;;  %v10731_v37 = vld [vmem:[%s17083_s11 + $0x584] sm:$0xf0] }
 0x640   : > { %v5271_v52 = vpop.f32.mrf.mxu2  ;;  %v5300_v2 = vpop.f32.mrf.mxu3  ;;  %v9833_v40 = vor.u32 %v10738_v48, %v9830_v3  ;;  %v9825_v32 = vor.u32 %v10736_v22, %v9822_v36  ;;  %v10985_v48 = vld [vmem:[#allocation3 + $0x80] sm:$0xff]  ;;  %6563 = vmatpush.bf16.msra.mxu3 %v9805_v27  ;;  %v9796_v27 = vld [vmem:[%s17083_s11 + $0x580] sm:$0xf] }
 0x641   : > { %v5301_v24 = vadd.f32 %v5300_v2, %v5271_v52  ;;  %v5877_v3 = vshrl.u32 %v10985_v48, 16  ;;  %v5880_v21 = vshll.u32 %v10985_v48, 16  ;;  %v5934_v52 = vunpack.c.h.b16 %v5861_v58  ;;  %v9750_v2 = vld [vmem:[%s17083_s11 + $0x528] sm:$0xf0]  ;;  %v10716_v22 = vld [vmem:[%s17083_s11 + $0x514] sm:$0xf] }
 0x642   : > { %6618 = vmatpush.bf16.msrb.mxu1 %v9833_v40  ;;  %6590 = vmatpush.bf16.msrb.mxu0 %v9761_v44  ;;  %v9753_v49 = vor.u32 %v10718_v28, %v9750_v2  ;;  %v9732_v40 = vld [vmem:[%s17083_s11 + $0x500] sm:$0xf]  ;;  %v9797_v14 = vor.u32 %v10731_v37, %v9796_v27 }
 0x643   : > { %v15952_v39 = vadd.f32 %v5301_v24, %v15700_v53  ;;  %v5933_v53 = vunpack.c.l.b16 %v5861_v58  ;;  %v9733_v24 = vor.u32 %v10715_v60, %v9732_v40  ;;  %v9742_v58 = vld [vmem:[%s17083_s11 + $0x518] sm:$0xf0]  ;;  %v5869_v40 = vor.u32 %v5868_v7, %v15954_v34  ;;  %v10730_v34 = vld [vmem:[%s17083_s11 + $0x584] sm:$0xf] }
 0x644   : > { %v5331_v13 = vpop.f32.mrf.mxu0  ;;  %v5360_v5 = vpop.f32.mrf.mxu1  ;;  %v9745_v2 = vor.u32 %v10716_v22, %v9742_v58  ;;  %v5879_v60 = vrot.slane %v5877_v3, 4  ;;  %6564 = vmatpush.bf16.msra.mxu3 %v9797_v14  ;;  %v9734_v3 = vld [vmem:[%s17083_s11 + $0x508] sm:$0xf0]  ;;  %v10044_v14 = vld [vmem:[%s17083_s11 + $0x6f0] sm:$0xf] }
 0x645   : > { %v5361_v55 = vadd.f32 %v5360_v5, %v5331_v13  ;;  %v10732_v13 = vld [vmem:[%s17083_s11 + $0x594] sm:$0xf]  ;;  %v9806_v5 = vld [vmem:[%s17083_s11 + $0x598] sm:$0xf0]  ;;  %v5943_v44 = vpack.c.b16 %v5933_v53, %v5931_v12  ;;  %6535 = vmatpush.bf16.msra.mxu2 %v9733_v24  ;;  %v10986_v12 = vld [vmem:[#allocation3 + $0x78] sm:$0x11] }
 0x646   : > { %6619 = vmatpush.bf16.msrb.mxu1 %v9825_v32  ;;  %v5944_v32 = vpack.c.b16 %v5934_v52, %v5932_v9  ;;  %6591 = vmatpush.bf16.msrb.mxu0 %v9753_v49  ;;  %v5872_v53 = vshll.u32 %v10986_v12, 16  ;;  %v10987_v9 = vld [vmem:[#allocation3 + $0x88] sm:$0x11]  ;;  %v10714_v49 = vld [vmem:[%s17083_s11 + $0x504] sm:$0xf]  ;;  %v5870_v27 = vrot.slane %v5869_v40, 4 }
 0x647   : > { %v15957_v46 = vadd.f32 %v5361_v55, %v15703_v20  ;;  %v9814_v20 = vld [vmem:[%s17083_s11 + $0x5a8] sm:$0xf0]  ;;  %v5886_v52 = vshll.u32 %v10987_v9, 16  ;;  %v9737_v7 = vor.u32 %v10714_v49, %v9734_v3  ;;  %v10785_v58 = vld [vmem:[%s17083_s11 + $0x6f4] sm:$0xf0] }
 0x648   : > { %v5273_v0 = vpop.f32.mrf.mxu2  ;;  %v5302_v8 = vpop.f32.mrf.mxu3  ;;  %v9817_v30 = vor.u32 %v10734_v57, %v9814_v20  ;;  %v9809_v57 = vor.u32 %v10732_v13, %v9806_v5  ;;  %v10045_v5 = vor.u32 %v10785_v58, %v10044_v14  ;;  %v10767_v12 = vld [vmem:[%s17083_s11 + $0x664] sm:$0xf0]  ;;  %v9964_v58 = vld [vmem:[%s17083_s11 + $0x650] sm:$0xf] }
 0x649   : > { %v5303_v36 = vadd.f32 %v5302_v8, %v5273_v0  ;;  %v5882_v0 = vrot.slane %v5880_v21, 5  ;;  %v9980_v21 = vld [vmem:[%s17083_s11 + $0x670] sm:$0xf]  ;;  %v10769_v8 = vld [vmem:[%s17083_s11 + $0x674] sm:$0xf0] }
 0x64a   : > { %6620 = vmatpush.bf16.msrb.mxu1 %v9817_v30  ;;  %6592 = vmatpush.bf16.msrb.mxu0 %v9745_v2 }
 0x64b   : > { %v15996_v55 = vadd.f32 %v5303_v36, %v15742_v54  ;;  %v5883_v37 = vor.u32 %v5882_v0, %v5879_v60  ;;  %v9981_v36 = vor.u32 %v10769_v8, %v9980_v21  ;;  %6931 = vmatpush.bf16.msrb.mxu3 %v10045_v5 }
 0x64c   : > { %v5334_v48 = vpop.f32.mrf.mxu0  ;;  %v5363_v28 = vpop.f32.mrf.mxu1 }
 0x64d   : > { %v5364_v20 = vadd.f32 %v5363_v28, %v5334_v48  ;;  %6133 = vmatmul.bf16.gmra.mxu2 %v5943_v44  ;;  %6162 = vmatmul.bf16.gmra.mxu3 %v5944_v32  ;;  %v5884_v40 = vrot.slane %v5883_v37, 4 }
 0x64e   : > { %6621 = vmatpush.bf16.msrb.mxu1 %v9809_v57  ;;  %6902 = vmatpush.bf16.msrb.mxu2 %v9981_v36 }
 0x64f   : > { %v16000_v54 = vadd.f32 %v5364_v20, %v15745_v6  ;;  %6191 = vmatmul.bf16.gmra.mxu0 %v5943_v44  ;;  %6220 = vmatmul.bf16.gmra.mxu1 %v5944_v32  ;;  %v9798_v6 = vld [vmem:[%s17083_s11 + $0x588] sm:$0xf0]  ;;  %v5874_v44 = vrot.slane %v5872_v53, 5  ;;  %v5888_v32 = vrot.slane %v5886_v52, 5  ;;  %v10036_v53 = vld [vmem:[%s17083_s11 + $0x6e0] sm:$0xf] }
 0x650   : > { %v5276_v30 = vpop.f32.mrf.mxu2  ;;  %v5305_v24 = vpop.f32.mrf.mxu3  ;;  %v9801_v22 = vor.u32 %v10730_v34, %v9798_v6  ;;  %6593 = vmatpush.bf16.msrb.mxu0 %v9737_v7 }
 0x651   : > { %v5306_v13 = vadd.f32 %v5305_v24, %v5276_v30  ;;  %v5875_v20 = vsel %vm11796_vm15, %v5870_v27, %v5874_v44  ;;  %v5889_v0 = vsel %vm11796_vm15, %v5884_v40, %v5888_v32 }
 0x652   : > { %6622 = vmatpush.bf16.msrb.mxu1 %v9801_v22  ;;  %v5935_v9 = vunpack.c.l.b16 %v5875_v20  ;;  %v5936_v52 = vunpack.c.h.b16 %v5875_v20  ;;  %v5937_v21 = vunpack.c.l.b16 %v5889_v0  ;;  %v5938_v8 = vunpack.c.h.b16 %v5889_v0 }
 0x653   : > { %v16027_v48 = vadd.f32 %v5306_v13, %v15772_v41  ;;  %v9972_v41 = vld [vmem:[%s17083_s11 + $0x660] sm:$0xf]  ;;  %v10028_v13 = vld [vmem:[%s17083_s11 + $0x6d0] sm:$0xf] }
 0x654   : > { %v5336_v28 = vpop.f32.mrf.mxu0  ;;  %v5365_v2 = vpop.f32.mrf.mxu1  ;;  %v9973_v49 = vor.u32 %v10767_v12, %v9972_v41  ;;  %v5945_v37 = vpack.c.b16 %v5937_v21, %v5935_v9  ;;  %v5946_v22 = vpack.c.b16 %v5938_v8, %v5936_v52  ;;  %v9956_v12 = vld [vmem:[%s17083_s11 + $0x640] sm:$0xf]  ;;  %v10779_v52 = vld [vmem:[%s17083_s11 + $0x6c4] sm:$0xf0] }
 0x655   : > { %v5366_v57 = vadd.f32 %v5365_v2, %v5336_v28  ;;  %v10020_v9 = vld [vmem:[%s17083_s11 + $0x6c0] sm:$0xf] }
 0x656   : > { %6903 = vmatpush.bf16.msrb.mxu2 %v9973_v49 }
 0x657   : > { %v16032_v60 = vadd.f32 %v5366_v57, %v15775_v29  ;;  %v10783_v29 = vld [vmem:[%s17083_s11 + $0x6e4] sm:$0xf0] }
 0x658   : > { %v5278_v3 = vpop.f32.mrf.mxu2  ;;  %v5307_v34 = vpop.f32.mrf.mxu3  ;;  %v10037_v7 = vor.u32 %v10783_v29, %v10036_v53  ;;  %v10763_v53 = vld [vmem:[%s17083_s11 + $0x644] sm:$0xf0]  ;;  %v10021_v29 = vor.u32 %v10779_v52, %v10020_v9  ;;  %v10038_v9 = vld [vmem:[%s17083_s11 + $0x6e8] sm:$0xf0] }
 0x659   : > { %v5308_v6 = vadd.f32 %v5307_v34, %v5278_v3 }
 0x65a   : > { %6932 = vmatpush.bf16.msrb.mxu3 %v10037_v7 }
 0x65b   : > { %v16049_v30 = vadd.f32 %v5308_v6, %v15790_v18  ;;  %v10765_v18 = vld [vmem:[%s17083_s11 + $0x654] sm:$0xf0] }
 0x65c   : > { %v5339_v24 = vpop.f32.mrf.mxu0  ;;  %v5368_v27 = vpop.f32.mrf.mxu1  ;;  %v9965_v5 = vor.u32 %v10765_v18, %v9964_v58 }
 0x65d   : > { %v5369_v36 = vadd.f32 %v5368_v27, %v5339_v24  ;;  %6138 = vmatmul.bf16.gmra.mxu2 %v5945_v37  ;;  %6167 = vmatmul.bf16.gmra.mxu3 %v5946_v22  ;;  %v9948_v24 = vld [vmem:[%s17083_s11 + $0x630] sm:$0xf] }
 0x65e   : > { %6904 = vmatpush.bf16.msrb.mxu2 %v9965_v5  ;;  %v10012_v27 = vld [vmem:[%s17083_s11 + $0x6b0] sm:$0xf]  ;;  %v10046_v5 = vld [vmem:[%s17083_s11 + $0x6f8] sm:$0xf0] }
 0x65f   : > { %v16052_v14 = vadd.f32 %v5369_v36, %v15793_v25  ;;  %6196 = vmatmul.bf16.gmra.mxu0 %v5945_v37  ;;  %6225 = vmatmul.bf16.gmra.mxu1 %v5946_v22  ;;  %v10781_v25 = vld [vmem:[%s17083_s11 + $0x6d4] sm:$0xf0] }
 0x660   : > { %v5281_v44 = vpop.f32.mrf.mxu2  ;;  %v5310_v32 = vpop.f32.mrf.mxu3  ;;  %v10029_v28 = vor.u32 %v10781_v25, %v10028_v13  ;;  %v10784_v13 = vld [vmem:[%s17083_s11 + $0x6f4] sm:$0xf] }
 0x661   : > { %v5311_v2 = vadd.f32 %v5310_v32, %v5281_v44  ;;  %v10049_v44 = vor.u32 %v10784_v13, %v10046_v5  ;;  %v9958_v13 = vld [vmem:[%s17083_s11 + $0x648] sm:$0xf0]  ;;  %v10778_v5 = vld [vmem:[%s17083_s11 + $0x6c4] sm:$0xf] }
 0x662   : > { %6933 = vmatpush.bf16.msrb.mxu3 %v10029_v28 }
 0x663   : > { %v16067_v57 = vadd.f32 %v5311_v2, %v15808_v31  ;;  %v9957_v31 = vor.u32 %v10763_v53, %v9956_v12  ;;  %6989 = vmatpush.bf16.msra.mxu1 %v10049_v44  ;;  %v9974_v12 = vld [vmem:[%s17083_s11 + $0x668] sm:$0xf0] }
 0x664   : > { %v5341_v20 = vpop.f32.mrf.mxu0  ;;  %v5370_v40 = vpop.f32.mrf.mxu1 }
 0x665   : > { %v5371_v0 = vadd.f32 %v5370_v40, %v5341_v20  ;;  %6905 = vmatpush.bf16.msrb.mxu2 %v9957_v31  ;;  %v10759_v31 = vld [vmem:[%s17083_s11 + $0x624] sm:$0xf0] }
 0x666   : > { %6934 = vmatpush.bf16.msrb.mxu3 %v10021_v29 }
 0x667   : > { %v16070_v41 = vadd.f32 %v5371_v0, %v15815_v56  ;;  %v10766_v0 = vld [vmem:[%s17083_s11 + $0x664] sm:$0xf] }
 0x668   : > { %v5283_v49 = vpop.f32.mrf.mxu2  ;;  %v5312_v56 = vpop.f32.mrf.mxu3  ;;  %v9977_v53 = vor.u32 %v10766_v0, %v9974_v12  ;;  %v9996_v0 = vld [vmem:[%s17083_s11 + $0x690] sm:$0xf]  ;;  %v10773_v12 = vld [vmem:[%s17083_s11 + $0x694] sm:$0xf0] }
 0x669   : > { %v5313_v3 = vadd.f32 %v5312_v56, %v5283_v49 }
 0x66b   : > { %v16085_v34 = vadd.f32 %v5313_v3, %v15830_v43  ;;  %v10761_v43 = vld [vmem:[%s17083_s11 + $0x634] sm:$0xf0]  ;;  %v10004_v3 = vld [vmem:[%s17083_s11 + $0x6a0] sm:$0xf] }
 0x66c   : > { %v5697_v7 = vpop.f32.mrf.mxu0  ;;  %v5726_v6 = vpop.f32.mrf.mxu1  ;;  %v9949_v37 = vor.u32 %v10761_v43, %v9948_v24  ;;  %v9966_v43 = vld [vmem:[%s17083_s11 + $0x658] sm:$0xf0] }
 0x66d   : > { %v5727_v21 = vadd.f32 %v5726_v6, %v5697_v7  ;;  %6536 = vmatmul.bf16.vlgmr.msra.gmra.mxu2 %v15204_v10  ;;  %6565 = vmatmul.bf16.vlgmr.msra.gmra.mxu3 %v15215_v1  ;;  %v10775_v7 = vld [vmem:[%s17083_s11 + $0x6a4] sm:$0xf0]  ;;  %v10764_v6 = vld [vmem:[%s17083_s11 + $0x654] sm:$0xf] }
 0x66e   : > { %6906 = vmatpush.bf16.msrb.mxu2 %v9949_v37  ;;  %v10005_v24 = vor.u32 %v10775_v7, %v10004_v3  ;;  %v10030_v37 = vld [vmem:[%s17083_s11 + $0x6d8] sm:$0xf0] }
 0x66f   : > { %v16090_v8 = vadd.f32 %v5727_v21, %v15833_v63  ;;  %6594 = vmatmul.bf16.vlgmr.msrb.gmra.mxu0 %v15204_v10  ;;  %6623 = vmatmul.bf16.vlgmr.msrb.gmra.mxu1 %v15215_v1  ;;  %v10777_v63 = vld [vmem:[%s17083_s11 + $0x6b4] sm:$0xf0]  ;;  %v10768_v10 = vld [vmem:[%s17083_s11 + $0x674] sm:$0xf]  ;;  %v9982_v1 = vld [vmem:[%s17083_s11 + $0x678] sm:$0xf0] }
 0x670   : > { %v5639_v22 = vpop.f32.mrf.mxu2  ;;  %v5668_v36 = vpop.f32.mrf.mxu3  ;;  %v10013_v58 = vor.u32 %v10777_v63, %v10012_v27  ;;  %v9985_v18 = vor.u32 %v10768_v10, %v9982_v1  ;;  %v10780_v27 = vld [vmem:[%s17083_s11 + $0x6d4] sm:$0xf] }
 0x671   : > { %v5669_v25 = vadd.f32 %v5668_v36, %v5639_v22  ;;  %v9969_v22 = vor.u32 %v10764_v6, %v9966_v43  ;;  %v10033_v36 = vor.u32 %v10780_v27, %v10030_v37  ;;  %v10774_v43 = vld [vmem:[%s17083_s11 + $0x6a4] sm:$0xf]  ;;  %v9924_v37 = vld [vmem:[%s17083_s11 + $0x600] sm:$0xf] }
 0x672   : > { %6935 = vmatpush.bf16.msrb.mxu3 %v10013_v58  ;;  %6960 = vmatpush.bf16.msra.mxu0 %v9985_v18 }
 0x673   : > { %v16119_v32 = vadd.f32 %v5669_v25, %v15860_v23  ;;  %v10782_v23 = vld [vmem:[%s17083_s11 + $0x6e4] sm:$0xf]  ;;  %v10757_v25 = vld [vmem:[%s17083_s11 + $0x614] sm:$0xf0] }
 0x674   : > { %v5699_v28 = vpop.f32.mrf.mxu0  ;;  %v5728_v2 = vpop.f32.mrf.mxu1  ;;  %v10041_v56 = vor.u32 %v10782_v23, %v10038_v9  ;;  %v10760_v23 = vld [vmem:[%s17083_s11 + $0x634] sm:$0xf]  ;;  %v9997_v9 = vor.u32 %v10773_v12, %v9996_v0 }
 0x675   : > { %v5729_v20 = vadd.f32 %v5728_v2, %v5699_v28 }
 0x676   : > { %6961 = vmatpush.bf16.msra.mxu0 %v9977_v53  ;;  %6990 = vmatpush.bf16.msra.mxu1 %v10041_v56 }
 0x677   : > { %v16122_v40 = vadd.f32 %v5729_v20, %v15867_v50  ;;  %v9940_v50 = vld [vmem:[%s17083_s11 + $0x620] sm:$0xf]  ;;  %6936 = vmatpush.bf16.msrb.mxu3 %v10005_v24  ;;  %v10758_v24 = vld [vmem:[%s17083_s11 + $0x624] sm:$0xf] }
 0x678   : > { %v5641_v52 = vpop.f32.mrf.mxu2  ;;  %v5670_v49 = vpop.f32.mrf.mxu3  ;;  %v9941_v29 = vor.u32 %v10759_v31, %v9940_v50  ;;  %v9950_v50 = vld [vmem:[%s17083_s11 + $0x638] sm:$0xf0]  ;;  %v10776_v31 = vld [vmem:[%s17083_s11 + $0x6b4] sm:$0xf] }
 0x679   : > { %v5671_v21 = vadd.f32 %v5670_v49, %v5641_v52  ;;  %v10014_v52 = vld [vmem:[%s17083_s11 + $0x6b8] sm:$0xf0]  ;;  %v9953_v3 = vor.u32 %v10760_v23, %v9950_v50  ;;  %v10770_v50 = vld [vmem:[%s17083_s11 + $0x684] sm:$0xf] }
 0x67a   : > { %6907 = vmatpush.bf16.msrb.mxu2 %v9941_v29  ;;  %6962 = vmatpush.bf16.msra.mxu0 %v9969_v22  ;;  %v10017_v7 = vor.u32 %v10776_v31, %v10014_v52  ;;  %v10801_v31 = vld [vmem:[%s17083_s11 + $0x774] sm:$0xf0] }
 0x67b   : > { %v16161_v63 = vadd.f32 %v5671_v21, %v15906_v59  ;;  %v10762_v59 = vld [vmem:[%s17083_s11 + $0x644] sm:$0xf]  ;;  %6991 = vmatpush.bf16.msra.mxu1 %v10033_v36  ;;  %6937 = vmatpush.bf16.msrb.mxu3 %v9997_v9  ;;  %v9926_v9 = vld [vmem:[%s17083_s11 + $0x608] sm:$0xf0] }
 0x67c   : > { %v5702_v10 = vpop.f32.mrf.mxu0  ;;  %v5731_v1 = vpop.f32.mrf.mxu1 }
 0x67d   : > { %v5732_v58 = vadd.f32 %v5731_v1, %v5702_v10  ;;  %6541 = vmatmul.bf16.gmra.mxu2 %v15238_v61  ;;  %6570 = vmatmul.bf16.gmra.mxu3 %v15240_v26  ;;  %v10755_v10 = vld [vmem:[%s17083_s11 + $0x604] sm:$0xf0] }
 0x67f   : > { %v16166_v18 = vadd.f32 %v5732_v58, %v15909_v15  ;;  %6599 = vmatmul.bf16.gmra.mxu0 %v15238_v61  ;;  %6628 = vmatmul.bf16.gmra.mxu1 %v15240_v26  ;;  %v9961_v15 = vor.u32 %v10762_v59, %v9958_v13  ;;  %v10022_v61 = vld [vmem:[%s17083_s11 + $0x6c8] sm:$0xf0]  ;;  %v9932_v26 = vld [vmem:[%s17083_s11 + $0x610] sm:$0xf]  ;;  %v9925_v58 = vor.u32 %v10755_v10, %v9924_v37  ;;  %v9988_v59 = vld [vmem:[%s17083_s11 + $0x680] sm:$0xf] }
 0x680   : > { %v5644_v44 = vpop.f32.mrf.mxu2  ;;  %v5673_v28 = vpop.f32.mrf.mxu3  ;;  %v10025_v2 = vor.u32 %v10778_v5, %v10022_v61  ;;  %v9933_v20 = vor.u32 %v10757_v25, %v9932_v26  ;;  %v10771_v13 = vld [vmem:[%s17083_s11 + $0x684] sm:$0xf0]  ;;  %v10756_v5 = vld [vmem:[%s17083_s11 + $0x614] sm:$0xf]  ;;  %v9934_v26 = vld [vmem:[%s17083_s11 + $0x618] sm:$0xf0] }
 0x681   : > { %v5674_v53 = vadd.f32 %v5673_v28, %v5644_v44  ;;  %6963 = vmatpush.bf16.msra.mxu0 %v9961_v15  ;;  %v9989_v61 = vor.u32 %v10771_v13, %v9988_v59  ;;  %v10772_v25 = vld [vmem:[%s17083_s11 + $0x694] sm:$0xf]  ;;  %v9998_v44 = vld [vmem:[%s17083_s11 + $0x698] sm:$0xf0]  ;;  %v9937_v0 = vor.u32 %v10756_v5, %v9934_v26 }
 0x682   : > { %6908 = vmatpush.bf16.msrb.mxu2 %v9933_v20  ;;  %6992 = vmatpush.bf16.msra.mxu1 %v10025_v2  ;;  %v10001_v12 = vor.u32 %v10772_v25, %v9998_v44 }
 0x683   : > { %v16207_v49 = vadd.f32 %v5674_v53, %v15952_v39  ;;  %v9942_v39 = vld [vmem:[%s17083_s11 + $0x628] sm:$0xf0]  ;;  %6938 = vmatpush.bf16.msrb.mxu3 %v9989_v61 }
 0x684   : > { %v5704_v56 = vpop.f32.mrf.mxu0  ;;  %v5733_v29 = vpop.f32.mrf.mxu1  ;;  %v9945_v27 = vor.u32 %v10758_v24, %v9942_v39 }
 0x685   : > { %v5734_v6 = vadd.f32 %v5733_v29, %v5704_v56  ;;  %6964 = vmatpush.bf16.msra.mxu0 %v9953_v3 }
 0x686   : > { %6993 = vmatpush.bf16.msra.mxu1 %v10017_v7  ;;  %6909 = vmatpush.bf16.msrb.mxu2 %v9925_v58  ;;  %v10204_v7 = vld [vmem:[%s17083_s11 + $0x7f0] sm:$0xf]  ;;  %v10815_v58 = vld [vmem:[%s17083_s11 + $0x7e4] sm:$0xf0] }
 0x687   : > { %v16210_v21 = vadd.f32 %v5734_v6, %v15957_v46  ;;  %v10006_v46 = vld [vmem:[%s17083_s11 + $0x6a8] sm:$0xf0]  ;;  %v10817_v6 = vld [vmem:[%s17083_s11 + $0x7f4] sm:$0xf0] }
 0x688   : > { %v5646_v1 = vpop.f32.mrf.mxu2  ;;  %v5675_v22 = vpop.f32.mrf.mxu3  ;;  %v10009_v36 = vor.u32 %v10774_v43, %v10006_v46  ;;  %v10205_v39 = vor.u32 %v10817_v6, %v10204_v7  ;;  %v10747_v7 = vld [vmem:[#allocation3 + $0x2c] sm:$0xf0]  ;;  %v10746_v6 = vld [vmem:[#allocation3 + $0x24] sm:$0xf] }
 0x689   : > { %v5676_v15 = vadd.f32 %v5675_v22, %v5646_v1  ;;  %6965 = vmatpush.bf16.msra.mxu0 %v9945_v27  ;;  %v10132_v1 = vld [vmem:[%s17083_s11 + $0x760] sm:$0xf]  ;;  %v10799_v22 = vld [vmem:[%s17083_s11 + $0x764] sm:$0xf0] }
 0x68a   : > { %6994 = vmatpush.bf16.msra.mxu1 %v10009_v36  ;;  %7416 = vmatpush.bf16.msra.mxu3 %v10205_v39  ;;  %v10133_v36 = vor.u32 %v10799_v22, %v10132_v1 }
 0x68b   : > { %v16249_v28 = vadd.f32 %v5676_v15, %v15996_v55  ;;  %v10754_v55 = vld [vmem:[%s17083_s11 + $0x604] sm:$0xf] }
 0x68c   : > { %v5707_v2 = vpop.f32.mrf.mxu0  ;;  %v5736_v20 = vpop.f32.mrf.mxu1 }
 0x68d   : > { %v5737_v23 = vadd.f32 %v5736_v20, %v5707_v2  ;;  %6546 = vmatmul.bf16.gmra.mxu2 %v15268_v51  ;;  %6575 = vmatmul.bf16.gmra.mxu3 %v15270_v45  ;;  %v10124_v2 = vld [vmem:[%s17083_s11 + $0x750] sm:$0xf] }
 0x68e   : > { %6966 = vmatpush.bf16.msra.mxu0 %v9937_v0  ;;  %6995 = vmatpush.bf16.msra.mxu1 %v10001_v12  ;;  %v10188_v20 = vld [vmem:[%s17083_s11 + $0x7d0] sm:$0xf] }
 0x68f   : > { %v16254_v53 = vadd.f32 %v5737_v23, %v16000_v54  ;;  %6604 = vmatmul.bf16.gmra.mxu0 %v15268_v51  ;;  %6633 = vmatmul.bf16.gmra.mxu1 %v15270_v45  ;;  %v9929_v54 = vor.u32 %v10754_v55, %v9926_v9  ;;  %v9990_v51 = vld [vmem:[%s17083_s11 + $0x688] sm:$0xf0]  ;;  %v10140_v45 = vld [vmem:[%s17083_s11 + $0x770] sm:$0xf] }
 0x690   : > { %v5649_v52 = vpop.f32.mrf.mxu2  ;;  %v5678_v56 = vpop.f32.mrf.mxu3  ;;  %v9993_v29 = vor.u32 %v10770_v50, %v9990_v51  ;;  %v10141_v3 = vor.u32 %v10801_v31, %v10140_v45  ;;  %v10116_v45 = vld [vmem:[%s17083_s11 + $0x740] sm:$0xf]  ;;  %v10795_v31 = vld [vmem:[%s17083_s11 + $0x744] sm:$0xf0] }
 0x691   : > { %v5679_v24 = vadd.f32 %v5678_v56, %v5649_v52  ;;  %v10180_v52 = vld [vmem:[%s17083_s11 + $0x7c0] sm:$0xf]  ;;  %v10117_v56 = vor.u32 %v10795_v31, %v10116_v45  ;;  %v10748_v31 = vld [vmem:[#allocation3 + $0x44] sm:$0xf] }
 0x692   : > { %7387 = vmatpush.bf16.msra.mxu2 %v10141_v3  ;;  %6967 = vmatpush.bf16.msra.mxu0 %v9929_v54 }
 0x693   : > { %v16283_v43 = vadd.f32 %v5679_v24, %v16027_v48  ;;  %6996 = vmatpush.bf16.msra.mxu1 %v9993_v29  ;;  %v10196_v48 = vld [vmem:[%s17083_s11 + $0x7e0] sm:$0xf]  ;;  %v10811_v29 = vld [vmem:[%s17083_s11 + $0x7c4] sm:$0xf0]  ;;  %v9894_v24 = vld [vmem:[#allocation3 + $0x30] sm:$0xf0] }
 0x694   : > { %v5709_v27 = vpop.f32.mrf.mxu0  ;;  %v5738_v46 = vpop.f32.mrf.mxu1  ;;  %v10197_v13 = vor.u32 %v10815_v58, %v10196_v48  ;;  %v10181_v39 = vor.u32 %v10811_v29, %v10180_v52  ;;  %v9897_v48 = vor.u32 %v10746_v6, %v9894_v24  ;;  %v9902_v52 = vld [vmem:[#allocation3 + $0x50] sm:$0xf0] }
 0x695   : > { %v5739_v37 = vadd.f32 %v5738_v46, %v5709_v27 }
 0x696   : > { %7388 = vmatpush.bf16.msra.mxu2 %v10133_v36  ;;  %7417 = vmatpush.bf16.msra.mxu3 %v10197_v13 }
 0x697   : > { %v16286_v10 = vadd.f32 %v5739_v37, %v16032_v60 }
 0x698   : > { %v5651_v59 = vpop.f32.mrf.mxu2  ;;  %v5680_v60 = vpop.f32.mrf.mxu3 }
 0x699   : > { %v5681_v5 = vadd.f32 %v5680_v60, %v5651_v59  ;;  %v10108_v59 = vld [vmem:[%s17083_s11 + $0x730] sm:$0xf] }
 0x69a   : > { %v10172_v60 = vld [vmem:[%s17083_s11 + $0x7b0] sm:$0xf] }
 0x69b   : > { %v16301_v15 = vadd.f32 %v5681_v5, %v16049_v30  ;;  %v10797_v30 = vld [vmem:[%s17083_s11 + $0x754] sm:$0xf0]  ;;  %v10800_v5 = vld [vmem:[%s17083_s11 + $0x774] sm:$0xf] }
 0x69c   : > { %v5712_v61 = vpop.f32.mrf.mxu0  ;;  %v5741_v26 = vpop.f32.mrf.mxu1  ;;  %v10125_v0 = vor.u32 %v10797_v30, %v10124_v2 }
 0x69d   : > { %v5742_v25 = vadd.f32 %v5741_v26, %v5712_v61  ;;  %6551 = vmatmul.bf16.gmra.mxu2 %v15288_v35  ;;  %6580 = vmatmul.bf16.gmra.mxu3 %v15290_v47  ;;  %v10142_v61 = vld [vmem:[%s17083_s11 + $0x778] sm:$0xf0] }
 0x69e   : > { %7389 = vmatpush.bf16.msra.mxu2 %v10125_v0  ;;  %v10145_v30 = vor.u32 %v10800_v5, %v10142_v61  ;;  %v10206_v0 = vld [vmem:[%s17083_s11 + $0x7f8] sm:$0xf0]  ;;  %v9905_v61 = vor.u32 %v10748_v31, %v9902_v52  ;;  %v10156_v31 = vld [vmem:[%s17083_s11 + $0x790] sm:$0xf]  ;;  %v10805_v52 = vld [vmem:[%s17083_s11 + $0x794] sm:$0xf0] }
 0x69f   : > { %v16306_v44 = vadd.f32 %v5742_v25, %v16052_v14  ;;  %6609 = vmatmul.bf16.gmra.mxu0 %v15288_v35  ;;  %6638 = vmatmul.bf16.gmra.mxu1 %v15290_v47  ;;  %v10813_v14 = vld [vmem:[%s17083_s11 + $0x7d4] sm:$0xf0] }
 0x6a0   : > { %v5654_v35 = vpop.f32.mrf.mxu2  ;;  %v5683_v12 = vpop.f32.mrf.mxu3  ;;  %v10189_v47 = vor.u32 %v10813_v14, %v10188_v20  ;;  %v10816_v20 = vld [vmem:[%s17083_s11 + $0x7f4] sm:$0xf]  ;;  %7445 = vmatpush.bf16.msrb.mxu0 %v10145_v30 }
 0x6a1   : > { %v5684_v23 = vadd.f32 %v5683_v12, %v5654_v35  ;;  %v10209_v35 = vor.u32 %v10816_v20, %v10206_v0  ;;  %v10794_v20 = vld [vmem:[%s17083_s11 + $0x744] sm:$0xf] }
 0x6a2   : > { %7418 = vmatpush.bf16.msra.mxu3 %v10189_v47  ;;  %7390 = vmatpush.bf16.msra.mxu2 %v10117_v56  ;;  %v10814_v56 = vld [vmem:[%s17083_s11 + $0x7e4] sm:$0xf] }
 0x6a3   : > { %v16323_v55 = vadd.f32 %v5684_v23, %v16067_v57  ;;  %v9892_v57 = vld [vmem:[#allocation3 + $0x20] sm:$0xf]  ;;  %7474 = vmatpush.bf16.msrb.mxu1 %v10209_v35  ;;  %v10810_v0 = vld [vmem:[%s17083_s11 + $0x7c4] sm:$0xf] }
 0x6a4   : > { %v5714_v9 = vpop.f32.mrf.mxu0  ;;  %v5743_v50 = vpop.f32.mrf.mxu1  ;;  %v9893_v22 = vor.u32 %v10747_v7, %v9892_v57  ;;  %v10798_v57 = vld [vmem:[%s17083_s11 + $0x764] sm:$0xf]  ;;  %v10092_v35 = vld [vmem:[%s17083_s11 + $0x710] sm:$0xf] }
 0x6a5   : > { %v5744_v54 = vadd.f32 %v5743_v50, %v5714_v9  ;;  %v9900_v50 = vld [vmem:[#allocation3 + $0x40] sm:$0xf] }
 0x6a6   : > { %7419 = vmatpush.bf16.msra.mxu3 %v10181_v39 }
 0x6a7   : > { %v16326_v51 = vadd.f32 %v5744_v54, %v16070_v41  ;;  %v10749_v54 = vld [vmem:[#allocation3 + $0x4c] sm:$0xf0] }
 0x6a8   : > { %v5656_v41 = vpop.f32.mrf.mxu2  ;;  %v5685_v3 = vpop.f32.mrf.mxu3 }
 0x6a9   : > { %v5686_v27 = vadd.f32 %v5685_v3, %v5656_v41  ;;  %v10100_v41 = vld [vmem:[%s17083_s11 + $0x720] sm:$0xf]  ;;  %v10791_v3 = vld [vmem:[%s17083_s11 + $0x724] sm:$0xf0] }
 0x6aa   : > { %v10101_v39 = vor.u32 %v10791_v3, %v10100_v41  ;;  %v10174_v41 = vld [vmem:[%s17083_s11 + $0x7b8] sm:$0xf0] }
 0x6ab   : > { %v16341_v46 = vadd.f32 %v5686_v27, %v16085_v34  ;;  %v10793_v34 = vld [vmem:[%s17083_s11 + $0x734] sm:$0xf0]  ;;  %v10164_v27 = vld [vmem:[%s17083_s11 + $0x7a0] sm:$0xf] }
 0x6ac   : > { %v6182_v37 = vpop.f32.mrf.mxu0  ;;  %v6211_v1 = vpop.f32.mrf.mxu1  ;;  %v10109_v13 = vor.u32 %v10793_v34, %v10108_v59  ;;  %v10812_v59 = vld [vmem:[%s17083_s11 + $0x7d4] sm:$0xf]  ;;  %v10190_v34 = vld [vmem:[%s17083_s11 + $0x7d8] sm:$0xf0] }
 0x6ad   : > { %v6212_v36 = vadd.f32 %v6211_v1, %v6182_v37  ;;  %6910 = vmatmul.bf16.vlgmr.msrb.gmra.mxu2 %v9893_v22  ;;  %6939 = vmatmul.bf16.vlgmr.msrb.gmra.mxu3 %v9897_v48  ;;  %v10807_v37 = vld [vmem:[%s17083_s11 + $0x7a4] sm:$0xf0]  ;;  %v10796_v1 = vld [vmem:[%s17083_s11 + $0x754] sm:$0xf] }
 0x6ae   : > { %7391 = vmatpush.bf16.msra.mxu2 %v10109_v13 }
 0x6af   : > { %v16344_v58 = vadd.f32 %v6212_v36, %v16090_v8  ;;  %6968 = vmatmul.bf16.vlgmr.msra.gmra.mxu0 %v9893_v22  ;;  %6997 = vmatmul.bf16.vlgmr.msra.gmra.mxu1 %v9897_v48  ;;  %v10809_v8 = vld [vmem:[%s17083_s11 + $0x7b4] sm:$0xf0]  ;;  %v10165_v48 = vor.u32 %v10807_v37, %v10164_v27  ;;  %v10126_v36 = vld [vmem:[%s17083_s11 + $0x758] sm:$0xf0]  ;;  %v9908_v37 = vld [vmem:[#allocation3 + $0x60] sm:$0xf] }
 0x6b0   : > { %v6124_v26 = vpop.f32.mrf.mxu2  ;;  %v6153_v25 = vpop.f32.mrf.mxu3  ;;  %v10173_v2 = vor.u32 %v10809_v8, %v10172_v60  ;;  %v9901_v60 = vor.u32 %v10749_v54, %v9900_v50 }
 0x6b1   : > { %v6154_v14 = vadd.f32 %v6153_v25, %v6124_v26  ;;  %v10129_v26 = vor.u32 %v10796_v1, %v10126_v36  ;;  %v10193_v25 = vor.u32 %v10812_v59, %v10190_v34  ;;  %v10751_v1 = vld [vmem:[#allocation3 + $0x6c] sm:$0xf0]  ;;  %v10102_v59 = vld [vmem:[%s17083_s11 + $0x728] sm:$0xf0]  ;;  %v10806_v34 = vld [vmem:[%s17083_s11 + $0x7a4] sm:$0xf] }
 0x6b2   : > { %7420 = vmatpush.bf16.msra.mxu3 %v10173_v2  ;;  %7392 = vmatpush.bf16.msra.mxu2 %v10101_v39 }
 0x6b3   : > { %v16371_v12 = vadd.f32 %v6154_v14, %v16119_v32  ;;  %v10134_v32 = vld [vmem:[%s17083_s11 + $0x768] sm:$0xf0] }
 0x6b4   : > { %v6184_v47 = vpop.f32.mrf.mxu0  ;;  %v6213_v23 = vpop.f32.mrf.mxu1  ;;  %v10137_v29 = vor.u32 %v10798_v57, %v10134_v32  ;;  %v10792_v57 = vld [vmem:[%s17083_s11 + $0x734] sm:$0xf] }
 0x6b5   : > { %v6214_v9 = vadd.f32 %v6213_v23, %v6184_v47  ;;  %v10789_v47 = vld [vmem:[%s17083_s11 + $0x714] sm:$0xf0] }
 0x6b6   : > { %7446 = vmatpush.bf16.msrb.mxu0 %v10137_v29  ;;  %7421 = vmatpush.bf16.msra.mxu3 %v10165_v48  ;;  %v10093_v54 = vor.u32 %v10789_v47, %v10092_v35  ;;  %v10110_v29 = vld [vmem:[%s17083_s11 + $0x738] sm:$0xf0]  ;;  %v9910_v48 = vld [vmem:[#allocation3 + $0x70] sm:$0xf0]  ;;  %v10804_v47 = vld [vmem:[%s17083_s11 + $0x794] sm:$0xf] }
 0x6b7   : > { %v16374_v45 = vadd.f32 %v6214_v9, %v16122_v40  ;;  %v10198_v40 = vld [vmem:[%s17083_s11 + $0x7e8] sm:$0xf0]  ;;  %v10094_v35 = vld [vmem:[%s17083_s11 + $0x718] sm:$0xf0] }
 0x6b8   : > { %v6126_v7 = vpop.f32.mrf.mxu2  ;;  %v6155_v6 = vpop.f32.mrf.mxu3  ;;  %v10201_v24 = vor.u32 %v10814_v56, %v10198_v40  ;;  %v10157_v56 = vor.u32 %v10805_v52, %v10156_v31  ;;  %v10808_v40 = vld [vmem:[%s17083_s11 + $0x7b4] sm:$0xf]  ;;  %7393 = vmatpush.bf16.msra.mxu2 %v10093_v54 }
 0x6b9   : > { %v6156_v22 = vadd.f32 %v6155_v6, %v6126_v7  ;;  %v10177_v39 = vor.u32 %v10808_v40, %v10174_v41  ;;  %v10086_v40 = vld [vmem:[%s17083_s11 + $0x708] sm:$0xf0]  ;;  %v10802_v41 = vld [vmem:[%s17083_s11 + $0x784] sm:$0xf] }
 0x6ba   : > { %7475 = vmatpush.bf16.msrb.mxu1 %v10201_v24  ;;  %7447 = vmatpush.bf16.msrb.mxu0 %v10129_v26  ;;  %v10113_v24 = vor.u32 %v10792_v57, %v10110_v29 }
 0x6bb   : > { %v16413_v13 = vadd.f32 %v6156_v22, %v16161_v63  ;;  %v10118_v63 = vld [vmem:[%s17083_s11 + $0x748] sm:$0xf0]  ;;  %7422 = vmatpush.bf16.msra.mxu3 %v10157_v56  ;;  %v10750_v22 = vld [vmem:[#allocation3 + $0x64] sm:$0xf] }
 0x6bc   : > { %v6187_v8 = vpop.f32.mrf.mxu0  ;;  %v6216_v5 = vpop.f32.mrf.mxu1  ;;  %v10121_v14 = vor.u32 %v10794_v20, %v10118_v63  ;;  %v10148_v20 = vld [vmem:[%s17083_s11 + $0x780] sm:$0xf]  ;;  %v10803_v63 = vld [vmem:[%s17083_s11 + $0x784] sm:$0xf0] }
 0x6bd   : > { %v6217_v2 = vadd.f32 %v6216_v5, %v6187_v8  ;;  %6915 = vmatmul.bf16.gmra.mxu2 %v9901_v60  ;;  %6944 = vmatmul.bf16.gmra.mxu3 %v9905_v61  ;;  %v10084_v8 = vld [vmem:[%s17083_s11 + $0x700] sm:$0xf]  ;;  %v10787_v5 = vld [vmem:[%s17083_s11 + $0x704] sm:$0xf0] }
 0x6be   : > { %7476 = vmatpush.bf16.msrb.mxu1 %v10193_v25  ;;  %7448 = vmatpush.bf16.msrb.mxu0 %v10121_v14 }
 0x6bf   : > { %v16416_v30 = vadd.f32 %v6217_v2, %v16166_v18  ;;  %6973 = vmatmul.bf16.gmra.mxu0 %v9901_v60  ;;  %7002 = vmatmul.bf16.gmra.mxu1 %v9905_v61  ;;  %v10182_v18 = vld [vmem:[%s17083_s11 + $0x7c8] sm:$0xf0]  ;;  %v10085_v2 = vor.u32 %v10787_v5, %v10084_v8 }
 0x6c0   : > { %v6129_v23 = vpop.f32.mrf.mxu2  ;;  %v6158_v9 = vpop.f32.mrf.mxu3  ;;  %v10185_v50 = vor.u32 %v10810_v0, %v10182_v18  ;;  %v10788_v0 = vld [vmem:[%s17083_s11 + $0x714] sm:$0xf]  ;;  %v10149_v18 = vor.u32 %v10803_v63, %v10148_v20 }
 0x6c1   : > { %v6159_v32 = vadd.f32 %v6158_v9, %v6129_v23  ;;  %v10158_v23 = vld [vmem:[%s17083_s11 + $0x798] sm:$0xf0]  ;;  %v9909_v9 = vor.u32 %v10751_v1, %v9908_v37  ;;  %7394 = vmatpush.bf16.msra.mxu2 %v10085_v2  ;;  %v10097_v57 = vor.u32 %v10788_v0, %v10094_v35  ;;  %v7034_v1 = vld [vmem:[#allocation3 + $0x20] sm:$0xff]  ;;  %v10753_v35 = vld [vmem:[#allocation3 + $0x8c] sm:$0xf0] }
 0x6c2   : > { %7477 = vmatpush.bf16.msrb.mxu1 %v10185_v50  ;;  %7449 = vmatpush.bf16.msrb.mxu0 %v10113_v24  ;;  %v9913_v50 = vor.u32 %v10750_v22, %v9910_v48  ;;  %v10833_v24 = vld [vmem:[%s17083_s11 + $0x874] sm:$0xf0]  ;;  %v10372_v48 = vld [vmem:[%s17083_s11 + $0x8f0] sm:$0xf] }
 0x6c3   : > { %v16455_v3 = vadd.f32 %v6159_v32, %v16207_v49  ;;  %v10790_v49 = vld [vmem:[%s17083_s11 + $0x724] sm:$0xf]  ;;  %v10161_v32 = vor.u32 %v10804_v47, %v10158_v23  ;;  %7423 = vmatpush.bf16.msra.mxu3 %v10149_v18  ;;  %v9916_v0 = vld [vmem:[#allocation3 + $0x80] sm:$0xf]  ;;  %v10364_v18 = vld [vmem:[%s17083_s11 + $0x8e0] sm:$0xf] }
 0x6c4   : > { %v6189_v7 = vpop.f32.mrf.mxu0  ;;  %v6218_v6 = vpop.f32.mrf.mxu1  ;;  %v10105_v60 = vor.u32 %v10790_v49, %v10102_v59  ;;  %v10849_v49 = vld [vmem:[%s17083_s11 + $0x8f4] sm:$0xf0] }
 0x6c5   : > { %v6219_v27 = vadd.f32 %v6218_v6, %v6189_v7  ;;  %v10308_v6 = vld [vmem:[%s17083_s11 + $0x870] sm:$0xf] }
 0x6c6   : > { %7478 = vmatpush.bf16.msrb.mxu1 %v10177_v39  ;;  %7450 = vmatpush.bf16.msrb.mxu0 %v10105_v60  ;;  %v10309_v22 = vor.u32 %v10833_v24, %v10308_v6  ;;  %v10373_v60 = vor.u32 %v10849_v49, %v10372_v48  ;;  %v9917_v6 = vor.u32 %v10753_v35, %v9916_v0  ;;  %v10989_v48 = vld [vmem:[#allocation3 + $0x38] sm:$0x11] }
 0x6c7   : > { %v16458_v36 = vadd.f32 %v6219_v27, %v16210_v21  ;;  %v10166_v21 = vld [vmem:[%s17083_s11 + $0x7a8] sm:$0xf0]  ;;  %v7074_v49 = vshll.u32 %v10989_v48, 16 }
 0x6c8   : > { %v6131_v61 = vpop.f32.mrf.mxu2  ;;  %v6160_v26 = vpop.f32.mrf.mxu3  ;;  %v10169_v25 = vor.u32 %v10806_v34, %v10166_v21  ;;  %v7036_v34 = vld [vmem:[#allocation3 + $0x30] sm:$0xff]  ;;  %7800 = vmatpush.bf16.msrb.mxu2 %v10309_v22  ;;  %7829 = vmatpush.bf16.msrb.mxu3 %v10373_v60 }
 0x6c9   : > { %v6161_v14 = vadd.f32 %v6160_v26, %v6131_v61  ;;  %v7051_v61 = vshrl.u32 %v7034_v1, 16  ;;  %v7054_v26 = vshll.u32 %v7034_v1, 16  ;;  %v7065_v2 = vshrl.u32 %v7036_v34, 16 }
 0x6ca   : > { %7479 = vmatpush.bf16.msrb.mxu1 %v10169_v25  ;;  %7451 = vmatpush.bf16.msrb.mxu0 %v10097_v57  ;;  %v7068_v20 = vshll.u32 %v7036_v34, 16  ;;  %v9918_v57 = vld [vmem:[#allocation3 + $0x90] sm:$0xf0] }
 0x6cb   : > { %v16497_v54 = vadd.f32 %v6161_v14, %v16249_v28  ;;  %v10786_v28 = vld [vmem:[%s17083_s11 + $0x704] sm:$0xf]  ;;  %v10300_v14 = vld [vmem:[%s17083_s11 + $0x860] sm:$0xf]  ;;  %v7053_v47 = vrot.slane %v7051_v61, 4  ;;  %v7056_v23 = vrot.slane %v7054_v26, 5 }
 0x6cc   : > { %v6192_v31 = vpop.f32.mrf.mxu0  ;;  %v6221_v52 = vpop.f32.mrf.mxu1  ;;  %v10089_v7 = vor.u32 %v10786_v28, %v10086_v40  ;;  %v7040_v34 = vld [vmem:[#allocation3 + $0x50] sm:$0xff] }
 0x6cd   : > { %v6222_v56 = vadd.f32 %v6221_v52, %v6192_v31  ;;  %6920 = vmatmul.bf16.gmra.mxu2 %v9909_v9  ;;  %6949 = vmatmul.bf16.gmra.mxu3 %v9913_v50  ;;  %v10752_v52 = vld [vmem:[#allocation3 + $0x84] sm:$0xf] }
 0x6ce   : > { %7480 = vmatpush.bf16.msrb.mxu1 %v10161_v32  ;;  %7452 = vmatpush.bf16.msrb.mxu0 %v10089_v7  ;;  %v7067_v32 = vrot.slane %v7065_v2, 4  ;;  %v9921_v24 = vor.u32 %v10752_v52, %v9918_v57 }
 0x6cf   : > { %v16500_v29 = vadd.f32 %v6222_v56, %v16254_v53  ;;  %6978 = vmatmul.bf16.gmra.mxu0 %v9909_v9  ;;  %7007 = vmatmul.bf16.gmra.mxu1 %v9913_v50  ;;  %v10150_v53 = vld [vmem:[%s17083_s11 + $0x788] sm:$0xf0]  ;;  %v7070_v56 = vrot.slane %v7068_v20, 5 }
 0x6d0   : > { %v6134_v39 = vpop.f32.mrf.mxu2  ;;  %v6163_v27 = vpop.f32.mrf.mxu3  ;;  %v10153_v37 = vor.u32 %v10802_v41, %v10150_v53 }
 0x6d1   : > { %v6164_v59 = vadd.f32 %v6163_v27, %v6134_v39  ;;  %v7057_v39 = vor.u32 %v7056_v23, %v7053_v47  ;;  %v7071_v22 = vor.u32 %v7070_v56, %v7067_v32  ;;  %v7093_v47 = vshrl.u32 %v7040_v34, 16 }
 0x6d2   : > { %7481 = vmatpush.bf16.msrb.mxu1 %v10153_v37  ;;  %v10988_v37 = vld [vmem:[#allocation3 + $0x28] sm:$0x11]  ;;  %v7096_v23 = vshll.u32 %v7040_v34, 16 }
 0x6d3   : > { %v16527_v21 = vadd.f32 %v6164_v59, %v16283_v43  ;;  %v10831_v43 = vld [vmem:[%s17083_s11 + $0x864] sm:$0xf0]  ;;  %v7060_v1 = vshll.u32 %v10988_v37, 16  ;;  %v7038_v59 = vld [vmem:[#allocation3 + $0x40] sm:$0xff]  ;;  %v7058_v61 = vrot.slane %v7057_v39, 4  ;;  %v7072_v0 = vrot.slane %v7071_v22, 4 }
 0x6d4   : > { %v6194_v8 = vpop.f32.mrf.mxu0  ;;  %v6223_v5 = vpop.f32.mrf.mxu1  ;;  %v10301_v9 = vor.u32 %v10831_v43, %v10300_v14  ;;  %v7079_v14 = vshrl.u32 %v7038_v59, 16  ;;  %v7082_v35 = vshll.u32 %v7038_v59, 16  ;;  %v10348_v39 = vld [vmem:[%s17083_s11 + $0x8c0] sm:$0xf]  ;;  %v10990_v59 = vld [vmem:[#allocation3 + $0x48] sm:$0x11] }
 0x6d5   : > { %v6224_v25 = vadd.f32 %v6223_v5, %v6194_v8  ;;  %v10829_v8 = vld [vmem:[%s17083_s11 + $0x854] sm:$0xf0]  ;;  %v10356_v5 = vld [vmem:[%s17083_s11 + $0x8d0] sm:$0xf]  ;;  %v7062_v20 = vrot.slane %v7060_v1, 5  ;;  %v7088_v34 = vshll.u32 %v10990_v59, 16 }
 0x6d6   : > { %7801 = vmatpush.bf16.msrb.mxu2 %v10301_v9  ;;  %v7076_v9 = vrot.slane %v7074_v49, 5  ;;  %v7081_v56 = vrot.slane %v7079_v14, 4 }
 0x6d7   : > { %v16530_v63 = vadd.f32 %v6224_v25, %v16286_v10  ;;  %v10847_v10 = vld [vmem:[%s17083_s11 + $0x8e4] sm:$0xf0]  ;;  %v7063_v52 = vsel %vm11796_vm15, %v7058_v61, %v7062_v20 }
 0x6d8   : > { %v6136_v50 = vpop.f32.mrf.mxu2  ;;  %v6165_v31 = vpop.f32.mrf.mxu3  ;;  %v10365_v28 = vor.u32 %v10847_v10, %v10364_v18  ;;  %v7077_v32 = vsel %vm11796_vm15, %v7072_v0, %v7076_v9  ;;  %v7196_v37 = vunpack.c.h.b16 %v7063_v52  ;;  %v7042_v9 = vld [vmem:[#allocation3 + $0x60] sm:$0xff] }
 0x6d9   : > { %v6166_v40 = vadd.f32 %v6165_v31, %v6136_v50  ;;  %v7198_v1 = vunpack.c.h.b16 %v7077_v32 }
 0x6da   : > { %7830 = vmatpush.bf16.msrb.mxu3 %v10365_v28  ;;  %v7084_v28 = vrot.slane %v7082_v35, 5  ;;  %v7090_v35 = vrot.slane %v7088_v34, 5 }
 0x6db   : > { %v16545_v41 = vadd.f32 %v6166_v40, %v16301_v15  ;;  %v10292_v15 = vld [vmem:[%s17083_s11 + $0x850] sm:$0xf]  ;;  %v7095_v40 = vrot.slane %v7093_v47, 4  ;;  %v7212_v14 = vpack.c.b16 %v7198_v1, %v7196_v37  ;;  %v10374_v37 = vld [vmem:[%s17083_s11 + $0x8f8] sm:$0xf0] }
 0x6dc   : > { %v6197_v7 = vpop.f32.mrf.mxu0  ;;  %v6226_v53 = vpop.f32.mrf.mxu1  ;;  %v10293_v26 = vor.u32 %v10829_v8, %v10292_v15 }
 0x6dd   : > { %v6227_v27 = vadd.f32 %v6226_v53, %v6197_v7  ;;  %6925 = vmatmul.bf16.gmra.mxu2 %v9917_v6  ;;  %6954 = vmatmul.bf16.gmra.mxu3 %v9921_v24  ;;  %v7098_v7 = vrot.slane %v7096_v23, 5 }
 0x6de   : > { %7802 = vmatpush.bf16.msrb.mxu2 %v10293_v26  ;;  %v10991_v26 = vld [vmem:[#allocation3 + $0x58] sm:$0x11] }
 0x6df   : > { %v16548_v60 = vadd.f32 %v6227_v27, %v16306_v44  ;;  %6983 = vmatmul.bf16.gmra.mxu0 %v9917_v6  ;;  %7012 = vmatmul.bf16.gmra.mxu1 %v9921_v24  ;;  %v10845_v44 = vld [vmem:[%s17083_s11 + $0x8d4] sm:$0xf0]  ;;  %v7195_v6 = vunpack.c.l.b16 %v7063_v52  ;;  %v10827_v24 = vld [vmem:[%s17083_s11 + $0x844] sm:$0xf0]  ;;  %v7197_v27 = vunpack.c.l.b16 %v7077_v32  ;;  %v7099_v61 = vor.u32 %v7098_v7, %v7095_v40 }
 0x6e0   : > { %v6139_v25 = vpop.f32.mrf.mxu2  ;;  %v6168_v2 = vpop.f32.mrf.mxu3  ;;  %v10357_v43 = vor.u32 %v10845_v44, %v10356_v5  ;;  %v7085_v5 = vor.u32 %v7084_v28, %v7081_v56  ;;  %v7102_v44 = vshll.u32 %v10991_v26, 16  ;;  %v10825_v52 = vld [vmem:[%s17083_s11 + $0x834] sm:$0xf0]  ;;  %v10832_v56 = vld [vmem:[%s17083_s11 + $0x874] sm:$0xf] }
 0x6e1   : > { %v6169_v18 = vadd.f32 %v6168_v2, %v6139_v25  ;;  %v7211_v0 = vpack.c.b16 %v7197_v27, %v7195_v6  ;;  %v7100_v47 = vrot.slane %v7099_v61, 4  ;;  %v10310_v28 = vld [vmem:[%s17083_s11 + $0x878] sm:$0xf0]  ;;  %v7107_v6 = vshrl.u32 %v7042_v9, 16  ;;  %v10848_v27 = vld [vmem:[%s17083_s11 + $0x8f4] sm:$0xf] }
 0x6e2   : > { %7831 = vmatpush.bf16.msrb.mxu3 %v10357_v43  ;;  %v7104_v23 = vrot.slane %v7102_v44, 5  ;;  %v10992_v44 = vld [vmem:[#allocation3 + $0x68] sm:$0x11] }
 0x6e3   : > { %v16563_v10 = vadd.f32 %v6169_v18, %v16323_v55  ;;  %v10284_v55 = vld [vmem:[%s17083_s11 + $0x840] sm:$0xf]  ;;  %v7086_v18 = vrot.slane %v7085_v5, 4  ;;  %v7109_v61 = vrot.slane %v7107_v6, 4 }
 0x6e4   : > { %v6199_v50 = vpop.f32.mrf.mxu0  ;;  %v6228_v31 = vpop.f32.mrf.mxu1  ;;  %v10285_v22 = vor.u32 %v10827_v24, %v10284_v55  ;;  %v7110_v55 = vshll.u32 %v7042_v9, 16 }
 0x6e5   : > { %v6229_v57 = vadd.f32 %v6228_v31, %v6199_v50  ;;  %v7044_v50 = vld [vmem:[#allocation3 + $0x70] sm:$0xff] }
 0x6e6   : > { %7803 = vmatpush.bf16.msrb.mxu2 %v10285_v22  ;;  %v7121_v22 = vshrl.u32 %v7044_v50, 16  ;;  %v7112_v26 = vrot.slane %v7110_v55, 5  ;;  %v10332_v55 = vld [vmem:[%s17083_s11 + $0x8a0] sm:$0xf] }
 0x6e7   : > { %v16570_v53 = vadd.f32 %v6229_v57, %v16326_v51  ;;  %v10843_v51 = vld [vmem:[%s17083_s11 + $0x8c4] sm:$0xf0]  ;;  %v10340_v57 = vld [vmem:[%s17083_s11 + $0x8b0] sm:$0xf] }
 0x6e8   : > { %v6141_v48 = vpop.f32.mrf.mxu2  ;;  %v6170_v49 = vpop.f32.mrf.mxu3  ;;  %v10349_v15 = vor.u32 %v10843_v51, %v10348_v39  ;;  %v16608_v39 = vor.u32 %v10832_v56, %v10310_v28  ;;  %v7124_v51 = vshll.u32 %v7044_v50, 16 }
 0x6e9   : > { %v6171_v8 = vadd.f32 %v6170_v49, %v6141_v48  ;;  %v16616_v48 = vor.u32 %v10848_v27, %v10374_v37  ;;  %v10828_v27 = vld [vmem:[%s17083_s11 + $0x854] sm:$0xf] }
 0x6ea   : > { %7832 = vmatpush.bf16.msrb.mxu3 %v10349_v15  ;;  %7858 = vmatpush.bf16.msra.mxu0 %v16608_v39  ;;  %v7091_v15 = vsel %vm11796_vm15, %v7086_v18, %v7090_v35  ;;  %v10830_v18 = vld [vmem:[%s17083_s11 + $0x864] sm:$0xf]  ;;  %v10302_v35 = vld [vmem:[%s17083_s11 + $0x868] sm:$0xf0] }
 0x6eb   : > { %v16585_v25 = vadd.f32 %v6171_v8, %v16341_v46  ;;  %v10276_v46 = vld [vmem:[%s17083_s11 + $0x830] sm:$0xf]  ;;  %v7105_v8 = vsel %vm11796_vm15, %v7100_v47, %v7104_v23  ;;  %7887 = vmatpush.bf16.msra.mxu1 %v16616_v48  ;;  %v7199_v9 = vunpack.c.l.b16 %v7091_v15  ;;  %v10846_v47 = vld [vmem:[%s17083_s11 + $0x8e4] sm:$0xf]  ;;  %v7200_v23 = vunpack.c.h.b16 %v7091_v15 }
 0x6ec   : > { %v6595_v2 = vpop.f32.mrf.mxu0  ;;  %v6624_v20 = vpop.f32.mrf.mxu1  ;;  %v10277_v32 = vor.u32 %v10825_v52, %v10276_v46  ;;  %v7201_v50 = vunpack.c.l.b16 %v7105_v8  ;;  %v7202_v46 = vunpack.c.h.b16 %v7105_v8  ;;  %v16639_v52 = vor.u32 %v10830_v18, %v10302_v35 }
 0x6ed   : > { %v6625_v43 = vadd.f32 %v6624_v20, %v6595_v2  ;;  %7395 = vmatmul.bf16.vlgmr.msra.gmra.mxu2 %v7211_v0  ;;  %7424 = vmatmul.bf16.vlgmr.msra.gmra.mxu3 %v7212_v14  ;;  %v7116_v2 = vshll.u32 %v10992_v44, 16  ;;  %v7123_v20 = vrot.slane %v7121_v22, 4 }
 0x6ee   : > { %7804 = vmatpush.bf16.msrb.mxu2 %v10277_v32  ;;  %v10823_v32 = vld [vmem:[%s17083_s11 + $0x824] sm:$0xf0]  ;;  %7859 = vmatpush.bf16.msra.mxu0 %v16639_v52  ;;  %v7213_v15 = vpack.c.b16 %v7201_v50, %v7199_v9  ;;  %v7214_v44 = vpack.c.b16 %v7202_v46, %v7200_v23  ;;  %v10826_v46 = vld [vmem:[%s17083_s11 + $0x844] sm:$0xf] }
 0x6ef   : > { %v16588_v31 = vadd.f32 %v6625_v43, %v16344_v58  ;;  %7453 = vmatmul.bf16.vlgmr.msrb.gmra.mxu0 %v7211_v0  ;;  %7482 = vmatmul.bf16.vlgmr.msrb.gmra.mxu1 %v7212_v14  ;;  %v10841_v58 = vld [vmem:[%s17083_s11 + $0x8b4] sm:$0xf0]  ;;  %v7126_v0 = vrot.slane %v7124_v51, 5  ;;  %v10993_v14 = vld [vmem:[#allocation3 + $0x78] sm:$0x11]  ;;  %v7118_v8 = vrot.slane %v7116_v2, 5 }
 0x6f0   : > { %v6537_v40 = vpop.f32.mrf.mxu2  ;;  %v6566_v7 = vpop.f32.mrf.mxu3  ;;  %v10341_v24 = vor.u32 %v10841_v58, %v10340_v57  ;;  %v10268_v57 = vld [vmem:[%s17083_s11 + $0x820] sm:$0xf]  ;;  %v16650_v58 = vld [vmem:[#allocation3 + $0x80] sm:$0xff]  ;;  %v10294_v51 = vld [vmem:[%s17083_s11 + $0x858] sm:$0xf0] }
 0x6f1   : > { %v6567_v1 = vadd.f32 %v6566_v7, %v6537_v40  ;;  %v7113_v40 = vor.u32 %v7112_v26, %v7109_v61  ;;  %v10269_v6 = vor.u32 %v10823_v32, %v10268_v57  ;;  %v7135_v9 = vshrl.u32 %v16650_v58, 16  ;;  %v10842_v57 = vld [vmem:[%s17083_s11 + $0x8c4] sm:$0xf]  ;;  %v10350_v32 = vld [vmem:[%s17083_s11 + $0x8c8] sm:$0xf0] }
 0x6f2   : > { %7833 = vmatpush.bf16.msrb.mxu3 %v10341_v24  ;;  %v10839_v24 = vld [vmem:[%s17083_s11 + $0x8a4] sm:$0xf0]  ;;  %v7138_v50 = vshll.u32 %v16650_v58, 16  ;;  %v10260_v58 = vld [vmem:[%s17083_s11 + $0x810] sm:$0xf] }
 0x6f3   : > { %v16620_v49 = vadd.f32 %v6567_v1, %v16371_v12  ;;  %v7130_v12 = vshll.u32 %v10993_v14, 16  ;;  %v7127_v1 = vor.u32 %v7126_v0, %v7123_v20  ;;  %v10333_v22 = vor.u32 %v10839_v24, %v10332_v55  ;;  %7805 = vmatpush.bf16.msrb.mxu2 %v10269_v6  ;;  %v10324_v24 = vld [vmem:[%s17083_s11 + $0x890] sm:$0xf] }
 0x6f4   : > { %v6597_v59 = vpop.f32.mrf.mxu0  ;;  %v6626_v34 = vpop.f32.mrf.mxu1  ;;  %v16677_v20 = vor.u32 %v10828_v27, %v10294_v51  ;;  %v7114_v18 = vrot.slane %v7113_v40, 4  ;;  %v16708_v6 = vor.u32 %v10842_v57, %v10350_v32  ;;  %v10837_v27 = vld [vmem:[%s17083_s11 + $0x894] sm:$0xf0]  ;;  %v10278_v51 = vld [vmem:[%s17083_s11 + $0x838] sm:$0xf0]  ;;  %v16741_v57 = vrot.slane %v7135_v9, 4 }
 0x6f5   : > { %v6627_v5 = vadd.f32 %v6626_v34, %v6597_v59  ;;  %v10844_v59 = vld [vmem:[%s17083_s11 + $0x8d4] sm:$0xf]  ;;  %v10358_v34 = vld [vmem:[%s17083_s11 + $0x8d8] sm:$0xf0]  ;;  %v7132_v35 = vrot.slane %v7130_v12, 5  ;;  %v7128_v2 = vrot.slane %v7127_v1, 4 }
 0x6f6   : > { %7834 = vmatpush.bf16.msrb.mxu3 %v10333_v22  ;;  %v16679_v0 = vor.u32 %v10844_v59, %v10358_v34  ;;  %v10286_v12 = vld [vmem:[%s17083_s11 + $0x848] sm:$0xf0]  ;;  %7860 = vmatpush.bf16.msra.mxu0 %v16677_v20  ;;  %v10325_v22 = vor.u32 %v10837_v27, %v10324_v24  ;;  %v10840_v59 = vld [vmem:[%s17083_s11 + $0x8b4] sm:$0xf]  ;;  %v10342_v34 = vld [vmem:[%s17083_s11 + $0x8b8] sm:$0xf0] }
 0x6f7   : > { %v16628_v43 = vadd.f32 %v6627_v5, %v16374_v45  ;;  %v10366_v45 = vld [vmem:[%s17083_s11 + $0x8e8] sm:$0xf0] }
 0x6f8   : > { %v6539_v56 = vpop.f32.mrf.mxu2  ;;  %v6568_v28 = vpop.f32.mrf.mxu3  ;;  %v16652_v7 = vor.u32 %v10846_v47, %v10366_v45  ;;  %v10270_v9 = vld [vmem:[%s17083_s11 + $0x828] sm:$0xf0] }
 0x6f9   : > { %v6569_v37 = vadd.f32 %v6568_v28, %v6539_v56  ;;  %v10821_v56 = vld [vmem:[%s17083_s11 + $0x814] sm:$0xf0] }
 0x6fa   : > { %7888 = vmatpush.bf16.msra.mxu1 %v16652_v7  ;;  %v10261_v55 = vor.u32 %v10821_v56, %v10260_v58  ;;  %7835 = vmatpush.bf16.msrb.mxu3 %v10325_v22  ;;  %v10835_v22 = vld [vmem:[%s17083_s11 + $0x884] sm:$0xf0] }
 0x6fb   : > { %v16675_v5 = vadd.f32 %v6569_v37, %v16413_v13  ;;  %v10994_v13 = vld [vmem:[#allocation3] sm:$0xff] }
 0x6fc   : > { %v6600_v61 = vpop.f32.mrf.mxu0  ;;  %v6629_v26 = vpop.f32.mrf.mxu1  ;;  %v7149_v47 = vshrl.u32 %v10994_v13, 16  ;;  %v7152_v45 = vshll.u32 %v10994_v13, 16  ;;  %v10824_v37 = vld [vmem:[%s17083_s11 + $0x834] sm:$0xf]  ;;  %7806 = vmatpush.bf16.msrb.mxu2 %v10261_v55 }
 0x6fd   : > { %v6630_v14 = vadd.f32 %v6629_v26, %v6600_v61  ;;  %7400 = vmatmul.bf16.gmra.mxu2 %v7213_v15  ;;  %7429 = vmatmul.bf16.gmra.mxu3 %v7214_v44  ;;  %v7133_v61 = vsel %vm11796_vm15, %v7128_v2, %v7132_v35  ;;  %v16737_v13 = vor.u32 %v10824_v37, %v10278_v51  ;;  %v10820_v51 = vld [vmem:[%s17083_s11 + $0x814] sm:$0xf] }
 0x6fe   : > { %7889 = vmatpush.bf16.msra.mxu1 %v16679_v0  ;;  %v7151_v35 = vrot.slane %v7149_v47, 4  ;;  %v7154_v2 = vrot.slane %v7152_v45, 5  ;;  %v7205_v32 = vunpack.c.l.b16 %v7133_v61  ;;  %v7206_v56 = vunpack.c.h.b16 %v7133_v61  ;;  %v10334_v47 = vld [vmem:[%s17083_s11 + $0x8a8] sm:$0xf0]  ;;  %v10252_v45 = vld [vmem:[%s17083_s11 + $0x800] sm:$0xf] }
 0x6ff   : > { %v16684_v23 = vadd.f32 %v6630_v14, %v16416_v30  ;;  %7458 = vmatmul.bf16.gmra.mxu0 %v7213_v15  ;;  %7487 = vmatmul.bf16.gmra.mxu1 %v7214_v44  ;;  %v16697_v30 = vor.u32 %v10826_v46, %v10286_v12  ;;  %v7119_v15 = vsel %vm11796_vm15, %v7114_v18, %v7118_v8  ;;  %v7140_v18 = vrot.slane %v7138_v50, 5  ;;  %v10838_v50 = vld [vmem:[%s17083_s11 + $0x8a4] sm:$0xf]  ;;  %v10836_v61 = vld [vmem:[%s17083_s11 + $0x894] sm:$0xf] }
 0x700   : > { %v6542_v28 = vpop.f32.mrf.mxu2  ;;  %v6571_v40 = vpop.f32.mrf.mxu3  ;;  %v16739_v46 = vor.u32 %v10840_v59, %v10342_v34  ;;  %v7203_v8 = vunpack.c.l.b16 %v7119_v15  ;;  %v7204_v58 = vunpack.c.h.b16 %v7119_v15  ;;  %v16768_v27 = vor.u32 %v10838_v50, %v10334_v47  ;;  %v10262_v15 = vld [vmem:[%s17083_s11 + $0x818] sm:$0xf0] }
 0x701   : > { %v6572_v1 = vadd.f32 %v6571_v40, %v6542_v28  ;;  %7861 = vmatpush.bf16.msra.mxu0 %v16697_v30  ;;  %v10822_v28 = vld [vmem:[%s17083_s11 + $0x824] sm:$0xf]  ;;  %v10819_v40 = vld [vmem:[%s17083_s11 + $0x804] sm:$0xf0]  ;;  %v16793_v47 = vor.u32 %v10820_v51, %v10262_v15 }
 0x702   : > { %7890 = vmatpush.bf16.msra.mxu1 %v16708_v6  ;;  %v10253_v37 = vor.u32 %v10819_v40, %v10252_v45 }
 0x703   : > { %v16733_v26 = vadd.f32 %v6572_v1, %v16455_v3  ;;  %v10316_v1 = vld [vmem:[%s17083_s11 + $0x880] sm:$0xf] }
 0x704   : > { %v6602_v44 = vpop.f32.mrf.mxu0  ;;  %v6631_v14 = vpop.f32.mrf.mxu1  ;;  %v10317_v34 = vor.u32 %v10835_v22, %v10316_v1  ;;  %7807 = vmatpush.bf16.msrb.mxu2 %v10253_v37  ;;  %v10818_v37 = vld [vmem:[%s17083_s11 + $0x804] sm:$0xf] }
 0x705   : > { %v6632_v12 = vadd.f32 %v6631_v14, %v6602_v44  ;;  %7862 = vmatpush.bf16.msra.mxu0 %v16737_v13  ;;  %v10326_v44 = vld [vmem:[%s17083_s11 + $0x898] sm:$0xf0]  ;;  %v7215_v14 = vpack.c.b16 %v7205_v32, %v7203_v8  ;;  %v10995_v8 = vld [vmem:[#allocation3 + $0x98] sm:$0x11] }
 0x706   : > { %7891 = vmatpush.bf16.msra.mxu1 %v16739_v46  ;;  %v16795_v45 = vor.u32 %v10836_v61, %v10326_v44  ;;  %v7158_v32 = vshll.u32 %v10995_v8, 16  ;;  %7836 = vmatpush.bf16.msrb.mxu3 %v10317_v34 }
 0x707   : > { %v16744_v3 = vadd.f32 %v6632_v12, %v16458_v36  ;;  %v16757_v36 = vor.u32 %v10822_v28, %v10270_v9  ;;  %v7216_v12 = vpack.c.b16 %v7206_v56, %v7204_v58 }
 0x708   : > { %v6544_v55 = vpop.f32.mrf.mxu2  ;;  %v6573_v24 = vpop.f32.mrf.mxu3  ;;  %10850 = vmatpush.bf16.msra.mxu2 %v16608_v39  ;;  %v10834_v39 = vld [vmem:[%s17083_s11 + $0x884] sm:$0xf]  ;;  %v7160_v51 = vrot.slane %v7158_v32, 5 }
 0x709   : > { %v6574_v59 = vadd.f32 %v6573_v24, %v6544_v55  ;;  %7863 = vmatpush.bf16.msra.mxu0 %v16757_v36  ;;  %v7141_v55 = vor.u32 %v7140_v18, %v16741_v57  ;;  %v7155_v24 = vor.u32 %v7154_v2, %v7151_v35  ;;  %v10254_v57 = vld [vmem:[%s17083_s11 + $0x808] sm:$0xf0] }
 0x70a   : > { %7892 = vmatpush.bf16.msra.mxu1 %v16768_v27  ;;  %v10318_v18 = vld [vmem:[%s17083_s11 + $0x888] sm:$0xf0]  ;;  %10858 = vmatpush.bf16.msra.mxu3 %v16616_v48 }
 0x70b   : > { %v16789_v28 = vadd.f32 %v6574_v59, %v16497_v54  ;;  %v10996_v54 = vld [vmem:[#allocation3 + $0x88] sm:$0x11]  ;;  %v7142_v1 = vrot.slane %v7141_v55, 4  ;;  %v7156_v22 = vrot.slane %v7155_v24, 4  ;;  %v10321_v59 = vor.u32 %v10834_v39, %v10318_v18 }
 0x70c   : > { %v6605_v9 = vpop.f32.mrf.mxu0  ;;  %v6634_v50 = vpop.f32.mrf.mxu1  ;;  %v7144_v58 = vshll.u32 %v10996_v54, 16  ;;  %10851 = vmatpush.bf16.msra.mxu2 %v16639_v52 }
 0x70d   : > { %v6635_v40 = vadd.f32 %v6634_v50, %v6605_v9  ;;  %7405 = vmatmul.bf16.gmra.mxu2 %v7215_v14  ;;  %7434 = vmatmul.bf16.gmra.mxu3 %v7216_v12  ;;  %v7161_v50 = vsel %vm11796_vm15, %v7156_v22, %v7160_v51 }
 0x70e   : > { %7864 = vmatpush.bf16.msra.mxu0 %v16793_v47  ;;  %7893 = vmatpush.bf16.msra.mxu1 %v16795_v45  ;;  %v7146_v15 = vrot.slane %v7144_v58, 5  ;;  %v7209_v52 = vunpack.c.l.b16 %v7161_v50  ;;  %v7210_v55 = vunpack.c.h.b16 %v7161_v50 }
 0x70f   : > { %v16800_v56 = vadd.f32 %v6635_v40, %v16500_v29  ;;  %7463 = vmatmul.bf16.gmra.mxu0 %v7215_v14  ;;  %7492 = vmatmul.bf16.gmra.mxu1 %v7216_v12  ;;  %v10257_v29 = vor.u32 %v10818_v37, %v10254_v57 }
 0x710   : > { %v6547_v35 = vpop.f32.mrf.mxu2  ;;  %v6576_v2 = vpop.f32.mrf.mxu3  ;;  %v7147_v9 = vsel %vm11796_vm15, %v7142_v1, %v7146_v15  ;;  %10859 = vmatpush.bf16.msra.mxu3 %v16652_v7  ;;  %10852 = vmatpush.bf16.msra.mxu2 %v16677_v20 }
 0x711   : > { %v6577_v34 = vadd.f32 %v6576_v2, %v6547_v35  ;;  %v7208_v40 = vunpack.c.h.b16 %v7147_v9 }
 0x712   : > { %7865 = vmatpush.bf16.msra.mxu0 %v10257_v29  ;;  %7894 = vmatpush.bf16.msra.mxu1 %v10321_v59 }
 0x713   : > { %v16819_v61 = vadd.f32 %v6577_v34, %v16527_v21  ;;  %v7207_v21 = vunpack.c.l.b16 %v7147_v9  ;;  %v7218_v58 = vpack.c.b16 %v7210_v55, %v7208_v40 }
 0x714   : > { %v6607_v44 = vpop.f32.mrf.mxu0  ;;  %v6636_v14 = vpop.f32.mrf.mxu1  ;;  %10860 = vmatpush.bf16.msra.mxu3 %v16679_v0  ;;  %10853 = vmatpush.bf16.msra.mxu2 %v16697_v30 }
 0x715   : > { %v6637_v12 = vadd.f32 %v6636_v14, %v6607_v44  ;;  %v7217_v20 = vpack.c.b16 %v7209_v52, %v7207_v21 }
 0x717   : > { %v16828_v48 = vadd.f32 %v6637_v12, %v16530_v63 }
 0x718   : > { %v6549_v24 = vpop.f32.mrf.mxu2  ;;  %v6578_v8 = vpop.f32.mrf.mxu3  ;;  %10861 = vmatpush.bf16.msra.mxu3 %v16708_v6  ;;  %10854 = vmatpush.bf16.msra.mxu2 %v16737_v13 }
 0x719   : > { %v6579_v32 = vadd.f32 %v6578_v8, %v6549_v24 }
 0x71b   : > { %v16833_v42 = vadd.f32 %v6579_v32, %v16545_v41 }
 0x71c   : > { %v6610_v7 = vpop.f32.mrf.mxu0  ;;  %v6639_v54 = vpop.f32.mrf.mxu1  ;;  %10862 = vmatpush.bf16.msra.mxu3 %v16739_v46  ;;  %10855 = vmatpush.bf16.msra.mxu2 %v16757_v36 }
 0x71d   : > { %v6640_v63 = vadd.f32 %v6639_v54, %v6610_v7  ;;  %7410 = vmatmul.bf16.gmra.mxu2 %v7217_v20  ;;  %7439 = vmatmul.bf16.gmra.mxu3 %v7218_v58 }
 0x71f   : > { %v16838_v37 = vadd.f32 %v6640_v63, %v16548_v60  ;;  %7468 = vmatmul.bf16.gmra.mxu0 %v7217_v20  ;;  %7497 = vmatmul.bf16.gmra.mxu1 %v7218_v58 }
 0x720   : > { %v6552_v0 = vpop.f32.mrf.mxu2  ;;  %v6581_v30 = vpop.f32.mrf.mxu3  ;;  %10863 = vmatpush.bf16.msra.mxu3 %v16768_v27  ;;  %10856 = vmatpush.bf16.msra.mxu2 %v16793_v47 }
 0x721   : > { %v6582_v41 = vadd.f32 %v6581_v30, %v6552_v0 }
 0x723   : > { %v16843_v57 = vadd.f32 %v6582_v41, %v16563_v10 }
 0x724   : > { %v6612_v6 = vpop.f32.mrf.mxu0  ;;  %v6641_v39 = vpop.f32.mrf.mxu1  ;;  %10864 = vmatpush.bf16.msra.mxu3 %v16795_v45  ;;  %10857 = vmatpush.bf16.msra.mxu2 %v10257_v29 }
 0x725   : > { %v6642_v13 = vadd.f32 %v6641_v39, %v6612_v6 }
 0x727   : > { %v16848_v60 = vadd.f32 %v6642_v13, %v16570_v53 }
 0x728   : > { %v6554_v18 = vpop.f32.mrf.mxu2  ;;  %v6583_v35 = vpop.f32.mrf.mxu3  ;;  %10865 = vmatpush.bf16.msra.mxu3 %v10321_v59 }
 0x729   : > { %v6584_v46 = vadd.f32 %v6583_v35, %v6554_v18 }
 0x72b   : > { %v16852_v36 = vadd.f32 %v6584_v46, %v16585_v25 }
 0x72c   : > { %v6969_v10 = vpop.f32.mrf.mxu0  ;;  %v6998_v2 = vpop.f32.mrf.mxu1 }
 0x72d   : > { %v6999_v1 = vadd.f32 %v6998_v2, %v6969_v10  ;;  %7808 = vmatmul.bf16.vlgmr.msrb.gmra.mxu2 %v15352_v38  ;;  %7837 = vmatmul.bf16.vlgmr.msrb.gmra.mxu3 %v15354_v4 }
 0x72f   : > { %v16857_v53 = vadd.f32 %v6999_v1, %v16588_v31  ;;  %7866 = vmatmul.bf16.vlgmr.msra.gmra.mxu0 %v15352_v38  ;;  %7895 = vmatmul.bf16.vlgmr.msra.gmra.mxu1 %v15354_v4 }
 0x730   : > { %v6911_v27 = vpop.f32.mrf.mxu2  ;;  %v6940_v47 = vpop.f32.mrf.mxu3 }
 0x731   : > { %v6941_v45 = vadd.f32 %v6940_v47, %v6911_v27 }
 0x733   : > { %v16862_v25 = vadd.f32 %v6941_v45, %v16620_v49 }
 0x734   : > { %v6971_v29 = vpop.f32.mrf.mxu0  ;;  %v7000_v22 = vpop.f32.mrf.mxu1 }
 0x735   : > { %v7001_v51 = vadd.f32 %v7000_v22, %v6971_v29 }
 0x737   : > { %v16865_v59 = vadd.f32 %v7001_v51, %v16628_v43 }
 0x738   : > { %v6913_v34 = vpop.f32.mrf.mxu2  ;;  %v6942_v15 = vpop.f32.mrf.mxu3 }
 0x739   : > { %v6943_v31 = vadd.f32 %v6942_v15, %v6913_v34 }
 0x73b   : > { %v16868_v44 = vadd.f32 %v6943_v31, %v16675_v5 }
 0x73c   : > { %v6974_v38 = vpop.f32.mrf.mxu0  ;;  %v7003_v4 = vpop.f32.mrf.mxu1 }
 0x73d   : > { %v7004_v14 = vadd.f32 %v7003_v4, %v6974_v38  ;;  %7813 = vmatmul.bf16.gmra.mxu2 %v15398_v17  ;;  %7842 = vmatmul.bf16.gmra.mxu3 %v15402_v16 }
 0x73f   : > { %v16873_v49 = vadd.f32 %v7004_v14, %v16684_v23  ;;  %7871 = vmatmul.bf16.gmra.mxu0 %v15398_v17  ;;  %7900 = vmatmul.bf16.gmra.mxu1 %v15402_v16 }
 0x740   : > { %v6916_v43 = vpop.f32.mrf.mxu2  ;;  %v6945_v12 = vpop.f32.mrf.mxu3 }
 0x741   : > { %v6946_v9 = vadd.f32 %v6945_v12, %v6916_v43 }
 0x743   : > { %v16878_v5 = vadd.f32 %v6946_v9, %v16733_v26 }
 0x744   : > { %v6976_v50 = vpop.f32.mrf.mxu0  ;;  %v7005_v21 = vpop.f32.mrf.mxu1 }
 0x745   : > { %v7006_v52 = vadd.f32 %v7005_v21, %v6976_v50 }
 0x747   : > { %v16881_v40 = vadd.f32 %v7006_v52, %v16744_v3 }
 0x748   : > { %v6918_v55 = vpop.f32.mrf.mxu2  ;;  %v6947_v24 = vpop.f32.mrf.mxu3 }
 0x749   : > { %v6948_v23 = vadd.f32 %v6947_v24, %v6918_v55 }
 0x74b   : > { %v16884_v8 = vadd.f32 %v6948_v23, %v16789_v28 }
 0x74c   : > { %v6979_v17 = vpop.f32.mrf.mxu0  ;;  %v7008_v16 = vpop.f32.mrf.mxu1 }
 0x74d   : > { %v7009_v32 = vadd.f32 %v7008_v16, %v6979_v17  ;;  %7818 = vmatmul.bf16.gmra.mxu2 %v15448_v62  ;;  %7847 = vmatmul.bf16.gmra.mxu3 %v15450_v19 }
 0x74f   : > { %v16889_v26 = vadd.f32 %v7009_v32, %v16800_v56  ;;  %7876 = vmatmul.bf16.gmra.mxu0 %v15448_v62  ;;  %7905 = vmatmul.bf16.gmra.mxu1 %v15450_v19 }
 0x750   : > { %v6921_v3 = vpop.f32.mrf.mxu2  ;;  %v6950_v7 = vpop.f32.mrf.mxu3 }
 0x751   : > { %v6951_v54 = vadd.f32 %v6950_v7, %v6921_v3 }
 0x753   : > { %v16894_v28 = vadd.f32 %v6951_v54, %v16819_v61 }
 0x754   : > { %v6981_v20 = vpop.f32.mrf.mxu0  ;;  %v7010_v58 = vpop.f32.mrf.mxu1 }
 0x755   : > { %v7011_v63 = vadd.f32 %v7010_v58, %v6981_v20 }
 0x757   : > { %v16897_v0 = vadd.f32 %v7011_v63, %v16828_v48 }
 0x758   : > { %v6923_v30 = vpop.f32.mrf.mxu2  ;;  %v6952_v41 = vpop.f32.mrf.mxu3 }
 0x759   : > { %v6953_v56 = vadd.f32 %v6952_v41, %v6923_v30 }
 0x75b   : > { %v16900_v6 = vadd.f32 %v6953_v56, %v16833_v42 }
 0x75c   : > { %v6984_v62 = vpop.f32.mrf.mxu0  ;;  %v7013_v19 = vpop.f32.mrf.mxu1 }
 0x75d   : > { %v7014_v39 = vadd.f32 %v7013_v19, %v6984_v62  ;;  %7823 = vmatmul.bf16.gmra.mxu2 %v15460_v11  ;;  %7852 = vmatmul.bf16.gmra.mxu3 %v15462_v33  ;;  %v7932_v19 = vld [vmem:[%s17084_s12] sm:$0x3] }
 0x75f   : > { %v7031_v61 = vadd.f32 %v7014_v39, %v16838_v37 }
 0x760   : > { %v6926_v13 = vpop.f32.mrf.mxu2  ;;  %v6955_v18 = vpop.f32.mrf.mxu3 }
 0x761   : > { %v6956_v35 = vadd.f32 %v6955_v18, %v6926_v13 }
 0x763   : > { %v16906_v48 = vadd.f32 %v6956_v35, %v16843_v57  ;;  %v16958_v35 = vperm.slane %v7932_v19, 1 }
 0x764   : > { %v6986_v46 = vpop.f32.mrf.mxu0  ;;  %v7015_v10 = vpop.f32.mrf.mxu1 }
 0x765   : > { %v7016_v2 = vadd.f32 %v7015_v10, %v6986_v46 }
 0x767   : > { %v7033_v42 = vadd.f32 %v7016_v2, %v16848_v60  ;;  %v17258_v2 = vld [vmem:[#allocation17_spill] sm:$0xff] }
 0x768   : > { %v6928_v1 = vpop.f32.mrf.mxu2  ;;  %v6957_v27 = vpop.f32.mrf.mxu3 }
 0x769   : > { %v6958_v47 = vadd.f32 %v6957_v27, %v6928_v1 }
 0x76b   : > { %v16910_v45 = vadd.f32 %v6958_v47, %v16852_v36 }
 0x76c   : > { %v7454_v29 = vpop.f32.mrf.mxu0  ;;  %v7483_v22 = vpop.f32.mrf.mxu1 }
 0x76d   : > { %7881 = vmatmul.bf16.vlgmr.msra.gmra.mxu2 %v15460_v11  ;;  %7910 = vmatmul.bf16.vlgmr.msra.gmra.mxu3 %v15462_v33  ;;  %v7484_v41 = vadd.f32 %v7483_v22, %v7454_v29 }
 0x76f   : > { %v7504_v13 = vadd.f32 %v7484_v41, %v16857_v53  ;;  %v10997_v53 = vld [vmem:[%s17077_s5] sm:$0x3]  ;;  %v17260_v41 = vld [vmem:[#allocation11_spill] sm:$0xff] }
 0x770   : > { %v7396_v37 = vpop.f32.mrf.mxu2  ;;  %v7425_v57 = vpop.f32.mrf.mxu3 }
 0x771   : > { %v7426_v46 = vadd.f32 %v7425_v57, %v7396_v37  ;;  %v16972_v37 = vperm.slane %v10997_v53, 0 }
 0x773   : > { %v7503_v57 = vadd.f32 %v7426_v46, %v16862_v25 }
 0x774   : > { %v7456_v51 = vpop.f32.mrf.mxu0  ;;  %v7485_v34 = vpop.f32.mrf.mxu1 }
 0x775   : > { %v7486_v27 = vadd.f32 %v7485_v34, %v7456_v51  ;;  %v16975_v51 = vperm.slane %v7932_v19, 0  ;;  %v17261_v19 = vld [vmem:[#allocation8_spill] sm:$0xff] }
 0x776   : > { %v550_v46 = vadd.f32 %v17261_v19, %v17258_v2 }
 0x778   : > { %v7398_v15 = vpop.f32.mrf.mxu2  ;;  %v7427_v31 = vpop.f32.mrf.mxu3 }
 0x77c   : > { %v7459_v38 = vpop.f32.mrf.mxu0  ;;  %v7488_v60 = vpop.f32.mrf.mxu1 }
 0x780   : > { %v16914_v4 = vpop.f32.mrf.mxu2  ;;  %v16916_v14 = vpop.f32.mrf.mxu3 }
 0x784   : > { %v16918_v36 = vpop.f32.mrf.mxu0  ;;  %v16920_v43 = vpop.f32.mrf.mxu1 }
 0x788   : > { %v16922_v12 = vpop.f32.mrf.mxu2  ;;  %v16924_v11 = vpop.f32.mrf.mxu3 }
 0x78c   : > { %v16926_v33 = vpop.f32.mrf.mxu0  ;;  %v16928_v9 = vpop.f32.mrf.mxu1 }
 0x790   : > { %v16930_v50 = vpop.f32.mrf.mxu2  ;;  %v16932_v21 = vpop.f32.mrf.mxu3 }
 0x794   : > { %v16934_v52 = vpop.f32.mrf.mxu0  ;;  %v16936_v55 = vpop.f32.mrf.mxu1 }
 0x798   : > { %v16938_v24 = vpop.f32.mrf.mxu2  ;;  %v16940_v23 = vpop.f32.mrf.mxu3 }
 0x79c   : > { %v7469_v17 = vpop.f32.mrf.mxu0  ;;  %v7498_v16 = vpop.f32.mrf.mxu1 }
 0x79d   : > { %v7499_v32 = vadd.f32 %v7498_v16, %v7469_v17 }
 0x79f   : > { %v16942_v3 = vadd.f32 %v7499_v32, %v7031_v61 }
 0x7a0   : > { %v16944_v7 = vpop.f32.mrf.mxu2  ;;  %v16946_v54 = vpop.f32.mrf.mxu3 }
 0x7a4   : > { %v7471_v20 = vpop.f32.mrf.mxu0  ;;  %v7500_v58 = vpop.f32.mrf.mxu1 }
 0x7a5   : > { %v7501_v63 = vadd.f32 %v7500_v58, %v7471_v20  ;;  %v7506_v58 = vadd.f32 %v7486_v27, %v16865_v59 }
 0x7a7   : > { %v16948_v30 = vadd.f32 %v7501_v63, %v7033_v42  ;;  %v17259_v42 = vld [vmem:[#allocation7_spill] sm:$0xff] }
 0x7a8   : > { %v16950_v56 = vpop.f32.mrf.mxu2  ;;  %v16952_v62 = vpop.f32.mrf.mxu3  ;;  %v547_v1 = vadd.f32 %v17259_v42, %v17258_v2 }
 0x7ac   : > { %v7867_v39 = vpop.f32.mrf.mxu0  ;;  %v7896_v61 = vpop.f32.mrf.mxu1 }
 0x7ad   : > { %v7897_v18 = vadd.f32 %v7896_v61, %v7867_v39  ;;  %v506_v39 = vadd.f32 %v17260_v41, %v16972_v37  ;;  %v7428_v61 = vadd.f32 %v7427_v31, %v7398_v15 }
 0x7af   : > { %v7917_v10 = vadd.f32 %v7897_v18, %v7504_v13  ;;  %v7505_v59 = vadd.f32 %v7428_v61, %v16868_v44 }
 0x7b0   : > { %v7809_v29 = vpop.f32.mrf.mxu2  ;;  %v7838_v22 = vpop.f32.mrf.mxu3 }
 0x7b1   : > { %v7939_v47 = vadd.f32 %v16958_v35, %v7917_v10  ;;  %v7839_v17 = vadd.f32 %v7838_v22, %v7809_v29  ;;  %v7489_v10 = vadd.f32 %v7488_v60, %v7459_v38  ;;  %v7431_v60 = vadd.f32 %v16916_v14, %v16914_v4 }
 0x7b3   : > { %v7955_v34 = vadd.f32 %v7939_v47, %v547_v1  ;;  %v7916_v16 = vadd.f32 %v7839_v17, %v7503_v57  ;;  %v7508_v53 = vadd.f32 %v7489_v10, %v16873_v49  ;;  %v17262_v17 = vld [vmem:[#allocation13_spill] sm:$0xff] }
 0x7b4   : > { %v7869_v32 = vpop.f32.mrf.mxu0  ;;  %v7898_v20 = vpop.f32.mrf.mxu1  ;;  %v509_v38 = vadd.f32 %v17262_v17, %v16972_v37 }
 0x7b5   : > { %7971 = vst [vmem:[%s16967_s18 + $0x8] sm:$0xff] %v7955_v34  ;;  %v7899_v63 = vadd.f32 %v7898_v20, %v7869_v32  ;;  %v7938_v13 = vadd.f32 %v16975_v51, %v7916_v16  ;;  %v17263_v32 = vld [vmem:[#allocation10_spill] sm:$0xff] }
 0x7b6   : > { %v553_v20 = vadd.f32 %v17263_v32, %v17258_v2  ;;  %v7496_v32 = vadd.f32 %v16936_v55, %v16934_v52  ;;  %v17268_v52 = vld [vmem:[#allocation20_spill] sm:$0xff] }
 0x7b7   : > { %v7919_v25 = vadd.f32 %v7899_v63, %v7506_v58  ;;  %v7954_v18 = vadd.f32 %v7938_v13, %v506_v39  ;;  %v7491_v58 = vadd.f32 %v16920_v43, %v16918_v36  ;;  %v7507_v39 = vadd.f32 %v7431_v60, %v16878_v5 }
 0x7b8   : > { %v7811_v1 = vpop.f32.mrf.mxu2  ;;  %v7840_v47 = vpop.f32.mrf.mxu3  ;;  %v7433_v43 = vadd.f32 %v16924_v11, %v16922_v12  ;;  %v518_v55 = vadd.f32 %v17268_v52, %v16972_v37 }
 0x7b9   : > { %v7941_v42 = vadd.f32 %v16958_v35, %v7919_v25  ;;  %7970 = vst [vmem:[%s16967_s18] sm:$0xff] %v7954_v18  ;;  %v7841_v27 = vadd.f32 %v7840_v47, %v7811_v1  ;;  %v7510_v18 = vadd.f32 %v7491_v58, %v16881_v40  ;;  %v17265_v1 = vld [vmem:[#allocation12_spill] sm:$0xff] }
 0x7ba   : > { %v556_v47 = vadd.f32 %v17265_v1, %v17258_v2  ;;  %v7441_v1 = vadd.f32 %v16946_v54, %v16944_v7 }
 0x7bb   : > { %v7957_v29 = vadd.f32 %v7941_v42, %v550_v46  ;;  %v7918_v22 = vadd.f32 %v7841_v27, %v7505_v59  ;;  %v17264_v46 = vld [vmem:[#allocation15_spill] sm:$0xff]  ;;  %v7494_v59 = vadd.f32 %v16928_v9, %v16926_v33  ;;  %v7436_v9 = vadd.f32 %v16932_v21, %v16930_v50 }
 0x7bc   : > { %v7872_v15 = vpop.f32.mrf.mxu0  ;;  %v7901_v31 = vpop.f32.mrf.mxu1  ;;  %v512_v36 = vadd.f32 %v17264_v46, %v16972_v37 }
 0x7bd   : > { %7973 = vst [vmem:[%s16967_s18 + $0x18] sm:$0xff] %v7957_v29  ;;  %v7902_v57 = vadd.f32 %v7901_v31, %v7872_v15  ;;  %v7940_v34 = vadd.f32 %v16975_v51, %v7918_v22  ;;  %v7509_v22 = vadd.f32 %v7433_v43, %v16884_v8 }
 0x7bf   : > { %v7921_v44 = vadd.f32 %v7902_v57, %v7508_v53  ;;  %v7956_v16 = vadd.f32 %v7940_v34, %v509_v38  ;;  %v7512_v57 = vadd.f32 %v7494_v59, %v16889_v26  ;;  %v17266_v38 = vld [vmem:[#allocation18_spill] sm:$0xff] }
 0x7c0   : > { %v7814_v63 = vpop.f32.mrf.mxu2  ;;  %v7843_v41 = vpop.f32.mrf.mxu3  ;;  %v515_v33 = vadd.f32 %v17266_v38, %v16972_v37  ;;  %v17272_v38 = vld [vmem:[#allocation23_spill] sm:$0xff] }
 0x7c1   : > { %v7943_v49 = vadd.f32 %v16958_v35, %v7921_v44  ;;  %7972 = vst [vmem:[%s16967_s18 + $0x10] sm:$0xff] %v7956_v16  ;;  %v7844_v61 = vadd.f32 %v7843_v41, %v7814_v63  ;;  %v17267_v44 = vld [vmem:[#allocation14_spill] sm:$0xff] }
 0x7c2   : > { %v559_v16 = vadd.f32 %v17267_v44, %v17258_v2 }
 0x7c3   : > { %v7959_v4 = vadd.f32 %v7943_v49, %v553_v20  ;;  %v7920_v14 = vadd.f32 %v7844_v61, %v7507_v39  ;;  %v7511_v49 = vadd.f32 %v7436_v9, %v16894_v28  ;;  %v7514_v61 = vadd.f32 %v7496_v32, %v16897_v0 }
 0x7c4   : > { %v7874_v13 = vpop.f32.mrf.mxu0  ;;  %v7903_v25 = vpop.f32.mrf.mxu1 }
 0x7c5   : > { %7975 = vst [vmem:[%s16967_s18 + $0x28] sm:$0xff] %v7959_v4  ;;  %v7904_v19 = vadd.f32 %v7903_v25, %v7874_v13  ;;  %v7942_v10 = vadd.f32 %v16975_v51, %v7920_v14  ;;  %v7438_v14 = vadd.f32 %v16940_v23, %v16938_v24  ;;  %v17270_v24 = vld [vmem:[#allocation21_spill] sm:$0xff] }
 0x7c6   : > { %v521_v23 = vadd.f32 %v17270_v24, %v16972_v37 }
 0x7c7   : > { %v7923_v5 = vadd.f32 %v7904_v19, %v7510_v18  ;;  %v7958_v42 = vadd.f32 %v7942_v10, %v512_v36  ;;  %v17269_v18 = vld [vmem:[#allocation16_spill] sm:$0xff]  ;;  %v7513_v43 = vadd.f32 %v7438_v14, %v16900_v6 }
 0x7c8   : > { %v7816_v27 = vpop.f32.mrf.mxu2  ;;  %v7845_v29 = vpop.f32.mrf.mxu3  ;;  %v562_v19 = vadd.f32 %v17269_v18, %v17258_v2 }
 0x7c9   : > { %v7945_v40 = vadd.f32 %v16958_v35, %v7923_v5  ;;  %7974 = vst [vmem:[%s16967_s18 + $0x20] sm:$0xff] %v7958_v42  ;;  %v7846_v15 = vadd.f32 %v7845_v29, %v7816_v27  ;;  %v7515_v29 = vadd.f32 %v7441_v1, %v16906_v48 }
 0x7cb   : > { %v7961_v12 = vadd.f32 %v7945_v40, %v556_v47  ;;  %v7922_v11 = vadd.f32 %v7846_v15, %v7509_v22  ;;  %v17271_v15 = vld [vmem:[#allocation22_spill] sm:$0xff] }
 0x7cc   : > { %v7877_v31 = vpop.f32.mrf.mxu0  ;;  %v7906_v53 = vpop.f32.mrf.mxu1 }
 0x7cd   : > { %7977 = vst [vmem:[%s16967_s18 + $0x38] sm:$0xff] %v7961_v12  ;;  %v7907_v17 = vadd.f32 %v7906_v53, %v7877_v31  ;;  %v7944_v60 = vadd.f32 %v16975_v51, %v7922_v11  ;;  %v524_v12 = vadd.f32 %v17271_v15, %v16972_v37  ;;  %v7443_v11 = vadd.f32 %v16952_v62, %v16950_v56 }
 0x7cf   : > { %v7925_v8 = vadd.f32 %v7907_v17, %v7512_v57  ;;  %v7960_v34 = vadd.f32 %v7944_v60, %v515_v33  ;;  %v7517_v57 = vadd.f32 %v7443_v11, %v16910_v45  ;;  %v527_v33 = vadd.f32 %v17272_v38, %v16972_v37  ;;  %v17273_v45 = vld [vmem:[#allocation19_spill] sm:$0xff] }
 0x7d0   : > { %v7819_v20 = vpop.f32.mrf.mxu2  ;;  %v7848_v58 = vpop.f32.mrf.mxu3 }
 0x7d1   : > { %v7947_v26 = vadd.f32 %v16958_v35, %v7925_v8  ;;  %7976 = vst [vmem:[%s16967_s18 + $0x30] sm:$0xff] %v7960_v34  ;;  %v7849_v63 = vadd.f32 %v7848_v58, %v7819_v20 }
 0x7d3   : > { %v7963_v50 = vadd.f32 %v7947_v26, %v559_v16  ;;  %v7924_v21 = vadd.f32 %v7849_v63, %v7511_v49 }
 0x7d4   : > { %v7879_v41 = vpop.f32.mrf.mxu0  ;;  %v7908_v39 = vpop.f32.mrf.mxu1 }
 0x7d5   : > { %7979 = vst [vmem:[%s16967_s18 + $0x48] sm:$0xff] %v7963_v50  ;;  %v7909_v4 = vadd.f32 %v7908_v39, %v7879_v41  ;;  %v7946_v28 = vadd.f32 %v16975_v51, %v7924_v21 }
 0x7d7   : > { %v7927_v13 = vadd.f32 %v7909_v4, %v7514_v61  ;;  %v7962_v25 = vadd.f32 %v7946_v28, %v518_v55 }
 0x7d8   : > { %v7821_v0 = vpop.f32.mrf.mxu2  ;;  %v7850_v36 = vpop.f32.mrf.mxu3 }
 0x7d9   : > { %v7949_v46 = vadd.f32 %v16958_v35, %v7927_v13  ;;  %7978 = vst [vmem:[%s16967_s18 + $0x40] sm:$0xff] %v7962_v25  ;;  %v7851_v10 = vadd.f32 %v7850_v36, %v7821_v0 }
 0x7db   : > { %v7965_v5 = vadd.f32 %v7949_v46, %v562_v19  ;;  %v7926_v42 = vadd.f32 %v7851_v10, %v7513_v43 }
 0x7dd   : > { %7981 = vst [vmem:[%s16967_s18 + $0x58] sm:$0xff] %v7965_v5  ;;  %v7948_v47 = vadd.f32 %v16975_v51, %v7926_v42 }
 0x7df   : > { %v7964_v59 = vadd.f32 %v7948_v47, %v521_v23 }
 0x7e0   : > { %v7824_v40 = vpop.f32.mrf.mxu2  ;;  %v7853_v27 = vpop.f32.mrf.mxu3 }
 0x7e1   : > { %7980 = vst [vmem:[%s16967_s18 + $0x50] sm:$0xff] %v7964_v59  ;;  %v7854_v6 = vadd.f32 %v7853_v27, %v7824_v40 }
 0x7e3   : > { %v7928_v22 = vadd.f32 %v7854_v6, %v7515_v29 }
 0x7e5   : > { %v7950_v7 = vadd.f32 %v16975_v51, %v7928_v22 }
 0x7e7   : > { %v7966_v54 = vadd.f32 %v7950_v7, %v524_v12 }
 0x7e8   : > { %v7826_v31 = vpop.f32.mrf.mxu2  ;;  %v7855_v53 = vpop.f32.mrf.mxu3 }
 0x7e9   : > { %7982 = vst [vmem:[%s16967_s18 + $0x60] sm:$0xff] %v7966_v54  ;;  %v7856_v48 = vadd.f32 %v7855_v53, %v7826_v31 }
 0x7eb   : > { %v7930_v17 = vadd.f32 %v7856_v48, %v7517_v57 }
 0x7ed   : > { %v7952_v9 = vadd.f32 %v16975_v51, %v7930_v17  ;;  %v17274_v51 = vld [vmem:[#allocation24_spill] sm:$0xff] }
 0x7ee   : > { %v568_v58 = vadd.f32 %v17274_v51, %v17258_v2 }
 0x7ef   : > { %v7968_v60 = vadd.f32 %v7952_v9, %v527_v33 }
 0x7f0   : > { %v7882_v8 = vpop.f32.mrf.mxu2  ;;  %v7911_v56 = vpop.f32.mrf.mxu3 }
 0x7f1   : > { %7984 = vst [vmem:[%s16967_s18 + $0x70] sm:$0xff] %v7968_v60  ;;  %v7912_v62 = vadd.f32 %v7911_v56, %v7882_v8 }
 0x7f3   : > { %v7929_v34 = vadd.f32 %v7912_v62, %v16942_v3 }
 0x7f5   : > { %v7951_v44 = vadd.f32 %v16958_v35, %v7929_v34 }
 0x7f7   : > { %v7967_v16 = vadd.f32 %v7951_v44, %v17273_v45 }
 0x7f8   : > { %v7884_v32 = vpop.f32.mrf.mxu2  ;;  %v7913_v26 = vpop.f32.mrf.mxu3 }
 0x7f9   : > { %7983 = vst [vmem:[%s16967_s18 + $0x68] sm:$0xff] %v7967_v16  ;;  %v7914_v20 = vadd.f32 %v7913_v26, %v7884_v32 }
 0x7fb   : > { %v7931_v37 = vadd.f32 %v7914_v20, %v16948_v30 }
 0x7fd   : > { %v7953_v49 = vadd.f32 %v16958_v35, %v7931_v37 }
 0x7ff   : > { %v7969_v63 = vadd.f32 %v7953_v49, %v568_v58 }
 0x801   : > { %7985 = vst [vmem:[%s16967_s18 + $0x78] sm:$0xff] %v7969_v63 }
 0x802 PF: > { %s23_s25 = sadd.s32 1, %s11004_s25  }
 0x803   : > { %p20_p4 = scmp.ge.s32.totalorder %s23_s25, 4  }
 0x805   :  { %22 = sbr.rel (!%p20_p4) target bundleno = 1 (0x1), region = 122 }

</bundles_post_ra>
